<compile_context>
chip_gen: v7x
topology: tpu7x:2x2x1
jax: 0.10.0
libtpu: 0.0.40
codegen_flags: <defaults>
</compile_context>

<pallas_src>
import jax
import jax.numpy as jnp
from jax import lax
from jax.experimental import pallas as pl
from jax.experimental.pallas import tpu as pltpu

H = 50              # GRU hidden dim (RNN_DIM)
HP = 64             # hidden padded on the contraction (sublane) axis
GP = 128            # per-gate lane slab (lane-aligned)
G3 = 3 * GP         # r|z|n gate slabs = 384 lanes
NUM_LAYERS = 6
L1, L2, L3, L4 = 25, 12, 6, 1


def gru_mlp_kernel(g0_ref, wi_ref, bcomb_ref, wh_ref, bhn_ref,
                   w1_ref, b1_ref, w2_ref, b2_ref, w34_ref, b34_ref,
                   out_ref, seq_ref, gates_ref):
    # g0_ref    : (T, B, 384) layer-0 input-gate terms (biases folded in)
    # wi_ref    : (5, 64, 384) input->gate weights for layers 1..5 (x @ W layout)
    # bcomb_ref : (5, 1, 384)  [bi_r+bh_r | bi_z+bh_z | bi_n] for layers 1..5
    # wh_ref    : (6, 64, 384) hidden->gate weights, fused r|z|n
    # bhn_ref   : (6, 1, 128)  hidden bias of the n gate (stays inside r*(...))
    # seq_ref   : (T, B, 64)   VMEM scratch: current layer's output sequence
    # gates_ref : (T, B, 384)  VMEM scratch: precomputed input-gate terms
    # out_ref   : (T*B, 1)
    T, B, _ = seq_ref.shape

    def run_layer(gsrc_ref, wh_l, bhn_row):
        # Hoist the (1,128)->(B,128) n-gate bias broadcast out of the time loop.
        bhn_b = jnp.broadcast_to(bhn_row, (B, GP))
        h = jnp.zeros((B, HP), jnp.float32)
        # T is static -> fully unrolled time loop, static seq/gates indices.
        for t in range(T):
            g = gsrc_ref[t]                                          # (B, 384)
            # Single fused hidden matmul for all three gates.
            hh = jnp.dot(h, wh_l, preferred_element_type=jnp.float32)
            # One sigmoid over the contiguous r|z slab (2*128 lanes).
            rz = jax.nn.sigmoid(g[:, :2 * GP] + hh[:, :2 * GP])
            r = rz[:, :GP]                                           # (B, 128)
            z = rz[:, GP:GP + HP]                                    # (B, 64)
            n = jnp.tanh(g[:, 2 * GP:] + r * (hh[:, 2 * GP:] + bhn_b))
            h = (1.0 - z) * n[:, :HP] + z * h                        # (B, 64)
            seq_ref[t] = h                                           # layer output

    # Layer 0: input-gate terms were precomputed in the wrapper (scalar input).
    run_layer(g0_ref, wh_ref[0], bhn_ref[0])

    # Layers 1..5: hoist the input-gate matmul over all T steps (off the chain).
    for layer in range(1, NUM_LAYERS):
        flat = seq_ref[...].reshape(T * B, HP)
        gi = jnp.dot(flat, wi_ref[layer - 1],
                     preferred_element_type=jnp.float32) + bcomb_ref[layer - 1]
        gates_ref[...] = gi.reshape(T, B, G3)
        run_layer(gates_ref, wh_ref[layer], bhn_ref[layer])

    # MLP head on all (t, b) positions at once; linear3/linear4 are folded.
    y = seq_ref[...].reshape(T * B, HP)
    y = jnp.maximum(
        jnp.dot(y, w1_ref[...], preferred_element_type=jnp.float32) + b1_ref[...], 0.0)
    y = jnp.maximum(
        jnp.dot(y, w2_ref[...], preferred_element_type=jnp.float32) + b2_ref[...], 0.0)
    y = jnp.sum(y * w34_ref[...], axis=-1, keepdims=True) + b34_ref[...]
    out_ref[...] = y


def pack_params(p):
    """Repack raw (PyTorch-layout) params into tile-aligned kernel slabs."""
    wh = jnp.zeros((NUM_LAYERS, HP, G3), jnp.float32)
    wi = jnp.zeros((NUM_LAYERS - 1, HP, G3), jnp.float32)
    for g in range(3):
        wh = wh.at[:, :H, g * GP:g * GP + H].set(p['wh'][:, g])
        wi = wi.at[:, :H, g * GP:g * GP + H].set(p['wi'][1:, g])

    bcomb = jnp.zeros((NUM_LAYERS - 1, 1, G3), jnp.float32)
    bcomb = bcomb.at[:, :, 0 * GP:0 * GP + H].set(p['bi'][1:, 0] + p['bh'][1:, 0])
    bcomb = bcomb.at[:, :, 1 * GP:1 * GP + H].set(p['bi'][1:, 1] + p['bh'][1:, 1])
    bcomb = bcomb.at[:, :, 2 * GP:2 * GP + H].set(p['bi'][1:, 2])

    # Layer 0 (input_size=1): only row 0 of the input weight is meaningful.
    wi0 = jnp.zeros((G3,), jnp.float32)
    bcomb0 = jnp.zeros((G3,), jnp.float32)
    for g in range(3):
        wi0 = wi0.at[g * GP:g * GP + H].set(p['wi'][0, g, 0, :])
    bcomb0 = bcomb0.at[0 * GP:0 * GP + H].set(p['bi'][0, 0, 0] + p['bh'][0, 0, 0])
    bcomb0 = bcomb0.at[1 * GP:1 * GP + H].set(p['bi'][0, 1, 0] + p['bh'][0, 1, 0])
    bcomb0 = bcomb0.at[2 * GP:2 * GP + H].set(p['bi'][0, 2, 0])

    bhn = jnp.zeros((NUM_LAYERS, 1, GP), jnp.float32)
    bhn = bhn.at[:, 0, :H].set(p['bh'][:, 2, 0, :])

    w1 = jnp.zeros((HP, GP), jnp.float32).at[:H, :L1].set(p['w1'])
    b1 = jnp.zeros((1, GP), jnp.float32).at[0, :L1].set(p['b1'][0])
    w2 = jnp.zeros((GP, GP), jnp.float32).at[:L1, :L2].set(p['w2'])
    b2 = jnp.zeros((1, GP), jnp.float32).at[0, :L2].set(p['b2'][0])
    # Fold Linear(12,6) and Linear(6,1): no activation between them.
    w34 = jnp.zeros((1, GP), jnp.float32).at[0, :L2].set((p['w3'] @ p['w4'])[:, 0])
    b34 = (p['b3'] @ p['w4'] + p['b4']).astype(jnp.float32)          # (1, 1)

    return dict(wi=wi, wh=wh, bcomb=bcomb, wi0=wi0, bcomb0=bcomb0, bhn=bhn,
                w1=w1, b1=b1, w2=w2, b2=b2, w34=w34, b34=b34)


def continus_model_forward(x, p):
    """x: (B, T, 1) float32, batch-first like the PyTorch module. Returns (B, T, 1)."""
    B, T, _ = x.shape
    kp = pack_params(p)

    # Layer-0 input-gate terms: rank-1 outer product of the scalar input with the
    # padded layer-0 input weight row, with the combined biases folded in.
    x_tb = jnp.transpose(x[:, :, 0])                                 # (T, B)
    g0 = x_tb[:, :, None] * kp['wi0'][None, None, :] + kp['bcomb0'][None, None, :]

    out_flat = pl.pallas_call(
        gru_mlp_kernel,
        out_shape=jax.ShapeDtypeStruct((T * B, 1), jnp.float32),
        in_specs=[pl.BlockSpec(memory_space=pltpu.MemorySpace.VMEM)] * 11,
        out_specs=pl.BlockSpec(memory_space=pltpu.MemorySpace.VMEM),
        scratch_shapes=[pltpu.VMEM((T, B, HP), jnp.float32),
                        pltpu.VMEM((T, B, G3), jnp.float32)],
    )(g0, kp['wi'], kp['bcomb'], kp['wh'], kp['bhn'],
      kp['w1'], kp['b1'], kp['w2'], kp['b2'], kp['w34'], kp['b34'])

    # (T*B, 1) time-major -> (B, T, 1) batch-first.
    return jnp.transpose(out_flat.reshape(T, B, 1), (1, 0, 2))


def init_params(key):
    """Deterministic synthetic parameters, shapes matching the PyTorch module."""
    ks = jax.random.split(key, 16)
    k_rnn = 1.0 / jnp.sqrt(H)

    # GRU weights, stored transposed so the math is x @ W (gate order r,z,n).
    wi = jnp.zeros((NUM_LAYERS, 3, H, H), jnp.float32)
    # layer 0 has input_size=1 -> only input row 0 is non-zero
    w_ih0 = jax.random.uniform(ks[0], (3, H), minval=-k_rnn, maxval=k_rnn)
    wi = wi.at[0, :, 0, :].set(w_ih0)
    wi = wi.at[1:].set(jax.random.uniform(ks[1], (NUM_LAYERS - 1, 3, H, H),
                                          minval=-k_rnn, maxval=k_rnn))
    wh = jax.random.uniform(ks[2], (NUM_LAYERS, 3, H, H), minval=-k_rnn, maxval=k_rnn)
    bi = jax.random.uniform(ks[3], (NUM_LAYERS, 3, 1, H), minval=-k_rnn, maxval=k_rnn)
    bh = jax.random.uniform(ks[4], (NUM_LAYERS, 3, 1, H), minval=-k_rnn, maxval=k_rnn)

    def lin(kw, kb, fan_in, fan_out):
        kk = 1.0 / jnp.sqrt(fan_in)
        w = jax.random.uniform(kw, (fan_in, fan_out), minval=-kk, maxval=kk)
        b = jax.random.uniform(kb, (1, fan_out), minval=-kk, maxval=kk)
        return w, b

    w1, b1 = lin(ks[5], ks[6], H, L1)
    w2, b2 = lin(ks[7], ks[8], L1, L2)
    w3, b3 = lin(ks[9], ks[10], L2, L3)
    w4, b4 = lin(ks[11], ks[12], L3, L4)

    return dict(wi=wi, wh=wh, bi=bi, bh=bh,
                w1=w1, b1=b1, w2=w2, b2=b2, w3=w3, b3=b3, w4=w4, b4=b4)


def ref_forward(x, p):
    """Pure-JAX reference (PyTorch GRU gate equations, gate order r,z,n)."""
    B, T, _ = x.shape
    seq = jnp.zeros((T, B, H), jnp.float32).at[:, :, 0].set(x[:, :, 0].T)
    for layer in range(NUM_LAYERS):
        h = jnp.zeros((B, H), jnp.float32)
        outs = []
        for t in range(T):
            x_t = seq[t]
            r = jax.nn.sigmoid(x_t @ p['wi'][layer, 0] + p['bi'][layer, 0]
                               + h @ p['wh'][layer, 0] + p['bh'][layer, 0])
            z = jax.nn.sigmoid(x_t @ p['wi'][layer, 1] + p['bi'][layer, 1]
                               + h @ p['wh'][layer, 1] + p['bh'][layer, 1])
            n = jnp.tanh(x_t @ p['wi'][layer, 2] + p['bi'][layer, 2]
                         + r * (h @ p['wh'][layer, 2] + p['bh'][layer, 2]))
            h = (1.0 - z) * n + z * h
            outs.append(h)
        seq = jnp.stack(outs, axis=0)
    y = seq.reshape(T * B, H)
    y = jnp.maximum(y @ p['w1'] + p['b1'], 0.0)
    y = jnp.maximum(y @ p['w2'] + p['b2'], 0.0)
    y = y @ p['w3'] + p['b3']
    y = y @ p['w4'] + p['b4']
    return jnp.transpose(y.reshape(T, B, 1), (1, 0, 2))


if __name__ == "__main__":
    key = jax.random.PRNGKey(0)
    pkey, xkey = jax.random.split(key)
    params = init_params(pkey)

    B, T = 2, 8                       # small shapes: batch=2, seq=8, feature=1
    x = jax.random.normal(xkey, (B, T, 1), jnp.float32)

    out = continus_model_forward(x, params)
    out = jax.block_until_ready(out)
    assert out.shape == (B, T, 1)

    ref = ref_forward(x, params)
    max_err = float(jnp.max(jnp.abs(out - ref)))
    assert max_err < 5e-4, f"mismatch vs reference: {max_err}"

    print("KERNEL_OK")
</pallas_src>

<mosaic_0001>
module attributes {stable_mosaic.version = 11 : i64} {
  func.func @gru_mlp_kernel(%arg0: memref<8x2x384xf32, #tpu.memory_space<vmem>>, %arg1: memref<5x64x384xf32, #tpu.memory_space<vmem>>, %arg2: memref<5x1x384xf32, #tpu.memory_space<vmem>>, %arg3: memref<6x64x384xf32, #tpu.memory_space<vmem>>, %arg4: memref<6x1x128xf32, #tpu.memory_space<vmem>>, %arg5: memref<64x128xf32, #tpu.memory_space<vmem>>, %arg6: memref<1x128xf32, #tpu.memory_space<vmem>>, %arg7: memref<128x128xf32, #tpu.memory_space<vmem>>, %arg8: memref<1x128xf32, #tpu.memory_space<vmem>>, %arg9: memref<1x128xf32, #tpu.memory_space<vmem>>, %arg10: memref<1x1xf32, #tpu.memory_space<vmem>>, %arg11: memref<16x1xf32, #tpu.memory_space<vmem>>, %arg12: memref<8x2x64xf32, #tpu.memory_space<vmem>>, %arg13: memref<8x2x384xf32, #tpu.memory_space<vmem>>) attributes {dimension_semantics = [], scalar_prefetch = 0 : i64, scratch_operands = 2 : i64, tpu.core_type = #tpu.core_type<tc>} {
    %c0 = arith.constant 0 : index
    %c0_0 = arith.constant 0 : index
    %c0_1 = arith.constant 0 : index
    %0 = vector.load %arg3[%c0, %c0_0, %c0_1] : memref<6x64x384xf32, #tpu.memory_space<vmem>>, vector<1x64x384xf32>
    %1 = vector.shape_cast %0 : vector<1x64x384xf32> to vector<64x384xf32>
    %c0_2 = arith.constant 0 : index
    %c0_3 = arith.constant 0 : index
    %c0_4 = arith.constant 0 : index
    %2 = vector.load %arg4[%c0_2, %c0_3, %c0_4] : memref<6x1x128xf32, #tpu.memory_space<vmem>>, vector<1x1x128xf32>
    %3 = vector.shape_cast %2 : vector<1x1x128xf32> to vector<1x128xf32>
    %4 = vector.shape_cast %3 : vector<1x128xf32> to vector<1x128xf32>
    %5 = vector.broadcast %4 : vector<1x128xf32> to vector<2x128xf32>
    %cst = arith.constant 0.000000e+00 : f32
    %6 = vector.broadcast %cst : f32 to vector<2x64xf32>
    %c0_5 = arith.constant 0 : index
    %c0_6 = arith.constant 0 : index
    %c0_7 = arith.constant 0 : index
    %7 = vector.load %arg0[%c0_5, %c0_6, %c0_7] : memref<8x2x384xf32, #tpu.memory_space<vmem>>, vector<1x2x384xf32>
    %8 = vector.shape_cast %7 : vector<1x2x384xf32> to vector<2x384xf32>
    %cst_8 = arith.constant dense<0.000000e+00> : vector<2x384xf32>
    %9 = tpu.matmul %6, %1, %cst_8 {dimension_numbers = #tpu.dot_dimension_numbers<[1], [0], [0], [1], [0, 0, 1, 1], [], []>} : vector<2x64xf32>, vector<64x384xf32>, vector<2x384xf32> -> vector<2x384xf32>
    %10 = vector.extract_strided_slice %8 {offsets = [0, 0], sizes = [2, 256], strides = [1, 1]} : vector<2x384xf32> to vector<2x256xf32>
    %11 = vector.extract_strided_slice %9 {offsets = [0, 0], sizes = [2, 256], strides = [1, 1]} : vector<2x384xf32> to vector<2x256xf32>
    %12 = arith.addf %10, %11 : vector<2x256xf32>
    %13 = arith.negf %12 : vector<2x256xf32>
    %14 = math.exp %13 : vector<2x256xf32>
    %cst_9 = arith.constant 1.000000e+00 : f32
    %15 = vector.broadcast %cst_9 : f32 to vector<2x256xf32>
    %16 = arith.addf %15, %14 : vector<2x256xf32>
    %17 = arith.divf %15, %16 : vector<2x256xf32>
    %18 = vector.extract_strided_slice %17 {offsets = [0, 0], sizes = [2, 128], strides = [1, 1]} : vector<2x256xf32> to vector<2x128xf32>
    %19 = vector.extract_strided_slice %17 {offsets = [0, 128], sizes = [2, 64], strides = [1, 1]} : vector<2x256xf32> to vector<2x64xf32>
    %20 = vector.extract_strided_slice %8 {offsets = [0, 256], sizes = [2, 128], strides = [1, 1]} : vector<2x384xf32> to vector<2x128xf32>
    %21 = vector.extract_strided_slice %9 {offsets = [0, 256], sizes = [2, 128], strides = [1, 1]} : vector<2x384xf32> to vector<2x128xf32>
    %22 = arith.addf %21, %5 : vector<2x128xf32>
    %23 = arith.mulf %18, %22 : vector<2x128xf32>
    %24 = arith.addf %20, %23 : vector<2x128xf32>
    %25 = math.tanh %24 : vector<2x128xf32>
    %cst_10 = arith.constant 1.000000e+00 : f32
    %26 = vector.broadcast %cst_10 : f32 to vector<2x64xf32>
    %27 = arith.subf %26, %19 : vector<2x64xf32>
    %28 = vector.extract_strided_slice %25 {offsets = [0, 0], sizes = [2, 64], strides = [1, 1]} : vector<2x128xf32> to vector<2x64xf32>
    %29 = arith.mulf %27, %28 : vector<2x64xf32>
    %30 = arith.mulf %19, %6 : vector<2x64xf32>
    %31 = arith.addf %29, %30 : vector<2x64xf32>
    %c0_11 = arith.constant 0 : index
    %c0_12 = arith.constant 0 : index
    %c0_13 = arith.constant 0 : index
    %32 = vector.load %arg12[%c0_11, %c0_12, %c0_13] : memref<8x2x64xf32, #tpu.memory_space<vmem>>, vector<1x2x64xf32>
    %33 = vector.shape_cast %32 : vector<1x2x64xf32> to vector<2x64xf32>
    %34 = vector.shape_cast %31 : vector<2x64xf32> to vector<1x2x64xf32>
    tpu.vector_store %arg12[%c0_11, %c0_12, %c0_13], %34 {strides = array<i32>} : memref<8x2x64xf32, #tpu.memory_space<vmem>>, vector<1x2x64xf32>,
    %c1 = arith.constant 1 : index
    %c0_14 = arith.constant 0 : index
    %c0_15 = arith.constant 0 : index
    %35 = vector.load %arg0[%c1, %c0_14, %c0_15] : memref<8x2x384xf32, #tpu.memory_space<vmem>>, vector<1x2x384xf32>
    %36 = vector.shape_cast %35 : vector<1x2x384xf32> to vector<2x384xf32>
    %cst_16 = arith.constant dense<0.000000e+00> : vector<2x384xf32>
    %37 = tpu.matmul %31, %1, %cst_16 {dimension_numbers = #tpu.dot_dimension_numbers<[1], [0], [0], [1], [0, 0, 1, 1], [], []>} : vector<2x64xf32>, vector<64x384xf32>, vector<2x384xf32> -> vector<2x384xf32>
    %38 = vector.extract_strided_slice %36 {offsets = [0, 0], sizes = [2, 256], strides = [1, 1]} : vector<2x384xf32> to vector<2x256xf32>
    %39 = vector.extract_strided_slice %37 {offsets = [0, 0], sizes = [2, 256], strides = [1, 1]} : vector<2x384xf32> to vector<2x256xf32>
    %40 = arith.addf %38, %39 : vector<2x256xf32>
    %41 = arith.negf %40 : vector<2x256xf32>
    %42 = math.exp %41 : vector<2x256xf32>
    %cst_17 = arith.constant 1.000000e+00 : f32
    %43 = vector.broadcast %cst_17 : f32 to vector<2x256xf32>
    %44 = arith.addf %43, %42 : vector<2x256xf32>
    %45 = arith.divf %43, %44 : vector<2x256xf32>
    %46 = vector.extract_strided_slice %45 {offsets = [0, 0], sizes = [2, 128], strides = [1, 1]} : vector<2x256xf32> to vector<2x128xf32>
    %47 = vector.extract_strided_slice %45 {offsets = [0, 128], sizes = [2, 64], strides = [1, 1]} : vector<2x256xf32> to vector<2x64xf32>
    %48 = vector.extract_strided_slice %36 {offsets = [0, 256], sizes = [2, 128], strides = [1, 1]} : vector<2x384xf32> to vector<2x128xf32>
    %49 = vector.extract_strided_slice %37 {offsets = [0, 256], sizes = [2, 128], strides = [1, 1]} : vector<2x384xf32> to vector<2x128xf32>
    %50 = arith.addf %49, %5 : vector<2x128xf32>
    %51 = arith.mulf %46, %50 : vector<2x128xf32>
    %52 = arith.addf %48, %51 : vector<2x128xf32>
    %53 = math.tanh %52 : vector<2x128xf32>
    %cst_18 = arith.constant 1.000000e+00 : f32
    %54 = vector.broadcast %cst_18 : f32 to vector<2x64xf32>
    %55 = arith.subf %54, %47 : vector<2x64xf32>
    %56 = vector.extract_strided_slice %53 {offsets = [0, 0], sizes = [2, 64], strides = [1, 1]} : vector<2x128xf32> to vector<2x64xf32>
    %57 = arith.mulf %55, %56 : vector<2x64xf32>
    %58 = arith.mulf %47, %31 : vector<2x64xf32>
    %59 = arith.addf %57, %58 : vector<2x64xf32>
    %c1_19 = arith.constant 1 : index
    %c0_20 = arith.constant 0 : index
    %c0_21 = arith.constant 0 : index
    %60 = vector.load %arg12[%c1_19, %c0_20, %c0_21] : memref<8x2x64xf32, #tpu.memory_space<vmem>>, vector<1x2x64xf32>
    %61 = vector.shape_cast %60 : vector<1x2x64xf32> to vector<2x64xf32>
    %62 = vector.shape_cast %59 : vector<2x64xf32> to vector<1x2x64xf32>
    tpu.vector_store %arg12[%c1_19, %c0_20, %c0_21], %62 {strides = array<i32>} : memref<8x2x64xf32, #tpu.memory_space<vmem>>, vector<1x2x64xf32>,
    %c2 = arith.constant 2 : index
    %c0_22 = arith.constant 0 : index
    %c0_23 = arith.constant 0 : index
    %63 = vector.load %arg0[%c2, %c0_22, %c0_23] : memref<8x2x384xf32, #tpu.memory_space<vmem>>, vector<1x2x384xf32>
    %64 = vector.shape_cast %63 : vector<1x2x384xf32> to vector<2x384xf32>
    %cst_24 = arith.constant dense<0.000000e+00> : vector<2x384xf32>
    %65 = tpu.matmul %59, %1, %cst_24 {dimension_numbers = #tpu.dot_dimension_numbers<[1], [0], [0], [1], [0, 0, 1, 1], [], []>} : vector<2x64xf32>, vector<64x384xf32>, vector<2x384xf32> -> vector<2x384xf32>
    %66 = vector.extract_strided_slice %64 {offsets = [0, 0], sizes = [2, 256], strides = [1, 1]} : vector<2x384xf32> to vector<2x256xf32>
    %67 = vector.extract_strided_slice %65 {offsets = [0, 0], sizes = [2, 256], strides = [1, 1]} : vector<2x384xf32> to vector<2x256xf32>
    %68 = arith.addf %66, %67 : vector<2x256xf32>
    %69 = arith.negf %68 : vector<2x256xf32>
    %70 = math.exp %69 : vector<2x256xf32>
    %cst_25 = arith.constant 1.000000e+00 : f32
    %71 = vector.broadcast %cst_25 : f32 to vector<2x256xf32>
    %72 = arith.addf %71, %70 : vector<2x256xf32>
    %73 = arith.divf %71, %72 : vector<2x256xf32>
    %74 = vector.extract_strided_slice %73 {offsets = [0, 0], sizes = [2, 128], strides = [1, 1]} : vector<2x256xf32> to vector<2x128xf32>
    %75 = vector.extract_strided_slice %73 {offsets = [0, 128], sizes = [2, 64], strides = [1, 1]} : vector<2x256xf32> to vector<2x64xf32>
    %76 = vector.extract_strided_slice %64 {offsets = [0, 256], sizes = [2, 128], strides = [1, 1]} : vector<2x384xf32> to vector<2x128xf32>
    %77 = vector.extract_strided_slice %65 {offsets = [0, 256], sizes = [2, 128], strides = [1, 1]} : vector<2x384xf32> to vector<2x128xf32>
    %78 = arith.addf %77, %5 : vector<2x128xf32>
    %79 = arith.mulf %74, %78 : vector<2x128xf32>
    %80 = arith.addf %76, %79 : vector<2x128xf32>
    %81 = math.tanh %80 : vector<2x128xf32>
    %cst_26 = arith.constant 1.000000e+00 : f32
    %82 = vector.broadcast %cst_26 : f32 to vector<2x64xf32>
    %83 = arith.subf %82, %75 : vector<2x64xf32>
    %84 = vector.extract_strided_slice %81 {offsets = [0, 0], sizes = [2, 64], strides = [1, 1]} : vector<2x128xf32> to vector<2x64xf32>
    %85 = arith.mulf %83, %84 : vector<2x64xf32>
    %86 = arith.mulf %75, %59 : vector<2x64xf32>
    %87 = arith.addf %85, %86 : vector<2x64xf32>
    %c2_27 = arith.constant 2 : index
    %c0_28 = arith.constant 0 : index
    %c0_29 = arith.constant 0 : index
    %88 = vector.load %arg12[%c2_27, %c0_28, %c0_29] : memref<8x2x64xf32, #tpu.memory_space<vmem>>, vector<1x2x64xf32>
    %89 = vector.shape_cast %88 : vector<1x2x64xf32> to vector<2x64xf32>
    %90 = vector.shape_cast %87 : vector<2x64xf32> to vector<1x2x64xf32>
    tpu.vector_store %arg12[%c2_27, %c0_28, %c0_29], %90 {strides = array<i32>} : memref<8x2x64xf32, #tpu.memory_space<vmem>>, vector<1x2x64xf32>,
    %c3 = arith.constant 3 : index
    %c0_30 = arith.constant 0 : index
    %c0_31 = arith.constant 0 : index
    %91 = vector.load %arg0[%c3, %c0_30, %c0_31] : memref<8x2x384xf32, #tpu.memory_space<vmem>>, vector<1x2x384xf32>
    %92 = vector.shape_cast %91 : vector<1x2x384xf32> to vector<2x384xf32>
    %cst_32 = arith.constant dense<0.000000e+00> : vector<2x384xf32>
    %93 = tpu.matmul %87, %1, %cst_32 {dimension_numbers = #tpu.dot_dimension_numbers<[1], [0], [0], [1], [0, 0, 1, 1], [], []>} : vector<2x64xf32>, vector<64x384xf32>, vector<2x384xf32> -> vector<2x384xf32>
    %94 = vector.extract_strided_slice %92 {offsets = [0, 0], sizes = [2, 256], strides = [1, 1]} : vector<2x384xf32> to vector<2x256xf32>
    %95 = vector.extract_strided_slice %93 {offsets = [0, 0], sizes = [2, 256], strides = [1, 1]} : vector<2x384xf32> to vector<2x256xf32>
    %96 = arith.addf %94, %95 : vector<2x256xf32>
    %97 = arith.negf %96 : vector<2x256xf32>
    %98 = math.exp %97 : vector<2x256xf32>
    %cst_33 = arith.constant 1.000000e+00 : f32
    %99 = vector.broadcast %cst_33 : f32 to vector<2x256xf32>
    %100 = arith.addf %99, %98 : vector<2x256xf32>
    %101 = arith.divf %99, %100 : vector<2x256xf32>
    %102 = vector.extract_strided_slice %101 {offsets = [0, 0], sizes = [2, 128], strides = [1, 1]} : vector<2x256xf32> to vector<2x128xf32>
    %103 = vector.extract_strided_slice %101 {offsets = [0, 128], sizes = [2, 64], strides = [1, 1]} : vector<2x256xf32> to vector<2x64xf32>
    %104 = vector.extract_strided_slice %92 {offsets = [0, 256], sizes = [2, 128], strides = [1, 1]} : vector<2x384xf32> to vector<2x128xf32>
    %105 = vector.extract_strided_slice %93 {offsets = [0, 256], sizes = [2, 128], strides = [1, 1]} : vector<2x384xf32> to vector<2x128xf32>
    %106 = arith.addf %105, %5 : vector<2x128xf32>
    %107 = arith.mulf %102, %106 : vector<2x128xf32>
    %108 = arith.addf %104, %107 : vector<2x128xf32>
    %109 = math.tanh %108 : vector<2x128xf32>
    %cst_34 = arith.constant 1.000000e+00 : f32
    %110 = vector.broadcast %cst_34 : f32 to vector<2x64xf32>
    %111 = arith.subf %110, %103 : vector<2x64xf32>
    %112 = vector.extract_strided_slice %109 {offsets = [0, 0], sizes = [2, 64], strides = [1, 1]} : vector<2x128xf32> to vector<2x64xf32>
    %113 = arith.mulf %111, %112 : vector<2x64xf32>
    %114 = arith.mulf %103, %87 : vector<2x64xf32>
    %115 = arith.addf %113, %114 : vector<2x64xf32>
    %c3_35 = arith.constant 3 : index
    %c0_36 = arith.constant 0 : index
    %c0_37 = arith.constant 0 : index
    %116 = vector.load %arg12[%c3_35, %c0_36, %c0_37] : memref<8x2x64xf32, #tpu.memory_space<vmem>>, vector<1x2x64xf32>
    %117 = vector.shape_cast %116 : vector<1x2x64xf32> to vector<2x64xf32>
    %118 = vector.shape_cast %115 : vector<2x64xf32> to vector<1x2x64xf32>
    tpu.vector_store %arg12[%c3_35, %c0_36, %c0_37], %118 {strides = array<i32>} : memref<8x2x64xf32, #tpu.memory_space<vmem>>, vector<1x2x64xf32>,
    %c4 = arith.constant 4 : index
    %c0_38 = arith.constant 0 : index
    %c0_39 = arith.constant 0 : index
    %119 = vector.load %arg0[%c4, %c0_38, %c0_39] : memref<8x2x384xf32, #tpu.memory_space<vmem>>, vector<1x2x384xf32>
    %120 = vector.shape_cast %119 : vector<1x2x384xf32> to vector<2x384xf32>
    %cst_40 = arith.constant dense<0.000000e+00> : vector<2x384xf32>
    %121 = tpu.matmul %115, %1, %cst_40 {dimension_numbers = #tpu.dot_dimension_numbers<[1], [0], [0], [1], [0, 0, 1, 1], [], []>} : vector<2x64xf32>, vector<64x384xf32>, vector<2x384xf32> -> vector<2x384xf32>
    %122 = vector.extract_strided_slice %120 {offsets = [0, 0], sizes = [2, 256], strides = [1, 1]} : vector<2x384xf32> to vector<2x256xf32>
    %123 = vector.extract_strided_slice %121 {offsets = [0, 0], sizes = [2, 256], strides = [1, 1]} : vector<2x384xf32> to vector<2x256xf32>
    %124 = arith.addf %122, %123 : vector<2x256xf32>
    %125 = arith.negf %124 : vector<2x256xf32>
    %126 = math.exp %125 : vector<2x256xf32>
    %cst_41 = arith.constant 1.000000e+00 : f32
    %127 = vector.broadcast %cst_41 : f32 to vector<2x256xf32>
    %128 = arith.addf %127, %126 : vector<2x256xf32>
    %129 = arith.divf %127, %128 : vector<2x256xf32>
    %130 = vector.extract_strided_slice %129 {offsets = [0, 0], sizes = [2, 128], strides = [1, 1]} : vector<2x256xf32> to vector<2x128xf32>
    %131 = vector.extract_strided_slice %129 {offsets = [0, 128], sizes = [2, 64], strides = [1, 1]} : vector<2x256xf32> to vector<2x64xf32>
    %132 = vector.extract_strided_slice %120 {offsets = [0, 256], sizes = [2, 128], strides = [1, 1]} : vector<2x384xf32> to vector<2x128xf32>
    %133 = vector.extract_strided_slice %121 {offsets = [0, 256], sizes = [2, 128], strides = [1, 1]} : vector<2x384xf32> to vector<2x128xf32>
    %134 = arith.addf %133, %5 : vector<2x128xf32>
    %135 = arith.mulf %130, %134 : vector<2x128xf32>
    %136 = arith.addf %132, %135 : vector<2x128xf32>
    %137 = math.tanh %136 : vector<2x128xf32>
    %cst_42 = arith.constant 1.000000e+00 : f32
    %138 = vector.broadcast %cst_42 : f32 to vector<2x64xf32>
    %139 = arith.subf %138, %131 : vector<2x64xf32>
    %140 = vector.extract_strided_slice %137 {offsets = [0, 0], sizes = [2, 64], strides = [1, 1]} : vector<2x128xf32> to vector<2x64xf32>
    %141 = arith.mulf %139, %140 : vector<2x64xf32>
    %142 = arith.mulf %131, %115 : vector<2x64xf32>
    %143 = arith.addf %141, %142 : vector<2x64xf32>
    %c4_43 = arith.constant 4 : index
    %c0_44 = arith.constant 0 : index
    %c0_45 = arith.constant 0 : index
    %144 = vector.load %arg12[%c4_43, %c0_44, %c0_45] : memref<8x2x64xf32, #tpu.memory_space<vmem>>, vector<1x2x64xf32>
    %145 = vector.shape_cast %144 : vector<1x2x64xf32> to vector<2x64xf32>
    %146 = vector.shape_cast %143 : vector<2x64xf32> to vector<1x2x64xf32>
    tpu.vector_store %arg12[%c4_43, %c0_44, %c0_45], %146 {strides = array<i32>} : memref<8x2x64xf32, #tpu.memory_space<vmem>>, vector<1x2x64xf32>,
    %c5 = arith.constant 5 : index
    %c0_46 = arith.constant 0 : index
    %c0_47 = arith.constant 0 : index
    %147 = vector.load %arg0[%c5, %c0_46, %c0_47] : memref<8x2x384xf32, #tpu.memory_space<vmem>>, vector<1x2x384xf32>
    %148 = vector.shape_cast %147 : vector<1x2x384xf32> to vector<2x384xf32>
    %cst_48 = arith.constant dense<0.000000e+00> : vector<2x384xf32>
    %149 = tpu.matmul %143, %1, %cst_48 {dimension_numbers = #tpu.dot_dimension_numbers<[1], [0], [0], [1], [0, 0, 1, 1], [], []>} : vector<2x64xf32>, vector<64x384xf32>, vector<2x384xf32> -> vector<2x384xf32>
    %150 = vector.extract_strided_slice %148 {offsets = [0, 0], sizes = [2, 256], strides = [1, 1]} : vector<2x384xf32> to vector<2x256xf32>
    %151 = vector.extract_strided_slice %149 {offsets = [0, 0], sizes = [2, 256], strides = [1, 1]} : vector<2x384xf32> to vector<2x256xf32>
    %152 = arith.addf %150, %151 : vector<2x256xf32>
    %153 = arith.negf %152 : vector<2x256xf32>
    %154 = math.exp %153 : vector<2x256xf32>
    %cst_49 = arith.constant 1.000000e+00 : f32
    %155 = vector.broadcast %cst_49 : f32 to vector<2x256xf32>
    %156 = arith.addf %155, %154 : vector<2x256xf32>
    %157 = arith.divf %155, %156 : vector<2x256xf32>
    %158 = vector.extract_strided_slice %157 {offsets = [0, 0], sizes = [2, 128], strides = [1, 1]} : vector<2x256xf32> to vector<2x128xf32>
    %159 = vector.extract_strided_slice %157 {offsets = [0, 128], sizes = [2, 64], strides = [1, 1]} : vector<2x256xf32> to vector<2x64xf32>
    %160 = vector.extract_strided_slice %148 {offsets = [0, 256], sizes = [2, 128], strides = [1, 1]} : vector<2x384xf32> to vector<2x128xf32>
    %161 = vector.extract_strided_slice %149 {offsets = [0, 256], sizes = [2, 128], strides = [1, 1]} : vector<2x384xf32> to vector<2x128xf32>
    %162 = arith.addf %161, %5 : vector<2x128xf32>
    %163 = arith.mulf %158, %162 : vector<2x128xf32>
    %164 = arith.addf %160, %163 : vector<2x128xf32>
    %165 = math.tanh %164 : vector<2x128xf32>
    %cst_50 = arith.constant 1.000000e+00 : f32
    %166 = vector.broadcast %cst_50 : f32 to vector<2x64xf32>
    %167 = arith.subf %166, %159 : vector<2x64xf32>
    %168 = vector.extract_strided_slice %165 {offsets = [0, 0], sizes = [2, 64], strides = [1, 1]} : vector<2x128xf32> to vector<2x64xf32>
    %169 = arith.mulf %167, %168 : vector<2x64xf32>
    %170 = arith.mulf %159, %143 : vector<2x64xf32>
    %171 = arith.addf %169, %170 : vector<2x64xf32>
    %c5_51 = arith.constant 5 : index
    %c0_52 = arith.constant 0 : index
    %c0_53 = arith.constant 0 : index
    %172 = vector.load %arg12[%c5_51, %c0_52, %c0_53] : memref<8x2x64xf32, #tpu.memory_space<vmem>>, vector<1x2x64xf32>
    %173 = vector.shape_cast %172 : vector<1x2x64xf32> to vector<2x64xf32>
    %174 = vector.shape_cast %171 : vector<2x64xf32> to vector<1x2x64xf32>
    tpu.vector_store %arg12[%c5_51, %c0_52, %c0_53], %174 {strides = array<i32>} : memref<8x2x64xf32, #tpu.memory_space<vmem>>, vector<1x2x64xf32>,
    %c6 = arith.constant 6 : index
    %c0_54 = arith.constant 0 : index
    %c0_55 = arith.constant 0 : index
    %175 = vector.load %arg0[%c6, %c0_54, %c0_55] : memref<8x2x384xf32, #tpu.memory_space<vmem>>, vector<1x2x384xf32>
    %176 = vector.shape_cast %175 : vector<1x2x384xf32> to vector<2x384xf32>
    %cst_56 = arith.constant dense<0.000000e+00> : vector<2x384xf32>
    %177 = tpu.matmul %171, %1, %cst_56 {dimension_numbers = #tpu.dot_dimension_numbers<[1], [0], [0], [1], [0, 0, 1, 1], [], []>} : vector<2x64xf32>, vector<64x384xf32>, vector<2x384xf32> -> vector<2x384xf32>
    %178 = vector.extract_strided_slice %176 {offsets = [0, 0], sizes = [2, 256], strides = [1, 1]} : vector<2x384xf32> to vector<2x256xf32>
    %179 = vector.extract_strided_slice %177 {offsets = [0, 0], sizes = [2, 256], strides = [1, 1]} : vector<2x384xf32> to vector<2x256xf32>
    %180 = arith.addf %178, %179 : vector<2x256xf32>
    %181 = arith.negf %180 : vector<2x256xf32>
    %182 = math.exp %181 : vector<2x256xf32>
    %cst_57 = arith.constant 1.000000e+00 : f32
    %183 = vector.broadcast %cst_57 : f32 to vector<2x256xf32>
    %184 = arith.addf %183, %182 : vector<2x256xf32>
    %185 = arith.divf %183, %184 : vector<2x256xf32>
    %186 = vector.extract_strided_slice %185 {offsets = [0, 0], sizes = [2, 128], strides = [1, 1]} : vector<2x256xf32> to vector<2x128xf32>
    %187 = vector.extract_strided_slice %185 {offsets = [0, 128], sizes = [2, 64], strides = [1, 1]} : vector<2x256xf32> to vector<2x64xf32>
    %188 = vector.extract_strided_slice %176 {offsets = [0, 256], sizes = [2, 128], strides = [1, 1]} : vector<2x384xf32> to vector<2x128xf32>
    %189 = vector.extract_strided_slice %177 {offsets = [0, 256], sizes = [2, 128], strides = [1, 1]} : vector<2x384xf32> to vector<2x128xf32>
    %190 = arith.addf %189, %5 : vector<2x128xf32>
    %191 = arith.mulf %186, %190 : vector<2x128xf32>
    %192 = arith.addf %188, %191 : vector<2x128xf32>
    %193 = math.tanh %192 : vector<2x128xf32>
    %cst_58 = arith.constant 1.000000e+00 : f32
    %194 = vector.broadcast %cst_58 : f32 to vector<2x64xf32>
    %195 = arith.subf %194, %187 : vector<2x64xf32>
    %196 = vector.extract_strided_slice %193 {offsets = [0, 0], sizes = [2, 64], strides = [1, 1]} : vector<2x128xf32> to vector<2x64xf32>
    %197 = arith.mulf %195, %196 : vector<2x64xf32>
    %198 = arith.mulf %187, %171 : vector<2x64xf32>
    %199 = arith.addf %197, %198 : vector<2x64xf32>
    %c6_59 = arith.constant 6 : index
    %c0_60 = arith.constant 0 : index
    %c0_61 = arith.constant 0 : index
    %200 = vector.load %arg12[%c6_59, %c0_60, %c0_61] : memref<8x2x64xf32, #tpu.memory_space<vmem>>, vector<1x2x64xf32>
    %201 = vector.shape_cast %200 : vector<1x2x64xf32> to vector<2x64xf32>
    %202 = vector.shape_cast %199 : vector<2x64xf32> to vector<1x2x64xf32>
    tpu.vector_store %arg12[%c6_59, %c0_60, %c0_61], %202 {strides = array<i32>} : memref<8x2x64xf32, #tpu.memory_space<vmem>>, vector<1x2x64xf32>,
    %c7 = arith.constant 7 : index
    %c0_62 = arith.constant 0 : index
    %c0_63 = arith.constant 0 : index
    %203 = vector.load %arg0[%c7, %c0_62, %c0_63] : memref<8x2x384xf32, #tpu.memory_space<vmem>>, vector<1x2x384xf32>
    %204 = vector.shape_cast %203 : vector<1x2x384xf32> to vector<2x384xf32>
    %cst_64 = arith.constant dense<0.000000e+00> : vector<2x384xf32>
    %205 = tpu.matmul %199, %1, %cst_64 {dimension_numbers = #tpu.dot_dimension_numbers<[1], [0], [0], [1], [0, 0, 1, 1], [], []>} : vector<2x64xf32>, vector<64x384xf32>, vector<2x384xf32> -> vector<2x384xf32>
    %206 = vector.extract_strided_slice %204 {offsets = [0, 0], sizes = [2, 256], strides = [1, 1]} : vector<2x384xf32> to vector<2x256xf32>
    %207 = vector.extract_strided_slice %205 {offsets = [0, 0], sizes = [2, 256], strides = [1, 1]} : vector<2x384xf32> to vector<2x256xf32>
    %208 = arith.addf %206, %207 : vector<2x256xf32>
    %209 = arith.negf %208 : vector<2x256xf32>
    %210 = math.exp %209 : vector<2x256xf32>
    %cst_65 = arith.constant 1.000000e+00 : f32
    %211 = vector.broadcast %cst_65 : f32 to vector<2x256xf32>
    %212 = arith.addf %211, %210 : vector<2x256xf32>
    %213 = arith.divf %211, %212 : vector<2x256xf32>
    %214 = vector.extract_strided_slice %213 {offsets = [0, 0], sizes = [2, 128], strides = [1, 1]} : vector<2x256xf32> to vector<2x128xf32>
    %215 = vector.extract_strided_slice %213 {offsets = [0, 128], sizes = [2, 64], strides = [1, 1]} : vector<2x256xf32> to vector<2x64xf32>
    %216 = vector.extract_strided_slice %204 {offsets = [0, 256], sizes = [2, 128], strides = [1, 1]} : vector<2x384xf32> to vector<2x128xf32>
    %217 = vector.extract_strided_slice %205 {offsets = [0, 256], sizes = [2, 128], strides = [1, 1]} : vector<2x384xf32> to vector<2x128xf32>
    %218 = arith.addf %217, %5 : vector<2x128xf32>
    %219 = arith.mulf %214, %218 : vector<2x128xf32>
    %220 = arith.addf %216, %219 : vector<2x128xf32>
    %221 = math.tanh %220 : vector<2x128xf32>
    %cst_66 = arith.constant 1.000000e+00 : f32
    %222 = vector.broadcast %cst_66 : f32 to vector<2x64xf32>
    %223 = arith.subf %222, %215 : vector<2x64xf32>
    %224 = vector.extract_strided_slice %221 {offsets = [0, 0], sizes = [2, 64], strides = [1, 1]} : vector<2x128xf32> to vector<2x64xf32>
    %225 = arith.mulf %223, %224 : vector<2x64xf32>
    %226 = arith.mulf %215, %199 : vector<2x64xf32>
    %227 = arith.addf %225, %226 : vector<2x64xf32>
    %c7_67 = arith.constant 7 : index
    %c0_68 = arith.constant 0 : index
    %c0_69 = arith.constant 0 : index
    %228 = vector.load %arg12[%c7_67, %c0_68, %c0_69] : memref<8x2x64xf32, #tpu.memory_space<vmem>>, vector<1x2x64xf32>
    %229 = vector.shape_cast %228 : vector<1x2x64xf32> to vector<2x64xf32>
    %230 = vector.shape_cast %227 : vector<2x64xf32> to vector<1x2x64xf32>
    tpu.vector_store %arg12[%c7_67, %c0_68, %c0_69], %230 {strides = array<i32>} : memref<8x2x64xf32, #tpu.memory_space<vmem>>, vector<1x2x64xf32>,
    %c0_70 = arith.constant 0 : index
    %c0_71 = arith.constant 0 : index
    %c0_72 = arith.constant 0 : index
    %231 = vector.load %arg12[%c0_70, %c0_71, %c0_72] : memref<8x2x64xf32, #tpu.memory_space<vmem>>, vector<8x2x64xf32>
    %232 = vector.shape_cast %231 : vector<8x2x64xf32> to vector<16x64xf32>
    %c0_73 = arith.constant 0 : index
    %c0_74 = arith.constant 0 : index
    %c0_75 = arith.constant 0 : index
    %233 = vector.load %arg1[%c0_73, %c0_74, %c0_75] : memref<5x64x384xf32, #tpu.memory_space<vmem>>, vector<1x64x384xf32>
    %234 = vector.shape_cast %233 : vector<1x64x384xf32> to vector<64x384xf32>
    %cst_76 = arith.constant dense<0.000000e+00> : vector<16x384xf32>
    %235 = tpu.matmul %232, %234, %cst_76 {dimension_numbers = #tpu.dot_dimension_numbers<[1], [0], [0], [1], [0, 0, 1, 1], [], []>} : vector<16x64xf32>, vector<64x384xf32>, vector<16x384xf32> -> vector<16x384xf32>
    %c0_77 = arith.constant 0 : index
    %c0_78 = arith.constant 0 : index
    %c0_79 = arith.constant 0 : index
    %236 = vector.load %arg2[%c0_77, %c0_78, %c0_79] : memref<5x1x384xf32, #tpu.memory_space<vmem>>, vector<1x1x384xf32>
    %237 = vector.shape_cast %236 : vector<1x1x384xf32> to vector<1x384xf32>
    %238 = vector.broadcast %237 : vector<1x384xf32> to vector<16x384xf32>
    %239 = arith.addf %235, %238 : vector<16x384xf32>
    %240 = vector.shape_cast %239 : vector<16x384xf32> to vector<8x2x384xf32>
    %c0_80 = arith.constant 0 : index
    %c0_81 = arith.constant 0 : index
    %c0_82 = arith.constant 0 : index
    %241 = vector.load %arg13[%c0_80, %c0_81, %c0_82] : memref<8x2x384xf32, #tpu.memory_space<vmem>>, vector<8x2x384xf32>
    tpu.vector_store %arg13[%c0_80, %c0_81, %c0_82], %240 {strides = array<i32>} : memref<8x2x384xf32, #tpu.memory_space<vmem>>, vector<8x2x384xf32>,
    %c1_83 = arith.constant 1 : index
    %c0_84 = arith.constant 0 : index
    %c0_85 = arith.constant 0 : index
    %242 = vector.load %arg3[%c1_83, %c0_84, %c0_85] : memref<6x64x384xf32, #tpu.memory_space<vmem>>, vector<1x64x384xf32>
    %243 = vector.shape_cast %242 : vector<1x64x384xf32> to vector<64x384xf32>
    %c1_86 = arith.constant 1 : index
    %c0_87 = arith.constant 0 : index
    %c0_88 = arith.constant 0 : index
    %244 = vector.load %arg4[%c1_86, %c0_87, %c0_88] : memref<6x1x128xf32, #tpu.memory_space<vmem>>, vector<1x1x128xf32>
    %245 = vector.shape_cast %244 : vector<1x1x128xf32> to vector<1x128xf32>
    %246 = vector.shape_cast %245 : vector<1x128xf32> to vector<1x128xf32>
    %247 = vector.broadcast %246 : vector<1x128xf32> to vector<2x128xf32>
    %cst_89 = arith.constant 0.000000e+00 : f32
    %248 = vector.broadcast %cst_89 : f32 to vector<2x64xf32>
    %c0_90 = arith.constant 0 : index
    %c0_91 = arith.constant 0 : index
    %c0_92 = arith.constant 0 : index
    %249 = vector.load %arg13[%c0_90, %c0_91, %c0_92] : memref<8x2x384xf32, #tpu.memory_space<vmem>>, vector<1x2x384xf32>
    %250 = vector.shape_cast %249 : vector<1x2x384xf32> to vector<2x384xf32>
    %cst_93 = arith.constant dense<0.000000e+00> : vector<2x384xf32>
    %251 = tpu.matmul %248, %243, %cst_93 {dimension_numbers = #tpu.dot_dimension_numbers<[1], [0], [0], [1], [0, 0, 1, 1], [], []>} : vector<2x64xf32>, vector<64x384xf32>, vector<2x384xf32> -> vector<2x384xf32>
    %252 = vector.extract_strided_slice %250 {offsets = [0, 0], sizes = [2, 256], strides = [1, 1]} : vector<2x384xf32> to vector<2x256xf32>
    %253 = vector.extract_strided_slice %251 {offsets = [0, 0], sizes = [2, 256], strides = [1, 1]} : vector<2x384xf32> to vector<2x256xf32>
    %254 = arith.addf %252, %253 : vector<2x256xf32>
    %255 = arith.negf %254 : vector<2x256xf32>
    %256 = math.exp %255 : vector<2x256xf32>
    %cst_94 = arith.constant 1.000000e+00 : f32
    %257 = vector.broadcast %cst_94 : f32 to vector<2x256xf32>
    %258 = arith.addf %257, %256 : vector<2x256xf32>
    %259 = arith.divf %257, %258 : vector<2x256xf32>
    %260 = vector.extract_strided_slice %259 {offsets = [0, 0], sizes = [2, 128], strides = [1, 1]} : vector<2x256xf32> to vector<2x128xf32>
    %261 = vector.extract_strided_slice %259 {offsets = [0, 128], sizes = [2, 64], strides = [1, 1]} : vector<2x256xf32> to vector<2x64xf32>
    %262 = vector.extract_strided_slice %250 {offsets = [0, 256], sizes = [2, 128], strides = [1, 1]} : vector<2x384xf32> to vector<2x128xf32>
    %263 = vector.extract_strided_slice %251 {offsets = [0, 256], sizes = [2, 128], strides = [1, 1]} : vector<2x384xf32> to vector<2x128xf32>
    %264 = arith.addf %263, %247 : vector<2x128xf32>
    %265 = arith.mulf %260, %264 : vector<2x128xf32>
    %266 = arith.addf %262, %265 : vector<2x128xf32>
    %267 = math.tanh %266 : vector<2x128xf32>
    %cst_95 = arith.constant 1.000000e+00 : f32
    %268 = vector.broadcast %cst_95 : f32 to vector<2x64xf32>
    %269 = arith.subf %268, %261 : vector<2x64xf32>
    %270 = vector.extract_strided_slice %267 {offsets = [0, 0], sizes = [2, 64], strides = [1, 1]} : vector<2x128xf32> to vector<2x64xf32>
    %271 = arith.mulf %269, %270 : vector<2x64xf32>
    %272 = arith.mulf %261, %248 : vector<2x64xf32>
    %273 = arith.addf %271, %272 : vector<2x64xf32>
    %c0_96 = arith.constant 0 : index
    %c0_97 = arith.constant 0 : index
    %c0_98 = arith.constant 0 : index
    %274 = vector.load %arg12[%c0_96, %c0_97, %c0_98] : memref<8x2x64xf32, #tpu.memory_space<vmem>>, vector<1x2x64xf32>
    %275 = vector.shape_cast %274 : vector<1x2x64xf32> to vector<2x64xf32>
    %276 = vector.shape_cast %273 : vector<2x64xf32> to vector<1x2x64xf32>
    tpu.vector_store %arg12[%c0_96, %c0_97, %c0_98], %276 {strides = array<i32>} : memref<8x2x64xf32, #tpu.memory_space<vmem>>, vector<1x2x64xf32>,
    %c1_99 = arith.constant 1 : index
    %c0_100 = arith.constant 0 : index
    %c0_101 = arith.constant 0 : index
    %277 = vector.load %arg13[%c1_99, %c0_100, %c0_101] : memref<8x2x384xf32, #tpu.memory_space<vmem>>, vector<1x2x384xf32>
    %278 = vector.shape_cast %277 : vector<1x2x384xf32> to vector<2x384xf32>
    %cst_102 = arith.constant dense<0.000000e+00> : vector<2x384xf32>
    %279 = tpu.matmul %273, %243, %cst_102 {dimension_numbers = #tpu.dot_dimension_numbers<[1], [0], [0], [1], [0, 0, 1, 1], [], []>} : vector<2x64xf32>, vector<64x384xf32>, vector<2x384xf32> -> vector<2x384xf32>
    %280 = vector.extract_strided_slice %278 {offsets = [0, 0], sizes = [2, 256], strides = [1, 1]} : vector<2x384xf32> to vector<2x256xf32>
    %281 = vector.extract_strided_slice %279 {offsets = [0, 0], sizes = [2, 256], strides = [1, 1]} : vector<2x384xf32> to vector<2x256xf32>
    %282 = arith.addf %280, %281 : vector<2x256xf32>
    %283 = arith.negf %282 : vector<2x256xf32>
    %284 = math.exp %283 : vector<2x256xf32>
    %cst_103 = arith.constant 1.000000e+00 : f32
    %285 = vector.broadcast %cst_103 : f32 to vector<2x256xf32>
    %286 = arith.addf %285, %284 : vector<2x256xf32>
    %287 = arith.divf %285, %286 : vector<2x256xf32>
    %288 = vector.extract_strided_slice %287 {offsets = [0, 0], sizes = [2, 128], strides = [1, 1]} : vector<2x256xf32> to vector<2x128xf32>
    %289 = vector.extract_strided_slice %287 {offsets = [0, 128], sizes = [2, 64], strides = [1, 1]} : vector<2x256xf32> to vector<2x64xf32>
    %290 = vector.extract_strided_slice %278 {offsets = [0, 256], sizes = [2, 128], strides = [1, 1]} : vector<2x384xf32> to vector<2x128xf32>
    %291 = vector.extract_strided_slice %279 {offsets = [0, 256], sizes = [2, 128], strides = [1, 1]} : vector<2x384xf32> to vector<2x128xf32>
    %292 = arith.addf %291, %247 : vector<2x128xf32>
    %293 = arith.mulf %288, %292 : vector<2x128xf32>
    %294 = arith.addf %290, %293 : vector<2x128xf32>
    %295 = math.tanh %294 : vector<2x128xf32>
    %cst_104 = arith.constant 1.000000e+00 : f32
    %296 = vector.broadcast %cst_104 : f32 to vector<2x64xf32>
    %297 = arith.subf %296, %289 : vector<2x64xf32>
    %298 = vector.extract_strided_slice %295 {offsets = [0, 0], sizes = [2, 64], strides = [1, 1]} : vector<2x128xf32> to vector<2x64xf32>
    %299 = arith.mulf %297, %298 : vector<2x64xf32>
    %300 = arith.mulf %289, %273 : vector<2x64xf32>
    %301 = arith.addf %299, %300 : vector<2x64xf32>
    %c1_105 = arith.constant 1 : index
    %c0_106 = arith.constant 0 : index
    %c0_107 = arith.constant 0 : index
    %302 = vector.load %arg12[%c1_105, %c0_106, %c0_107] : memref<8x2x64xf32, #tpu.memory_space<vmem>>, vector<1x2x64xf32>
    %303 = vector.shape_cast %302 : vector<1x2x64xf32> to vector<2x64xf32>
    %304 = vector.shape_cast %301 : vector<2x64xf32> to vector<1x2x64xf32>
    tpu.vector_store %arg12[%c1_105, %c0_106, %c0_107], %304 {strides = array<i32>} : memref<8x2x64xf32, #tpu.memory_space<vmem>>, vector<1x2x64xf32>,
    %c2_108 = arith.constant 2 : index
    %c0_109 = arith.constant 0 : index
    %c0_110 = arith.constant 0 : index
    %305 = vector.load %arg13[%c2_108, %c0_109, %c0_110] : memref<8x2x384xf32, #tpu.memory_space<vmem>>, vector<1x2x384xf32>
    %306 = vector.shape_cast %305 : vector<1x2x384xf32> to vector<2x384xf32>
    %cst_111 = arith.constant dense<0.000000e+00> : vector<2x384xf32>
    %307 = tpu.matmul %301, %243, %cst_111 {dimension_numbers = #tpu.dot_dimension_numbers<[1], [0], [0], [1], [0, 0, 1, 1], [], []>} : vector<2x64xf32>, vector<64x384xf32>, vector<2x384xf32> -> vector<2x384xf32>
    %308 = vector.extract_strided_slice %306 {offsets = [0, 0], sizes = [2, 256], strides = [1, 1]} : vector<2x384xf32> to vector<2x256xf32>
    %309 = vector.extract_strided_slice %307 {offsets = [0, 0], sizes = [2, 256], strides = [1, 1]} : vector<2x384xf32> to vector<2x256xf32>
    %310 = arith.addf %308, %309 : vector<2x256xf32>
    %311 = arith.negf %310 : vector<2x256xf32>
    %312 = math.exp %311 : vector<2x256xf32>
    %cst_112 = arith.constant 1.000000e+00 : f32
    %313 = vector.broadcast %cst_112 : f32 to vector<2x256xf32>
    %314 = arith.addf %313, %312 : vector<2x256xf32>
    %315 = arith.divf %313, %314 : vector<2x256xf32>
    %316 = vector.extract_strided_slice %315 {offsets = [0, 0], sizes = [2, 128], strides = [1, 1]} : vector<2x256xf32> to vector<2x128xf32>
    %317 = vector.extract_strided_slice %315 {offsets = [0, 128], sizes = [2, 64], strides = [1, 1]} : vector<2x256xf32> to vector<2x64xf32>
    %318 = vector.extract_strided_slice %306 {offsets = [0, 256], sizes = [2, 128], strides = [1, 1]} : vector<2x384xf32> to vector<2x128xf32>
    %319 = vector.extract_strided_slice %307 {offsets = [0, 256], sizes = [2, 128], strides = [1, 1]} : vector<2x384xf32> to vector<2x128xf32>
    %320 = arith.addf %319, %247 : vector<2x128xf32>
    %321 = arith.mulf %316, %320 : vector<2x128xf32>
    %322 = arith.addf %318, %321 : vector<2x128xf32>
    %323 = math.tanh %322 : vector<2x128xf32>
    %cst_113 = arith.constant 1.000000e+00 : f32
    %324 = vector.broadcast %cst_113 : f32 to vector<2x64xf32>
    %325 = arith.subf %324, %317 : vector<2x64xf32>
    %326 = vector.extract_strided_slice %323 {offsets = [0, 0], sizes = [2, 64], strides = [1, 1]} : vector<2x128xf32> to vector<2x64xf32>
    %327 = arith.mulf %325, %326 : vector<2x64xf32>
    %328 = arith.mulf %317, %301 : vector<2x64xf32>
    %329 = arith.addf %327, %328 : vector<2x64xf32>
    %c2_114 = arith.constant 2 : index
    %c0_115 = arith.constant 0 : index
    %c0_116 = arith.constant 0 : index
    %330 = vector.load %arg12[%c2_114, %c0_115, %c0_116] : memref<8x2x64xf32, #tpu.memory_space<vmem>>, vector<1x2x64xf32>
    %331 = vector.shape_cast %330 : vector<1x2x64xf32> to vector<2x64xf32>
    %332 = vector.shape_cast %329 : vector<2x64xf32> to vector<1x2x64xf32>
    tpu.vector_store %arg12[%c2_114, %c0_115, %c0_116], %332 {strides = array<i32>} : memref<8x2x64xf32, #tpu.memory_space<vmem>>, vector<1x2x64xf32>,
    %c3_117 = arith.constant 3 : index
    %c0_118 = arith.constant 0 : index
    %c0_119 = arith.constant 0 : index
    %333 = vector.load %arg13[%c3_117, %c0_118, %c0_119] : memref<8x2x384xf32, #tpu.memory_space<vmem>>, vector<1x2x384xf32>
    %334 = vector.shape_cast %333 : vector<1x2x384xf32> to vector<2x384xf32>
    %cst_120 = arith.constant dense<0.000000e+00> : vector<2x384xf32>
    %335 = tpu.matmul %329, %243, %cst_120 {dimension_numbers = #tpu.dot_dimension_numbers<[1], [0], [0], [1], [0, 0, 1, 1], [], []>} : vector<2x64xf32>, vector<64x384xf32>, vector<2x384xf32> -> vector<2x384xf32>
    %336 = vector.extract_strided_slice %334 {offsets = [0, 0], sizes = [2, 256], strides = [1, 1]} : vector<2x384xf32> to vector<2x256xf32>
    %337 = vector.extract_strided_slice %335 {offsets = [0, 0], sizes = [2, 256], strides = [1, 1]} : vector<2x384xf32> to vector<2x256xf32>
    %338 = arith.addf %336, %337 : vector<2x256xf32>
    %339 = arith.negf %338 : vector<2x256xf32>
    %340 = math.exp %339 : vector<2x256xf32>
    %cst_121 = arith.constant 1.000000e+00 : f32
    %341 = vector.broadcast %cst_121 : f32 to vector<2x256xf32>
    %342 = arith.addf %341, %340 : vector<2x256xf32>
    %343 = arith.divf %341, %342 : vector<2x256xf32>
    %344 = vector.extract_strided_slice %343 {offsets = [0, 0], sizes = [2, 128], strides = [1, 1]} : vector<2x256xf32> to vector<2x128xf32>
    %345 = vector.extract_strided_slice %343 {offsets = [0, 128], sizes = [2, 64], strides = [1, 1]} : vector<2x256xf32> to vector<2x64xf32>
    %346 = vector.extract_strided_slice %334 {offsets = [0, 256], sizes = [2, 128], strides = [1, 1]} : vector<2x384xf32> to vector<2x128xf32>
    %347 = vector.extract_strided_slice %335 {offsets = [0, 256], sizes = [2, 128], strides = [1, 1]} : vector<2x384xf32> to vector<2x128xf32>
    %348 = arith.addf %347, %247 : vector<2x128xf32>
    %349 = arith.mulf %344, %348 : vector<2x128xf32>
    %350 = arith.addf %346, %349 : vector<2x128xf32>
    %351 = math.tanh %350 : vector<2x128xf32>
    %cst_122 = arith.constant 1.000000e+00 : f32
    %352 = vector.broadcast %cst_122 : f32 to vector<2x64xf32>
    %353 = arith.subf %352, %345 : vector<2x64xf32>
    %354 = vector.extract_strided_slice %351 {offsets = [0, 0], sizes = [2, 64], strides = [1, 1]} : vector<2x128xf32> to vector<2x64xf32>
    %355 = arith.mulf %353, %354 : vector<2x64xf32>
    %356 = arith.mulf %345, %329 : vector<2x64xf32>
    %357 = arith.addf %355, %356 : vector<2x64xf32>
    %c3_123 = arith.constant 3 : index
    %c0_124 = arith.constant 0 : index
    %c0_125 = arith.constant 0 : index
    %358 = vector.load %arg12[%c3_123, %c0_124, %c0_125] : memref<8x2x64xf32, #tpu.memory_space<vmem>>, vector<1x2x64xf32>
    %359 = vector.shape_cast %358 : vector<1x2x64xf32> to vector<2x64xf32>
    %360 = vector.shape_cast %357 : vector<2x64xf32> to vector<1x2x64xf32>
    tpu.vector_store %arg12[%c3_123, %c0_124, %c0_125], %360 {strides = array<i32>} : memref<8x2x64xf32, #tpu.memory_space<vmem>>, vector<1x2x64xf32>,
    %c4_126 = arith.constant 4 : index
    %c0_127 = arith.constant 0 : index
    %c0_128 = arith.constant 0 : index
    %361 = vector.load %arg13[%c4_126, %c0_127, %c0_128] : memref<8x2x384xf32, #tpu.memory_space<vmem>>, vector<1x2x384xf32>
    %362 = vector.shape_cast %361 : vector<1x2x384xf32> to vector<2x384xf32>
    %cst_129 = arith.constant dense<0.000000e+00> : vector<2x384xf32>
    %363 = tpu.matmul %357, %243, %cst_129 {dimension_numbers = #tpu.dot_dimension_numbers<[1], [0], [0], [1], [0, 0, 1, 1], [], []>} : vector<2x64xf32>, vector<64x384xf32>, vector<2x384xf32> -> vector<2x384xf32>
    %364 = vector.extract_strided_slice %362 {offsets = [0, 0], sizes = [2, 256], strides = [1, 1]} : vector<2x384xf32> to vector<2x256xf32>
    %365 = vector.extract_strided_slice %363 {offsets = [0, 0], sizes = [2, 256], strides = [1, 1]} : vector<2x384xf32> to vector<2x256xf32>
    %366 = arith.addf %364, %365 : vector<2x256xf32>
    %367 = arith.negf %366 : vector<2x256xf32>
    %368 = math.exp %367 : vector<2x256xf32>
    %cst_130 = arith.constant 1.000000e+00 : f32
    %369 = vector.broadcast %cst_130 : f32 to vector<2x256xf32>
    %370 = arith.addf %369, %368 : vector<2x256xf32>
    %371 = arith.divf %369, %370 : vector<2x256xf32>
    %372 = vector.extract_strided_slice %371 {offsets = [0, 0], sizes = [2, 128], strides = [1, 1]} : vector<2x256xf32> to vector<2x128xf32>
    %373 = vector.extract_strided_slice %371 {offsets = [0, 128], sizes = [2, 64], strides = [1, 1]} : vector<2x256xf32> to vector<2x64xf32>
    %374 = vector.extract_strided_slice %362 {offsets = [0, 256], sizes = [2, 128], strides = [1, 1]} : vector<2x384xf32> to vector<2x128xf32>
    %375 = vector.extract_strided_slice %363 {offsets = [0, 256], sizes = [2, 128], strides = [1, 1]} : vector<2x384xf32> to vector<2x128xf32>
    %376 = arith.addf %375, %247 : vector<2x128xf32>
    %377 = arith.mulf %372, %376 : vector<2x128xf32>
    %378 = arith.addf %374, %377 : vector<2x128xf32>
    %379 = math.tanh %378 : vector<2x128xf32>
    %cst_131 = arith.constant 1.000000e+00 : f32
    %380 = vector.broadcast %cst_131 : f32 to vector<2x64xf32>
    %381 = arith.subf %380, %373 : vector<2x64xf32>
    %382 = vector.extract_strided_slice %379 {offsets = [0, 0], sizes = [2, 64], strides = [1, 1]} : vector<2x128xf32> to vector<2x64xf32>
    %383 = arith.mulf %381, %382 : vector<2x64xf32>
    %384 = arith.mulf %373, %357 : vector<2x64xf32>
    %385 = arith.addf %383, %384 : vector<2x64xf32>
    %c4_132 = arith.constant 4 : index
    %c0_133 = arith.constant 0 : index
    %c0_134 = arith.constant 0 : index
    %386 = vector.load %arg12[%c4_132, %c0_133, %c0_134] : memref<8x2x64xf32, #tpu.memory_space<vmem>>, vector<1x2x64xf32>
    %387 = vector.shape_cast %386 : vector<1x2x64xf32> to vector<2x64xf32>
    %388 = vector.shape_cast %385 : vector<2x64xf32> to vector<1x2x64xf32>
    tpu.vector_store %arg12[%c4_132, %c0_133, %c0_134], %388 {strides = array<i32>} : memref<8x2x64xf32, #tpu.memory_space<vmem>>, vector<1x2x64xf32>,
    %c5_135 = arith.constant 5 : index
    %c0_136 = arith.constant 0 : index
    %c0_137 = arith.constant 0 : index
    %389 = vector.load %arg13[%c5_135, %c0_136, %c0_137] : memref<8x2x384xf32, #tpu.memory_space<vmem>>, vector<1x2x384xf32>
    %390 = vector.shape_cast %389 : vector<1x2x384xf32> to vector<2x384xf32>
    %cst_138 = arith.constant dense<0.000000e+00> : vector<2x384xf32>
    %391 = tpu.matmul %385, %243, %cst_138 {dimension_numbers = #tpu.dot_dimension_numbers<[1], [0], [0], [1], [0, 0, 1, 1], [], []>} : vector<2x64xf32>, vector<64x384xf32>, vector<2x384xf32> -> vector<2x384xf32>
    %392 = vector.extract_strided_slice %390 {offsets = [0, 0], sizes = [2, 256], strides = [1, 1]} : vector<2x384xf32> to vector<2x256xf32>
    %393 = vector.extract_strided_slice %391 {offsets = [0, 0], sizes = [2, 256], strides = [1, 1]} : vector<2x384xf32> to vector<2x256xf32>
    %394 = arith.addf %392, %393 : vector<2x256xf32>
    %395 = arith.negf %394 : vector<2x256xf32>
    %396 = math.exp %395 : vector<2x256xf32>
    %cst_139 = arith.constant 1.000000e+00 : f32
    %397 = vector.broadcast %cst_139 : f32 to vector<2x256xf32>
    %398 = arith.addf %397, %396 : vector<2x256xf32>
    %399 = arith.divf %397, %398 : vector<2x256xf32>
    %400 = vector.extract_strided_slice %399 {offsets = [0, 0], sizes = [2, 128], strides = [1, 1]} : vector<2x256xf32> to vector<2x128xf32>
    %401 = vector.extract_strided_slice %399 {offsets = [0, 128], sizes = [2, 64], strides = [1, 1]} : vector<2x256xf32> to vector<2x64xf32>
    %402 = vector.extract_strided_slice %390 {offsets = [0, 256], sizes = [2, 128], strides = [1, 1]} : vector<2x384xf32> to vector<2x128xf32>
    %403 = vector.extract_strided_slice %391 {offsets = [0, 256], sizes = [2, 128], strides = [1, 1]} : vector<2x384xf32> to vector<2x128xf32>
    %404 = arith.addf %403, %247 : vector<2x128xf32>
    %405 = arith.mulf %400, %404 : vector<2x128xf32>
    %406 = arith.addf %402, %405 : vector<2x128xf32>
    %407 = math.tanh %406 : vector<2x128xf32>
    %cst_140 = arith.constant 1.000000e+00 : f32
    %408 = vector.broadcast %cst_140 : f32 to vector<2x64xf32>
    %409 = arith.subf %408, %401 : vector<2x64xf32>
    %410 = vector.extract_strided_slice %407 {offsets = [0, 0], sizes = [2, 64], strides = [1, 1]} : vector<2x128xf32> to vector<2x64xf32>
    %411 = arith.mulf %409, %410 : vector<2x64xf32>
    %412 = arith.mulf %401, %385 : vector<2x64xf32>
    %413 = arith.addf %411, %412 : vector<2x64xf32>
    %c5_141 = arith.constant 5 : index
    %c0_142 = arith.constant 0 : index
    %c0_143 = arith.constant 0 : index
    %414 = vector.load %arg12[%c5_141, %c0_142, %c0_143] : memref<8x2x64xf32, #tpu.memory_space<vmem>>, vector<1x2x64xf32>
    %415 = vector.shape_cast %414 : vector<1x2x64xf32> to vector<2x64xf32>
    %416 = vector.shape_cast %413 : vector<2x64xf32> to vector<1x2x64xf32>
    tpu.vector_store %arg12[%c5_141, %c0_142, %c0_143], %416 {strides = array<i32>} : memref<8x2x64xf32, #tpu.memory_space<vmem>>, vector<1x2x64xf32>,
    %c6_144 = arith.constant 6 : index
    %c0_145 = arith.constant 0 : index
    %c0_146 = arith.constant 0 : index
    %417 = vector.load %arg13[%c6_144, %c0_145, %c0_146] : memref<8x2x384xf32, #tpu.memory_space<vmem>>, vector<1x2x384xf32>
    %418 = vector.shape_cast %417 : vector<1x2x384xf32> to vector<2x384xf32>
    %cst_147 = arith.constant dense<0.000000e+00> : vector<2x384xf32>
    %419 = tpu.matmul %413, %243, %cst_147 {dimension_numbers = #tpu.dot_dimension_numbers<[1], [0], [0], [1], [0, 0, 1, 1], [], []>} : vector<2x64xf32>, vector<64x384xf32>, vector<2x384xf32> -> vector<2x384xf32>
    %420 = vector.extract_strided_slice %418 {offsets = [0, 0], sizes = [2, 256], strides = [1, 1]} : vector<2x384xf32> to vector<2x256xf32>
    %421 = vector.extract_strided_slice %419 {offsets = [0, 0], sizes = [2, 256], strides = [1, 1]} : vector<2x384xf32> to vector<2x256xf32>
    %422 = arith.addf %420, %421 : vector<2x256xf32>
    %423 = arith.negf %422 : vector<2x256xf32>
    %424 = math.exp %423 : vector<2x256xf32>
    %cst_148 = arith.constant 1.000000e+00 : f32
    %425 = vector.broadcast %cst_148 : f32 to vector<2x256xf32>
    %426 = arith.addf %425, %424 : vector<2x256xf32>
    %427 = arith.divf %425, %426 : vector<2x256xf32>
    %428 = vector.extract_strided_slice %427 {offsets = [0, 0], sizes = [2, 128], strides = [1, 1]} : vector<2x256xf32> to vector<2x128xf32>
    %429 = vector.extract_strided_slice %427 {offsets = [0, 128], sizes = [2, 64], strides = [1, 1]} : vector<2x256xf32> to vector<2x64xf32>
    %430 = vector.extract_strided_slice %418 {offsets = [0, 256], sizes = [2, 128], strides = [1, 1]} : vector<2x384xf32> to vector<2x128xf32>
    %431 = vector.extract_strided_slice %419 {offsets = [0, 256], sizes = [2, 128], strides = [1, 1]} : vector<2x384xf32> to vector<2x128xf32>
    %432 = arith.addf %431, %247 : vector<2x128xf32>
    %433 = arith.mulf %428, %432 : vector<2x128xf32>
    %434 = arith.addf %430, %433 : vector<2x128xf32>
    %435 = math.tanh %434 : vector<2x128xf32>
    %cst_149 = arith.constant 1.000000e+00 : f32
    %436 = vector.broadcast %cst_149 : f32 to vector<2x64xf32>
    %437 = arith.subf %436, %429 : vector<2x64xf32>
    %438 = vector.extract_strided_slice %435 {offsets = [0, 0], sizes = [2, 64], strides = [1, 1]} : vector<2x128xf32> to vector<2x64xf32>
    %439 = arith.mulf %437, %438 : vector<2x64xf32>
    %440 = arith.mulf %429, %413 : vector<2x64xf32>
    %441 = arith.addf %439, %440 : vector<2x64xf32>
    %c6_150 = arith.constant 6 : index
    %c0_151 = arith.constant 0 : index
    %c0_152 = arith.constant 0 : index
    %442 = vector.load %arg12[%c6_150, %c0_151, %c0_152] : memref<8x2x64xf32, #tpu.memory_space<vmem>>, vector<1x2x64xf32>
    %443 = vector.shape_cast %442 : vector<1x2x64xf32> to vector<2x64xf32>
    %444 = vector.shape_cast %441 : vector<2x64xf32> to vector<1x2x64xf32>
    tpu.vector_store %arg12[%c6_150, %c0_151, %c0_152], %444 {strides = array<i32>} : memref<8x2x64xf32, #tpu.memory_space<vmem>>, vector<1x2x64xf32>,
    %c7_153 = arith.constant 7 : index
    %c0_154 = arith.constant 0 : index
    %c0_155 = arith.constant 0 : index
    %445 = vector.load %arg13[%c7_153, %c0_154, %c0_155] : memref<8x2x384xf32, #tpu.memory_space<vmem>>, vector<1x2x384xf32>
    %446 = vector.shape_cast %445 : vector<1x2x384xf32> to vector<2x384xf32>
    %cst_156 = arith.constant dense<0.000000e+00> : vector<2x384xf32>
    %447 = tpu.matmul %441, %243, %cst_156 {dimension_numbers = #tpu.dot_dimension_numbers<[1], [0], [0], [1], [0, 0, 1, 1], [], []>} : vector<2x64xf32>, vector<64x384xf32>, vector<2x384xf32> -> vector<2x384xf32>
    %448 = vector.extract_strided_slice %446 {offsets = [0, 0], sizes = [2, 256], strides = [1, 1]} : vector<2x384xf32> to vector<2x256xf32>
    %449 = vector.extract_strided_slice %447 {offsets = [0, 0], sizes = [2, 256], strides = [1, 1]} : vector<2x384xf32> to vector<2x256xf32>
    %450 = arith.addf %448, %449 : vector<2x256xf32>
    %451 = arith.negf %450 : vector<2x256xf32>
    %452 = math.exp %451 : vector<2x256xf32>
    %cst_157 = arith.constant 1.000000e+00 : f32
    %453 = vector.broadcast %cst_157 : f32 to vector<2x256xf32>
    %454 = arith.addf %453, %452 : vector<2x256xf32>
    %455 = arith.divf %453, %454 : vector<2x256xf32>
    %456 = vector.extract_strided_slice %455 {offsets = [0, 0], sizes = [2, 128], strides = [1, 1]} : vector<2x256xf32> to vector<2x128xf32>
    %457 = vector.extract_strided_slice %455 {offsets = [0, 128], sizes = [2, 64], strides = [1, 1]} : vector<2x256xf32> to vector<2x64xf32>
    %458 = vector.extract_strided_slice %446 {offsets = [0, 256], sizes = [2, 128], strides = [1, 1]} : vector<2x384xf32> to vector<2x128xf32>
    %459 = vector.extract_strided_slice %447 {offsets = [0, 256], sizes = [2, 128], strides = [1, 1]} : vector<2x384xf32> to vector<2x128xf32>
    %460 = arith.addf %459, %247 : vector<2x128xf32>
    %461 = arith.mulf %456, %460 : vector<2x128xf32>
    %462 = arith.addf %458, %461 : vector<2x128xf32>
    %463 = math.tanh %462 : vector<2x128xf32>
    %cst_158 = arith.constant 1.000000e+00 : f32
    %464 = vector.broadcast %cst_158 : f32 to vector<2x64xf32>
    %465 = arith.subf %464, %457 : vector<2x64xf32>
    %466 = vector.extract_strided_slice %463 {offsets = [0, 0], sizes = [2, 64], strides = [1, 1]} : vector<2x128xf32> to vector<2x64xf32>
    %467 = arith.mulf %465, %466 : vector<2x64xf32>
    %468 = arith.mulf %457, %441 : vector<2x64xf32>
    %469 = arith.addf %467, %468 : vector<2x64xf32>
    %c7_159 = arith.constant 7 : index
    %c0_160 = arith.constant 0 : index
    %c0_161 = arith.constant 0 : index
    %470 = vector.load %arg12[%c7_159, %c0_160, %c0_161] : memref<8x2x64xf32, #tpu.memory_space<vmem>>, vector<1x2x64xf32>
    %471 = vector.shape_cast %470 : vector<1x2x64xf32> to vector<2x64xf32>
    %472 = vector.shape_cast %469 : vector<2x64xf32> to vector<1x2x64xf32>
    tpu.vector_store %arg12[%c7_159, %c0_160, %c0_161], %472 {strides = array<i32>} : memref<8x2x64xf32, #tpu.memory_space<vmem>>, vector<1x2x64xf32>,
    %c0_162 = arith.constant 0 : index
    %c0_163 = arith.constant 0 : index
    %c0_164 = arith.constant 0 : index
    %473 = vector.load %arg12[%c0_162, %c0_163, %c0_164] : memref<8x2x64xf32, #tpu.memory_space<vmem>>, vector<8x2x64xf32>
    %474 = vector.shape_cast %473 : vector<8x2x64xf32> to vector<16x64xf32>
    %c1_165 = arith.constant 1 : index
    %c0_166 = arith.constant 0 : index
    %c0_167 = arith.constant 0 : index
    %475 = vector.load %arg1[%c1_165, %c0_166, %c0_167] : memref<5x64x384xf32, #tpu.memory_space<vmem>>, vector<1x64x384xf32>
    %476 = vector.shape_cast %475 : vector<1x64x384xf32> to vector<64x384xf32>
    %cst_168 = arith.constant dense<0.000000e+00> : vector<16x384xf32>
    %477 = tpu.matmul %474, %476, %cst_168 {dimension_numbers = #tpu.dot_dimension_numbers<[1], [0], [0], [1], [0, 0, 1, 1], [], []>} : vector<16x64xf32>, vector<64x384xf32>, vector<16x384xf32> -> vector<16x384xf32>
    %c1_169 = arith.constant 1 : index
    %c0_170 = arith.constant 0 : index
    %c0_171 = arith.constant 0 : index
    %478 = vector.load %arg2[%c1_169, %c0_170, %c0_171] : memref<5x1x384xf32, #tpu.memory_space<vmem>>, vector<1x1x384xf32>
    %479 = vector.shape_cast %478 : vector<1x1x384xf32> to vector<1x384xf32>
    %480 = vector.broadcast %479 : vector<1x384xf32> to vector<16x384xf32>
    %481 = arith.addf %477, %480 : vector<16x384xf32>
    %482 = vector.shape_cast %481 : vector<16x384xf32> to vector<8x2x384xf32>
    %c0_172 = arith.constant 0 : index
    %c0_173 = arith.constant 0 : index
    %c0_174 = arith.constant 0 : index
    %483 = vector.load %arg13[%c0_172, %c0_173, %c0_174] : memref<8x2x384xf32, #tpu.memory_space<vmem>>, vector<8x2x384xf32>
    tpu.vector_store %arg13[%c0_172, %c0_173, %c0_174], %482 {strides = array<i32>} : memref<8x2x384xf32, #tpu.memory_space<vmem>>, vector<8x2x384xf32>,
    %c2_175 = arith.constant 2 : index
    %c0_176 = arith.constant 0 : index
    %c0_177 = arith.constant 0 : index
    %484 = vector.load %arg3[%c2_175, %c0_176, %c0_177] : memref<6x64x384xf32, #tpu.memory_space<vmem>>, vector<1x64x384xf32>
    %485 = vector.shape_cast %484 : vector<1x64x384xf32> to vector<64x384xf32>
    %c2_178 = arith.constant 2 : index
    %c0_179 = arith.constant 0 : index
    %c0_180 = arith.constant 0 : index
    %486 = vector.load %arg4[%c2_178, %c0_179, %c0_180] : memref<6x1x128xf32, #tpu.memory_space<vmem>>, vector<1x1x128xf32>
    %487 = vector.shape_cast %486 : vector<1x1x128xf32> to vector<1x128xf32>
    %488 = vector.shape_cast %487 : vector<1x128xf32> to vector<1x128xf32>
    %489 = vector.broadcast %488 : vector<1x128xf32> to vector<2x128xf32>
    %cst_181 = arith.constant 0.000000e+00 : f32
    %490 = vector.broadcast %cst_181 : f32 to vector<2x64xf32>
    %c0_182 = arith.constant 0 : index
    %c0_183 = arith.constant 0 : index
    %c0_184 = arith.constant 0 : index
    %491 = vector.load %arg13[%c0_182, %c0_183, %c0_184] : memref<8x2x384xf32, #tpu.memory_space<vmem>>, vector<1x2x384xf32>
    %492 = vector.shape_cast %491 : vector<1x2x384xf32> to vector<2x384xf32>
    %cst_185 = arith.constant dense<0.000000e+00> : vector<2x384xf32>
    %493 = tpu.matmul %490, %485, %cst_185 {dimension_numbers = #tpu.dot_dimension_numbers<[1], [0], [0], [1], [0, 0, 1, 1], [], []>} : vector<2x64xf32>, vector<64x384xf32>, vector<2x384xf32> -> vector<2x384xf32>
    %494 = vector.extract_strided_slice %492 {offsets = [0, 0], sizes = [2, 256], strides = [1, 1]} : vector<2x384xf32> to vector<2x256xf32>
    %495 = vector.extract_strided_slice %493 {offsets = [0, 0], sizes = [2, 256], strides = [1, 1]} : vector<2x384xf32> to vector<2x256xf32>
    %496 = arith.addf %494, %495 : vector<2x256xf32>
    %497 = arith.negf %496 : vector<2x256xf32>
    %498 = math.exp %497 : vector<2x256xf32>
    %cst_186 = arith.constant 1.000000e+00 : f32
    %499 = vector.broadcast %cst_186 : f32 to vector<2x256xf32>
    %500 = arith.addf %499, %498 : vector<2x256xf32>
    %501 = arith.divf %499, %500 : vector<2x256xf32>
    %502 = vector.extract_strided_slice %501 {offsets = [0, 0], sizes = [2, 128], strides = [1, 1]} : vector<2x256xf32> to vector<2x128xf32>
    %503 = vector.extract_strided_slice %501 {offsets = [0, 128], sizes = [2, 64], strides = [1, 1]} : vector<2x256xf32> to vector<2x64xf32>
    %504 = vector.extract_strided_slice %492 {offsets = [0, 256], sizes = [2, 128], strides = [1, 1]} : vector<2x384xf32> to vector<2x128xf32>
    %505 = vector.extract_strided_slice %493 {offsets = [0, 256], sizes = [2, 128], strides = [1, 1]} : vector<2x384xf32> to vector<2x128xf32>
    %506 = arith.addf %505, %489 : vector<2x128xf32>
    %507 = arith.mulf %502, %506 : vector<2x128xf32>
    %508 = arith.addf %504, %507 : vector<2x128xf32>
    %509 = math.tanh %508 : vector<2x128xf32>
    %cst_187 = arith.constant 1.000000e+00 : f32
    %510 = vector.broadcast %cst_187 : f32 to vector<2x64xf32>
    %511 = arith.subf %510, %503 : vector<2x64xf32>
    %512 = vector.extract_strided_slice %509 {offsets = [0, 0], sizes = [2, 64], strides = [1, 1]} : vector<2x128xf32> to vector<2x64xf32>
    %513 = arith.mulf %511, %512 : vector<2x64xf32>
    %514 = arith.mulf %503, %490 : vector<2x64xf32>
    %515 = arith.addf %513, %514 : vector<2x64xf32>
    %c0_188 = arith.constant 0 : index
    %c0_189 = arith.constant 0 : index
    %c0_190 = arith.constant 0 : index
    %516 = vector.load %arg12[%c0_188, %c0_189, %c0_190] : memref<8x2x64xf32, #tpu.memory_space<vmem>>, vector<1x2x64xf32>
    %517 = vector.shape_cast %516 : vector<1x2x64xf32> to vector<2x64xf32>
    %518 = vector.shape_cast %515 : vector<2x64xf32> to vector<1x2x64xf32>
    tpu.vector_store %arg12[%c0_188, %c0_189, %c0_190], %518 {strides = array<i32>} : memref<8x2x64xf32, #tpu.memory_space<vmem>>, vector<1x2x64xf32>,
    %c1_191 = arith.constant 1 : index
    %c0_192 = arith.constant 0 : index
    %c0_193 = arith.constant 0 : index
    %519 = vector.load %arg13[%c1_191, %c0_192, %c0_193] : memref<8x2x384xf32, #tpu.memory_space<vmem>>, vector<1x2x384xf32>
    %520 = vector.shape_cast %519 : vector<1x2x384xf32> to vector<2x384xf32>
    %cst_194 = arith.constant dense<0.000000e+00> : vector<2x384xf32>
    %521 = tpu.matmul %515, %485, %cst_194 {dimension_numbers = #tpu.dot_dimension_numbers<[1], [0], [0], [1], [0, 0, 1, 1], [], []>} : vector<2x64xf32>, vector<64x384xf32>, vector<2x384xf32> -> vector<2x384xf32>
    %522 = vector.extract_strided_slice %520 {offsets = [0, 0], sizes = [2, 256], strides = [1, 1]} : vector<2x384xf32> to vector<2x256xf32>
    %523 = vector.extract_strided_slice %521 {offsets = [0, 0], sizes = [2, 256], strides = [1, 1]} : vector<2x384xf32> to vector<2x256xf32>
    %524 = arith.addf %522, %523 : vector<2x256xf32>
    %525 = arith.negf %524 : vector<2x256xf32>
    %526 = math.exp %525 : vector<2x256xf32>
    %cst_195 = arith.constant 1.000000e+00 : f32
    %527 = vector.broadcast %cst_195 : f32 to vector<2x256xf32>
    %528 = arith.addf %527, %526 : vector<2x256xf32>
    %529 = arith.divf %527, %528 : vector<2x256xf32>
    %530 = vector.extract_strided_slice %529 {offsets = [0, 0], sizes = [2, 128], strides = [1, 1]} : vector<2x256xf32> to vector<2x128xf32>
    %531 = vector.extract_strided_slice %529 {offsets = [0, 128], sizes = [2, 64], strides = [1, 1]} : vector<2x256xf32> to vector<2x64xf32>
    %532 = vector.extract_strided_slice %520 {offsets = [0, 256], sizes = [2, 128], strides = [1, 1]} : vector<2x384xf32> to vector<2x128xf32>
    %533 = vector.extract_strided_slice %521 {offsets = [0, 256], sizes = [2, 128], strides = [1, 1]} : vector<2x384xf32> to vector<2x128xf32>
    %534 = arith.addf %533, %489 : vector<2x128xf32>
    %535 = arith.mulf %530, %534 : vector<2x128xf32>
    %536 = arith.addf %532, %535 : vector<2x128xf32>
    %537 = math.tanh %536 : vector<2x128xf32>
    %cst_196 = arith.constant 1.000000e+00 : f32
    %538 = vector.broadcast %cst_196 : f32 to vector<2x64xf32>
    %539 = arith.subf %538, %531 : vector<2x64xf32>
    %540 = vector.extract_strided_slice %537 {offsets = [0, 0], sizes = [2, 64], strides = [1, 1]} : vector<2x128xf32> to vector<2x64xf32>
    %541 = arith.mulf %539, %540 : vector<2x64xf32>
    %542 = arith.mulf %531, %515 : vector<2x64xf32>
    %543 = arith.addf %541, %542 : vector<2x64xf32>
    %c1_197 = arith.constant 1 : index
    %c0_198 = arith.constant 0 : index
    %c0_199 = arith.constant 0 : index
    %544 = vector.load %arg12[%c1_197, %c0_198, %c0_199] : memref<8x2x64xf32, #tpu.memory_space<vmem>>, vector<1x2x64xf32>
    %545 = vector.shape_cast %544 : vector<1x2x64xf32> to vector<2x64xf32>
    %546 = vector.shape_cast %543 : vector<2x64xf32> to vector<1x2x64xf32>
    tpu.vector_store %arg12[%c1_197, %c0_198, %c0_199], %546 {strides = array<i32>} : memref<8x2x64xf32, #tpu.memory_space<vmem>>, vector<1x2x64xf32>,
    %c2_200 = arith.constant 2 : index
    %c0_201 = arith.constant 0 : index
    %c0_202 = arith.constant 0 : index
    %547 = vector.load %arg13[%c2_200, %c0_201, %c0_202] : memref<8x2x384xf32, #tpu.memory_space<vmem>>, vector<1x2x384xf32>
    %548 = vector.shape_cast %547 : vector<1x2x384xf32> to vector<2x384xf32>
    %cst_203 = arith.constant dense<0.000000e+00> : vector<2x384xf32>
    %549 = tpu.matmul %543, %485, %cst_203 {dimension_numbers = #tpu.dot_dimension_numbers<[1], [0], [0], [1], [0, 0, 1, 1], [], []>} : vector<2x64xf32>, vector<64x384xf32>, vector<2x384xf32> -> vector<2x384xf32>
    %550 = vector.extract_strided_slice %548 {offsets = [0, 0], sizes = [2, 256], strides = [1, 1]} : vector<2x384xf32> to vector<2x256xf32>
    %551 = vector.extract_strided_slice %549 {offsets = [0, 0], sizes = [2, 256], strides = [1, 1]} : vector<2x384xf32> to vector<2x256xf32>
    %552 = arith.addf %550, %551 : vector<2x256xf32>
    %553 = arith.negf %552 : vector<2x256xf32>
    %554 = math.exp %553 : vector<2x256xf32>
    %cst_204 = arith.constant 1.000000e+00 : f32
    %555 = vector.broadcast %cst_204 : f32 to vector<2x256xf32>
    %556 = arith.addf %555, %554 : vector<2x256xf32>
    %557 = arith.divf %555, %556 : vector<2x256xf32>
    %558 = vector.extract_strided_slice %557 {offsets = [0, 0], sizes = [2, 128], strides = [1, 1]} : vector<2x256xf32> to vector<2x128xf32>
    %559 = vector.extract_strided_slice %557 {offsets = [0, 128], sizes = [2, 64], strides = [1, 1]} : vector<2x256xf32> to vector<2x64xf32>
    %560 = vector.extract_strided_slice %548 {offsets = [0, 256], sizes = [2, 128], strides = [1, 1]} : vector<2x384xf32> to vector<2x128xf32>
    %561 = vector.extract_strided_slice %549 {offsets = [0, 256], sizes = [2, 128], strides = [1, 1]} : vector<2x384xf32> to vector<2x128xf32>
    %562 = arith.addf %561, %489 : vector<2x128xf32>
    %563 = arith.mulf %558, %562 : vector<2x128xf32>
    %564 = arith.addf %560, %563 : vector<2x128xf32>
    %565 = math.tanh %564 : vector<2x128xf32>
    %cst_205 = arith.constant 1.000000e+00 : f32
    %566 = vector.broadcast %cst_205 : f32 to vector<2x64xf32>
    %567 = arith.subf %566, %559 : vector<2x64xf32>
    %568 = vector.extract_strided_slice %565 {offsets = [0, 0], sizes = [2, 64], strides = [1, 1]} : vector<2x128xf32> to vector<2x64xf32>
    %569 = arith.mulf %567, %568 : vector<2x64xf32>
    %570 = arith.mulf %559, %543 : vector<2x64xf32>
    %571 = arith.addf %569, %570 : vector<2x64xf32>
    %c2_206 = arith.constant 2 : index
    %c0_207 = arith.constant 0 : index
    %c0_208 = arith.constant 0 : index
    %572 = vector.load %arg12[%c2_206, %c0_207, %c0_208] : memref<8x2x64xf32, #tpu.memory_space<vmem>>, vector<1x2x64xf32>
    %573 = vector.shape_cast %572 : vector<1x2x64xf32> to vector<2x64xf32>
    %574 = vector.shape_cast %571 : vector<2x64xf32> to vector<1x2x64xf32>
    tpu.vector_store %arg12[%c2_206, %c0_207, %c0_208], %574 {strides = array<i32>} : memref<8x2x64xf32, #tpu.memory_space<vmem>>, vector<1x2x64xf32>,
    %c3_209 = arith.constant 3 : index
    %c0_210 = arith.constant 0 : index
    %c0_211 = arith.constant 0 : index
    %575 = vector.load %arg13[%c3_209, %c0_210, %c0_211] : memref<8x2x384xf32, #tpu.memory_space<vmem>>, vector<1x2x384xf32>
    %576 = vector.shape_cast %575 : vector<1x2x384xf32> to vector<2x384xf32>
    %cst_212 = arith.constant dense<0.000000e+00> : vector<2x384xf32>
    %577 = tpu.matmul %571, %485, %cst_212 {dimension_numbers = #tpu.dot_dimension_numbers<[1], [0], [0], [1], [0, 0, 1, 1], [], []>} : vector<2x64xf32>, vector<64x384xf32>, vector<2x384xf32> -> vector<2x384xf32>
    %578 = vector.extract_strided_slice %576 {offsets = [0, 0], sizes = [2, 256], strides = [1, 1]} : vector<2x384xf32> to vector<2x256xf32>
    %579 = vector.extract_strided_slice %577 {offsets = [0, 0], sizes = [2, 256], strides = [1, 1]} : vector<2x384xf32> to vector<2x256xf32>
    %580 = arith.addf %578, %579 : vector<2x256xf32>
    %581 = arith.negf %580 : vector<2x256xf32>
    %582 = math.exp %581 : vector<2x256xf32>
    %cst_213 = arith.constant 1.000000e+00 : f32
    %583 = vector.broadcast %cst_213 : f32 to vector<2x256xf32>
    %584 = arith.addf %583, %582 : vector<2x256xf32>
    %585 = arith.divf %583, %584 : vector<2x256xf32>
    %586 = vector.extract_strided_slice %585 {offsets = [0, 0], sizes = [2, 128], strides = [1, 1]} : vector<2x256xf32> to vector<2x128xf32>
    %587 = vector.extract_strided_slice %585 {offsets = [0, 128], sizes = [2, 64], strides = [1, 1]} : vector<2x256xf32> to vector<2x64xf32>
    %588 = vector.extract_strided_slice %576 {offsets = [0, 256], sizes = [2, 128], strides = [1, 1]} : vector<2x384xf32> to vector<2x128xf32>
    %589 = vector.extract_strided_slice %577 {offsets = [0, 256], sizes = [2, 128], strides = [1, 1]} : vector<2x384xf32> to vector<2x128xf32>
    %590 = arith.addf %589, %489 : vector<2x128xf32>
    %591 = arith.mulf %586, %590 : vector<2x128xf32>
    %592 = arith.addf %588, %591 : vector<2x128xf32>
    %593 = math.tanh %592 : vector<2x128xf32>
    %cst_214 = arith.constant 1.000000e+00 : f32
    %594 = vector.broadcast %cst_214 : f32 to vector<2x64xf32>
    %595 = arith.subf %594, %587 : vector<2x64xf32>
    %596 = vector.extract_strided_slice %593 {offsets = [0, 0], sizes = [2, 64], strides = [1, 1]} : vector<2x128xf32> to vector<2x64xf32>
    %597 = arith.mulf %595, %596 : vector<2x64xf32>
    %598 = arith.mulf %587, %571 : vector<2x64xf32>
    %599 = arith.addf %597, %598 : vector<2x64xf32>
    %c3_215 = arith.constant 3 : index
    %c0_216 = arith.constant 0 : index
    %c0_217 = arith.constant 0 : index
    %600 = vector.load %arg12[%c3_215, %c0_216, %c0_217] : memref<8x2x64xf32, #tpu.memory_space<vmem>>, vector<1x2x64xf32>
    %601 = vector.shape_cast %600 : vector<1x2x64xf32> to vector<2x64xf32>
    %602 = vector.shape_cast %599 : vector<2x64xf32> to vector<1x2x64xf32>
    tpu.vector_store %arg12[%c3_215, %c0_216, %c0_217], %602 {strides = array<i32>} : memref<8x2x64xf32, #tpu.memory_space<vmem>>, vector<1x2x64xf32>,
    %c4_218 = arith.constant 4 : index
    %c0_219 = arith.constant 0 : index
    %c0_220 = arith.constant 0 : index
    %603 = vector.load %arg13[%c4_218, %c0_219, %c0_220] : memref<8x2x384xf32, #tpu.memory_space<vmem>>, vector<1x2x384xf32>
    %604 = vector.shape_cast %603 : vector<1x2x384xf32> to vector<2x384xf32>
    %cst_221 = arith.constant dense<0.000000e+00> : vector<2x384xf32>
    %605 = tpu.matmul %599, %485, %cst_221 {dimension_numbers = #tpu.dot_dimension_numbers<[1], [0], [0], [1], [0, 0, 1, 1], [], []>} : vector<2x64xf32>, vector<64x384xf32>, vector<2x384xf32> -> vector<2x384xf32>
    %606 = vector.extract_strided_slice %604 {offsets = [0, 0], sizes = [2, 256], strides = [1, 1]} : vector<2x384xf32> to vector<2x256xf32>
    %607 = vector.extract_strided_slice %605 {offsets = [0, 0], sizes = [2, 256], strides = [1, 1]} : vector<2x384xf32> to vector<2x256xf32>
    %608 = arith.addf %606, %607 : vector<2x256xf32>
    %609 = arith.negf %608 : vector<2x256xf32>
    %610 = math.exp %609 : vector<2x256xf32>
    %cst_222 = arith.constant 1.000000e+00 : f32
    %611 = vector.broadcast %cst_222 : f32 to vector<2x256xf32>
    %612 = arith.addf %611, %610 : vector<2x256xf32>
    %613 = arith.divf %611, %612 : vector<2x256xf32>
    %614 = vector.extract_strided_slice %613 {offsets = [0, 0], sizes = [2, 128], strides = [1, 1]} : vector<2x256xf32> to vector<2x128xf32>
    %615 = vector.extract_strided_slice %613 {offsets = [0, 128], sizes = [2, 64], strides = [1, 1]} : vector<2x256xf32> to vector<2x64xf32>
    %616 = vector.extract_strided_slice %604 {offsets = [0, 256], sizes = [2, 128], strides = [1, 1]} : vector<2x384xf32> to vector<2x128xf32>
    %617 = vector.extract_strided_slice %605 {offsets = [0, 256], sizes = [2, 128], strides = [1, 1]} : vector<2x384xf32> to vector<2x128xf32>
    %618 = arith.addf %617, %489 : vector<2x128xf32>
    %619 = arith.mulf %614, %618 : vector<2x128xf32>
    %620 = arith.addf %616, %619 : vector<2x128xf32>
    %621 = math.tanh %620 : vector<2x128xf32>
    %cst_223 = arith.constant 1.000000e+00 : f32
    %622 = vector.broadcast %cst_223 : f32 to vector<2x64xf32>
    %623 = arith.subf %622, %615 : vector<2x64xf32>
    %624 = vector.extract_strided_slice %621 {offsets = [0, 0], sizes = [2, 64], strides = [1, 1]} : vector<2x128xf32> to vector<2x64xf32>
    %625 = arith.mulf %623, %624 : vector<2x64xf32>
    %626 = arith.mulf %615, %599 : vector<2x64xf32>
    %627 = arith.addf %625, %626 : vector<2x64xf32>
    %c4_224 = arith.constant 4 : index
    %c0_225 = arith.constant 0 : index
    %c0_226 = arith.constant 0 : index
    %628 = vector.load %arg12[%c4_224, %c0_225, %c0_226] : memref<8x2x64xf32, #tpu.memory_space<vmem>>, vector<1x2x64xf32>
    %629 = vector.shape_cast %628 : vector<1x2x64xf32> to vector<2x64xf32>
    %630 = vector.shape_cast %627 : vector<2x64xf32> to vector<1x2x64xf32>
    tpu.vector_store %arg12[%c4_224, %c0_225, %c0_226], %630 {strides = array<i32>} : memref<8x2x64xf32, #tpu.memory_space<vmem>>, vector<1x2x64xf32>,
    %c5_227 = arith.constant 5 : index
    %c0_228 = arith.constant 0 : index
    %c0_229 = arith.constant 0 : index
    %631 = vector.load %arg13[%c5_227, %c0_228, %c0_229] : memref<8x2x384xf32, #tpu.memory_space<vmem>>, vector<1x2x384xf32>
    %632 = vector.shape_cast %631 : vector<1x2x384xf32> to vector<2x384xf32>
    %cst_230 = arith.constant dense<0.000000e+00> : vector<2x384xf32>
    %633 = tpu.matmul %627, %485, %cst_230 {dimension_numbers = #tpu.dot_dimension_numbers<[1], [0], [0], [1], [0, 0, 1, 1], [], []>} : vector<2x64xf32>, vector<64x384xf32>, vector<2x384xf32> -> vector<2x384xf32>
    %634 = vector.extract_strided_slice %632 {offsets = [0, 0], sizes = [2, 256], strides = [1, 1]} : vector<2x384xf32> to vector<2x256xf32>
    %635 = vector.extract_strided_slice %633 {offsets = [0, 0], sizes = [2, 256], strides = [1, 1]} : vector<2x384xf32> to vector<2x256xf32>
    %636 = arith.addf %634, %635 : vector<2x256xf32>
    %637 = arith.negf %636 : vector<2x256xf32>
    %638 = math.exp %637 : vector<2x256xf32>
    %cst_231 = arith.constant 1.000000e+00 : f32
    %639 = vector.broadcast %cst_231 : f32 to vector<2x256xf32>
    %640 = arith.addf %639, %638 : vector<2x256xf32>
    %641 = arith.divf %639, %640 : vector<2x256xf32>
    %642 = vector.extract_strided_slice %641 {offsets = [0, 0], sizes = [2, 128], strides = [1, 1]} : vector<2x256xf32> to vector<2x128xf32>
    %643 = vector.extract_strided_slice %641 {offsets = [0, 128], sizes = [2, 64], strides = [1, 1]} : vector<2x256xf32> to vector<2x64xf32>
    %644 = vector.extract_strided_slice %632 {offsets = [0, 256], sizes = [2, 128], strides = [1, 1]} : vector<2x384xf32> to vector<2x128xf32>
    %645 = vector.extract_strided_slice %633 {offsets = [0, 256], sizes = [2, 128], strides = [1, 1]} : vector<2x384xf32> to vector<2x128xf32>
    %646 = arith.addf %645, %489 : vector<2x128xf32>
    %647 = arith.mulf %642, %646 : vector<2x128xf32>
    %648 = arith.addf %644, %647 : vector<2x128xf32>
    %649 = math.tanh %648 : vector<2x128xf32>
    %cst_232 = arith.constant 1.000000e+00 : f32
    %650 = vector.broadcast %cst_232 : f32 to vector<2x64xf32>
    %651 = arith.subf %650, %643 : vector<2x64xf32>
    %652 = vector.extract_strided_slice %649 {offsets = [0, 0], sizes = [2, 64], strides = [1, 1]} : vector<2x128xf32> to vector<2x64xf32>
    %653 = arith.mulf %651, %652 : vector<2x64xf32>
    %654 = arith.mulf %643, %627 : vector<2x64xf32>
    %655 = arith.addf %653, %654 : vector<2x64xf32>
    %c5_233 = arith.constant 5 : index
    %c0_234 = arith.constant 0 : index
    %c0_235 = arith.constant 0 : index
    %656 = vector.load %arg12[%c5_233, %c0_234, %c0_235] : memref<8x2x64xf32, #tpu.memory_space<vmem>>, vector<1x2x64xf32>
    %657 = vector.shape_cast %656 : vector<1x2x64xf32> to vector<2x64xf32>
    %658 = vector.shape_cast %655 : vector<2x64xf32> to vector<1x2x64xf32>
    tpu.vector_store %arg12[%c5_233, %c0_234, %c0_235], %658 {strides = array<i32>} : memref<8x2x64xf32, #tpu.memory_space<vmem>>, vector<1x2x64xf32>,
    %c6_236 = arith.constant 6 : index
    %c0_237 = arith.constant 0 : index
    %c0_238 = arith.constant 0 : index
    %659 = vector.load %arg13[%c6_236, %c0_237, %c0_238] : memref<8x2x384xf32, #tpu.memory_space<vmem>>, vector<1x2x384xf32>
    %660 = vector.shape_cast %659 : vector<1x2x384xf32> to vector<2x384xf32>
    %cst_239 = arith.constant dense<0.000000e+00> : vector<2x384xf32>
    %661 = tpu.matmul %655, %485, %cst_239 {dimension_numbers = #tpu.dot_dimension_numbers<[1], [0], [0], [1], [0, 0, 1, 1], [], []>} : vector<2x64xf32>, vector<64x384xf32>, vector<2x384xf32> -> vector<2x384xf32>
    %662 = vector.extract_strided_slice %660 {offsets = [0, 0], sizes = [2, 256], strides = [1, 1]} : vector<2x384xf32> to vector<2x256xf32>
    %663 = vector.extract_strided_slice %661 {offsets = [0, 0], sizes = [2, 256], strides = [1, 1]} : vector<2x384xf32> to vector<2x256xf32>
    %664 = arith.addf %662, %663 : vector<2x256xf32>
    %665 = arith.negf %664 : vector<2x256xf32>
    %666 = math.exp %665 : vector<2x256xf32>
    %cst_240 = arith.constant 1.000000e+00 : f32
    %667 = vector.broadcast %cst_240 : f32 to vector<2x256xf32>
    %668 = arith.addf %667, %666 : vector<2x256xf32>
    %669 = arith.divf %667, %668 : vector<2x256xf32>
    %670 = vector.extract_strided_slice %669 {offsets = [0, 0], sizes = [2, 128], strides = [1, 1]} : vector<2x256xf32> to vector<2x128xf32>
    %671 = vector.extract_strided_slice %669 {offsets = [0, 128], sizes = [2, 64], strides = [1, 1]} : vector<2x256xf32> to vector<2x64xf32>
    %672 = vector.extract_strided_slice %660 {offsets = [0, 256], sizes = [2, 128], strides = [1, 1]} : vector<2x384xf32> to vector<2x128xf32>
    %673 = vector.extract_strided_slice %661 {offsets = [0, 256], sizes = [2, 128], strides = [1, 1]} : vector<2x384xf32> to vector<2x128xf32>
    %674 = arith.addf %673, %489 : vector<2x128xf32>
    %675 = arith.mulf %670, %674 : vector<2x128xf32>
    %676 = arith.addf %672, %675 : vector<2x128xf32>
    %677 = math.tanh %676 : vector<2x128xf32>
    %cst_241 = arith.constant 1.000000e+00 : f32
    %678 = vector.broadcast %cst_241 : f32 to vector<2x64xf32>
    %679 = arith.subf %678, %671 : vector<2x64xf32>
    %680 = vector.extract_strided_slice %677 {offsets = [0, 0], sizes = [2, 64], strides = [1, 1]} : vector<2x128xf32> to vector<2x64xf32>
    %681 = arith.mulf %679, %680 : vector<2x64xf32>
    %682 = arith.mulf %671, %655 : vector<2x64xf32>
    %683 = arith.addf %681, %682 : vector<2x64xf32>
    %c6_242 = arith.constant 6 : index
    %c0_243 = arith.constant 0 : index
    %c0_244 = arith.constant 0 : index
    %684 = vector.load %arg12[%c6_242, %c0_243, %c0_244] : memref<8x2x64xf32, #tpu.memory_space<vmem>>, vector<1x2x64xf32>
    %685 = vector.shape_cast %684 : vector<1x2x64xf32> to vector<2x64xf32>
    %686 = vector.shape_cast %683 : vector<2x64xf32> to vector<1x2x64xf32>
    tpu.vector_store %arg12[%c6_242, %c0_243, %c0_244], %686 {strides = array<i32>} : memref<8x2x64xf32, #tpu.memory_space<vmem>>, vector<1x2x64xf32>,
    %c7_245 = arith.constant 7 : index
    %c0_246 = arith.constant 0 : index
    %c0_247 = arith.constant 0 : index
    %687 = vector.load %arg13[%c7_245, %c0_246, %c0_247] : memref<8x2x384xf32, #tpu.memory_space<vmem>>, vector<1x2x384xf32>
    %688 = vector.shape_cast %687 : vector<1x2x384xf32> to vector<2x384xf32>
    %cst_248 = arith.constant dense<0.000000e+00> : vector<2x384xf32>
    %689 = tpu.matmul %683, %485, %cst_248 {dimension_numbers = #tpu.dot_dimension_numbers<[1], [0], [0], [1], [0, 0, 1, 1], [], []>} : vector<2x64xf32>, vector<64x384xf32>, vector<2x384xf32> -> vector<2x384xf32>
    %690 = vector.extract_strided_slice %688 {offsets = [0, 0], sizes = [2, 256], strides = [1, 1]} : vector<2x384xf32> to vector<2x256xf32>
    %691 = vector.extract_strided_slice %689 {offsets = [0, 0], sizes = [2, 256], strides = [1, 1]} : vector<2x384xf32> to vector<2x256xf32>
    %692 = arith.addf %690, %691 : vector<2x256xf32>
    %693 = arith.negf %692 : vector<2x256xf32>
    %694 = math.exp %693 : vector<2x256xf32>
    %cst_249 = arith.constant 1.000000e+00 : f32
    %695 = vector.broadcast %cst_249 : f32 to vector<2x256xf32>
    %696 = arith.addf %695, %694 : vector<2x256xf32>
    %697 = arith.divf %695, %696 : vector<2x256xf32>
    %698 = vector.extract_strided_slice %697 {offsets = [0, 0], sizes = [2, 128], strides = [1, 1]} : vector<2x256xf32> to vector<2x128xf32>
    %699 = vector.extract_strided_slice %697 {offsets = [0, 128], sizes = [2, 64], strides = [1, 1]} : vector<2x256xf32> to vector<2x64xf32>
    %700 = vector.extract_strided_slice %688 {offsets = [0, 256], sizes = [2, 128], strides = [1, 1]} : vector<2x384xf32> to vector<2x128xf32>
    %701 = vector.extract_strided_slice %689 {offsets = [0, 256], sizes = [2, 128], strides = [1, 1]} : vector<2x384xf32> to vector<2x128xf32>
    %702 = arith.addf %701, %489 : vector<2x128xf32>
    %703 = arith.mulf %698, %702 : vector<2x128xf32>
    %704 = arith.addf %700, %703 : vector<2x128xf32>
    %705 = math.tanh %704 : vector<2x128xf32>
    %cst_250 = arith.constant 1.000000e+00 : f32
    %706 = vector.broadcast %cst_250 : f32 to vector<2x64xf32>
    %707 = arith.subf %706, %699 : vector<2x64xf32>
    %708 = vector.extract_strided_slice %705 {offsets = [0, 0], sizes = [2, 64], strides = [1, 1]} : vector<2x128xf32> to vector<2x64xf32>
    %709 = arith.mulf %707, %708 : vector<2x64xf32>
    %710 = arith.mulf %699, %683 : vector<2x64xf32>
    %711 = arith.addf %709, %710 : vector<2x64xf32>
    %c7_251 = arith.constant 7 : index
    %c0_252 = arith.constant 0 : index
    %c0_253 = arith.constant 0 : index
    %712 = vector.load %arg12[%c7_251, %c0_252, %c0_253] : memref<8x2x64xf32, #tpu.memory_space<vmem>>, vector<1x2x64xf32>
    %713 = vector.shape_cast %712 : vector<1x2x64xf32> to vector<2x64xf32>
    %714 = vector.shape_cast %711 : vector<2x64xf32> to vector<1x2x64xf32>
    tpu.vector_store %arg12[%c7_251, %c0_252, %c0_253], %714 {strides = array<i32>} : memref<8x2x64xf32, #tpu.memory_space<vmem>>, vector<1x2x64xf32>,
    %c0_254 = arith.constant 0 : index
    %c0_255 = arith.constant 0 : index
    %c0_256 = arith.constant 0 : index
    %715 = vector.load %arg12[%c0_254, %c0_255, %c0_256] : memref<8x2x64xf32, #tpu.memory_space<vmem>>, vector<8x2x64xf32>
    %716 = vector.shape_cast %715 : vector<8x2x64xf32> to vector<16x64xf32>
    %c2_257 = arith.constant 2 : index
    %c0_258 = arith.constant 0 : index
    %c0_259 = arith.constant 0 : index
    %717 = vector.load %arg1[%c2_257, %c0_258, %c0_259] : memref<5x64x384xf32, #tpu.memory_space<vmem>>, vector<1x64x384xf32>
    %718 = vector.shape_cast %717 : vector<1x64x384xf32> to vector<64x384xf32>
    %cst_260 = arith.constant dense<0.000000e+00> : vector<16x384xf32>
    %719 = tpu.matmul %716, %718, %cst_260 {dimension_numbers = #tpu.dot_dimension_numbers<[1], [0], [0], [1], [0, 0, 1, 1], [], []>} : vector<16x64xf32>, vector<64x384xf32>, vector<16x384xf32> -> vector<16x384xf32>
    %c2_261 = arith.constant 2 : index
    %c0_262 = arith.constant 0 : index
    %c0_263 = arith.constant 0 : index
    %720 = vector.load %arg2[%c2_261, %c0_262, %c0_263] : memref<5x1x384xf32, #tpu.memory_space<vmem>>, vector<1x1x384xf32>
    %721 = vector.shape_cast %720 : vector<1x1x384xf32> to vector<1x384xf32>
    %722 = vector.broadcast %721 : vector<1x384xf32> to vector<16x384xf32>
    %723 = arith.addf %719, %722 : vector<16x384xf32>
    %724 = vector.shape_cast %723 : vector<16x384xf32> to vector<8x2x384xf32>
    %c0_264 = arith.constant 0 : index
    %c0_265 = arith.constant 0 : index
    %c0_266 = arith.constant 0 : index
    %725 = vector.load %arg13[%c0_264, %c0_265, %c0_266] : memref<8x2x384xf32, #tpu.memory_space<vmem>>, vector<8x2x384xf32>
    tpu.vector_store %arg13[%c0_264, %c0_265, %c0_266], %724 {strides = array<i32>} : memref<8x2x384xf32, #tpu.memory_space<vmem>>, vector<8x2x384xf32>,
    %c3_267 = arith.constant 3 : index
    %c0_268 = arith.constant 0 : index
    %c0_269 = arith.constant 0 : index
    %726 = vector.load %arg3[%c3_267, %c0_268, %c0_269] : memref<6x64x384xf32, #tpu.memory_space<vmem>>, vector<1x64x384xf32>
    %727 = vector.shape_cast %726 : vector<1x64x384xf32> to vector<64x384xf32>
    %c3_270 = arith.constant 3 : index
    %c0_271 = arith.constant 0 : index
    %c0_272 = arith.constant 0 : index
    %728 = vector.load %arg4[%c3_270, %c0_271, %c0_272] : memref<6x1x128xf32, #tpu.memory_space<vmem>>, vector<1x1x128xf32>
    %729 = vector.shape_cast %728 : vector<1x1x128xf32> to vector<1x128xf32>
    %730 = vector.shape_cast %729 : vector<1x128xf32> to vector<1x128xf32>
    %731 = vector.broadcast %730 : vector<1x128xf32> to vector<2x128xf32>
    %cst_273 = arith.constant 0.000000e+00 : f32
    %732 = vector.broadcast %cst_273 : f32 to vector<2x64xf32>
    %c0_274 = arith.constant 0 : index
    %c0_275 = arith.constant 0 : index
    %c0_276 = arith.constant 0 : index
    %733 = vector.load %arg13[%c0_274, %c0_275, %c0_276] : memref<8x2x384xf32, #tpu.memory_space<vmem>>, vector<1x2x384xf32>
    %734 = vector.shape_cast %733 : vector<1x2x384xf32> to vector<2x384xf32>
    %cst_277 = arith.constant dense<0.000000e+00> : vector<2x384xf32>
    %735 = tpu.matmul %732, %727, %cst_277 {dimension_numbers = #tpu.dot_dimension_numbers<[1], [0], [0], [1], [0, 0, 1, 1], [], []>} : vector<2x64xf32>, vector<64x384xf32>, vector<2x384xf32> -> vector<2x384xf32>
    %736 = vector.extract_strided_slice %734 {offsets = [0, 0], sizes = [2, 256], strides = [1, 1]} : vector<2x384xf32> to vector<2x256xf32>
    %737 = vector.extract_strided_slice %735 {offsets = [0, 0], sizes = [2, 256], strides = [1, 1]} : vector<2x384xf32> to vector<2x256xf32>
    %738 = arith.addf %736, %737 : vector<2x256xf32>
    %739 = arith.negf %738 : vector<2x256xf32>
    %740 = math.exp %739 : vector<2x256xf32>
    %cst_278 = arith.constant 1.000000e+00 : f32
    %741 = vector.broadcast %cst_278 : f32 to vector<2x256xf32>
    %742 = arith.addf %741, %740 : vector<2x256xf32>
    %743 = arith.divf %741, %742 : vector<2x256xf32>
    %744 = vector.extract_strided_slice %743 {offsets = [0, 0], sizes = [2, 128], strides = [1, 1]} : vector<2x256xf32> to vector<2x128xf32>
    %745 = vector.extract_strided_slice %743 {offsets = [0, 128], sizes = [2, 64], strides = [1, 1]} : vector<2x256xf32> to vector<2x64xf32>
    %746 = vector.extract_strided_slice %734 {offsets = [0, 256], sizes = [2, 128], strides = [1, 1]} : vector<2x384xf32> to vector<2x128xf32>
    %747 = vector.extract_strided_slice %735 {offsets = [0, 256], sizes = [2, 128], strides = [1, 1]} : vector<2x384xf32> to vector<2x128xf32>
    %748 = arith.addf %747, %731 : vector<2x128xf32>
    %749 = arith.mulf %744, %748 : vector<2x128xf32>
    %750 = arith.addf %746, %749 : vector<2x128xf32>
    %751 = math.tanh %750 : vector<2x128xf32>
    %cst_279 = arith.constant 1.000000e+00 : f32
    %752 = vector.broadcast %cst_279 : f32 to vector<2x64xf32>
    %753 = arith.subf %752, %745 : vector<2x64xf32>
    %754 = vector.extract_strided_slice %751 {offsets = [0, 0], sizes = [2, 64], strides = [1, 1]} : vector<2x128xf32> to vector<2x64xf32>
    %755 = arith.mulf %753, %754 : vector<2x64xf32>
    %756 = arith.mulf %745, %732 : vector<2x64xf32>
    %757 = arith.addf %755, %756 : vector<2x64xf32>
    %c0_280 = arith.constant 0 : index
    %c0_281 = arith.constant 0 : index
    %c0_282 = arith.constant 0 : index
    %758 = vector.load %arg12[%c0_280, %c0_281, %c0_282] : memref<8x2x64xf32, #tpu.memory_space<vmem>>, vector<1x2x64xf32>
    %759 = vector.shape_cast %758 : vector<1x2x64xf32> to vector<2x64xf32>
    %760 = vector.shape_cast %757 : vector<2x64xf32> to vector<1x2x64xf32>
    tpu.vector_store %arg12[%c0_280, %c0_281, %c0_282], %760 {strides = array<i32>} : memref<8x2x64xf32, #tpu.memory_space<vmem>>, vector<1x2x64xf32>,
    %c1_283 = arith.constant 1 : index
    %c0_284 = arith.constant 0 : index
    %c0_285 = arith.constant 0 : index
    %761 = vector.load %arg13[%c1_283, %c0_284, %c0_285] : memref<8x2x384xf32, #tpu.memory_space<vmem>>, vector<1x2x384xf32>
    %762 = vector.shape_cast %761 : vector<1x2x384xf32> to vector<2x384xf32>
    %cst_286 = arith.constant dense<0.000000e+00> : vector<2x384xf32>
    %763 = tpu.matmul %757, %727, %cst_286 {dimension_numbers = #tpu.dot_dimension_numbers<[1], [0], [0], [1], [0, 0, 1, 1], [], []>} : vector<2x64xf32>, vector<64x384xf32>, vector<2x384xf32> -> vector<2x384xf32>
    %764 = vector.extract_strided_slice %762 {offsets = [0, 0], sizes = [2, 256], strides = [1, 1]} : vector<2x384xf32> to vector<2x256xf32>
    %765 = vector.extract_strided_slice %763 {offsets = [0, 0], sizes = [2, 256], strides = [1, 1]} : vector<2x384xf32> to vector<2x256xf32>
    %766 = arith.addf %764, %765 : vector<2x256xf32>
    %767 = arith.negf %766 : vector<2x256xf32>
    %768 = math.exp %767 : vector<2x256xf32>
    %cst_287 = arith.constant 1.000000e+00 : f32
    %769 = vector.broadcast %cst_287 : f32 to vector<2x256xf32>
    %770 = arith.addf %769, %768 : vector<2x256xf32>
    %771 = arith.divf %769, %770 : vector<2x256xf32>
    %772 = vector.extract_strided_slice %771 {offsets = [0, 0], sizes = [2, 128], strides = [1, 1]} : vector<2x256xf32> to vector<2x128xf32>
    %773 = vector.extract_strided_slice %771 {offsets = [0, 128], sizes = [2, 64], strides = [1, 1]} : vector<2x256xf32> to vector<2x64xf32>
    %774 = vector.extract_strided_slice %762 {offsets = [0, 256], sizes = [2, 128], strides = [1, 1]} : vector<2x384xf32> to vector<2x128xf32>
    %775 = vector.extract_strided_slice %763 {offsets = [0, 256], sizes = [2, 128], strides = [1, 1]} : vector<2x384xf32> to vector<2x128xf32>
    %776 = arith.addf %775, %731 : vector<2x128xf32>
    %777 = arith.mulf %772, %776 : vector<2x128xf32>
    %778 = arith.addf %774, %777 : vector<2x128xf32>
    %779 = math.tanh %778 : vector<2x128xf32>
    %cst_288 = arith.constant 1.000000e+00 : f32
    %780 = vector.broadcast %cst_288 : f32 to vector<2x64xf32>
    %781 = arith.subf %780, %773 : vector<2x64xf32>
    %782 = vector.extract_strided_slice %779 {offsets = [0, 0], sizes = [2, 64], strides = [1, 1]} : vector<2x128xf32> to vector<2x64xf32>
    %783 = arith.mulf %781, %782 : vector<2x64xf32>
    %784 = arith.mulf %773, %757 : vector<2x64xf32>
    %785 = arith.addf %783, %784 : vector<2x64xf32>
    %c1_289 = arith.constant 1 : index
    %c0_290 = arith.constant 0 : index
    %c0_291 = arith.constant 0 : index
    %786 = vector.load %arg12[%c1_289, %c0_290, %c0_291] : memref<8x2x64xf32, #tpu.memory_space<vmem>>, vector<1x2x64xf32>
    %787 = vector.shape_cast %786 : vector<1x2x64xf32> to vector<2x64xf32>
    %788 = vector.shape_cast %785 : vector<2x64xf32> to vector<1x2x64xf32>
    tpu.vector_store %arg12[%c1_289, %c0_290, %c0_291], %788 {strides = array<i32>} : memref<8x2x64xf32, #tpu.memory_space<vmem>>, vector<1x2x64xf32>,
    %c2_292 = arith.constant 2 : index
    %c0_293 = arith.constant 0 : index
    %c0_294 = arith.constant 0 : index
    %789 = vector.load %arg13[%c2_292, %c0_293, %c0_294] : memref<8x2x384xf32, #tpu.memory_space<vmem>>, vector<1x2x384xf32>
    %790 = vector.shape_cast %789 : vector<1x2x384xf32> to vector<2x384xf32>
    %cst_295 = arith.constant dense<0.000000e+00> : vector<2x384xf32>
    %791 = tpu.matmul %785, %727, %cst_295 {dimension_numbers = #tpu.dot_dimension_numbers<[1], [0], [0], [1], [0, 0, 1, 1], [], []>} : vector<2x64xf32>, vector<64x384xf32>, vector<2x384xf32> -> vector<2x384xf32>
    %792 = vector.extract_strided_slice %790 {offsets = [0, 0], sizes = [2, 256], strides = [1, 1]} : vector<2x384xf32> to vector<2x256xf32>
    %793 = vector.extract_strided_slice %791 {offsets = [0, 0], sizes = [2, 256], strides = [1, 1]} : vector<2x384xf32> to vector<2x256xf32>
    %794 = arith.addf %792, %793 : vector<2x256xf32>
    %795 = arith.negf %794 : vector<2x256xf32>
    %796 = math.exp %795 : vector<2x256xf32>
    %cst_296 = arith.constant 1.000000e+00 : f32
    %797 = vector.broadcast %cst_296 : f32 to vector<2x256xf32>
    %798 = arith.addf %797, %796 : vector<2x256xf32>
    %799 = arith.divf %797, %798 : vector<2x256xf32>
    %800 = vector.extract_strided_slice %799 {offsets = [0, 0], sizes = [2, 128], strides = [1, 1]} : vector<2x256xf32> to vector<2x128xf32>
    %801 = vector.extract_strided_slice %799 {offsets = [0, 128], sizes = [2, 64], strides = [1, 1]} : vector<2x256xf32> to vector<2x64xf32>
    %802 = vector.extract_strided_slice %790 {offsets = [0, 256], sizes = [2, 128], strides = [1, 1]} : vector<2x384xf32> to vector<2x128xf32>
    %803 = vector.extract_strided_slice %791 {offsets = [0, 256], sizes = [2, 128], strides = [1, 1]} : vector<2x384xf32> to vector<2x128xf32>
    %804 = arith.addf %803, %731 : vector<2x128xf32>
    %805 = arith.mulf %800, %804 : vector<2x128xf32>
    %806 = arith.addf %802, %805 : vector<2x128xf32>
    %807 = math.tanh %806 : vector<2x128xf32>
    %cst_297 = arith.constant 1.000000e+00 : f32
    %808 = vector.broadcast %cst_297 : f32 to vector<2x64xf32>
    %809 = arith.subf %808, %801 : vector<2x64xf32>
    %810 = vector.extract_strided_slice %807 {offsets = [0, 0], sizes = [2, 64], strides = [1, 1]} : vector<2x128xf32> to vector<2x64xf32>
    %811 = arith.mulf %809, %810 : vector<2x64xf32>
    %812 = arith.mulf %801, %785 : vector<2x64xf32>
    %813 = arith.addf %811, %812 : vector<2x64xf32>
    %c2_298 = arith.constant 2 : index
    %c0_299 = arith.constant 0 : index
    %c0_300 = arith.constant 0 : index
    %814 = vector.load %arg12[%c2_298, %c0_299, %c0_300] : memref<8x2x64xf32, #tpu.memory_space<vmem>>, vector<1x2x64xf32>
    %815 = vector.shape_cast %814 : vector<1x2x64xf32> to vector<2x64xf32>
    %816 = vector.shape_cast %813 : vector<2x64xf32> to vector<1x2x64xf32>
    tpu.vector_store %arg12[%c2_298, %c0_299, %c0_300], %816 {strides = array<i32>} : memref<8x2x64xf32, #tpu.memory_space<vmem>>, vector<1x2x64xf32>,
    %c3_301 = arith.constant 3 : index
    %c0_302 = arith.constant 0 : index
    %c0_303 = arith.constant 0 : index
    %817 = vector.load %arg13[%c3_301, %c0_302, %c0_303] : memref<8x2x384xf32, #tpu.memory_space<vmem>>, vector<1x2x384xf32>
    %818 = vector.shape_cast %817 : vector<1x2x384xf32> to vector<2x384xf32>
    %cst_304 = arith.constant dense<0.000000e+00> : vector<2x384xf32>
    %819 = tpu.matmul %813, %727, %cst_304 {dimension_numbers = #tpu.dot_dimension_numbers<[1], [0], [0], [1], [0, 0, 1, 1], [], []>} : vector<2x64xf32>, vector<64x384xf32>, vector<2x384xf32> -> vector<2x384xf32>
    %820 = vector.extract_strided_slice %818 {offsets = [0, 0], sizes = [2, 256], strides = [1, 1]} : vector<2x384xf32> to vector<2x256xf32>
    %821 = vector.extract_strided_slice %819 {offsets = [0, 0], sizes = [2, 256], strides = [1, 1]} : vector<2x384xf32> to vector<2x256xf32>
    %822 = arith.addf %820, %821 : vector<2x256xf32>
    %823 = arith.negf %822 : vector<2x256xf32>
    %824 = math.exp %823 : vector<2x256xf32>
    %cst_305 = arith.constant 1.000000e+00 : f32
    %825 = vector.broadcast %cst_305 : f32 to vector<2x256xf32>
    %826 = arith.addf %825, %824 : vector<2x256xf32>
    %827 = arith.divf %825, %826 : vector<2x256xf32>
    %828 = vector.extract_strided_slice %827 {offsets = [0, 0], sizes = [2, 128], strides = [1, 1]} : vector<2x256xf32> to vector<2x128xf32>
    %829 = vector.extract_strided_slice %827 {offsets = [0, 128], sizes = [2, 64], strides = [1, 1]} : vector<2x256xf32> to vector<2x64xf32>
    %830 = vector.extract_strided_slice %818 {offsets = [0, 256], sizes = [2, 128], strides = [1, 1]} : vector<2x384xf32> to vector<2x128xf32>
    %831 = vector.extract_strided_slice %819 {offsets = [0, 256], sizes = [2, 128], strides = [1, 1]} : vector<2x384xf32> to vector<2x128xf32>
    %832 = arith.addf %831, %731 : vector<2x128xf32>
    %833 = arith.mulf %828, %832 : vector<2x128xf32>
    %834 = arith.addf %830, %833 : vector<2x128xf32>
    %835 = math.tanh %834 : vector<2x128xf32>
    %cst_306 = arith.constant 1.000000e+00 : f32
    %836 = vector.broadcast %cst_306 : f32 to vector<2x64xf32>
    %837 = arith.subf %836, %829 : vector<2x64xf32>
    %838 = vector.extract_strided_slice %835 {offsets = [0, 0], sizes = [2, 64], strides = [1, 1]} : vector<2x128xf32> to vector<2x64xf32>
    %839 = arith.mulf %837, %838 : vector<2x64xf32>
    %840 = arith.mulf %829, %813 : vector<2x64xf32>
    %841 = arith.addf %839, %840 : vector<2x64xf32>
    %c3_307 = arith.constant 3 : index
    %c0_308 = arith.constant 0 : index
    %c0_309 = arith.constant 0 : index
    %842 = vector.load %arg12[%c3_307, %c0_308, %c0_309] : memref<8x2x64xf32, #tpu.memory_space<vmem>>, vector<1x2x64xf32>
    %843 = vector.shape_cast %842 : vector<1x2x64xf32> to vector<2x64xf32>
    %844 = vector.shape_cast %841 : vector<2x64xf32> to vector<1x2x64xf32>
    tpu.vector_store %arg12[%c3_307, %c0_308, %c0_309], %844 {strides = array<i32>} : memref<8x2x64xf32, #tpu.memory_space<vmem>>, vector<1x2x64xf32>,
    %c4_310 = arith.constant 4 : index
    %c0_311 = arith.constant 0 : index
    %c0_312 = arith.constant 0 : index
    %845 = vector.load %arg13[%c4_310, %c0_311, %c0_312] : memref<8x2x384xf32, #tpu.memory_space<vmem>>, vector<1x2x384xf32>
    %846 = vector.shape_cast %845 : vector<1x2x384xf32> to vector<2x384xf32>
    %cst_313 = arith.constant dense<0.000000e+00> : vector<2x384xf32>
    %847 = tpu.matmul %841, %727, %cst_313 {dimension_numbers = #tpu.dot_dimension_numbers<[1], [0], [0], [1], [0, 0, 1, 1], [], []>} : vector<2x64xf32>, vector<64x384xf32>, vector<2x384xf32> -> vector<2x384xf32>
    %848 = vector.extract_strided_slice %846 {offsets = [0, 0], sizes = [2, 256], strides = [1, 1]} : vector<2x384xf32> to vector<2x256xf32>
    %849 = vector.extract_strided_slice %847 {offsets = [0, 0], sizes = [2, 256], strides = [1, 1]} : vector<2x384xf32> to vector<2x256xf32>
    %850 = arith.addf %848, %849 : vector<2x256xf32>
    %851 = arith.negf %850 : vector<2x256xf32>
    %852 = math.exp %851 : vector<2x256xf32>
    %cst_314 = arith.constant 1.000000e+00 : f32
    %853 = vector.broadcast %cst_314 : f32 to vector<2x256xf32>
    %854 = arith.addf %853, %852 : vector<2x256xf32>
    %855 = arith.divf %853, %854 : vector<2x256xf32>
    %856 = vector.extract_strided_slice %855 {offsets = [0, 0], sizes = [2, 128], strides = [1, 1]} : vector<2x256xf32> to vector<2x128xf32>
    %857 = vector.extract_strided_slice %855 {offsets = [0, 128], sizes = [2, 64], strides = [1, 1]} : vector<2x256xf32> to vector<2x64xf32>
    %858 = vector.extract_strided_slice %846 {offsets = [0, 256], sizes = [2, 128], strides = [1, 1]} : vector<2x384xf32> to vector<2x128xf32>
    %859 = vector.extract_strided_slice %847 {offsets = [0, 256], sizes = [2, 128], strides = [1, 1]} : vector<2x384xf32> to vector<2x128xf32>
    %860 = arith.addf %859, %731 : vector<2x128xf32>
    %861 = arith.mulf %856, %860 : vector<2x128xf32>
    %862 = arith.addf %858, %861 : vector<2x128xf32>
    %863 = math.tanh %862 : vector<2x128xf32>
    %cst_315 = arith.constant 1.000000e+00 : f32
    %864 = vector.broadcast %cst_315 : f32 to vector<2x64xf32>
    %865 = arith.subf %864, %857 : vector<2x64xf32>
    %866 = vector.extract_strided_slice %863 {offsets = [0, 0], sizes = [2, 64], strides = [1, 1]} : vector<2x128xf32> to vector<2x64xf32>
    %867 = arith.mulf %865, %866 : vector<2x64xf32>
    %868 = arith.mulf %857, %841 : vector<2x64xf32>
    %869 = arith.addf %867, %868 : vector<2x64xf32>
    %c4_316 = arith.constant 4 : index
    %c0_317 = arith.constant 0 : index
    %c0_318 = arith.constant 0 : index
    %870 = vector.load %arg12[%c4_316, %c0_317, %c0_318] : memref<8x2x64xf32, #tpu.memory_space<vmem>>, vector<1x2x64xf32>
    %871 = vector.shape_cast %870 : vector<1x2x64xf32> to vector<2x64xf32>
    %872 = vector.shape_cast %869 : vector<2x64xf32> to vector<1x2x64xf32>
    tpu.vector_store %arg12[%c4_316, %c0_317, %c0_318], %872 {strides = array<i32>} : memref<8x2x64xf32, #tpu.memory_space<vmem>>, vector<1x2x64xf32>,
    %c5_319 = arith.constant 5 : index
    %c0_320 = arith.constant 0 : index
    %c0_321 = arith.constant 0 : index
    %873 = vector.load %arg13[%c5_319, %c0_320, %c0_321] : memref<8x2x384xf32, #tpu.memory_space<vmem>>, vector<1x2x384xf32>
    %874 = vector.shape_cast %873 : vector<1x2x384xf32> to vector<2x384xf32>
    %cst_322 = arith.constant dense<0.000000e+00> : vector<2x384xf32>
    %875 = tpu.matmul %869, %727, %cst_322 {dimension_numbers = #tpu.dot_dimension_numbers<[1], [0], [0], [1], [0, 0, 1, 1], [], []>} : vector<2x64xf32>, vector<64x384xf32>, vector<2x384xf32> -> vector<2x384xf32>
    %876 = vector.extract_strided_slice %874 {offsets = [0, 0], sizes = [2, 256], strides = [1, 1]} : vector<2x384xf32> to vector<2x256xf32>
    %877 = vector.extract_strided_slice %875 {offsets = [0, 0], sizes = [2, 256], strides = [1, 1]} : vector<2x384xf32> to vector<2x256xf32>
    %878 = arith.addf %876, %877 : vector<2x256xf32>
    %879 = arith.negf %878 : vector<2x256xf32>
    %880 = math.exp %879 : vector<2x256xf32>
    %cst_323 = arith.constant 1.000000e+00 : f32
    %881 = vector.broadcast %cst_323 : f32 to vector<2x256xf32>
    %882 = arith.addf %881, %880 : vector<2x256xf32>
    %883 = arith.divf %881, %882 : vector<2x256xf32>
    %884 = vector.extract_strided_slice %883 {offsets = [0, 0], sizes = [2, 128], strides = [1, 1]} : vector<2x256xf32> to vector<2x128xf32>
    %885 = vector.extract_strided_slice %883 {offsets = [0, 128], sizes = [2, 64], strides = [1, 1]} : vector<2x256xf32> to vector<2x64xf32>
    %886 = vector.extract_strided_slice %874 {offsets = [0, 256], sizes = [2, 128], strides = [1, 1]} : vector<2x384xf32> to vector<2x128xf32>
    %887 = vector.extract_strided_slice %875 {offsets = [0, 256], sizes = [2, 128], strides = [1, 1]} : vector<2x384xf32> to vector<2x128xf32>
    %888 = arith.addf %887, %731 : vector<2x128xf32>
    %889 = arith.mulf %884, %888 : vector<2x128xf32>
    %890 = arith.addf %886, %889 : vector<2x128xf32>
    %891 = math.tanh %890 : vector<2x128xf32>
    %cst_324 = arith.constant 1.000000e+00 : f32
    %892 = vector.broadcast %cst_324 : f32 to vector<2x64xf32>
    %893 = arith.subf %892, %885 : vector<2x64xf32>
    %894 = vector.extract_strided_slice %891 {offsets = [0, 0], sizes = [2, 64], strides = [1, 1]} : vector<2x128xf32> to vector<2x64xf32>
    %895 = arith.mulf %893, %894 : vector<2x64xf32>
    %896 = arith.mulf %885, %869 : vector<2x64xf32>
    %897 = arith.addf %895, %896 : vector<2x64xf32>
    %c5_325 = arith.constant 5 : index
    %c0_326 = arith.constant 0 : index
    %c0_327 = arith.constant 0 : index
    %898 = vector.load %arg12[%c5_325, %c0_326, %c0_327] : memref<8x2x64xf32, #tpu.memory_space<vmem>>, vector<1x2x64xf32>
    %899 = vector.shape_cast %898 : vector<1x2x64xf32> to vector<2x64xf32>
    %900 = vector.shape_cast %897 : vector<2x64xf32> to vector<1x2x64xf32>
    tpu.vector_store %arg12[%c5_325, %c0_326, %c0_327], %900 {strides = array<i32>} : memref<8x2x64xf32, #tpu.memory_space<vmem>>, vector<1x2x64xf32>,
    %c6_328 = arith.constant 6 : index
    %c0_329 = arith.constant 0 : index
    %c0_330 = arith.constant 0 : index
    %901 = vector.load %arg13[%c6_328, %c0_329, %c0_330] : memref<8x2x384xf32, #tpu.memory_space<vmem>>, vector<1x2x384xf32>
    %902 = vector.shape_cast %901 : vector<1x2x384xf32> to vector<2x384xf32>
    %cst_331 = arith.constant dense<0.000000e+00> : vector<2x384xf32>
    %903 = tpu.matmul %897, %727, %cst_331 {dimension_numbers = #tpu.dot_dimension_numbers<[1], [0], [0], [1], [0, 0, 1, 1], [], []>} : vector<2x64xf32>, vector<64x384xf32>, vector<2x384xf32> -> vector<2x384xf32>
    %904 = vector.extract_strided_slice %902 {offsets = [0, 0], sizes = [2, 256], strides = [1, 1]} : vector<2x384xf32> to vector<2x256xf32>
    %905 = vector.extract_strided_slice %903 {offsets = [0, 0], sizes = [2, 256], strides = [1, 1]} : vector<2x384xf32> to vector<2x256xf32>
    %906 = arith.addf %904, %905 : vector<2x256xf32>
    %907 = arith.negf %906 : vector<2x256xf32>
    %908 = math.exp %907 : vector<2x256xf32>
    %cst_332 = arith.constant 1.000000e+00 : f32
    %909 = vector.broadcast %cst_332 : f32 to vector<2x256xf32>
    %910 = arith.addf %909, %908 : vector<2x256xf32>
    %911 = arith.divf %909, %910 : vector<2x256xf32>
    %912 = vector.extract_strided_slice %911 {offsets = [0, 0], sizes = [2, 128], strides = [1, 1]} : vector<2x256xf32> to vector<2x128xf32>
    %913 = vector.extract_strided_slice %911 {offsets = [0, 128], sizes = [2, 64], strides = [1, 1]} : vector<2x256xf32> to vector<2x64xf32>
    %914 = vector.extract_strided_slice %902 {offsets = [0, 256], sizes = [2, 128], strides = [1, 1]} : vector<2x384xf32> to vector<2x128xf32>
    %915 = vector.extract_strided_slice %903 {offsets = [0, 256], sizes = [2, 128], strides = [1, 1]} : vector<2x384xf32> to vector<2x128xf32>
    %916 = arith.addf %915, %731 : vector<2x128xf32>
    %917 = arith.mulf %912, %916 : vector<2x128xf32>
    %918 = arith.addf %914, %917 : vector<2x128xf32>
    %919 = math.tanh %918 : vector<2x128xf32>
    %cst_333 = arith.constant 1.000000e+00 : f32
    %920 = vector.broadcast %cst_333 : f32 to vector<2x64xf32>
    %921 = arith.subf %920, %913 : vector<2x64xf32>
    %922 = vector.extract_strided_slice %919 {offsets = [0, 0], sizes = [2, 64], strides = [1, 1]} : vector<2x128xf32> to vector<2x64xf32>
    %923 = arith.mulf %921, %922 : vector<2x64xf32>
    %924 = arith.mulf %913, %897 : vector<2x64xf32>
    %925 = arith.addf %923, %924 : vector<2x64xf32>
    %c6_334 = arith.constant 6 : index
    %c0_335 = arith.constant 0 : index
    %c0_336 = arith.constant 0 : index
    %926 = vector.load %arg12[%c6_334, %c0_335, %c0_336] : memref<8x2x64xf32, #tpu.memory_space<vmem>>, vector<1x2x64xf32>
    %927 = vector.shape_cast %926 : vector<1x2x64xf32> to vector<2x64xf32>
    %928 = vector.shape_cast %925 : vector<2x64xf32> to vector<1x2x64xf32>
    tpu.vector_store %arg12[%c6_334, %c0_335, %c0_336], %928 {strides = array<i32>} : memref<8x2x64xf32, #tpu.memory_space<vmem>>, vector<1x2x64xf32>,
    %c7_337 = arith.constant 7 : index
    %c0_338 = arith.constant 0 : index
    %c0_339 = arith.constant 0 : index
    %929 = vector.load %arg13[%c7_337, %c0_338, %c0_339] : memref<8x2x384xf32, #tpu.memory_space<vmem>>, vector<1x2x384xf32>
    %930 = vector.shape_cast %929 : vector<1x2x384xf32> to vector<2x384xf32>
    %cst_340 = arith.constant dense<0.000000e+00> : vector<2x384xf32>
    %931 = tpu.matmul %925, %727, %cst_340 {dimension_numbers = #tpu.dot_dimension_numbers<[1], [0], [0], [1], [0, 0, 1, 1], [], []>} : vector<2x64xf32>, vector<64x384xf32>, vector<2x384xf32> -> vector<2x384xf32>
    %932 = vector.extract_strided_slice %930 {offsets = [0, 0], sizes = [2, 256], strides = [1, 1]} : vector<2x384xf32> to vector<2x256xf32>
    %933 = vector.extract_strided_slice %931 {offsets = [0, 0], sizes = [2, 256], strides = [1, 1]} : vector<2x384xf32> to vector<2x256xf32>
    %934 = arith.addf %932, %933 : vector<2x256xf32>
    %935 = arith.negf %934 : vector<2x256xf32>
    %936 = math.exp %935 : vector<2x256xf32>
    %cst_341 = arith.constant 1.000000e+00 : f32
    %937 = vector.broadcast %cst_341 : f32 to vector<2x256xf32>
    %938 = arith.addf %937, %936 : vector<2x256xf32>
    %939 = arith.divf %937, %938 : vector<2x256xf32>
    %940 = vector.extract_strided_slice %939 {offsets = [0, 0], sizes = [2, 128], strides = [1, 1]} : vector<2x256xf32> to vector<2x128xf32>
    %941 = vector.extract_strided_slice %939 {offsets = [0, 128], sizes = [2, 64], strides = [1, 1]} : vector<2x256xf32> to vector<2x64xf32>
    %942 = vector.extract_strided_slice %930 {offsets = [0, 256], sizes = [2, 128], strides = [1, 1]} : vector<2x384xf32> to vector<2x128xf32>
    %943 = vector.extract_strided_slice %931 {offsets = [0, 256], sizes = [2, 128], strides = [1, 1]} : vector<2x384xf32> to vector<2x128xf32>
    %944 = arith.addf %943, %731 : vector<2x128xf32>
    %945 = arith.mulf %940, %944 : vector<2x128xf32>
    %946 = arith.addf %942, %945 : vector<2x128xf32>
    %947 = math.tanh %946 : vector<2x128xf32>
    %cst_342 = arith.constant 1.000000e+00 : f32
    %948 = vector.broadcast %cst_342 : f32 to vector<2x64xf32>
    %949 = arith.subf %948, %941 : vector<2x64xf32>
    %950 = vector.extract_strided_slice %947 {offsets = [0, 0], sizes = [2, 64], strides = [1, 1]} : vector<2x128xf32> to vector<2x64xf32>
    %951 = arith.mulf %949, %950 : vector<2x64xf32>
    %952 = arith.mulf %941, %925 : vector<2x64xf32>
    %953 = arith.addf %951, %952 : vector<2x64xf32>
    %c7_343 = arith.constant 7 : index
    %c0_344 = arith.constant 0 : index
    %c0_345 = arith.constant 0 : index
    %954 = vector.load %arg12[%c7_343, %c0_344, %c0_345] : memref<8x2x64xf32, #tpu.memory_space<vmem>>, vector<1x2x64xf32>
    %955 = vector.shape_cast %954 : vector<1x2x64xf32> to vector<2x64xf32>
    %956 = vector.shape_cast %953 : vector<2x64xf32> to vector<1x2x64xf32>
    tpu.vector_store %arg12[%c7_343, %c0_344, %c0_345], %956 {strides = array<i32>} : memref<8x2x64xf32, #tpu.memory_space<vmem>>, vector<1x2x64xf32>,
    %c0_346 = arith.constant 0 : index
    %c0_347 = arith.constant 0 : index
    %c0_348 = arith.constant 0 : index
    %957 = vector.load %arg12[%c0_346, %c0_347, %c0_348] : memref<8x2x64xf32, #tpu.memory_space<vmem>>, vector<8x2x64xf32>
    %958 = vector.shape_cast %957 : vector<8x2x64xf32> to vector<16x64xf32>
    %c3_349 = arith.constant 3 : index
    %c0_350 = arith.constant 0 : index
    %c0_351 = arith.constant 0 : index
    %959 = vector.load %arg1[%c3_349, %c0_350, %c0_351] : memref<5x64x384xf32, #tpu.memory_space<vmem>>, vector<1x64x384xf32>
    %960 = vector.shape_cast %959 : vector<1x64x384xf32> to vector<64x384xf32>
    %cst_352 = arith.constant dense<0.000000e+00> : vector<16x384xf32>
    %961 = tpu.matmul %958, %960, %cst_352 {dimension_numbers = #tpu.dot_dimension_numbers<[1], [0], [0], [1], [0, 0, 1, 1], [], []>} : vector<16x64xf32>, vector<64x384xf32>, vector<16x384xf32> -> vector<16x384xf32>
    %c3_353 = arith.constant 3 : index
    %c0_354 = arith.constant 0 : index
    %c0_355 = arith.constant 0 : index
    %962 = vector.load %arg2[%c3_353, %c0_354, %c0_355] : memref<5x1x384xf32, #tpu.memory_space<vmem>>, vector<1x1x384xf32>
    %963 = vector.shape_cast %962 : vector<1x1x384xf32> to vector<1x384xf32>
    %964 = vector.broadcast %963 : vector<1x384xf32> to vector<16x384xf32>
    %965 = arith.addf %961, %964 : vector<16x384xf32>
    %966 = vector.shape_cast %965 : vector<16x384xf32> to vector<8x2x384xf32>
    %c0_356 = arith.constant 0 : index
    %c0_357 = arith.constant 0 : index
    %c0_358 = arith.constant 0 : index
    %967 = vector.load %arg13[%c0_356, %c0_357, %c0_358] : memref<8x2x384xf32, #tpu.memory_space<vmem>>, vector<8x2x384xf32>
    tpu.vector_store %arg13[%c0_356, %c0_357, %c0_358], %966 {strides = array<i32>} : memref<8x2x384xf32, #tpu.memory_space<vmem>>, vector<8x2x384xf32>,
    %c4_359 = arith.constant 4 : index
    %c0_360 = arith.constant 0 : index
    %c0_361 = arith.constant 0 : index
    %968 = vector.load %arg3[%c4_359, %c0_360, %c0_361] : memref<6x64x384xf32, #tpu.memory_space<vmem>>, vector<1x64x384xf32>
    %969 = vector.shape_cast %968 : vector<1x64x384xf32> to vector<64x384xf32>
    %c4_362 = arith.constant 4 : index
    %c0_363 = arith.constant 0 : index
    %c0_364 = arith.constant 0 : index
    %970 = vector.load %arg4[%c4_362, %c0_363, %c0_364] : memref<6x1x128xf32, #tpu.memory_space<vmem>>, vector<1x1x128xf32>
    %971 = vector.shape_cast %970 : vector<1x1x128xf32> to vector<1x128xf32>
    %972 = vector.shape_cast %971 : vector<1x128xf32> to vector<1x128xf32>
    %973 = vector.broadcast %972 : vector<1x128xf32> to vector<2x128xf32>
    %cst_365 = arith.constant 0.000000e+00 : f32
    %974 = vector.broadcast %cst_365 : f32 to vector<2x64xf32>
    %c0_366 = arith.constant 0 : index
    %c0_367 = arith.constant 0 : index
    %c0_368 = arith.constant 0 : index
    %975 = vector.load %arg13[%c0_366, %c0_367, %c0_368] : memref<8x2x384xf32, #tpu.memory_space<vmem>>, vector<1x2x384xf32>
    %976 = vector.shape_cast %975 : vector<1x2x384xf32> to vector<2x384xf32>
    %cst_369 = arith.constant dense<0.000000e+00> : vector<2x384xf32>
    %977 = tpu.matmul %974, %969, %cst_369 {dimension_numbers = #tpu.dot_dimension_numbers<[1], [0], [0], [1], [0, 0, 1, 1], [], []>} : vector<2x64xf32>, vector<64x384xf32>, vector<2x384xf32> -> vector<2x384xf32>
    %978 = vector.extract_strided_slice %976 {offsets = [0, 0], sizes = [2, 256], strides = [1, 1]} : vector<2x384xf32> to vector<2x256xf32>
    %979 = vector.extract_strided_slice %977 {offsets = [0, 0], sizes = [2, 256], strides = [1, 1]} : vector<2x384xf32> to vector<2x256xf32>
    %980 = arith.addf %978, %979 : vector<2x256xf32>
    %981 = arith.negf %980 : vector<2x256xf32>
    %982 = math.exp %981 : vector<2x256xf32>
    %cst_370 = arith.constant 1.000000e+00 : f32
    %983 = vector.broadcast %cst_370 : f32 to vector<2x256xf32>
    %984 = arith.addf %983, %982 : vector<2x256xf32>
    %985 = arith.divf %983, %984 : vector<2x256xf32>
    %986 = vector.extract_strided_slice %985 {offsets = [0, 0], sizes = [2, 128], strides = [1, 1]} : vector<2x256xf32> to vector<2x128xf32>
    %987 = vector.extract_strided_slice %985 {offsets = [0, 128], sizes = [2, 64], strides = [1, 1]} : vector<2x256xf32> to vector<2x64xf32>
    %988 = vector.extract_strided_slice %976 {offsets = [0, 256], sizes = [2, 128], strides = [1, 1]} : vector<2x384xf32> to vector<2x128xf32>
    %989 = vector.extract_strided_slice %977 {offsets = [0, 256], sizes = [2, 128], strides = [1, 1]} : vector<2x384xf32> to vector<2x128xf32>
    %990 = arith.addf %989, %973 : vector<2x128xf32>
    %991 = arith.mulf %986, %990 : vector<2x128xf32>
    %992 = arith.addf %988, %991 : vector<2x128xf32>
    %993 = math.tanh %992 : vector<2x128xf32>
    %cst_371 = arith.constant 1.000000e+00 : f32
    %994 = vector.broadcast %cst_371 : f32 to vector<2x64xf32>
    %995 = arith.subf %994, %987 : vector<2x64xf32>
    %996 = vector.extract_strided_slice %993 {offsets = [0, 0], sizes = [2, 64], strides = [1, 1]} : vector<2x128xf32> to vector<2x64xf32>
    %997 = arith.mulf %995, %996 : vector<2x64xf32>
    %998 = arith.mulf %987, %974 : vector<2x64xf32>
    %999 = arith.addf %997, %998 : vector<2x64xf32>
    %c0_372 = arith.constant 0 : index
    %c0_373 = arith.constant 0 : index
    %c0_374 = arith.constant 0 : index
    %1000 = vector.load %arg12[%c0_372, %c0_373, %c0_374] : memref<8x2x64xf32, #tpu.memory_space<vmem>>, vector<1x2x64xf32>
    %1001 = vector.shape_cast %1000 : vector<1x2x64xf32> to vector<2x64xf32>
    %1002 = vector.shape_cast %999 : vector<2x64xf32> to vector<1x2x64xf32>
    tpu.vector_store %arg12[%c0_372, %c0_373, %c0_374], %1002 {strides = array<i32>} : memref<8x2x64xf32, #tpu.memory_space<vmem>>, vector<1x2x64xf32>,
    %c1_375 = arith.constant 1 : index
    %c0_376 = arith.constant 0 : index
    %c0_377 = arith.constant 0 : index
    %1003 = vector.load %arg13[%c1_375, %c0_376, %c0_377] : memref<8x2x384xf32, #tpu.memory_space<vmem>>, vector<1x2x384xf32>
    %1004 = vector.shape_cast %1003 : vector<1x2x384xf32> to vector<2x384xf32>
    %cst_378 = arith.constant dense<0.000000e+00> : vector<2x384xf32>
    %1005 = tpu.matmul %999, %969, %cst_378 {dimension_numbers = #tpu.dot_dimension_numbers<[1], [0], [0], [1], [0, 0, 1, 1], [], []>} : vector<2x64xf32>, vector<64x384xf32>, vector<2x384xf32> -> vector<2x384xf32>
    %1006 = vector.extract_strided_slice %1004 {offsets = [0, 0], sizes = [2, 256], strides = [1, 1]} : vector<2x384xf32> to vector<2x256xf32>
    %1007 = vector.extract_strided_slice %1005 {offsets = [0, 0], sizes = [2, 256], strides = [1, 1]} : vector<2x384xf32> to vector<2x256xf32>
    %1008 = arith.addf %1006, %1007 : vector<2x256xf32>
    %1009 = arith.negf %1008 : vector<2x256xf32>
    %1010 = math.exp %1009 : vector<2x256xf32>
    %cst_379 = arith.constant 1.000000e+00 : f32
    %1011 = vector.broadcast %cst_379 : f32 to vector<2x256xf32>
    %1012 = arith.addf %1011, %1010 : vector<2x256xf32>
    %1013 = arith.divf %1011, %1012 : vector<2x256xf32>
    %1014 = vector.extract_strided_slice %1013 {offsets = [0, 0], sizes = [2, 128], strides = [1, 1]} : vector<2x256xf32> to vector<2x128xf32>
    %1015 = vector.extract_strided_slice %1013 {offsets = [0, 128], sizes = [2, 64], strides = [1, 1]} : vector<2x256xf32> to vector<2x64xf32>
    %1016 = vector.extract_strided_slice %1004 {offsets = [0, 256], sizes = [2, 128], strides = [1, 1]} : vector<2x384xf32> to vector<2x128xf32>
    %1017 = vector.extract_strided_slice %1005 {offsets = [0, 256], sizes = [2, 128], strides = [1, 1]} : vector<2x384xf32> to vector<2x128xf32>
    %1018 = arith.addf %1017, %973 : vector<2x128xf32>
    %1019 = arith.mulf %1014, %1018 : vector<2x128xf32>
    %1020 = arith.addf %1016, %1019 : vector<2x128xf32>
    %1021 = math.tanh %1020 : vector<2x128xf32>
    %cst_380 = arith.constant 1.000000e+00 : f32
    %1022 = vector.broadcast %cst_380 : f32 to vector<2x64xf32>
    %1023 = arith.subf %1022, %1015 : vector<2x64xf32>
    %1024 = vector.extract_strided_slice %1021 {offsets = [0, 0], sizes = [2, 64], strides = [1, 1]} : vector<2x128xf32> to vector<2x64xf32>
    %1025 = arith.mulf %1023, %1024 : vector<2x64xf32>
    %1026 = arith.mulf %1015, %999 : vector<2x64xf32>
    %1027 = arith.addf %1025, %1026 : vector<2x64xf32>
    %c1_381 = arith.constant 1 : index
    %c0_382 = arith.constant 0 : index
    %c0_383 = arith.constant 0 : index
    %1028 = vector.load %arg12[%c1_381, %c0_382, %c0_383] : memref<8x2x64xf32, #tpu.memory_space<vmem>>, vector<1x2x64xf32>
    %1029 = vector.shape_cast %1028 : vector<1x2x64xf32> to vector<2x64xf32>
    %1030 = vector.shape_cast %1027 : vector<2x64xf32> to vector<1x2x64xf32>
    tpu.vector_store %arg12[%c1_381, %c0_382, %c0_383], %1030 {strides = array<i32>} : memref<8x2x64xf32, #tpu.memory_space<vmem>>, vector<1x2x64xf32>,
    %c2_384 = arith.constant 2 : index
    %c0_385 = arith.constant 0 : index
    %c0_386 = arith.constant 0 : index
    %1031 = vector.load %arg13[%c2_384, %c0_385, %c0_386] : memref<8x2x384xf32, #tpu.memory_space<vmem>>, vector<1x2x384xf32>
    %1032 = vector.shape_cast %1031 : vector<1x2x384xf32> to vector<2x384xf32>
    %cst_387 = arith.constant dense<0.000000e+00> : vector<2x384xf32>
    %1033 = tpu.matmul %1027, %969, %cst_387 {dimension_numbers = #tpu.dot_dimension_numbers<[1], [0], [0], [1], [0, 0, 1, 1], [], []>} : vector<2x64xf32>, vector<64x384xf32>, vector<2x384xf32> -> vector<2x384xf32>
    %1034 = vector.extract_strided_slice %1032 {offsets = [0, 0], sizes = [2, 256], strides = [1, 1]} : vector<2x384xf32> to vector<2x256xf32>
    %1035 = vector.extract_strided_slice %1033 {offsets = [0, 0], sizes = [2, 256], strides = [1, 1]} : vector<2x384xf32> to vector<2x256xf32>
    %1036 = arith.addf %1034, %1035 : vector<2x256xf32>
    %1037 = arith.negf %1036 : vector<2x256xf32>
    %1038 = math.exp %1037 : vector<2x256xf32>
    %cst_388 = arith.constant 1.000000e+00 : f32
    %1039 = vector.broadcast %cst_388 : f32 to vector<2x256xf32>
    %1040 = arith.addf %1039, %1038 : vector<2x256xf32>
    %1041 = arith.divf %1039, %1040 : vector<2x256xf32>
    %1042 = vector.extract_strided_slice %1041 {offsets = [0, 0], sizes = [2, 128], strides = [1, 1]} : vector<2x256xf32> to vector<2x128xf32>
    %1043 = vector.extract_strided_slice %1041 {offsets = [0, 128], sizes = [2, 64], strides = [1, 1]} : vector<2x256xf32> to vector<2x64xf32>
    %1044 = vector.extract_strided_slice %1032 {offsets = [0, 256], sizes = [2, 128], strides = [1, 1]} : vector<2x384xf32> to vector<2x128xf32>
    %1045 = vector.extract_strided_slice %1033 {offsets = [0, 256], sizes = [2, 128], strides = [1, 1]} : vector<2x384xf32> to vector<2x128xf32>
    %1046 = arith.addf %1045, %973 : vector<2x128xf32>
    %1047 = arith.mulf %1042, %1046 : vector<2x128xf32>
    %1048 = arith.addf %1044, %1047 : vector<2x128xf32>
    %1049 = math.tanh %1048 : vector<2x128xf32>
    %cst_389 = arith.constant 1.000000e+00 : f32
    %1050 = vector.broadcast %cst_389 : f32 to vector<2x64xf32>
    %1051 = arith.subf %1050, %1043 : vector<2x64xf32>
    %1052 = vector.extract_strided_slice %1049 {offsets = [0, 0], sizes = [2, 64], strides = [1, 1]} : vector<2x128xf32> to vector<2x64xf32>
    %1053 = arith.mulf %1051, %1052 : vector<2x64xf32>
    %1054 = arith.mulf %1043, %1027 : vector<2x64xf32>
    %1055 = arith.addf %1053, %1054 : vector<2x64xf32>
    %c2_390 = arith.constant 2 : index
    %c0_391 = arith.constant 0 : index
    %c0_392 = arith.constant 0 : index
    %1056 = vector.load %arg12[%c2_390, %c0_391, %c0_392] : memref<8x2x64xf32, #tpu.memory_space<vmem>>, vector<1x2x64xf32>
    %1057 = vector.shape_cast %1056 : vector<1x2x64xf32> to vector<2x64xf32>
    %1058 = vector.shape_cast %1055 : vector<2x64xf32> to vector<1x2x64xf32>
    tpu.vector_store %arg12[%c2_390, %c0_391, %c0_392], %1058 {strides = array<i32>} : memref<8x2x64xf32, #tpu.memory_space<vmem>>, vector<1x2x64xf32>,
    %c3_393 = arith.constant 3 : index
    %c0_394 = arith.constant 0 : index
    %c0_395 = arith.constant 0 : index
    %1059 = vector.load %arg13[%c3_393, %c0_394, %c0_395] : memref<8x2x384xf32, #tpu.memory_space<vmem>>, vector<1x2x384xf32>
    %1060 = vector.shape_cast %1059 : vector<1x2x384xf32> to vector<2x384xf32>
    %cst_396 = arith.constant dense<0.000000e+00> : vector<2x384xf32>
    %1061 = tpu.matmul %1055, %969, %cst_396 {dimension_numbers = #tpu.dot_dimension_numbers<[1], [0], [0], [1], [0, 0, 1, 1], [], []>} : vector<2x64xf32>, vector<64x384xf32>, vector<2x384xf32> -> vector<2x384xf32>
    %1062 = vector.extract_strided_slice %1060 {offsets = [0, 0], sizes = [2, 256], strides = [1, 1]} : vector<2x384xf32> to vector<2x256xf32>
    %1063 = vector.extract_strided_slice %1061 {offsets = [0, 0], sizes = [2, 256], strides = [1, 1]} : vector<2x384xf32> to vector<2x256xf32>
    %1064 = arith.addf %1062, %1063 : vector<2x256xf32>
    %1065 = arith.negf %1064 : vector<2x256xf32>
    %1066 = math.exp %1065 : vector<2x256xf32>
    %cst_397 = arith.constant 1.000000e+00 : f32
    %1067 = vector.broadcast %cst_397 : f32 to vector<2x256xf32>
    %1068 = arith.addf %1067, %1066 : vector<2x256xf32>
    %1069 = arith.divf %1067, %1068 : vector<2x256xf32>
    %1070 = vector.extract_strided_slice %1069 {offsets = [0, 0], sizes = [2, 128], strides = [1, 1]} : vector<2x256xf32> to vector<2x128xf32>
    %1071 = vector.extract_strided_slice %1069 {offsets = [0, 128], sizes = [2, 64], strides = [1, 1]} : vector<2x256xf32> to vector<2x64xf32>
    %1072 = vector.extract_strided_slice %1060 {offsets = [0, 256], sizes = [2, 128], strides = [1, 1]} : vector<2x384xf32> to vector<2x128xf32>
    %1073 = vector.extract_strided_slice %1061 {offsets = [0, 256], sizes = [2, 128], strides = [1, 1]} : vector<2x384xf32> to vector<2x128xf32>
    %1074 = arith.addf %1073, %973 : vector<2x128xf32>
    %1075 = arith.mulf %1070, %1074 : vector<2x128xf32>
    %1076 = arith.addf %1072, %1075 : vector<2x128xf32>
    %1077 = math.tanh %1076 : vector<2x128xf32>
    %cst_398 = arith.constant 1.000000e+00 : f32
    %1078 = vector.broadcast %cst_398 : f32 to vector<2x64xf32>
    %1079 = arith.subf %1078, %1071 : vector<2x64xf32>
    %1080 = vector.extract_strided_slice %1077 {offsets = [0, 0], sizes = [2, 64], strides = [1, 1]} : vector<2x128xf32> to vector<2x64xf32>
    %1081 = arith.mulf %1079, %1080 : vector<2x64xf32>
    %1082 = arith.mulf %1071, %1055 : vector<2x64xf32>
    %1083 = arith.addf %1081, %1082 : vector<2x64xf32>
    %c3_399 = arith.constant 3 : index
    %c0_400 = arith.constant 0 : index
    %c0_401 = arith.constant 0 : index
    %1084 = vector.load %arg12[%c3_399, %c0_400, %c0_401] : memref<8x2x64xf32, #tpu.memory_space<vmem>>, vector<1x2x64xf32>
    %1085 = vector.shape_cast %1084 : vector<1x2x64xf32> to vector<2x64xf32>
    %1086 = vector.shape_cast %1083 : vector<2x64xf32> to vector<1x2x64xf32>
    tpu.vector_store %arg12[%c3_399, %c0_400, %c0_401], %1086 {strides = array<i32>} : memref<8x2x64xf32, #tpu.memory_space<vmem>>, vector<1x2x64xf32>,
    %c4_402 = arith.constant 4 : index
    %c0_403 = arith.constant 0 : index
    %c0_404 = arith.constant 0 : index
    %1087 = vector.load %arg13[%c4_402, %c0_403, %c0_404] : memref<8x2x384xf32, #tpu.memory_space<vmem>>, vector<1x2x384xf32>
    %1088 = vector.shape_cast %1087 : vector<1x2x384xf32> to vector<2x384xf32>
    %cst_405 = arith.constant dense<0.000000e+00> : vector<2x384xf32>
    %1089 = tpu.matmul %1083, %969, %cst_405 {dimension_numbers = #tpu.dot_dimension_numbers<[1], [0], [0], [1], [0, 0, 1, 1], [], []>} : vector<2x64xf32>, vector<64x384xf32>, vector<2x384xf32> -> vector<2x384xf32>
    %1090 = vector.extract_strided_slice %1088 {offsets = [0, 0], sizes = [2, 256], strides = [1, 1]} : vector<2x384xf32> to vector<2x256xf32>
    %1091 = vector.extract_strided_slice %1089 {offsets = [0, 0], sizes = [2, 256], strides = [1, 1]} : vector<2x384xf32> to vector<2x256xf32>
    %1092 = arith.addf %1090, %1091 : vector<2x256xf32>
    %1093 = arith.negf %1092 : vector<2x256xf32>
    %1094 = math.exp %1093 : vector<2x256xf32>
    %cst_406 = arith.constant 1.000000e+00 : f32
    %1095 = vector.broadcast %cst_406 : f32 to vector<2x256xf32>
    %1096 = arith.addf %1095, %1094 : vector<2x256xf32>
    %1097 = arith.divf %1095, %1096 : vector<2x256xf32>
    %1098 = vector.extract_strided_slice %1097 {offsets = [0, 0], sizes = [2, 128], strides = [1, 1]} : vector<2x256xf32> to vector<2x128xf32>
    %1099 = vector.extract_strided_slice %1097 {offsets = [0, 128], sizes = [2, 64], strides = [1, 1]} : vector<2x256xf32> to vector<2x64xf32>
    %1100 = vector.extract_strided_slice %1088 {offsets = [0, 256], sizes = [2, 128], strides = [1, 1]} : vector<2x384xf32> to vector<2x128xf32>
    %1101 = vector.extract_strided_slice %1089 {offsets = [0, 256], sizes = [2, 128], strides = [1, 1]} : vector<2x384xf32> to vector<2x128xf32>
    %1102 = arith.addf %1101, %973 : vector<2x128xf32>
    %1103 = arith.mulf %1098, %1102 : vector<2x128xf32>
    %1104 = arith.addf %1100, %1103 : vector<2x128xf32>
    %1105 = math.tanh %1104 : vector<2x128xf32>
    %cst_407 = arith.constant 1.000000e+00 : f32
    %1106 = vector.broadcast %cst_407 : f32 to vector<2x64xf32>
    %1107 = arith.subf %1106, %1099 : vector<2x64xf32>
    %1108 = vector.extract_strided_slice %1105 {offsets = [0, 0], sizes = [2, 64], strides = [1, 1]} : vector<2x128xf32> to vector<2x64xf32>
    %1109 = arith.mulf %1107, %1108 : vector<2x64xf32>
    %1110 = arith.mulf %1099, %1083 : vector<2x64xf32>
    %1111 = arith.addf %1109, %1110 : vector<2x64xf32>
    %c4_408 = arith.constant 4 : index
    %c0_409 = arith.constant 0 : index
    %c0_410 = arith.constant 0 : index
    %1112 = vector.load %arg12[%c4_408, %c0_409, %c0_410] : memref<8x2x64xf32, #tpu.memory_space<vmem>>, vector<1x2x64xf32>
    %1113 = vector.shape_cast %1112 : vector<1x2x64xf32> to vector<2x64xf32>
    %1114 = vector.shape_cast %1111 : vector<2x64xf32> to vector<1x2x64xf32>
    tpu.vector_store %arg12[%c4_408, %c0_409, %c0_410], %1114 {strides = array<i32>} : memref<8x2x64xf32, #tpu.memory_space<vmem>>, vector<1x2x64xf32>,
    %c5_411 = arith.constant 5 : index
    %c0_412 = arith.constant 0 : index
    %c0_413 = arith.constant 0 : index
    %1115 = vector.load %arg13[%c5_411, %c0_412, %c0_413] : memref<8x2x384xf32, #tpu.memory_space<vmem>>, vector<1x2x384xf32>
    %1116 = vector.shape_cast %1115 : vector<1x2x384xf32> to vector<2x384xf32>
    %cst_414 = arith.constant dense<0.000000e+00> : vector<2x384xf32>
    %1117 = tpu.matmul %1111, %969, %cst_414 {dimension_numbers = #tpu.dot_dimension_numbers<[1], [0], [0], [1], [0, 0, 1, 1], [], []>} : vector<2x64xf32>, vector<64x384xf32>, vector<2x384xf32> -> vector<2x384xf32>
    %1118 = vector.extract_strided_slice %1116 {offsets = [0, 0], sizes = [2, 256], strides = [1, 1]} : vector<2x384xf32> to vector<2x256xf32>
    %1119 = vector.extract_strided_slice %1117 {offsets = [0, 0], sizes = [2, 256], strides = [1, 1]} : vector<2x384xf32> to vector<2x256xf32>
    %1120 = arith.addf %1118, %1119 : vector<2x256xf32>
    %1121 = arith.negf %1120 : vector<2x256xf32>
    %1122 = math.exp %1121 : vector<2x256xf32>
    %cst_415 = arith.constant 1.000000e+00 : f32
    %1123 = vector.broadcast %cst_415 : f32 to vector<2x256xf32>
    %1124 = arith.addf %1123, %1122 : vector<2x256xf32>
    %1125 = arith.divf %1123, %1124 : vector<2x256xf32>
    %1126 = vector.extract_strided_slice %1125 {offsets = [0, 0], sizes = [2, 128], strides = [1, 1]} : vector<2x256xf32> to vector<2x128xf32>
    %1127 = vector.extract_strided_slice %1125 {offsets = [0, 128], sizes = [2, 64], strides = [1, 1]} : vector<2x256xf32> to vector<2x64xf32>
    %1128 = vector.extract_strided_slice %1116 {offsets = [0, 256], sizes = [2, 128], strides = [1, 1]} : vector<2x384xf32> to vector<2x128xf32>
    %1129 = vector.extract_strided_slice %1117 {offsets = [0, 256], sizes = [2, 128], strides = [1, 1]} : vector<2x384xf32> to vector<2x128xf32>
    %1130 = arith.addf %1129, %973 : vector<2x128xf32>
    %1131 = arith.mulf %1126, %1130 : vector<2x128xf32>
    %1132 = arith.addf %1128, %1131 : vector<2x128xf32>
    %1133 = math.tanh %1132 : vector<2x128xf32>
    %cst_416 = arith.constant 1.000000e+00 : f32
    %1134 = vector.broadcast %cst_416 : f32 to vector<2x64xf32>
    %1135 = arith.subf %1134, %1127 : vector<2x64xf32>
    %1136 = vector.extract_strided_slice %1133 {offsets = [0, 0], sizes = [2, 64], strides = [1, 1]} : vector<2x128xf32> to vector<2x64xf32>
    %1137 = arith.mulf %1135, %1136 : vector<2x64xf32>
    %1138 = arith.mulf %1127, %1111 : vector<2x64xf32>
    %1139 = arith.addf %1137, %1138 : vector<2x64xf32>
    %c5_417 = arith.constant 5 : index
    %c0_418 = arith.constant 0 : index
    %c0_419 = arith.constant 0 : index
    %1140 = vector.load %arg12[%c5_417, %c0_418, %c0_419] : memref<8x2x64xf32, #tpu.memory_space<vmem>>, vector<1x2x64xf32>
    %1141 = vector.shape_cast %1140 : vector<1x2x64xf32> to vector<2x64xf32>
    %1142 = vector.shape_cast %1139 : vector<2x64xf32> to vector<1x2x64xf32>
    tpu.vector_store %arg12[%c5_417, %c0_418, %c0_419], %1142 {strides = array<i32>} : memref<8x2x64xf32, #tpu.memory_space<vmem>>, vector<1x2x64xf32>,
    %c6_420 = arith.constant 6 : index
    %c0_421 = arith.constant 0 : index
    %c0_422 = arith.constant 0 : index
    %1143 = vector.load %arg13[%c6_420, %c0_421, %c0_422] : memref<8x2x384xf32, #tpu.memory_space<vmem>>, vector<1x2x384xf32>
    %1144 = vector.shape_cast %1143 : vector<1x2x384xf32> to vector<2x384xf32>
    %cst_423 = arith.constant dense<0.000000e+00> : vector<2x384xf32>
    %1145 = tpu.matmul %1139, %969, %cst_423 {dimension_numbers = #tpu.dot_dimension_numbers<[1], [0], [0], [1], [0, 0, 1, 1], [], []>} : vector<2x64xf32>, vector<64x384xf32>, vector<2x384xf32> -> vector<2x384xf32>
    %1146 = vector.extract_strided_slice %1144 {offsets = [0, 0], sizes = [2, 256], strides = [1, 1]} : vector<2x384xf32> to vector<2x256xf32>
    %1147 = vector.extract_strided_slice %1145 {offsets = [0, 0], sizes = [2, 256], strides = [1, 1]} : vector<2x384xf32> to vector<2x256xf32>
    %1148 = arith.addf %1146, %1147 : vector<2x256xf32>
    %1149 = arith.negf %1148 : vector<2x256xf32>
    %1150 = math.exp %1149 : vector<2x256xf32>
    %cst_424 = arith.constant 1.000000e+00 : f32
    %1151 = vector.broadcast %cst_424 : f32 to vector<2x256xf32>
    %1152 = arith.addf %1151, %1150 : vector<2x256xf32>
    %1153 = arith.divf %1151, %1152 : vector<2x256xf32>
    %1154 = vector.extract_strided_slice %1153 {offsets = [0, 0], sizes = [2, 128], strides = [1, 1]} : vector<2x256xf32> to vector<2x128xf32>
    %1155 = vector.extract_strided_slice %1153 {offsets = [0, 128], sizes = [2, 64], strides = [1, 1]} : vector<2x256xf32> to vector<2x64xf32>
    %1156 = vector.extract_strided_slice %1144 {offsets = [0, 256], sizes = [2, 128], strides = [1, 1]} : vector<2x384xf32> to vector<2x128xf32>
    %1157 = vector.extract_strided_slice %1145 {offsets = [0, 256], sizes = [2, 128], strides = [1, 1]} : vector<2x384xf32> to vector<2x128xf32>
    %1158 = arith.addf %1157, %973 : vector<2x128xf32>
    %1159 = arith.mulf %1154, %1158 : vector<2x128xf32>
    %1160 = arith.addf %1156, %1159 : vector<2x128xf32>
    %1161 = math.tanh %1160 : vector<2x128xf32>
    %cst_425 = arith.constant 1.000000e+00 : f32
    %1162 = vector.broadcast %cst_425 : f32 to vector<2x64xf32>
    %1163 = arith.subf %1162, %1155 : vector<2x64xf32>
    %1164 = vector.extract_strided_slice %1161 {offsets = [0, 0], sizes = [2, 64], strides = [1, 1]} : vector<2x128xf32> to vector<2x64xf32>
    %1165 = arith.mulf %1163, %1164 : vector<2x64xf32>
    %1166 = arith.mulf %1155, %1139 : vector<2x64xf32>
    %1167 = arith.addf %1165, %1166 : vector<2x64xf32>
    %c6_426 = arith.constant 6 : index
    %c0_427 = arith.constant 0 : index
    %c0_428 = arith.constant 0 : index
    %1168 = vector.load %arg12[%c6_426, %c0_427, %c0_428] : memref<8x2x64xf32, #tpu.memory_space<vmem>>, vector<1x2x64xf32>
    %1169 = vector.shape_cast %1168 : vector<1x2x64xf32> to vector<2x64xf32>
    %1170 = vector.shape_cast %1167 : vector<2x64xf32> to vector<1x2x64xf32>
    tpu.vector_store %arg12[%c6_426, %c0_427, %c0_428], %1170 {strides = array<i32>} : memref<8x2x64xf32, #tpu.memory_space<vmem>>, vector<1x2x64xf32>,
    %c7_429 = arith.constant 7 : index
    %c0_430 = arith.constant 0 : index
    %c0_431 = arith.constant 0 : index
    %1171 = vector.load %arg13[%c7_429, %c0_430, %c0_431] : memref<8x2x384xf32, #tpu.memory_space<vmem>>, vector<1x2x384xf32>
    %1172 = vector.shape_cast %1171 : vector<1x2x384xf32> to vector<2x384xf32>
    %cst_432 = arith.constant dense<0.000000e+00> : vector<2x384xf32>
    %1173 = tpu.matmul %1167, %969, %cst_432 {dimension_numbers = #tpu.dot_dimension_numbers<[1], [0], [0], [1], [0, 0, 1, 1], [], []>} : vector<2x64xf32>, vector<64x384xf32>, vector<2x384xf32> -> vector<2x384xf32>
    %1174 = vector.extract_strided_slice %1172 {offsets = [0, 0], sizes = [2, 256], strides = [1, 1]} : vector<2x384xf32> to vector<2x256xf32>
    %1175 = vector.extract_strided_slice %1173 {offsets = [0, 0], sizes = [2, 256], strides = [1, 1]} : vector<2x384xf32> to vector<2x256xf32>
    %1176 = arith.addf %1174, %1175 : vector<2x256xf32>
    %1177 = arith.negf %1176 : vector<2x256xf32>
    %1178 = math.exp %1177 : vector<2x256xf32>
    %cst_433 = arith.constant 1.000000e+00 : f32
    %1179 = vector.broadcast %cst_433 : f32 to vector<2x256xf32>
    %1180 = arith.addf %1179, %1178 : vector<2x256xf32>
    %1181 = arith.divf %1179, %1180 : vector<2x256xf32>
    %1182 = vector.extract_strided_slice %1181 {offsets = [0, 0], sizes = [2, 128], strides = [1, 1]} : vector<2x256xf32> to vector<2x128xf32>
    %1183 = vector.extract_strided_slice %1181 {offsets = [0, 128], sizes = [2, 64], strides = [1, 1]} : vector<2x256xf32> to vector<2x64xf32>
    %1184 = vector.extract_strided_slice %1172 {offsets = [0, 256], sizes = [2, 128], strides = [1, 1]} : vector<2x384xf32> to vector<2x128xf32>
    %1185 = vector.extract_strided_slice %1173 {offsets = [0, 256], sizes = [2, 128], strides = [1, 1]} : vector<2x384xf32> to vector<2x128xf32>
    %1186 = arith.addf %1185, %973 : vector<2x128xf32>
    %1187 = arith.mulf %1182, %1186 : vector<2x128xf32>
    %1188 = arith.addf %1184, %1187 : vector<2x128xf32>
    %1189 = math.tanh %1188 : vector<2x128xf32>
    %cst_434 = arith.constant 1.000000e+00 : f32
    %1190 = vector.broadcast %cst_434 : f32 to vector<2x64xf32>
    %1191 = arith.subf %1190, %1183 : vector<2x64xf32>
    %1192 = vector.extract_strided_slice %1189 {offsets = [0, 0], sizes = [2, 64], strides = [1, 1]} : vector<2x128xf32> to vector<2x64xf32>
    %1193 = arith.mulf %1191, %1192 : vector<2x64xf32>
    %1194 = arith.mulf %1183, %1167 : vector<2x64xf32>
    %1195 = arith.addf %1193, %1194 : vector<2x64xf32>
    %c7_435 = arith.constant 7 : index
    %c0_436 = arith.constant 0 : index
    %c0_437 = arith.constant 0 : index
    %1196 = vector.load %arg12[%c7_435, %c0_436, %c0_437] : memref<8x2x64xf32, #tpu.memory_space<vmem>>, vector<1x2x64xf32>
    %1197 = vector.shape_cast %1196 : vector<1x2x64xf32> to vector<2x64xf32>
    %1198 = vector.shape_cast %1195 : vector<2x64xf32> to vector<1x2x64xf32>
    tpu.vector_store %arg12[%c7_435, %c0_436, %c0_437], %1198 {strides = array<i32>} : memref<8x2x64xf32, #tpu.memory_space<vmem>>, vector<1x2x64xf32>,
    %c0_438 = arith.constant 0 : index
    %c0_439 = arith.constant 0 : index
    %c0_440 = arith.constant 0 : index
    %1199 = vector.load %arg12[%c0_438, %c0_439, %c0_440] : memref<8x2x64xf32, #tpu.memory_space<vmem>>, vector<8x2x64xf32>
    %1200 = vector.shape_cast %1199 : vector<8x2x64xf32> to vector<16x64xf32>
    %c4_441 = arith.constant 4 : index
    %c0_442 = arith.constant 0 : index
    %c0_443 = arith.constant 0 : index
    %1201 = vector.load %arg1[%c4_441, %c0_442, %c0_443] : memref<5x64x384xf32, #tpu.memory_space<vmem>>, vector<1x64x384xf32>
    %1202 = vector.shape_cast %1201 : vector<1x64x384xf32> to vector<64x384xf32>
    %cst_444 = arith.constant dense<0.000000e+00> : vector<16x384xf32>
    %1203 = tpu.matmul %1200, %1202, %cst_444 {dimension_numbers = #tpu.dot_dimension_numbers<[1], [0], [0], [1], [0, 0, 1, 1], [], []>} : vector<16x64xf32>, vector<64x384xf32>, vector<16x384xf32> -> vector<16x384xf32>
    %c4_445 = arith.constant 4 : index
    %c0_446 = arith.constant 0 : index
    %c0_447 = arith.constant 0 : index
    %1204 = vector.load %arg2[%c4_445, %c0_446, %c0_447] : memref<5x1x384xf32, #tpu.memory_space<vmem>>, vector<1x1x384xf32>
    %1205 = vector.shape_cast %1204 : vector<1x1x384xf32> to vector<1x384xf32>
    %1206 = vector.broadcast %1205 : vector<1x384xf32> to vector<16x384xf32>
    %1207 = arith.addf %1203, %1206 : vector<16x384xf32>
    %1208 = vector.shape_cast %1207 : vector<16x384xf32> to vector<8x2x384xf32>
    %c0_448 = arith.constant 0 : index
    %c0_449 = arith.constant 0 : index
    %c0_450 = arith.constant 0 : index
    %1209 = vector.load %arg13[%c0_448, %c0_449, %c0_450] : memref<8x2x384xf32, #tpu.memory_space<vmem>>, vector<8x2x384xf32>
    tpu.vector_store %arg13[%c0_448, %c0_449, %c0_450], %1208 {strides = array<i32>} : memref<8x2x384xf32, #tpu.memory_space<vmem>>, vector<8x2x384xf32>,
    %c5_451 = arith.constant 5 : index
    %c0_452 = arith.constant 0 : index
    %c0_453 = arith.constant 0 : index
    %1210 = vector.load %arg3[%c5_451, %c0_452, %c0_453] : memref<6x64x384xf32, #tpu.memory_space<vmem>>, vector<1x64x384xf32>
    %1211 = vector.shape_cast %1210 : vector<1x64x384xf32> to vector<64x384xf32>
    %c5_454 = arith.constant 5 : index
    %c0_455 = arith.constant 0 : index
    %c0_456 = arith.constant 0 : index
    %1212 = vector.load %arg4[%c5_454, %c0_455, %c0_456] : memref<6x1x128xf32, #tpu.memory_space<vmem>>, vector<1x1x128xf32>
    %1213 = vector.shape_cast %1212 : vector<1x1x128xf32> to vector<1x128xf32>
    %1214 = vector.shape_cast %1213 : vector<1x128xf32> to vector<1x128xf32>
    %1215 = vector.broadcast %1214 : vector<1x128xf32> to vector<2x128xf32>
    %cst_457 = arith.constant 0.000000e+00 : f32
    %1216 = vector.broadcast %cst_457 : f32 to vector<2x64xf32>
    %c0_458 = arith.constant 0 : index
    %c0_459 = arith.constant 0 : index
    %c0_460 = arith.constant 0 : index
    %1217 = vector.load %arg13[%c0_458, %c0_459, %c0_460] : memref<8x2x384xf32, #tpu.memory_space<vmem>>, vector<1x2x384xf32>
    %1218 = vector.shape_cast %1217 : vector<1x2x384xf32> to vector<2x384xf32>
    %cst_461 = arith.constant dense<0.000000e+00> : vector<2x384xf32>
    %1219 = tpu.matmul %1216, %1211, %cst_461 {dimension_numbers = #tpu.dot_dimension_numbers<[1], [0], [0], [1], [0, 0, 1, 1], [], []>} : vector<2x64xf32>, vector<64x384xf32>, vector<2x384xf32> -> vector<2x384xf32>
    %1220 = vector.extract_strided_slice %1218 {offsets = [0, 0], sizes = [2, 256], strides = [1, 1]} : vector<2x384xf32> to vector<2x256xf32>
    %1221 = vector.extract_strided_slice %1219 {offsets = [0, 0], sizes = [2, 256], strides = [1, 1]} : vector<2x384xf32> to vector<2x256xf32>
    %1222 = arith.addf %1220, %1221 : vector<2x256xf32>
    %1223 = arith.negf %1222 : vector<2x256xf32>
    %1224 = math.exp %1223 : vector<2x256xf32>
    %cst_462 = arith.constant 1.000000e+00 : f32
    %1225 = vector.broadcast %cst_462 : f32 to vector<2x256xf32>
    %1226 = arith.addf %1225, %1224 : vector<2x256xf32>
    %1227 = arith.divf %1225, %1226 : vector<2x256xf32>
    %1228 = vector.extract_strided_slice %1227 {offsets = [0, 0], sizes = [2, 128], strides = [1, 1]} : vector<2x256xf32> to vector<2x128xf32>
    %1229 = vector.extract_strided_slice %1227 {offsets = [0, 128], sizes = [2, 64], strides = [1, 1]} : vector<2x256xf32> to vector<2x64xf32>
    %1230 = vector.extract_strided_slice %1218 {offsets = [0, 256], sizes = [2, 128], strides = [1, 1]} : vector<2x384xf32> to vector<2x128xf32>
    %1231 = vector.extract_strided_slice %1219 {offsets = [0, 256], sizes = [2, 128], strides = [1, 1]} : vector<2x384xf32> to vector<2x128xf32>
    %1232 = arith.addf %1231, %1215 : vector<2x128xf32>
    %1233 = arith.mulf %1228, %1232 : vector<2x128xf32>
    %1234 = arith.addf %1230, %1233 : vector<2x128xf32>
    %1235 = math.tanh %1234 : vector<2x128xf32>
    %cst_463 = arith.constant 1.000000e+00 : f32
    %1236 = vector.broadcast %cst_463 : f32 to vector<2x64xf32>
    %1237 = arith.subf %1236, %1229 : vector<2x64xf32>
    %1238 = vector.extract_strided_slice %1235 {offsets = [0, 0], sizes = [2, 64], strides = [1, 1]} : vector<2x128xf32> to vector<2x64xf32>
    %1239 = arith.mulf %1237, %1238 : vector<2x64xf32>
    %1240 = arith.mulf %1229, %1216 : vector<2x64xf32>
    %1241 = arith.addf %1239, %1240 : vector<2x64xf32>
    %c0_464 = arith.constant 0 : index
    %c0_465 = arith.constant 0 : index
    %c0_466 = arith.constant 0 : index
    %1242 = vector.load %arg12[%c0_464, %c0_465, %c0_466] : memref<8x2x64xf32, #tpu.memory_space<vmem>>, vector<1x2x64xf32>
    %1243 = vector.shape_cast %1242 : vector<1x2x64xf32> to vector<2x64xf32>
    %1244 = vector.shape_cast %1241 : vector<2x64xf32> to vector<1x2x64xf32>
    tpu.vector_store %arg12[%c0_464, %c0_465, %c0_466], %1244 {strides = array<i32>} : memref<8x2x64xf32, #tpu.memory_space<vmem>>, vector<1x2x64xf32>,
    %c1_467 = arith.constant 1 : index
    %c0_468 = arith.constant 0 : index
    %c0_469 = arith.constant 0 : index
    %1245 = vector.load %arg13[%c1_467, %c0_468, %c0_469] : memref<8x2x384xf32, #tpu.memory_space<vmem>>, vector<1x2x384xf32>
    %1246 = vector.shape_cast %1245 : vector<1x2x384xf32> to vector<2x384xf32>
    %cst_470 = arith.constant dense<0.000000e+00> : vector<2x384xf32>
    %1247 = tpu.matmul %1241, %1211, %cst_470 {dimension_numbers = #tpu.dot_dimension_numbers<[1], [0], [0], [1], [0, 0, 1, 1], [], []>} : vector<2x64xf32>, vector<64x384xf32>, vector<2x384xf32> -> vector<2x384xf32>
    %1248 = vector.extract_strided_slice %1246 {offsets = [0, 0], sizes = [2, 256], strides = [1, 1]} : vector<2x384xf32> to vector<2x256xf32>
    %1249 = vector.extract_strided_slice %1247 {offsets = [0, 0], sizes = [2, 256], strides = [1, 1]} : vector<2x384xf32> to vector<2x256xf32>
    %1250 = arith.addf %1248, %1249 : vector<2x256xf32>
    %1251 = arith.negf %1250 : vector<2x256xf32>
    %1252 = math.exp %1251 : vector<2x256xf32>
    %cst_471 = arith.constant 1.000000e+00 : f32
    %1253 = vector.broadcast %cst_471 : f32 to vector<2x256xf32>
    %1254 = arith.addf %1253, %1252 : vector<2x256xf32>
    %1255 = arith.divf %1253, %1254 : vector<2x256xf32>
    %1256 = vector.extract_strided_slice %1255 {offsets = [0, 0], sizes = [2, 128], strides = [1, 1]} : vector<2x256xf32> to vector<2x128xf32>
    %1257 = vector.extract_strided_slice %1255 {offsets = [0, 128], sizes = [2, 64], strides = [1, 1]} : vector<2x256xf32> to vector<2x64xf32>
    %1258 = vector.extract_strided_slice %1246 {offsets = [0, 256], sizes = [2, 128], strides = [1, 1]} : vector<2x384xf32> to vector<2x128xf32>
    %1259 = vector.extract_strided_slice %1247 {offsets = [0, 256], sizes = [2, 128], strides = [1, 1]} : vector<2x384xf32> to vector<2x128xf32>
    %1260 = arith.addf %1259, %1215 : vector<2x128xf32>
    %1261 = arith.mulf %1256, %1260 : vector<2x128xf32>
    %1262 = arith.addf %1258, %1261 : vector<2x128xf32>
    %1263 = math.tanh %1262 : vector<2x128xf32>
    %cst_472 = arith.constant 1.000000e+00 : f32
    %1264 = vector.broadcast %cst_472 : f32 to vector<2x64xf32>
    %1265 = arith.subf %1264, %1257 : vector<2x64xf32>
    %1266 = vector.extract_strided_slice %1263 {offsets = [0, 0], sizes = [2, 64], strides = [1, 1]} : vector<2x128xf32> to vector<2x64xf32>
    %1267 = arith.mulf %1265, %1266 : vector<2x64xf32>
    %1268 = arith.mulf %1257, %1241 : vector<2x64xf32>
    %1269 = arith.addf %1267, %1268 : vector<2x64xf32>
    %c1_473 = arith.constant 1 : index
    %c0_474 = arith.constant 0 : index
    %c0_475 = arith.constant 0 : index
    %1270 = vector.load %arg12[%c1_473, %c0_474, %c0_475] : memref<8x2x64xf32, #tpu.memory_space<vmem>>, vector<1x2x64xf32>
    %1271 = vector.shape_cast %1270 : vector<1x2x64xf32> to vector<2x64xf32>
    %1272 = vector.shape_cast %1269 : vector<2x64xf32> to vector<1x2x64xf32>
    tpu.vector_store %arg12[%c1_473, %c0_474, %c0_475], %1272 {strides = array<i32>} : memref<8x2x64xf32, #tpu.memory_space<vmem>>, vector<1x2x64xf32>,
    %c2_476 = arith.constant 2 : index
    %c0_477 = arith.constant 0 : index
    %c0_478 = arith.constant 0 : index
    %1273 = vector.load %arg13[%c2_476, %c0_477, %c0_478] : memref<8x2x384xf32, #tpu.memory_space<vmem>>, vector<1x2x384xf32>
    %1274 = vector.shape_cast %1273 : vector<1x2x384xf32> to vector<2x384xf32>
    %cst_479 = arith.constant dense<0.000000e+00> : vector<2x384xf32>
    %1275 = tpu.matmul %1269, %1211, %cst_479 {dimension_numbers = #tpu.dot_dimension_numbers<[1], [0], [0], [1], [0, 0, 1, 1], [], []>} : vector<2x64xf32>, vector<64x384xf32>, vector<2x384xf32> -> vector<2x384xf32>
    %1276 = vector.extract_strided_slice %1274 {offsets = [0, 0], sizes = [2, 256], strides = [1, 1]} : vector<2x384xf32> to vector<2x256xf32>
    %1277 = vector.extract_strided_slice %1275 {offsets = [0, 0], sizes = [2, 256], strides = [1, 1]} : vector<2x384xf32> to vector<2x256xf32>
    %1278 = arith.addf %1276, %1277 : vector<2x256xf32>
    %1279 = arith.negf %1278 : vector<2x256xf32>
    %1280 = math.exp %1279 : vector<2x256xf32>
    %cst_480 = arith.constant 1.000000e+00 : f32
    %1281 = vector.broadcast %cst_480 : f32 to vector<2x256xf32>
    %1282 = arith.addf %1281, %1280 : vector<2x256xf32>
    %1283 = arith.divf %1281, %1282 : vector<2x256xf32>
    %1284 = vector.extract_strided_slice %1283 {offsets = [0, 0], sizes = [2, 128], strides = [1, 1]} : vector<2x256xf32> to vector<2x128xf32>
    %1285 = vector.extract_strided_slice %1283 {offsets = [0, 128], sizes = [2, 64], strides = [1, 1]} : vector<2x256xf32> to vector<2x64xf32>
    %1286 = vector.extract_strided_slice %1274 {offsets = [0, 256], sizes = [2, 128], strides = [1, 1]} : vector<2x384xf32> to vector<2x128xf32>
    %1287 = vector.extract_strided_slice %1275 {offsets = [0, 256], sizes = [2, 128], strides = [1, 1]} : vector<2x384xf32> to vector<2x128xf32>
    %1288 = arith.addf %1287, %1215 : vector<2x128xf32>
    %1289 = arith.mulf %1284, %1288 : vector<2x128xf32>
    %1290 = arith.addf %1286, %1289 : vector<2x128xf32>
    %1291 = math.tanh %1290 : vector<2x128xf32>
    %cst_481 = arith.constant 1.000000e+00 : f32
    %1292 = vector.broadcast %cst_481 : f32 to vector<2x64xf32>
    %1293 = arith.subf %1292, %1285 : vector<2x64xf32>
    %1294 = vector.extract_strided_slice %1291 {offsets = [0, 0], sizes = [2, 64], strides = [1, 1]} : vector<2x128xf32> to vector<2x64xf32>
    %1295 = arith.mulf %1293, %1294 : vector<2x64xf32>
    %1296 = arith.mulf %1285, %1269 : vector<2x64xf32>
    %1297 = arith.addf %1295, %1296 : vector<2x64xf32>
    %c2_482 = arith.constant 2 : index
    %c0_483 = arith.constant 0 : index
    %c0_484 = arith.constant 0 : index
    %1298 = vector.load %arg12[%c2_482, %c0_483, %c0_484] : memref<8x2x64xf32, #tpu.memory_space<vmem>>, vector<1x2x64xf32>
    %1299 = vector.shape_cast %1298 : vector<1x2x64xf32> to vector<2x64xf32>
    %1300 = vector.shape_cast %1297 : vector<2x64xf32> to vector<1x2x64xf32>
    tpu.vector_store %arg12[%c2_482, %c0_483, %c0_484], %1300 {strides = array<i32>} : memref<8x2x64xf32, #tpu.memory_space<vmem>>, vector<1x2x64xf32>,
    %c3_485 = arith.constant 3 : index
    %c0_486 = arith.constant 0 : index
    %c0_487 = arith.constant 0 : index
    %1301 = vector.load %arg13[%c3_485, %c0_486, %c0_487] : memref<8x2x384xf32, #tpu.memory_space<vmem>>, vector<1x2x384xf32>
    %1302 = vector.shape_cast %1301 : vector<1x2x384xf32> to vector<2x384xf32>
    %cst_488 = arith.constant dense<0.000000e+00> : vector<2x384xf32>
    %1303 = tpu.matmul %1297, %1211, %cst_488 {dimension_numbers = #tpu.dot_dimension_numbers<[1], [0], [0], [1], [0, 0, 1, 1], [], []>} : vector<2x64xf32>, vector<64x384xf32>, vector<2x384xf32> -> vector<2x384xf32>
    %1304 = vector.extract_strided_slice %1302 {offsets = [0, 0], sizes = [2, 256], strides = [1, 1]} : vector<2x384xf32> to vector<2x256xf32>
    %1305 = vector.extract_strided_slice %1303 {offsets = [0, 0], sizes = [2, 256], strides = [1, 1]} : vector<2x384xf32> to vector<2x256xf32>
    %1306 = arith.addf %1304, %1305 : vector<2x256xf32>
    %1307 = arith.negf %1306 : vector<2x256xf32>
    %1308 = math.exp %1307 : vector<2x256xf32>
    %cst_489 = arith.constant 1.000000e+00 : f32
    %1309 = vector.broadcast %cst_489 : f32 to vector<2x256xf32>
    %1310 = arith.addf %1309, %1308 : vector<2x256xf32>
    %1311 = arith.divf %1309, %1310 : vector<2x256xf32>
    %1312 = vector.extract_strided_slice %1311 {offsets = [0, 0], sizes = [2, 128], strides = [1, 1]} : vector<2x256xf32> to vector<2x128xf32>
    %1313 = vector.extract_strided_slice %1311 {offsets = [0, 128], sizes = [2, 64], strides = [1, 1]} : vector<2x256xf32> to vector<2x64xf32>
    %1314 = vector.extract_strided_slice %1302 {offsets = [0, 256], sizes = [2, 128], strides = [1, 1]} : vector<2x384xf32> to vector<2x128xf32>
    %1315 = vector.extract_strided_slice %1303 {offsets = [0, 256], sizes = [2, 128], strides = [1, 1]} : vector<2x384xf32> to vector<2x128xf32>
    %1316 = arith.addf %1315, %1215 : vector<2x128xf32>
    %1317 = arith.mulf %1312, %1316 : vector<2x128xf32>
    %1318 = arith.addf %1314, %1317 : vector<2x128xf32>
    %1319 = math.tanh %1318 : vector<2x128xf32>
    %cst_490 = arith.constant 1.000000e+00 : f32
    %1320 = vector.broadcast %cst_490 : f32 to vector<2x64xf32>
    %1321 = arith.subf %1320, %1313 : vector<2x64xf32>
    %1322 = vector.extract_strided_slice %1319 {offsets = [0, 0], sizes = [2, 64], strides = [1, 1]} : vector<2x128xf32> to vector<2x64xf32>
    %1323 = arith.mulf %1321, %1322 : vector<2x64xf32>
    %1324 = arith.mulf %1313, %1297 : vector<2x64xf32>
    %1325 = arith.addf %1323, %1324 : vector<2x64xf32>
    %c3_491 = arith.constant 3 : index
    %c0_492 = arith.constant 0 : index
    %c0_493 = arith.constant 0 : index
    %1326 = vector.load %arg12[%c3_491, %c0_492, %c0_493] : memref<8x2x64xf32, #tpu.memory_space<vmem>>, vector<1x2x64xf32>
    %1327 = vector.shape_cast %1326 : vector<1x2x64xf32> to vector<2x64xf32>
    %1328 = vector.shape_cast %1325 : vector<2x64xf32> to vector<1x2x64xf32>
    tpu.vector_store %arg12[%c3_491, %c0_492, %c0_493], %1328 {strides = array<i32>} : memref<8x2x64xf32, #tpu.memory_space<vmem>>, vector<1x2x64xf32>,
    %c4_494 = arith.constant 4 : index
    %c0_495 = arith.constant 0 : index
    %c0_496 = arith.constant 0 : index
    %1329 = vector.load %arg13[%c4_494, %c0_495, %c0_496] : memref<8x2x384xf32, #tpu.memory_space<vmem>>, vector<1x2x384xf32>
    %1330 = vector.shape_cast %1329 : vector<1x2x384xf32> to vector<2x384xf32>
    %cst_497 = arith.constant dense<0.000000e+00> : vector<2x384xf32>
    %1331 = tpu.matmul %1325, %1211, %cst_497 {dimension_numbers = #tpu.dot_dimension_numbers<[1], [0], [0], [1], [0, 0, 1, 1], [], []>} : vector<2x64xf32>, vector<64x384xf32>, vector<2x384xf32> -> vector<2x384xf32>
    %1332 = vector.extract_strided_slice %1330 {offsets = [0, 0], sizes = [2, 256], strides = [1, 1]} : vector<2x384xf32> to vector<2x256xf32>
    %1333 = vector.extract_strided_slice %1331 {offsets = [0, 0], sizes = [2, 256], strides = [1, 1]} : vector<2x384xf32> to vector<2x256xf32>
    %1334 = arith.addf %1332, %1333 : vector<2x256xf32>
    %1335 = arith.negf %1334 : vector<2x256xf32>
    %1336 = math.exp %1335 : vector<2x256xf32>
    %cst_498 = arith.constant 1.000000e+00 : f32
    %1337 = vector.broadcast %cst_498 : f32 to vector<2x256xf32>
    %1338 = arith.addf %1337, %1336 : vector<2x256xf32>
    %1339 = arith.divf %1337, %1338 : vector<2x256xf32>
    %1340 = vector.extract_strided_slice %1339 {offsets = [0, 0], sizes = [2, 128], strides = [1, 1]} : vector<2x256xf32> to vector<2x128xf32>
    %1341 = vector.extract_strided_slice %1339 {offsets = [0, 128], sizes = [2, 64], strides = [1, 1]} : vector<2x256xf32> to vector<2x64xf32>
    %1342 = vector.extract_strided_slice %1330 {offsets = [0, 256], sizes = [2, 128], strides = [1, 1]} : vector<2x384xf32> to vector<2x128xf32>
    %1343 = vector.extract_strided_slice %1331 {offsets = [0, 256], sizes = [2, 128], strides = [1, 1]} : vector<2x384xf32> to vector<2x128xf32>
    %1344 = arith.addf %1343, %1215 : vector<2x128xf32>
    %1345 = arith.mulf %1340, %1344 : vector<2x128xf32>
    %1346 = arith.addf %1342, %1345 : vector<2x128xf32>
    %1347 = math.tanh %1346 : vector<2x128xf32>
    %cst_499 = arith.constant 1.000000e+00 : f32
    %1348 = vector.broadcast %cst_499 : f32 to vector<2x64xf32>
    %1349 = arith.subf %1348, %1341 : vector<2x64xf32>
    %1350 = vector.extract_strided_slice %1347 {offsets = [0, 0], sizes = [2, 64], strides = [1, 1]} : vector<2x128xf32> to vector<2x64xf32>
    %1351 = arith.mulf %1349, %1350 : vector<2x64xf32>
    %1352 = arith.mulf %1341, %1325 : vector<2x64xf32>
    %1353 = arith.addf %1351, %1352 : vector<2x64xf32>
    %c4_500 = arith.constant 4 : index
    %c0_501 = arith.constant 0 : index
    %c0_502 = arith.constant 0 : index
    %1354 = vector.load %arg12[%c4_500, %c0_501, %c0_502] : memref<8x2x64xf32, #tpu.memory_space<vmem>>, vector<1x2x64xf32>
    %1355 = vector.shape_cast %1354 : vector<1x2x64xf32> to vector<2x64xf32>
    %1356 = vector.shape_cast %1353 : vector<2x64xf32> to vector<1x2x64xf32>
    tpu.vector_store %arg12[%c4_500, %c0_501, %c0_502], %1356 {strides = array<i32>} : memref<8x2x64xf32, #tpu.memory_space<vmem>>, vector<1x2x64xf32>,
    %c5_503 = arith.constant 5 : index
    %c0_504 = arith.constant 0 : index
    %c0_505 = arith.constant 0 : index
    %1357 = vector.load %arg13[%c5_503, %c0_504, %c0_505] : memref<8x2x384xf32, #tpu.memory_space<vmem>>, vector<1x2x384xf32>
    %1358 = vector.shape_cast %1357 : vector<1x2x384xf32> to vector<2x384xf32>
    %cst_506 = arith.constant dense<0.000000e+00> : vector<2x384xf32>
    %1359 = tpu.matmul %1353, %1211, %cst_506 {dimension_numbers = #tpu.dot_dimension_numbers<[1], [0], [0], [1], [0, 0, 1, 1], [], []>} : vector<2x64xf32>, vector<64x384xf32>, vector<2x384xf32> -> vector<2x384xf32>
    %1360 = vector.extract_strided_slice %1358 {offsets = [0, 0], sizes = [2, 256], strides = [1, 1]} : vector<2x384xf32> to vector<2x256xf32>
    %1361 = vector.extract_strided_slice %1359 {offsets = [0, 0], sizes = [2, 256], strides = [1, 1]} : vector<2x384xf32> to vector<2x256xf32>
    %1362 = arith.addf %1360, %1361 : vector<2x256xf32>
    %1363 = arith.negf %1362 : vector<2x256xf32>
    %1364 = math.exp %1363 : vector<2x256xf32>
    %cst_507 = arith.constant 1.000000e+00 : f32
    %1365 = vector.broadcast %cst_507 : f32 to vector<2x256xf32>
    %1366 = arith.addf %1365, %1364 : vector<2x256xf32>
    %1367 = arith.divf %1365, %1366 : vector<2x256xf32>
    %1368 = vector.extract_strided_slice %1367 {offsets = [0, 0], sizes = [2, 128], strides = [1, 1]} : vector<2x256xf32> to vector<2x128xf32>
    %1369 = vector.extract_strided_slice %1367 {offsets = [0, 128], sizes = [2, 64], strides = [1, 1]} : vector<2x256xf32> to vector<2x64xf32>
    %1370 = vector.extract_strided_slice %1358 {offsets = [0, 256], sizes = [2, 128], strides = [1, 1]} : vector<2x384xf32> to vector<2x128xf32>
    %1371 = vector.extract_strided_slice %1359 {offsets = [0, 256], sizes = [2, 128], strides = [1, 1]} : vector<2x384xf32> to vector<2x128xf32>
    %1372 = arith.addf %1371, %1215 : vector<2x128xf32>
    %1373 = arith.mulf %1368, %1372 : vector<2x128xf32>
    %1374 = arith.addf %1370, %1373 : vector<2x128xf32>
    %1375 = math.tanh %1374 : vector<2x128xf32>
    %cst_508 = arith.constant 1.000000e+00 : f32
    %1376 = vector.broadcast %cst_508 : f32 to vector<2x64xf32>
    %1377 = arith.subf %1376, %1369 : vector<2x64xf32>
    %1378 = vector.extract_strided_slice %1375 {offsets = [0, 0], sizes = [2, 64], strides = [1, 1]} : vector<2x128xf32> to vector<2x64xf32>
    %1379 = arith.mulf %1377, %1378 : vector<2x64xf32>
    %1380 = arith.mulf %1369, %1353 : vector<2x64xf32>
    %1381 = arith.addf %1379, %1380 : vector<2x64xf32>
    %c5_509 = arith.constant 5 : index
    %c0_510 = arith.constant 0 : index
    %c0_511 = arith.constant 0 : index
    %1382 = vector.load %arg12[%c5_509, %c0_510, %c0_511] : memref<8x2x64xf32, #tpu.memory_space<vmem>>, vector<1x2x64xf32>
    %1383 = vector.shape_cast %1382 : vector<1x2x64xf32> to vector<2x64xf32>
    %1384 = vector.shape_cast %1381 : vector<2x64xf32> to vector<1x2x64xf32>
    tpu.vector_store %arg12[%c5_509, %c0_510, %c0_511], %1384 {strides = array<i32>} : memref<8x2x64xf32, #tpu.memory_space<vmem>>, vector<1x2x64xf32>,
    %c6_512 = arith.constant 6 : index
    %c0_513 = arith.constant 0 : index
    %c0_514 = arith.constant 0 : index
    %1385 = vector.load %arg13[%c6_512, %c0_513, %c0_514] : memref<8x2x384xf32, #tpu.memory_space<vmem>>, vector<1x2x384xf32>
    %1386 = vector.shape_cast %1385 : vector<1x2x384xf32> to vector<2x384xf32>
    %cst_515 = arith.constant dense<0.000000e+00> : vector<2x384xf32>
    %1387 = tpu.matmul %1381, %1211, %cst_515 {dimension_numbers = #tpu.dot_dimension_numbers<[1], [0], [0], [1], [0, 0, 1, 1], [], []>} : vector<2x64xf32>, vector<64x384xf32>, vector<2x384xf32> -> vector<2x384xf32>
    %1388 = vector.extract_strided_slice %1386 {offsets = [0, 0], sizes = [2, 256], strides = [1, 1]} : vector<2x384xf32> to vector<2x256xf32>
    %1389 = vector.extract_strided_slice %1387 {offsets = [0, 0], sizes = [2, 256], strides = [1, 1]} : vector<2x384xf32> to vector<2x256xf32>
    %1390 = arith.addf %1388, %1389 : vector<2x256xf32>
    %1391 = arith.negf %1390 : vector<2x256xf32>
    %1392 = math.exp %1391 : vector<2x256xf32>
    %cst_516 = arith.constant 1.000000e+00 : f32
    %1393 = vector.broadcast %cst_516 : f32 to vector<2x256xf32>
    %1394 = arith.addf %1393, %1392 : vector<2x256xf32>
    %1395 = arith.divf %1393, %1394 : vector<2x256xf32>
    %1396 = vector.extract_strided_slice %1395 {offsets = [0, 0], sizes = [2, 128], strides = [1, 1]} : vector<2x256xf32> to vector<2x128xf32>
    %1397 = vector.extract_strided_slice %1395 {offsets = [0, 128], sizes = [2, 64], strides = [1, 1]} : vector<2x256xf32> to vector<2x64xf32>
    %1398 = vector.extract_strided_slice %1386 {offsets = [0, 256], sizes = [2, 128], strides = [1, 1]} : vector<2x384xf32> to vector<2x128xf32>
    %1399 = vector.extract_strided_slice %1387 {offsets = [0, 256], sizes = [2, 128], strides = [1, 1]} : vector<2x384xf32> to vector<2x128xf32>
    %1400 = arith.addf %1399, %1215 : vector<2x128xf32>
    %1401 = arith.mulf %1396, %1400 : vector<2x128xf32>
    %1402 = arith.addf %1398, %1401 : vector<2x128xf32>
    %1403 = math.tanh %1402 : vector<2x128xf32>
    %cst_517 = arith.constant 1.000000e+00 : f32
    %1404 = vector.broadcast %cst_517 : f32 to vector<2x64xf32>
    %1405 = arith.subf %1404, %1397 : vector<2x64xf32>
    %1406 = vector.extract_strided_slice %1403 {offsets = [0, 0], sizes = [2, 64], strides = [1, 1]} : vector<2x128xf32> to vector<2x64xf32>
    %1407 = arith.mulf %1405, %1406 : vector<2x64xf32>
    %1408 = arith.mulf %1397, %1381 : vector<2x64xf32>
    %1409 = arith.addf %1407, %1408 : vector<2x64xf32>
    %c6_518 = arith.constant 6 : index
    %c0_519 = arith.constant 0 : index
    %c0_520 = arith.constant 0 : index
    %1410 = vector.load %arg12[%c6_518, %c0_519, %c0_520] : memref<8x2x64xf32, #tpu.memory_space<vmem>>, vector<1x2x64xf32>
    %1411 = vector.shape_cast %1410 : vector<1x2x64xf32> to vector<2x64xf32>
    %1412 = vector.shape_cast %1409 : vector<2x64xf32> to vector<1x2x64xf32>
    tpu.vector_store %arg12[%c6_518, %c0_519, %c0_520], %1412 {strides = array<i32>} : memref<8x2x64xf32, #tpu.memory_space<vmem>>, vector<1x2x64xf32>,
    %c7_521 = arith.constant 7 : index
    %c0_522 = arith.constant 0 : index
    %c0_523 = arith.constant 0 : index
    %1413 = vector.load %arg13[%c7_521, %c0_522, %c0_523] : memref<8x2x384xf32, #tpu.memory_space<vmem>>, vector<1x2x384xf32>
    %1414 = vector.shape_cast %1413 : vector<1x2x384xf32> to vector<2x384xf32>
    %cst_524 = arith.constant dense<0.000000e+00> : vector<2x384xf32>
    %1415 = tpu.matmul %1409, %1211, %cst_524 {dimension_numbers = #tpu.dot_dimension_numbers<[1], [0], [0], [1], [0, 0, 1, 1], [], []>} : vector<2x64xf32>, vector<64x384xf32>, vector<2x384xf32> -> vector<2x384xf32>
    %1416 = vector.extract_strided_slice %1414 {offsets = [0, 0], sizes = [2, 256], strides = [1, 1]} : vector<2x384xf32> to vector<2x256xf32>
    %1417 = vector.extract_strided_slice %1415 {offsets = [0, 0], sizes = [2, 256], strides = [1, 1]} : vector<2x384xf32> to vector<2x256xf32>
    %1418 = arith.addf %1416, %1417 : vector<2x256xf32>
    %1419 = arith.negf %1418 : vector<2x256xf32>
    %1420 = math.exp %1419 : vector<2x256xf32>
    %cst_525 = arith.constant 1.000000e+00 : f32
    %1421 = vector.broadcast %cst_525 : f32 to vector<2x256xf32>
    %1422 = arith.addf %1421, %1420 : vector<2x256xf32>
    %1423 = arith.divf %1421, %1422 : vector<2x256xf32>
    %1424 = vector.extract_strided_slice %1423 {offsets = [0, 0], sizes = [2, 128], strides = [1, 1]} : vector<2x256xf32> to vector<2x128xf32>
    %1425 = vector.extract_strided_slice %1423 {offsets = [0, 128], sizes = [2, 64], strides = [1, 1]} : vector<2x256xf32> to vector<2x64xf32>
    %1426 = vector.extract_strided_slice %1414 {offsets = [0, 256], sizes = [2, 128], strides = [1, 1]} : vector<2x384xf32> to vector<2x128xf32>
    %1427 = vector.extract_strided_slice %1415 {offsets = [0, 256], sizes = [2, 128], strides = [1, 1]} : vector<2x384xf32> to vector<2x128xf32>
    %1428 = arith.addf %1427, %1215 : vector<2x128xf32>
    %1429 = arith.mulf %1424, %1428 : vector<2x128xf32>
    %1430 = arith.addf %1426, %1429 : vector<2x128xf32>
    %1431 = math.tanh %1430 : vector<2x128xf32>
    %cst_526 = arith.constant 1.000000e+00 : f32
    %1432 = vector.broadcast %cst_526 : f32 to vector<2x64xf32>
    %1433 = arith.subf %1432, %1425 : vector<2x64xf32>
    %1434 = vector.extract_strided_slice %1431 {offsets = [0, 0], sizes = [2, 64], strides = [1, 1]} : vector<2x128xf32> to vector<2x64xf32>
    %1435 = arith.mulf %1433, %1434 : vector<2x64xf32>
    %1436 = arith.mulf %1425, %1409 : vector<2x64xf32>
    %1437 = arith.addf %1435, %1436 : vector<2x64xf32>
    %c7_527 = arith.constant 7 : index
    %c0_528 = arith.constant 0 : index
    %c0_529 = arith.constant 0 : index
    %1438 = vector.load %arg12[%c7_527, %c0_528, %c0_529] : memref<8x2x64xf32, #tpu.memory_space<vmem>>, vector<1x2x64xf32>
    %1439 = vector.shape_cast %1438 : vector<1x2x64xf32> to vector<2x64xf32>
    %1440 = vector.shape_cast %1437 : vector<2x64xf32> to vector<1x2x64xf32>
    tpu.vector_store %arg12[%c7_527, %c0_528, %c0_529], %1440 {strides = array<i32>} : memref<8x2x64xf32, #tpu.memory_space<vmem>>, vector<1x2x64xf32>,
    %c0_530 = arith.constant 0 : index
    %c0_531 = arith.constant 0 : index
    %c0_532 = arith.constant 0 : index
    %1441 = vector.load %arg12[%c0_530, %c0_531, %c0_532] : memref<8x2x64xf32, #tpu.memory_space<vmem>>, vector<8x2x64xf32>
    %1442 = vector.shape_cast %1441 : vector<8x2x64xf32> to vector<16x64xf32>
    %c0_533 = arith.constant 0 : index
    %c0_534 = arith.constant 0 : index
    %1443 = vector.load %arg5[%c0_533, %c0_534] : memref<64x128xf32, #tpu.memory_space<vmem>>, vector<64x128xf32>
    %cst_535 = arith.constant dense<0.000000e+00> : vector<16x128xf32>
    %1444 = tpu.matmul %1442, %1443, %cst_535 {dimension_numbers = #tpu.dot_dimension_numbers<[1], [0], [0], [1], [0, 0, 1, 1], [], []>} : vector<16x64xf32>, vector<64x128xf32>, vector<16x128xf32> -> vector<16x128xf32>
    %c0_536 = arith.constant 0 : index
    %c0_537 = arith.constant 0 : index
    %1445 = vector.load %arg6[%c0_536, %c0_537] : memref<1x128xf32, #tpu.memory_space<vmem>>, vector<1x128xf32>
    %1446 = vector.broadcast %1445 : vector<1x128xf32> to vector<16x128xf32>
    %1447 = arith.addf %1444, %1446 : vector<16x128xf32>
    %cst_538 = arith.constant 0.000000e+00 : f32
    %1448 = vector.broadcast %cst_538 : f32 to vector<16x128xf32>
    %1449 = arith.maximumf %1447, %1448 : vector<16x128xf32>
    %c0_539 = arith.constant 0 : index
    %c0_540 = arith.constant 0 : index
    %1450 = vector.load %arg7[%c0_539, %c0_540] : memref<128x128xf32, #tpu.memory_space<vmem>>, vector<128x128xf32>
    %cst_541 = arith.constant dense<0.000000e+00> : vector<16x128xf32>
    %1451 = tpu.matmul %1449, %1450, %cst_541 {dimension_numbers = #tpu.dot_dimension_numbers<[1], [0], [0], [1], [0, 0, 1, 1], [], []>} : vector<16x128xf32>, vector<128x128xf32>, vector<16x128xf32> -> vector<16x128xf32>
    %c0_542 = arith.constant 0 : index
    %c0_543 = arith.constant 0 : index
    %1452 = vector.load %arg8[%c0_542, %c0_543] : memref<1x128xf32, #tpu.memory_space<vmem>>, vector<1x128xf32>
    %1453 = vector.broadcast %1452 : vector<1x128xf32> to vector<16x128xf32>
    %1454 = arith.addf %1451, %1453 : vector<16x128xf32>
    %cst_544 = arith.constant 0.000000e+00 : f32
    %1455 = vector.broadcast %cst_544 : f32 to vector<16x128xf32>
    %1456 = arith.maximumf %1454, %1455 : vector<16x128xf32>
    %c0_545 = arith.constant 0 : index
    %c0_546 = arith.constant 0 : index
    %1457 = vector.load %arg9[%c0_545, %c0_546] : memref<1x128xf32, #tpu.memory_space<vmem>>, vector<1x128xf32>
    %1458 = vector.broadcast %1457 : vector<1x128xf32> to vector<16x128xf32>
    %1459 = arith.mulf %1456, %1458 : vector<16x128xf32>
    %cst_547 = arith.constant dense<0.000000e+00> : vector<16xf32>
    %1460 = vector.multi_reduction <add>, %1459, %cst_547 [1] : vector<16x128xf32> to vector<16xf32>
    %1461 = vector.shape_cast %1460 : vector<16xf32> to vector<16x1xf32>
    %c0_548 = arith.constant 0 : index
    %c0_549 = arith.constant 0 : index
    %1462 = vector.load %arg10[%c0_548, %c0_549] : memref<1x1xf32, #tpu.memory_space<vmem>>, vector<1x1xf32>
    %1463 = vector.broadcast %1462 : vector<1x1xf32> to vector<16x1xf32>
    %1464 = arith.addf %1461, %1463 : vector<16x1xf32>
    %c0_550 = arith.constant 0 : index
    %c0_551 = arith.constant 0 : index
    %1465 = vector.load %arg11[%c0_550, %c0_551] : memref<16x1xf32, #tpu.memory_space<vmem>>, vector<16x1xf32>
    tpu.vector_store %arg11[%c0_550, %c0_551], %1464 {strides = array<i32>} : memref<16x1xf32, #tpu.memory_space<vmem>>, vector<16x1xf32>,
    return
  }
}

</mosaic_0001>

<bundles_post_ra>
// kernel: tpu_custom_call.1
= control target key start
LH: loop header
LB: loop body
LE: loop exit
PB: predicated region body
PF: predicated region fallthrough
CT: control target
= control target key end

     0   :  { %s16380_s0 = inlined_call_operand.hbm [shape: f32[8,2,384], index: 0, kind: input, shape index: {}]   ;;  %s16381_s1 = inlined_call_operand.hbm [shape: f32[5,64,384], index: 1, kind: input, shape index: {}]   ;;  %s16382_s2 = inlined_call_operand.hbm [shape: f32[5,1,384], index: 2, kind: input, shape index: {}]   ;;  %s16383_s3 = inlined_call_operand.hbm [shape: f32[6,64,384], index: 3, kind: input, shape index: {}]   ;;  %s16384_s4 = inlined_call_operand.vmem [shape: f32[6,1,128], index: 4, kind: input, shape index: {}]   ;;  %s16385_s5 = inlined_call_operand.hbm [shape: f32[64,128], index: 5, kind: input, shape index: {}]   ;;  %s16386_s6 = inlined_call_operand.vmem [shape: f32[1,128], index: 6, kind: input, shape index: {}]   ;;  %s16387_s7 = inlined_call_operand.hbm [shape: f32[128,128], index: 7, kind: input, shape index: {}]   ;;  %s16388_s8 = inlined_call_operand.vmem [shape: f32[1,128], index: 8, kind: input, shape index: {}]   ;;  %s16389_s9 = inlined_call_operand.vmem [shape: f32[1,128], index: 9, kind: input, shape index: {}]   ;;  %s16390_s10 = inlined_call_operand.<no memory space> [shape: f32[1,1], index: 10, kind: input, shape index: {}]   ;;  %s16391_s11 = inlined_call_operand.vmem [shape: f32[16,1], index: 11, kind: output, shape index: {}]  }
   0x1   :  { %v16_v0 = vstv %s16390_s10 }
   0x2   :  { %17 = vst [vmem:[#allocation4] sm:$0x1] %v16_v0 }
   0x3   :  { %18 = vsyncpa [#allocation6], 0 }
   0x4   :  { %19 = vsyncpa [#allocation8], 0 }
   0x5   :  { %20 = vsyncpa [#allocation11], 0 }
   0x6   :  { %21 = vsyncpa [#allocation14], 0  ;;  %s14590_s19 = smov [#allocation7]   ;;  %s14450_s23 = scalar_lea.hbm %s16381_s1, 15360 }
   0x7   :  { %s39_s20 = sshll.u32 %s14590_s19, 4  ;;  %p14451_p0 = scmp.ne.s32.totalorder %s16381_s1, %s14450_s23  ;;  %s40_s20 = int_to_ptr.vmem [resolvable:$true] %s39_s20 }
   0x8   :  { %p14454_p1 = scmp.lt.u32.totalorder %s14450_s23, %s16381_s1 }
   0xa   :  { %p14456_p2 = pnand %p14454_p1, %p14451_p0 }
   0xc   :  { %14459 = shalt.err (!%p14456_p2)
}
   0xd   :  { %s14460_s10 = scalar_lea.vmem %s40_s20, 15360  ;;  %p14465_p4 = scmp.lt.s32.totalorder %s40_s20, %s40_s20 }
   0xe   :  { %p14461_p3 = scmp.ne.s32.totalorder %s40_s20, %s14460_s10  ;;  %p14466_p5 = scmp.lt.s32.totalorder %s14460_s10, %s14460_s10 }
  0x10   :  { %p14467_p6 = por %p14466_p5, %p14465_p4 }
  0x12   :  { %p14468_p7 = pnand %p14467_p6, %p14461_p3 }
  0x14   :  { %14471 = shalt.err (!%p14468_p7)
}
  0x15   :  { %s14591_s28 = smov 384   ;;  %s14592_s29 = smov 24  }
  0x16   :  { %45 = dma.hbm_to_vmem [thread:$0]  %s16381_s1, 15360, %s40_s20, [#allocation8], %s14591_s28, %s14591_s28, %s14592_s29  }
  0x17   :  { %s14593_s13 = smov [#allocation10]   ;;  %s14594_s15 = smov [#allocation5]  }
  0x18   :  { %s63_s14 = sshll.u32 %s14593_s13, 4  ;;  %s27_s16 = sshll.u32 %s14594_s15, 4  ;;  %s64_s14 = int_to_ptr.vmem [resolvable:$true] %s63_s14  ;;  %s28_s16 = int_to_ptr.vmem [resolvable:$true] %s27_s16 }
  0x19   :  { %s14472_s19 = scalar_lea.hbm %s16383_s3, 18432 }
  0x1a   :  { %p14473_p8 = scmp.ne.s32.totalorder %s16383_s3, %s14472_s19  ;;  %p14476_p9 = scmp.lt.u32.totalorder %s14472_s19, %s16383_s3 }
  0x1c   :  { %p14478_p10 = pnand %p14476_p9, %p14473_p8 }
  0x1e   :  { %14481 = shalt.err (!%p14478_p10)
}
  0x1f   :  { %s14482_s1 = scalar_lea.vmem %s64_s14, 18432  ;;  %p14487_p12 = scmp.lt.s32.totalorder %s64_s14, %s64_s14 }
  0x20   :  { %p14483_p11 = scmp.ne.s32.totalorder %s64_s14, %s14482_s1  ;;  %p14488_p13 = scmp.lt.s32.totalorder %s14482_s1, %s14482_s1 }
  0x22   :  { %p14489_p0 = por %p14488_p13, %p14487_p12 }
  0x24   :  { %p14490_p1 = pnand %p14489_p0, %p14483_p11 }
  0x26   :  { %14493 = shalt.err (!%p14490_p1)
}
  0x27   :  { %69 = dma.hbm_to_vmem [thread:$0]  %s16383_s3, 18432, %s64_s14, [#allocation11], %s14591_s28, %s14591_s28, %s14592_s29  }
  0x28   :  { %s14494_s10 = scalar_lea.hbm %s16380_s0, 768 }
  0x29   :  { %p14495_p2 = scmp.ne.s32.totalorder %s16380_s0, %s14494_s10  ;;  %p14498_p3 = scmp.lt.u32.totalorder %s14494_s10, %s16380_s0 }
  0x2b   :  { %p14500_p4 = pnand %p14498_p3, %p14495_p2 }
  0x2d   :  { %14503 = shalt.err (!%p14500_p4)
}
  0x2e   :  { %s14504_s17 = scalar_lea.vmem %s28_s16, 768  ;;  %p14509_p6 = scmp.lt.s32.totalorder %s28_s16, %s28_s16 }
  0x2f   :  { %p14505_p5 = scmp.ne.s32.totalorder %s28_s16, %s14504_s17  ;;  %p14510_p7 = scmp.lt.s32.totalorder %s14504_s17, %s14504_s17 }
  0x31   :  { %p14511_p8 = por %p14510_p7, %p14509_p6 }
  0x33   :  { %p14512_p9 = pnand %p14511_p8, %p14505_p5 }
  0x35   :  { %14515 = shalt.err (!%p14512_p9)
}
  0x36   :  { %s14595_s3 = smov 96   ;;  %s14596_s28 = smov 6  }
  0x37   :  { %33 = dma.hbm_to_vmem [thread:$0]  %s16380_s0, 768, %s28_s16, [#allocation6], %s14595_s3, %s14595_s3, %s14596_s28  }
  0x38   :  { %s14597_s18 = smov [#allocation9]   ;;  %s14516_s23 = scalar_lea.hbm %s16382_s2, 240 }
  0x39   :  { %s51_s19 = sshll.u32 %s14597_s18, 4  ;;  %p14517_p10 = scmp.ne.s32.totalorder %s16382_s2, %s14516_s23  ;;  %s52_s19 = int_to_ptr.vmem [resolvable:$true] %s51_s19 }
  0x3a   :  { %p14520_p11 = scmp.lt.u32.totalorder %s14516_s23, %s16382_s2 }
  0x3c   :  { %p14522_p12 = pnand %p14520_p11, %p14517_p10 }
  0x3e   :  { %14525 = shalt.err (!%p14522_p12)
}
  0x3f   :  { %s14526_s26 = scalar_lea.vmem %s52_s19, 240  ;;  %s14530_s0 = scalar_lea.vmem %s52_s19, 256 }
  0x40   :  { %p14527_p13 = scmp.ne.s32.totalorder %s52_s19, %s14526_s26  ;;  %p14531_p0 = scmp.lt.s32.totalorder %s52_s19, %s52_s19 }
  0x41   :  { %p14532_p1 = scmp.lt.s32.totalorder %s14530_s0, %s14526_s26 }
  0x43   :  { %p14533_p2 = por %p14532_p1, %p14531_p0 }
  0x45   :  { %p14534_p3 = pnand %p14533_p2, %p14527_p13 }
  0x47   :  { %14537 = shalt.err (!%p14534_p3)
}
  0x48   :  { %s14598_s16 = smov 48   ;;  %s14599_s27 = smov 3  }
  0x49   :  { %57 = dma.hbm_to_vmem [thread:$0]  %s16382_s2, 240, %s52_s19, [#allocation8], %s14598_s16, %s14598_s16, %s14599_s27  }
  0x4a   :  { %s14600_s12 = smov [#allocation12]   ;;  %s14538_s3 = scalar_lea.hbm %s16385_s5, 1024 }
  0x4b   :  { %s77_s13 = sshll.u32 %s14600_s12, 4  ;;  %p14539_p4 = scmp.ne.s32.totalorder %s16385_s5, %s14538_s3  ;;  %s78_s13 = int_to_ptr.vmem [resolvable:$true] %s77_s13 }
  0x4c   :  { %p14542_p5 = scmp.lt.u32.totalorder %s14538_s3, %s16385_s5 }
  0x4e   :  { %p14544_p6 = pnand %p14542_p5, %p14539_p4 }
  0x50   :  { %14547 = shalt.err (!%p14544_p6)
}
  0x51   :  { %s14548_s21 = scalar_lea.vmem %s78_s13, 1024  ;;  %p14553_p8 = scmp.lt.s32.totalorder %s78_s13, %s78_s13 }
  0x52   :  { %p14549_p7 = scmp.ne.s32.totalorder %s78_s13, %s14548_s21  ;;  %p14554_p9 = scmp.lt.s32.totalorder %s14548_s21, %s14548_s21 }
  0x54   :  { %p14555_p10 = por %p14554_p9, %p14553_p8 }
  0x56   :  { %p14556_p11 = pnand %p14555_p10, %p14549_p7 }
  0x58   :  { %14559 = shalt.err (!%p14556_p11)
}
  0x59   :  { %s14601_s2 = smov 128   ;;  %s14602_s19 = smov 8  }
  0x5a   :  { %83 = dma.hbm_to_vmem [thread:$0]  %s16385_s5, 1024, %s78_s13, [#allocation11], %s14601_s2, %s14601_s2, %s14602_s19  }
  0x5b   :  { %s14603_s24 = smov [#allocation13]   ;;  %s14560_s26 = scalar_lea.hbm %s16387_s7, 2048 }
  0x5c   :  { %s91_s1 = sshll.u32 %s14603_s24, 4  ;;  %p14561_p12 = scmp.ne.s32.totalorder %s16387_s7, %s14560_s26  ;;  %s92_s1 = int_to_ptr.vmem [resolvable:$true] %s91_s1 }
  0x5d   :  { %p14564_p13 = scmp.lt.u32.totalorder %s14560_s26, %s16387_s7 }
  0x5f   :  { %p14566_p0 = pnand %p14564_p13, %p14561_p12 }
  0x61   :  { %14569 = shalt.err (!%p14566_p0)
}
  0x62   :  { %s14570_s30 = scalar_lea.vmem %s92_s1, 2048  ;;  %p14575_p2 = scmp.lt.s32.totalorder %s92_s1, %s92_s1 }
  0x63   :  { %p14571_p1 = scmp.ne.s32.totalorder %s92_s1, %s14570_s30  ;;  %p14576_p3 = scmp.lt.s32.totalorder %s14570_s30, %s14570_s30 }
  0x65   :  { %p14577_p4 = por %p14576_p3, %p14575_p2 }
  0x67   :  { %p14578_p5 = pnand %p14577_p4, %p14571_p1 }
  0x69   :  { %14581 = shalt.err (!%p14578_p5)
}
  0x6a   :  { %97 = dma.hbm_to_vmem [thread:$0]  %s16387_s7, 2048, %s92_s1, [#allocation14], %s14601_s2, %s14601_s2, %s14602_s19  }
  0x6b   :  { %14582 = dma.done.wait [#allocation6], 768  }
  0x6c   :  { %14583 = vsyncadd [#allocation6], 4294966528 }
  0x6d   :  { %14584 = dma.done.wait [#allocation8], 15600  }
  0x6e   :  { %14585 = vsyncadd [#allocation8], 4294951696 }
  0x6f   :  { %14586 = dma.done.wait [#allocation11], 19456  }
  0x70   :  { %14587 = vsyncadd [#allocation11], 4294947840 }
  0x71   :  { %14588 = dma.done.wait [#allocation14], 2048  }
  0x72   :  { %14589 = vsyncadd [#allocation14], 4294965248  ;;  %v14604_v1 = vmov 0.0   ;;  %v14605_v2 = vmov 0.0|0.0   ;;  %vm14606_vm0 = vmmov 0   ;;  %v123_v3 = vld [vmem:[#allocation10 + $0x8] sm:$0xff]  ;;  %v305_v41 = vlaneseq }
  0x73   :  { %222 = vmatprep.mubr.f32.mxu0 %v14604_v1  ;;  %12608 = vmatprep.subr.bf16.mxu1 %v14605_v2  ;;  %v126_v4 = vld [vmem:[#allocation10 + $0x20] sm:$0xff]  ;;  %v125_v7 = vld [vmem:[#allocation10 + $0x18] sm:$0xff]  ;;  %v132_v9 = vld [vmem:[#allocation10 + $0x50] sm:$0xff]  ;;  %v14607_v39 = vmov 1983009808   ;;  %vm154_vm1 = vcmask 523264  }
  0x74   :  { %11547 = vmatprep.mubr.msk.f32.mxu1 %vm14606_vm0, %v14604_v1  ;;  %v122_v5 = vld [vmem:[#allocation10] sm:$0xff]  ;;  %v14747_v6 = vpack.c.bf16 %v126_v4, %v123_v3  ;;  %v129_v8 = vld [vmem:[#allocation10 + $0x38] sm:$0xff]  ;;  %v128_v12 = vld [vmem:[#allocation10 + $0x30] sm:$0xff]  ;;  %v303_v40 = vunpack.c.l.s4 %v14607_v39  ;;  %v14809_v43 = vshrl.u32 %v305_v41, 7  ;;  %vm331_vm2 = vcmask 517120  }
  0x75   :  { %v14749_v10 = vpack.c.bf16 %v125_v7, %v122_v5  ;;  %v14751_v11 = vpack.c.bf16 %v132_v9, %v129_v8  ;;  %v131_v13 = vld [vmem:[#allocation10 + $0x48] sm:$0xff]  ;;  %v138_v15 = vld [vmem:[#allocation10 + $0x80] sm:$0xff]  ;;  %v137_v18 = vld [vmem:[#allocation10 + $0x78] sm:$0xff]  ;;  %vm10841_vm3 = vcmask 7168  }
  0x76   :  { %v135_v14 = vld [vmem:[#allocation10 + $0x68] sm:$0xff]  ;;  %12593 = vmatprep.subr.bf16.mxu0 %v14747_v6  ;;  %v14755_v16 = vpack.c.bf16 %v131_v13, %v128_v12  ;;  %v134_v17 = vld [vmem:[#allocation10 + $0x60] sm:$0xff]  ;;  %v141_v20 = vld [vmem:[#allocation10 + $0x98] sm:$0xff]  ;;  %v304_v42 = vunpack.c.0.s8 %v303_v40 }
  0x77   :  { %12595 = vmatpush1.bf16.msra.mxu0 %v14749_v10  ;;  %v14758_v19 = vpack.c.bf16 %v138_v15, %v135_v14  ;;  %v124_v21 = vld [vmem:[#allocation10 + $0x10] sm:$0xff]  ;;  %v127_v22 = vld [vmem:[#allocation10 + $0x28] sm:$0xff]  ;;  %v130_v25 = vld [vmem:[#allocation10 + $0x40] sm:$0xff]  ;;  %v14763_v27 = vpack.c.bf16 %v137_v18, %v134_v17 }
  0x78   :  { %12597 = vmatprep.subr.bf16.mxu0 %v14751_v11  ;;  %v144_v23 = vld [vmem:[#allocation10 + $0xb0] sm:$0xff]  ;;  %v14760_v24 = vpack.c.bf16 %v127_v22, %v124_v21  ;;  %v133_v26 = vld [vmem:[#allocation10 + $0x58] sm:$0xff]  ;;  %v143_v31 = vld [vmem:[#allocation10 + $0xa8] sm:$0xff]  ;;  %v14812_v45 = vsub.s32 %v304_v42, %v14809_v43 }
  0x79   :  { %v140_v28 = vld [vmem:[#allocation10 + $0x90] sm:$0xff]  ;;  %v14766_v29 = vpack.c.bf16 %v133_v26, %v130_v25  ;;  %v14769_v30 = vpack.c.bf16 %v144_v23, %v141_v20  ;;  %v139_v33 = vld [vmem:[#allocation10 + $0x88] sm:$0xff]  ;;  %v142_v36 = vld [vmem:[#allocation10 + $0xa0] sm:$0xff] }
  0x7a   :  { %12610 = vmatpush3.bf16.msra.mxu1 %v14760_v24  ;;  %v136_v32 = vld [vmem:[#allocation10 + $0x70] sm:$0xff]  ;;  %v14773_v34 = vpack.c.bf16 %v143_v31, %v140_v28  ;;  %v145_v37 = vld [vmem:[#allocation10 + $0xb8] sm:$0xff]  ;;  %v153_v48 = vld [vmem:[#allocation5] sm:$0x3f] }
  0x7b   :  { %12599 = vmatpush1.bf16.msra.mxu0 %v14755_v16  ;;  %12611 = vmatprep.subr.bf16.mxu1 %v14605_v2  ;;  %v14776_v35 = vpack.c.bf16 %v139_v33, %v136_v32  ;;  %v14782_v38 = vpack.c.bf16 %v145_v37, %v142_v36  ;;  %v14818_v56 = vld [vmem:[%s16384_s4] ss:$0 sm:$0xff]  ;;  %v320_v58 = vrot.slane %v153_v48, 4  ;;  %v334_v14 = vld [vmem:[#allocation5 + $0x6] sm:$0x3f] }
  0x7c   :  { %12601 = vmatprep.subr.bf16.mxu0 %v14758_v19  ;;  %v500_v23 = vrot.slane %v334_v14, 4 }
  0x7e   :  { %12613 = vmatpush3.bf16.msra.mxu1 %v14766_v29 }
  0x7f   :  { %12603 = vmatpush1.bf16.msra.mxu0 %v14763_v27  ;;  %12614 = vmatprep.subr.bf16.mxu1 %v14605_v2 }
  0x80   :  { %12605 = vmatprep.subr.bf16.mxu0 %v14769_v30 }
  0x82   :  { %12616 = vmatpush3.bf16.msra.mxu1 %v14776_v35 }
  0x83   :  { %12607 = vmatpush1.bf16.msra.mxu0 %v14773_v34  ;;  %12617 = vmatprep.subr.bf16.mxu1 %v14605_v2 }
  0x84   :  { %12621 = vmatprep.subr.bf16.mxu0 %v14747_v6 }
  0x86   :  { %223 = vmatmul.mubr.f32.vlgmr.msra.gmra.mrb[0].mxu0 %v14604_v1  ;;  %12619 = vmatpush3.bf16.msra.mxu1 %v14782_v38 }
  0x87   :  { %12623 = vmatpush1.bf16.msra.mxu0 %v14749_v10  ;;  %12636 = vmatprep.subr.bf16.mxu1 %v14605_v2 }
  0x88   :  { %12625 = vmatprep.subr.bf16.mxu0 %v14751_v11  ;;  %402 = vmatprep.mubr.f32.mxu0 %v14604_v1 }
  0x89   :  { %11548 = vmatmul.mubr.f32.vlgmr.msra.gmra.mrb[0].mxu1 %v14604_v1 }
  0x8a   :  { %12638 = vmatpush3.bf16.msra.mxu1 %v14760_v24  ;;  %11566 = vmatprep.mubr.msk.f32.mxu1 %vm14606_vm0, %v14604_v1 }
  0x8b   :  { %12627 = vmatpush1.bf16.msra.mxu0 %v14755_v16  ;;  %12639 = vmatprep.subr.bf16.mxu1 %v14605_v2 }
  0x8c   :  { %12629 = vmatprep.subr.bf16.mxu0 %v14758_v19 }
  0x8e   :  { %12641 = vmatpush3.bf16.msra.mxu1 %v14766_v29 }
  0x8f   :  { %12631 = vmatpush1.bf16.msra.mxu0 %v14763_v27  ;;  %12642 = vmatprep.subr.bf16.mxu1 %v14605_v2 }
  0x90   :  { %12633 = vmatprep.subr.bf16.mxu0 %v14769_v30 }
  0x92   :  { %12644 = vmatpush3.bf16.msra.mxu1 %v14776_v35 }
  0x93   :  { %12635 = vmatpush1.bf16.msra.mxu0 %v14773_v34  ;;  %12645 = vmatprep.subr.bf16.mxu1 %v14605_v2 }
  0x94   :  { %12649 = vmatprep.subr.bf16.mxu0 %v14747_v6 }
  0x96   :  { %12647 = vmatpush3.bf16.msra.mxu1 %v14782_v38 }
  0x97   :  { %12664 = vmatprep.subr.bf16.mxu1 %v14605_v2 }
 0x159   :  { %v224_v44 = vpop.f32.mrb[0].mxu0 }
 0x15a   :  { %v226_v46 = vpop.f32.mrb[1].mxu0 }
 0x15b   :  { %v301_v47 = vcombine.low %v224_v44, %v226_v46 }
 0x15c   :  { %v295_v50 = vpop.f32.mrb[0].mxu1 }
 0x15d   :  { %v308_v49 = vrot.slane %v301_v47, %v14812_v45  ;;  %v11549_v51 = vpop.f32.mrb[1].mxu1  ;;  %v317_v57 = vadd.f32 %v14818_v56, %v295_v50  ;;  %v514_v47 = vld [vmem:[#allocation5 + $0xc] sm:$0x3f] }
 0x15f   :  { %v310_v52 = vadd.f32 %v308_v49, %v153_v48 }
 0x161   :  { %v10853_v53 = vmul.f32 -1.442695, %v310_v52 }
 0x163   :  { %14162 = vpow2.f32 %v10853_v53 }
 0x16d   :  { %v14163_v54 = vpop.eup %14162 }
 0x16e   :  { %v314_v55 = vadd.f32 1.0, %v14163_v54  ;;  %v680_v54 = vrot.slane %v514_v47, 4 }
 0x170   :  { %14164 = vrcp.f32 %v314_v55 }
 0x17a   :  { %v14165_v59 = vpop.eup %14164 }
 0x17b   :  { %v318_v60 = vmul.f32 %v14165_v59, %v317_v57  ;;  %v325_v62 = vrot.slane %v14165_v59, 2 }
 0x17d   :  { %v322_v61 = vadd.f32 %v320_v58, %v318_v60  ;;  %v327_v63 = vsub.f32 1.0, %v325_v62  ;;  %v329_v4 = vmul.f32 0.0, %v325_v62 }
 0x17f   :  { %14166 = vtanh.f32 %v322_v61 }
 0x189   :  { %v14167_v0 = vpop.eup %14166 }
 0x18a   :  { %v328_v3 = vmul.f32 %v14167_v0, %v327_v63 }
 0x18c   :  { %v330_v5 = vadd.f32 %v329_v4, %v328_v3 }
 0x18e   :  { %332 = vst.msk [vmem:[#allocation2] sm:$0x3] %vm331_vm2, %v330_v5  ;;  %10854 = vmatmul.mubr.msk.f32.vlgmr.msra.gmra.mrb[2].mxu0 %vm154_vm1, %v330_v5  ;;  %11567 = vmatmul.mubr.msk.f32.vlgmr.msra.gmra.mrb[2].mxu1 %vm154_vm1, %v330_v5 }
 0x18f   :  { %12651 = vmatpush1.bf16.msra.mxu0 %v14749_v10  ;;  %12666 = vmatpush3.bf16.msra.mxu1 %v14760_v24 }
 0x190   :  { %12653 = vmatprep.subr.bf16.mxu0 %v14751_v11  ;;  %12667 = vmatprep.subr.bf16.mxu1 %v14605_v2 }
 0x191   :  { %582 = vmatprep.mubr.f32.mxu0 %v14604_v1  ;;  %11585 = vmatprep.mubr.msk.f32.mxu1 %vm14606_vm0, %v14604_v1 }
 0x193   :  { %12655 = vmatpush1.bf16.msra.mxu0 %v14755_v16  ;;  %12669 = vmatpush3.bf16.msra.mxu1 %v14766_v29 }
 0x194   :  { %12657 = vmatprep.subr.bf16.mxu0 %v14758_v19  ;;  %12670 = vmatprep.subr.bf16.mxu1 %v14605_v2 }
 0x197   :  { %12659 = vmatpush1.bf16.msra.mxu0 %v14763_v27  ;;  %12672 = vmatpush3.bf16.msra.mxu1 %v14776_v35 }
 0x198   :  { %12661 = vmatprep.subr.bf16.mxu0 %v14769_v30  ;;  %12673 = vmatprep.subr.bf16.mxu1 %v14605_v2 }
 0x19b   :  { %12663 = vmatpush1.bf16.msra.mxu0 %v14773_v34  ;;  %12675 = vmatpush3.bf16.msra.mxu1 %v14782_v38 }
 0x19c   :  { %12677 = vmatprep.subr.bf16.mxu0 %v14747_v6  ;;  %12692 = vmatprep.subr.bf16.mxu1 %v14605_v2 }
 0x261   :  { %v404_v7 = vpop.f32.mrb[2].mxu0  ;;  %v475_v8 = vpop.f32.mrb[2].mxu1 }
 0x262   :  { %v406_v9 = vpop.f32.mrb[3].mxu0  ;;  %v11568_v12 = vpop.f32.mrb[3].mxu1  ;;  %v497_v22 = vadd.f32 %v14818_v56, %v475_v8 }
 0x263   :  { %v481_v13 = vcombine.low %v404_v7, %v406_v9  ;;  %v694_v9 = vld [vmem:[#allocation5 + $0x12] sm:$0x3f] }
 0x265   :  { %v488_v15 = vrot.slane %v481_v13, %v14812_v45 }
 0x267   :  { %v490_v17 = vadd.f32 %v488_v15, %v334_v14 }
 0x269   :  { %v10856_v18 = vmul.f32 -1.442695, %v490_v17 }
 0x26b   :  { %14168 = vpow2.f32 %v10856_v18 }
 0x275   :  { %v14169_v20 = vpop.eup %14168 }
 0x276   :  { %v494_v21 = vadd.f32 1.0, %v14169_v20  ;;  %v860_v20 = vrot.slane %v694_v9, 4 }
 0x278   :  { %14170 = vrcp.f32 %v494_v21 }
 0x282   :  { %v14171_v25 = vpop.eup %14170 }
 0x283   :  { %v498_v26 = vmul.f32 %v14171_v25, %v497_v22  ;;  %v505_v31 = vrot.slane %v14171_v25, 2 }
 0x285   :  { %v502_v28 = vadd.f32 %v500_v23, %v498_v26  ;;  %v507_v32 = vsub.f32 1.0, %v505_v31  ;;  %v509_v37 = vmul.f32 %v505_v31, %v330_v5 }
 0x287   :  { %14172 = vtanh.f32 %v502_v28 }
 0x291   :  { %v14173_v33 = vpop.eup %14172 }
 0x292   :  { %v508_v36 = vmul.f32 %v14173_v33, %v507_v32 }
 0x294   :  { %v510_v39 = vadd.f32 %v509_v37, %v508_v36 }
 0x296   :  { %512 = vst.msk [vmem:[#allocation2 + $0x2] sm:$0x3] %vm331_vm2, %v510_v39  ;;  %10857 = vmatmul.mubr.msk.f32.vlgmr.msra.gmra.mrb[4].mxu0 %vm154_vm1, %v510_v39  ;;  %11586 = vmatmul.mubr.msk.f32.vlgmr.msra.gmra.mrb[4].mxu1 %vm154_vm1, %v510_v39 }
 0x297   :  { %12679 = vmatpush1.bf16.msra.mxu0 %v14749_v10  ;;  %12694 = vmatpush3.bf16.msra.mxu1 %v14760_v24 }
 0x298   :  { %12681 = vmatprep.subr.bf16.mxu0 %v14751_v11  ;;  %12695 = vmatprep.subr.bf16.mxu1 %v14605_v2 }
 0x299   :  { %762 = vmatprep.mubr.f32.mxu0 %v14604_v1  ;;  %11604 = vmatprep.mubr.msk.f32.mxu1 %vm14606_vm0, %v14604_v1 }
 0x29b   :  { %12683 = vmatpush1.bf16.msra.mxu0 %v14755_v16  ;;  %12697 = vmatpush3.bf16.msra.mxu1 %v14766_v29 }
 0x29c   :  { %12685 = vmatprep.subr.bf16.mxu0 %v14758_v19  ;;  %12698 = vmatprep.subr.bf16.mxu1 %v14605_v2 }
 0x29f   :  { %12687 = vmatpush1.bf16.msra.mxu0 %v14763_v27  ;;  %12700 = vmatpush3.bf16.msra.mxu1 %v14776_v35 }
 0x2a0   :  { %12689 = vmatprep.subr.bf16.mxu0 %v14769_v30  ;;  %12701 = vmatprep.subr.bf16.mxu1 %v14605_v2 }
 0x2a3   :  { %12691 = vmatpush1.bf16.msra.mxu0 %v14773_v34  ;;  %12703 = vmatpush3.bf16.msra.mxu1 %v14782_v38 }
 0x2a4   :  { %12705 = vmatprep.subr.bf16.mxu0 %v14747_v6  ;;  %12720 = vmatprep.subr.bf16.mxu1 %v14605_v2 }
 0x369   :  { %v584_v40 = vpop.f32.mrb[4].mxu0  ;;  %v655_v41 = vpop.f32.mrb[4].mxu1 }
 0x36a   :  { %v586_v42 = vpop.f32.mrb[5].mxu0  ;;  %v11587_v44 = vpop.f32.mrb[5].mxu1  ;;  %v677_v53 = vadd.f32 %v14818_v56, %v655_v41 }
 0x36b   :  { %v661_v46 = vcombine.low %v584_v40, %v586_v42  ;;  %v874_v42 = vld [vmem:[#allocation5 + $0x18] sm:$0x3f] }
 0x36d   :  { %v668_v48 = vrot.slane %v661_v46, %v14812_v45 }
 0x36f   :  { %v670_v49 = vadd.f32 %v668_v48, %v514_v47 }
 0x371   :  { %v10859_v50 = vmul.f32 -1.442695, %v670_v49 }
 0x373   :  { %14174 = vpow2.f32 %v10859_v50 }
 0x37d   :  { %v14175_v51 = vpop.eup %14174 }
 0x37e   :  { %v674_v52 = vadd.f32 1.0, %v14175_v51  ;;  %v1040_v51 = vrot.slane %v874_v42, 4 }
 0x380   :  { %14176 = vrcp.f32 %v674_v52 }
 0x38a   :  { %v14177_v55 = vpop.eup %14176 }
 0x38b   :  { %v678_v57 = vmul.f32 %v14177_v55, %v677_v53  ;;  %v685_v59 = vrot.slane %v14177_v55, 2 }
 0x38d   :  { %v682_v58 = vadd.f32 %v680_v54, %v678_v57  ;;  %v687_v60 = vsub.f32 1.0, %v685_v59  ;;  %v689_v63 = vmul.f32 %v685_v59, %v510_v39 }
 0x38f   :  { %14178 = vtanh.f32 %v682_v58 }
 0x399   :  { %v14179_v61 = vpop.eup %14178 }
 0x39a   :  { %v688_v62 = vmul.f32 %v14179_v61, %v687_v60 }
 0x39c   :  { %v690_v0 = vadd.f32 %v689_v63, %v688_v62 }
 0x39e   :  { %692 = vst.msk [vmem:[#allocation2 + $0x4] sm:$0x3] %vm331_vm2, %v690_v0  ;;  %10860 = vmatmul.mubr.msk.f32.vlgmr.msra.gmra.mrb[6].mxu0 %vm154_vm1, %v690_v0  ;;  %11605 = vmatmul.mubr.msk.f32.vlgmr.msra.gmra.mrb[6].mxu1 %vm154_vm1, %v690_v0 }
 0x39f   :  { %12707 = vmatpush1.bf16.msra.mxu0 %v14749_v10  ;;  %12722 = vmatpush3.bf16.msra.mxu1 %v14760_v24 }
 0x3a0   :  { %12709 = vmatprep.subr.bf16.mxu0 %v14751_v11  ;;  %12723 = vmatprep.subr.bf16.mxu1 %v14605_v2 }
 0x3a1   :  { %942 = vmatprep.mubr.f32.mxu0 %v14604_v1  ;;  %11623 = vmatprep.mubr.msk.f32.mxu1 %vm14606_vm0, %v14604_v1 }
 0x3a3   :  { %12711 = vmatpush1.bf16.msra.mxu0 %v14755_v16  ;;  %12725 = vmatpush3.bf16.msra.mxu1 %v14766_v29 }
 0x3a4   :  { %12713 = vmatprep.subr.bf16.mxu0 %v14758_v19  ;;  %12726 = vmatprep.subr.bf16.mxu1 %v14605_v2 }
 0x3a7   :  { %12715 = vmatpush1.bf16.msra.mxu0 %v14763_v27  ;;  %12728 = vmatpush3.bf16.msra.mxu1 %v14776_v35 }
 0x3a8   :  { %12717 = vmatprep.subr.bf16.mxu0 %v14769_v30  ;;  %12729 = vmatprep.subr.bf16.mxu1 %v14605_v2 }
 0x3ab   :  { %12719 = vmatpush1.bf16.msra.mxu0 %v14773_v34  ;;  %12731 = vmatpush3.bf16.msra.mxu1 %v14782_v38 }
 0x3ac   :  { %12733 = vmatprep.subr.bf16.mxu0 %v14747_v6  ;;  %12748 = vmatprep.subr.bf16.mxu1 %v14605_v2 }
 0x471   :  { %v764_v3 = vpop.f32.mrb[6].mxu0  ;;  %v835_v4 = vpop.f32.mrb[6].mxu1 }
 0x472   :  { %v766_v5 = vpop.f32.mrb[7].mxu0  ;;  %v11606_v7 = vpop.f32.mrb[7].mxu1  ;;  %v857_v18 = vadd.f32 %v14818_v56, %v835_v4 }
 0x473   :  { %v841_v8 = vcombine.low %v764_v3, %v766_v5  ;;  %v1054_v5 = vld [vmem:[#allocation5 + $0x1e] sm:$0x3f] }
 0x475   :  { %v848_v12 = vrot.slane %v841_v8, %v14812_v45 }
 0x477   :  { %v850_v13 = vadd.f32 %v848_v12, %v694_v9 }
 0x479   :  { %v10862_v14 = vmul.f32 -1.442695, %v850_v13 }
 0x47b   :  { %14180 = vpow2.f32 %v10862_v14 }
 0x485   :  { %v14181_v15 = vpop.eup %14180 }
 0x486   :  { %v854_v17 = vadd.f32 1.0, %v14181_v15  ;;  %v1220_v15 = vrot.slane %v1054_v5, 4 }
 0x488   :  { %14182 = vrcp.f32 %v854_v17 }
 0x492   :  { %v14183_v21 = vpop.eup %14182 }
 0x493   :  { %v858_v22 = vmul.f32 %v14183_v21, %v857_v18  ;;  %v865_v25 = vrot.slane %v14183_v21, 2 }
 0x495   :  { %v862_v23 = vadd.f32 %v860_v20, %v858_v22  ;;  %v867_v26 = vsub.f32 1.0, %v865_v25  ;;  %v869_v32 = vmul.f32 %v865_v25, %v690_v0 }
 0x497   :  { %14184 = vtanh.f32 %v862_v23 }
 0x4a1   :  { %v14185_v28 = vpop.eup %14184 }
 0x4a2   :  { %v868_v31 = vmul.f32 %v14185_v28, %v867_v26 }
 0x4a4   :  { %v870_v33 = vadd.f32 %v869_v32, %v868_v31 }
 0x4a6   :  { %872 = vst.msk [vmem:[#allocation2 + $0x6] sm:$0x3] %vm331_vm2, %v870_v33  ;;  %10863 = vmatmul.mubr.msk.f32.vlgmr.msra.gmra.mrb[8].mxu0 %vm154_vm1, %v870_v33  ;;  %11624 = vmatmul.mubr.msk.f32.vlgmr.msra.gmra.mrb[8].mxu1 %vm154_vm1, %v870_v33 }
 0x4a7   :  { %12735 = vmatpush1.bf16.msra.mxu0 %v14749_v10  ;;  %12750 = vmatpush3.bf16.msra.mxu1 %v14760_v24 }
 0x4a8   :  { %12737 = vmatprep.subr.bf16.mxu0 %v14751_v11  ;;  %12751 = vmatprep.subr.bf16.mxu1 %v14605_v2 }
 0x4a9   :  { %1122 = vmatprep.mubr.f32.mxu0 %v14604_v1  ;;  %11642 = vmatprep.mubr.msk.f32.mxu1 %vm14606_vm0, %v14604_v1 }
 0x4ab   :  { %12739 = vmatpush1.bf16.msra.mxu0 %v14755_v16  ;;  %12753 = vmatpush3.bf16.msra.mxu1 %v14766_v29 }
 0x4ac   :  { %12741 = vmatprep.subr.bf16.mxu0 %v14758_v19  ;;  %12754 = vmatprep.subr.bf16.mxu1 %v14605_v2 }
 0x4af   :  { %12743 = vmatpush1.bf16.msra.mxu0 %v14763_v27  ;;  %12756 = vmatpush3.bf16.msra.mxu1 %v14776_v35 }
 0x4b0   :  { %12745 = vmatprep.subr.bf16.mxu0 %v14769_v30  ;;  %12757 = vmatprep.subr.bf16.mxu1 %v14605_v2 }
 0x4b3   :  { %12747 = vmatpush1.bf16.msra.mxu0 %v14773_v34  ;;  %12759 = vmatpush3.bf16.msra.mxu1 %v14782_v38 }
 0x4b4   :  { %12761 = vmatprep.subr.bf16.mxu0 %v14747_v6  ;;  %12776 = vmatprep.subr.bf16.mxu1 %v14605_v2 }
 0x579   :  { %v944_v36 = vpop.f32.mrb[8].mxu0  ;;  %v1015_v37 = vpop.f32.mrb[8].mxu1 }
 0x57a   :  { %v946_v39 = vpop.f32.mrb[9].mxu0  ;;  %v11625_v40 = vpop.f32.mrb[9].mxu1  ;;  %v1037_v50 = vadd.f32 %v14818_v56, %v1015_v37 }
 0x57b   :  { %v1021_v41 = vcombine.low %v944_v36, %v946_v39 }
 0x57d   :  { %v1028_v44 = vrot.slane %v1021_v41, %v14812_v45  ;;  %v1596_v41 = vld [vmem:[#allocation2 + $0x6] sm:$0x3] }
 0x57f   :  { %v1030_v46 = vadd.f32 %v1028_v44, %v874_v42  ;;  %v1594_v44 = vld [vmem:[#allocation2 + $0x2] sm:$0x3] }
 0x581   :  { %v10865_v47 = vmul.f32 -1.442695, %v1030_v46  ;;  %v1595_v46 = vld [vmem:[#allocation2 + $0x4] sm:$0x3] }
 0x583   :  { %14186 = vpow2.f32 %v10865_v47  ;;  %v1651_v47 = vcombine.low %v1595_v46, %v1596_v41 }
 0x58d   :  { %v14187_v48 = vpop.eup %14186 }
 0x58e   :  { %v1034_v49 = vadd.f32 1.0, %v14187_v48  ;;  %v1593_v48 = vld [vmem:[#allocation2] sm:$0x3] }
 0x590   :  { %14188 = vrcp.f32 %v1034_v49  ;;  %v1650_v49 = vcombine.low %v1593_v48, %v1594_v44  ;;  %v1949_v44 = vld [vmem:[#allocation10 + $0x140] sm:$0xff]  ;;  %v1948_v48 = vld [vmem:[#allocation10 + $0x138] sm:$0xff] }
 0x59a   :  { %v14189_v52 = vpop.eup %14188 }
 0x59b   :  { %v1038_v53 = vmul.f32 %v14189_v52, %v1037_v50  ;;  %v1045_v55 = vrot.slane %v14189_v52, 2  ;;  %v1604_v52 = vld [vmem:[#allocation7 + $0x18] sm:$0xff] }
 0x59d   :  { %v1042_v54 = vadd.f32 %v1040_v51, %v1038_v53  ;;  %v1047_v57 = vsub.f32 1.0, %v1045_v55  ;;  %v1049_v60 = vmul.f32 %v1045_v55, %v870_v33  ;;  %v1601_v51 = vld [vmem:[#allocation7] sm:$0xff]  ;;  %v1608_v55 = vld [vmem:[#allocation7 + $0x38] sm:$0xff] }
 0x59f   :  { %14190 = vtanh.f32 %v1042_v54  ;;  %v1665_v54 = vrot.slane %v1651_v47, %v14812_v45  ;;  %v1945_v47 = vld [vmem:[#allocation10 + $0x120] sm:$0xff] }
 0x5a9   :  { %v14191_v58 = vpop.eup %14190 }
 0x5aa   :  { %v1048_v59 = vmul.f32 %v14191_v58, %v1047_v57  ;;  %v1611_v57 = vld [vmem:[#allocation7 + $0x50] sm:$0xff] }
 0x5ac   :  { %v1050_v61 = vadd.f32 %v1049_v60, %v1048_v59  ;;  %v12818_v60 = vpack.c.bf16 %v1604_v52, %v1601_v51  ;;  %v1955_v51 = vld [vmem:[#allocation10 + $0x170] sm:$0xff] }
 0x5ad   :  { %v1951_v52 = vld [vmem:[#allocation10 + $0x150] sm:$0xff] }
 0x5ae   :  { %1052 = vst.msk [vmem:[#allocation2 + $0x8] sm:$0x3] %vm331_vm2, %v1050_v61  ;;  %10866 = vmatmul.mubr.msk.f32.vlgmr.msra.gmra.mrb[10].mxu0 %vm154_vm1, %v1050_v61  ;;  %11643 = vmatmul.mubr.msk.f32.vlgmr.msra.gmra.mrb[10].mxu1 %vm154_vm1, %v1050_v61 }
 0x5af   :  { %12763 = vmatpush1.bf16.msra.mxu0 %v14749_v10  ;;  %12778 = vmatpush3.bf16.msra.mxu1 %v14760_v24 }
 0x5b0   :  { %12765 = vmatprep.subr.bf16.mxu0 %v14751_v11  ;;  %12779 = vmatprep.subr.bf16.mxu1 %v14605_v2 }
 0x5b1   :  { %1302 = vmatprep.mubr.f32.mxu0 %v14604_v1  ;;  %11661 = vmatprep.mubr.msk.f32.mxu1 %vm14606_vm0, %v14604_v1 }
 0x5b3   :  { %12767 = vmatpush1.bf16.msra.mxu0 %v14755_v16  ;;  %12781 = vmatpush3.bf16.msra.mxu1 %v14766_v29 }
 0x5b4   :  { %12769 = vmatprep.subr.bf16.mxu0 %v14758_v19  ;;  %12782 = vmatprep.subr.bf16.mxu1 %v14605_v2 }
 0x5b7   :  { %12771 = vmatpush1.bf16.msra.mxu0 %v14763_v27  ;;  %12784 = vmatpush3.bf16.msra.mxu1 %v14776_v35 }
 0x5b8   :  { %12773 = vmatprep.subr.bf16.mxu0 %v14769_v30  ;;  %12785 = vmatprep.subr.bf16.mxu1 %v14605_v2 }
 0x5bb   :  { %12775 = vmatpush1.bf16.msra.mxu0 %v14773_v34  ;;  %12787 = vmatpush3.bf16.msra.mxu1 %v14782_v38 }
 0x5bc   :  { %12789 = vmatprep.subr.bf16.mxu0 %v14747_v6  ;;  %12804 = vmatprep.subr.bf16.mxu1 %v14605_v2 }
 0x681   :  { %v1124_v62 = vpop.f32.mrb[10].mxu0  ;;  %v1195_v63 = vpop.f32.mrb[10].mxu1 }
 0x682   :  { %v1126_v0 = vpop.f32.mrb[11].mxu0  ;;  %v11644_v3 = vpop.f32.mrb[11].mxu1  ;;  %v1217_v14 = vadd.f32 %v14818_v56, %v1195_v63  ;;  %v12820_v63 = vpack.c.bf16 %v1611_v57, %v1608_v55 }
 0x683   :  { %v1201_v4 = vcombine.low %v1124_v62, %v1126_v0  ;;  %v1607_v0 = vld [vmem:[#allocation7 + $0x30] sm:$0xff]  ;;  %v1610_v3 = vld [vmem:[#allocation7 + $0x48] sm:$0xff] }
 0x685   :  { %v1208_v7 = vrot.slane %v1201_v4, %v14812_v45 }
 0x687   :  { %v1210_v8 = vadd.f32 %v1208_v7, %v1054_v5  ;;  %v1614_v5 = vld [vmem:[#allocation7 + $0x68] sm:$0xff]  ;;  %v1617_v7 = vld [vmem:[#allocation7 + $0x80] sm:$0xff] }
 0x689   :  { %v10868_v9 = vmul.f32 -1.442695, %v1210_v8  ;;  %v12822_v8 = vpack.c.bf16 %v1610_v3, %v1607_v0 }
 0x68b   :  { %14192 = vpow2.f32 %v10868_v9  ;;  %v12824_v9 = vpack.c.bf16 %v1617_v7, %v1614_v5  ;;  %v15005_v5 = vsub.s32 0, %v14809_v43  ;;  %v15007_v7 = vld [vmem:[#allocation9] sm:$0x7] }
 0x695   :  { %v14193_v12 = vpop.eup %14192 }
 0x696   :  { %v1214_v13 = vadd.f32 1.0, %v14193_v12  ;;  %v1613_v12 = vld [vmem:[#allocation7 + $0x60] sm:$0xff] }
 0x698   :  { %14194 = vrcp.f32 %v1214_v13  ;;  %v1616_v13 = vld [vmem:[#allocation7 + $0x78] sm:$0xff] }
 0x6a2   :  { %v14195_v6 = vpop.eup %14194 }
 0x6a3   :  { %v1218_v17 = vmul.f32 %v14195_v6, %v1217_v14  ;;  %v1225_v20 = vrot.slane %v14195_v6, 2  ;;  %v1620_v14 = vld [vmem:[#allocation7 + $0x98] sm:$0xff]  ;;  %v12826_v6 = vpack.c.bf16 %v1616_v13, %v1613_v12 }
 0x6a5   :  { %v1222_v18 = vadd.f32 %v1220_v15, %v1218_v17  ;;  %v1227_v21 = vsub.f32 1.0, %v1225_v20  ;;  %v1229_v25 = vmul.f32 %v1225_v20, %v1050_v61  ;;  %v1658_v61 = vrot.slane %v1650_v49, %v14812_v45  ;;  %v1623_v15 = vld [vmem:[#allocation7 + $0xb0] sm:$0xff]  ;;  %v1622_v20 = vld [vmem:[#allocation7 + $0xa8] sm:$0xff] }
 0x6a6   :  { %v12828_v17 = vpack.c.bf16 %v1623_v15, %v1620_v14  ;;  %v1952_v49 = vld [vmem:[#allocation10 + $0x158] sm:$0xff] }
 0x6a7   :  { %14196 = vtanh.f32 %v1222_v18  ;;  %v1666_v4 = vcombine.low %v1658_v61, %v1665_v54  ;;  %v1619_v18 = vld [vmem:[#allocation7 + $0x90] sm:$0xff]  ;;  %v14995_v54 = vpack.c.bf16 %v1955_v51, %v1952_v49  ;;  %v1947_v49 = vld [vmem:[#allocation10 + $0x130] sm:$0xff]  ;;  %v1950_v51 = vld [vmem:[#allocation10 + $0x148] sm:$0xff] }
 0x6b1   :  { %v14197_v22 = vpop.eup %14196 }
 0x6b2   :  { %v1228_v23 = vmul.f32 %v14197_v22, %v1227_v21  ;;  %v12830_v21 = vpack.c.bf16 %v1622_v20, %v1619_v18  ;;  %v1603_v22 = vld [vmem:[#allocation7 + $0x10] sm:$0xff] }
 0x6b4   :  { %v1230_v26 = vadd.f32 %v1229_v25, %v1228_v23  ;;  %v1606_v23 = vld [vmem:[#allocation7 + $0x28] sm:$0xff] }
 0x6b5   :  { %v12832_v25 = vpack.c.bf16 %v1606_v23, %v1603_v22 }
 0x6b6   :  { %1232 = vst.msk [vmem:[#allocation2 + $0xa] sm:$0x3] %vm331_vm2, %v1230_v26  ;;  %10869 = vmatmul.mubr.msk.f32.vlgmr.msra.gmra.mrb[12].mxu0 %vm154_vm1, %v1230_v26  ;;  %11662 = vmatmul.mubr.msk.f32.vlgmr.msra.gmra.mrb[12].mxu1 %vm154_vm1, %v1230_v26 }
 0x6b7   :  { %12791 = vmatpush1.bf16.msra.mxu0 %v14749_v10  ;;  %12806 = vmatpush3.bf16.msra.mxu1 %v14760_v24  ;;  %v1602_v10 = vld [vmem:[#allocation7 + $0x8] sm:$0xff] }
 0x6b8   :  { %12793 = vmatprep.subr.bf16.mxu0 %v14751_v11  ;;  %12807 = vmatprep.subr.bf16.mxu1 %v14605_v2  ;;  %v1605_v11 = vld [vmem:[#allocation7 + $0x20] sm:$0xff] }
 0x6b9   :  { %1482 = vmatprep.mubr.f32.mxu0 %v14604_v1  ;;  %11680 = vmatprep.mubr.msk.f32.mxu1 %vm14606_vm0, %v14604_v1 }
 0x6bb   :  { %12795 = vmatpush1.bf16.msra.mxu0 %v14755_v16  ;;  %12809 = vmatpush3.bf16.msra.mxu1 %v14766_v29  ;;  %v12816_v16 = vpack.c.bf16 %v1605_v11, %v1602_v10  ;;  %v1612_v10 = vld [vmem:[#allocation7 + $0x58] sm:$0xff]  ;;  %v1615_v11 = vld [vmem:[#allocation7 + $0x70] sm:$0xff] }
 0x6bc   :  { %12797 = vmatprep.subr.bf16.mxu0 %v14758_v19  ;;  %12810 = vmatprep.subr.bf16.mxu1 %v14605_v2 }
 0x6bf   :  { %12799 = vmatpush1.bf16.msra.mxu0 %v14763_v27  ;;  %12812 = vmatpush3.bf16.msra.mxu1 %v14776_v35  ;;  %v1234_v27 = vld [vmem:[#allocation5 + $0x24] sm:$0x3f] }
 0x6c0   :  { %12801 = vmatprep.subr.bf16.mxu0 %v14769_v30  ;;  %12813 = vmatprep.subr.bf16.mxu1 %v14605_v2 }
 0x6c3   :  { %12803 = vmatpush1.bf16.msra.mxu0 %v14773_v34  ;;  %12815 = vmatpush3.bf16.msra.mxu1 %v14782_v38  ;;  %v1400_v38 = vrot.slane %v1234_v27, 4 }
 0x6c4   :  { %12817 = vmatprep.subr.bf16.mxu0 %v12816_v16  ;;  %12833 = vmatprep.subr.bf16.mxu1 %v12832_v25 }
 0x789   :  { %v1304_v24 = vpop.f32.mrb[12].mxu0  ;;  %v1375_v19 = vpop.f32.mrb[12].mxu1 }
 0x78a   :  { %v1306_v29 = vpop.f32.mrb[13].mxu0  ;;  %v11663_v28 = vpop.f32.mrb[13].mxu1  ;;  %v1397_v34 = vadd.f32 %v14818_v56, %v1375_v19  ;;  %v1934_v19 = vld [vmem:[#allocation10 + $0xc8] sm:$0xff] }
 0x78b   :  { %v1381_v31 = vcombine.low %v1304_v24, %v1306_v29  ;;  %v1618_v24 = vld [vmem:[#allocation7 + $0x88] sm:$0xff]  ;;  %v1937_v29 = vld [vmem:[#allocation10 + $0xe0] sm:$0xff] }
 0x78c   :  { %v12840_v28 = vpack.c.bf16 %v1618_v24, %v1615_v11 }
 0x78d   :  { %v1388_v35 = vrot.slane %v1381_v31, %v14812_v45  ;;  %v14977_v31 = vpack.c.bf16 %v1937_v29, %v1934_v19 }
 0x78f   :  { %v1390_v32 = vadd.f32 %v1388_v35, %v1234_v27  ;;  %v1933_v27 = vld [vmem:[#allocation10 + $0xc0] sm:$0xff]  ;;  %v1936_v35 = vld [vmem:[#allocation10 + $0xd8] sm:$0xff] }
 0x791   :  { %v10871_v30 = vmul.f32 -1.442695, %v1390_v32  ;;  %v1621_v32 = vld [vmem:[#allocation7 + $0xa0] sm:$0xff] }
 0x793   :  { %14198 = vpow2.f32 %v10871_v30  ;;  %v14979_v30 = vpack.c.bf16 %v1936_v35, %v1933_v27  ;;  %v1598_v27 = vld [vmem:[#allocation2 + $0xa] sm:$0x3]  ;;  %v1597_v35 = vld [vmem:[#allocation2 + $0x8] sm:$0x3] }
 0x79d   :  { %v14199_v33 = vpop.eup %14198 }
 0x79e   :  { %v1394_v36 = vadd.f32 1.0, %v14199_v33  ;;  %v1624_v33 = vld [vmem:[#allocation7 + $0xb8] sm:$0xff] }
 0x7a0   :  { %14200 = vrcp.f32 %v1394_v36  ;;  %v1940_v36 = vld [vmem:[#allocation10 + $0xf8] sm:$0xff] }
 0x7aa   :  { %v14201_v37 = vpop.eup %14200 }
 0x7ab   :  { %v1398_v39 = vmul.f32 %v14201_v37, %v1397_v34  ;;  %v1405_v42 = vrot.slane %v14201_v37, 2  ;;  %v1943_v34 = vld [vmem:[#allocation10 + $0x110] sm:$0xff] }
 0x7ac   :  { %v1939_v37 = vld [vmem:[#allocation10 + $0xf0] sm:$0xff] }
 0x7ad   :  { %v1402_v40 = vadd.f32 %v1400_v38, %v1398_v39  ;;  %v1407_v50 = vsub.f32 1.0, %v1405_v42  ;;  %v1409_v59 = vmul.f32 %v1405_v42, %v1230_v26  ;;  %v1609_v26 = vld [vmem:[#allocation7 + $0x40] sm:$0xff]  ;;  %v14982_v38 = vpack.c.bf16 %v1943_v34, %v1940_v36  ;;  %v1942_v39 = vld [vmem:[#allocation10 + $0x108] sm:$0xff] }
 0x7ae   :  { %v12836_v16 = vpack.c.bf16 %v1612_v10, %v1609_v26  ;;  %v14985_v41 = vpack.c.bf16 %v1942_v39, %v1939_v37  ;;  %v1946_v42 = vld [vmem:[#allocation10 + $0x128] sm:$0xff]  ;;  %v1935_v34 = vld [vmem:[#allocation10 + $0xd0] sm:$0xff] }
 0x7af   :  { %14202 = vtanh.f32 %v1402_v40  ;;  %v12844_v40 = vpack.c.bf16 %v1624_v33, %v1621_v32  ;;  %v14990_v46 = vpack.c.bf16 %v1949_v44, %v1946_v42  ;;  %v1667_v32 = vcombine.low %v1597_v35, %v1598_v27  ;;  %v1938_v37 = vld [vmem:[#allocation10 + $0xe8] sm:$0xff] }
 0x7b0   :  { %v15035_v42 = vpack.c.bf16 %v1938_v37, %v1935_v34 }
 0x7b1   :  { %v1675_v39 = vrot.slane %v1667_v32, %v14812_v45 }
 0x7b9   :  { %v14203_v53 = vpop.eup %14202 }
 0x7ba   :  { %v1408_v58 = vmul.f32 %v14203_v53, %v1407_v50  ;;  %v14992_v50 = vpack.c.bf16 %v1948_v48, %v1945_v47  ;;  %v1954_v53 = vld [vmem:[#allocation10 + $0x168] sm:$0xff]  ;;  %v1941_v47 = vld [vmem:[#allocation10 + $0x100] sm:$0xff] }
 0x7bb   :  { %v14998_v55 = vpack.c.bf16 %v1954_v53, %v1951_v52  ;;  %v15048_v52 = vpack.c.bf16 %v1950_v51, %v1947_v49  ;;  %v1953_v53 = vld [vmem:[#allocation10 + $0x160] sm:$0xff] }
 0x7bc   :  { %v14965_v62 = vadd.f32 %v1409_v59, %v1408_v58 }
 0x7be   :  { %1412 = vst.msk [vmem:[#allocation2 + $0xc] sm:$0x3] %vm331_vm2, %v14965_v62  ;;  %10872 = vmatmul.mubr.msk.f32.vlgmr.msra.gmra.mrb[14].mxu0 %vm154_vm1, %v14965_v62  ;;  %11681 = vmatmul.mubr.msk.f32.vlgmr.msra.gmra.mrb[14].mxu1 %vm154_vm1, %v14965_v62 }
 0x7bf   :  { %12819 = vmatpush1.bf16.msra.mxu0 %v12818_v60  ;;  %11699 = vmatprep.mubr.msk.f32.mxu1 %vm154_vm1, %v1666_v4 }
 0x7c0   :  { %12821 = vmatprep.subr.bf16.mxu0 %v12820_v63  ;;  %1752 = vmatprep.mubr.f32.mxu0 %v14604_v1  ;;  %v1414_v63 = vld [vmem:[#allocation5 + $0x2a] sm:$0x3f] }
 0x7c1   :  { %12835 = vmatpush3.bf16.msra.mxu1 %v12832_v25  ;;  %v1580_v23 = vrot.slane %v1414_v63, 4 }
 0x7c2   :  { %12837 = vmatprep.subr.bf16.mxu1 %v12836_v16 }
 0x7c3   :  { %12823 = vmatpush1.bf16.msra.mxu0 %v12822_v8  ;;  %v15010_v8 = vsub.s32 1, %v14809_v43 }
 0x7c4   :  { %12825 = vmatprep.subr.bf16.mxu0 %v12824_v9  ;;  %v15014_v9 = vrot.slane %v15007_v7, %v15005_v5 }
 0x7c5   :  { %12839 = vmatpush3.bf16.msra.mxu1 %v12836_v16  ;;  %v15018_v12 = vrot.slane %v15007_v7, %v15010_v8  ;;  %v1599_v33 = vld [vmem:[#allocation2 + $0xc] sm:$0x3] }
 0x7c6   :  { %12841 = vmatprep.subr.bf16.mxu1 %v12840_v28 }
 0x7c7   :  { %12827 = vmatpush1.bf16.msra.mxu0 %v12826_v6 }
 0x7c8   :  { %12829 = vmatprep.subr.bf16.mxu0 %v12828_v17 }
 0x7c9   :  { %12843 = vmatpush3.bf16.msra.mxu1 %v12840_v28 }
 0x7ca   :  { %12845 = vmatprep.subr.bf16.mxu1 %v12844_v40 }
 0x7cb   :  { %12831 = vmatpush1.bf16.msra.mxu0 %v12830_v21 }
 0x7cc   :  { %12849 = vmatprep.subr.bf16.mxu0 %v14977_v31 }
 0x7cd   :  { %12847 = vmatpush3.bf16.msra.mxu1 %v12844_v40 }
 0x7ce   :  { %10875 = vmatmul.mubr.msk.f32.vlgmr.msra.gmra.mrb[16].mxu0 %vm154_vm1, %v1666_v4  ;;  %12864 = vmatprep.subr.bf16.mxu1 %v14605_v2 }
 0x7cf   :  { %1758 = vmatprep.mubr.f32.mxu0 %v14604_v1  ;;  %12851 = vmatpush1.bf16.msra.mxu0 %v14979_v30 }
 0x7d0   :  { %12853 = vmatprep.subr.bf16.mxu0 %v14982_v38 }
 0x7d3   :  { %12855 = vmatpush1.bf16.msra.mxu0 %v14985_v41 }
 0x7d4   :  { %12857 = vmatprep.subr.bf16.mxu0 %v14990_v46 }
 0x7d7   :  { %12859 = vmatpush1.bf16.msra.mxu0 %v14992_v50 }
 0x7d8   :  { %12861 = vmatprep.subr.bf16.mxu0 %v14995_v54 }
 0x7db   :  { %12863 = vmatpush1.bf16.msra.mxu0 %v14998_v55 }
 0x7dc   :  { %12877 = vmatprep.subr.bf16.mxu0 %v14977_v31 }
 0x891   :  { %v1484_v57 = vpop.f32.mrb[14].mxu0  ;;  %v1555_v58 = vpop.f32.mrb[14].mxu1 }
 0x892   :  { %v1486_v59 = vpop.f32.mrb[15].mxu0  ;;  %v11682_v60 = vpop.f32.mrb[15].mxu1  ;;  %v1577_v22 = vadd.f32 %v14818_v56, %v1555_v58 }
 0x893   :  { %v1561_v61 = vcombine.low %v1484_v57, %v1486_v59  ;;  %v1956_v57 = vld [vmem:[#allocation10 + $0x178] sm:$0xff]  ;;  %v15078_v59 = vsub.s32 2, %v14809_v43 }
 0x894   :  { %v15055_v58 = vpack.c.bf16 %v1956_v57, %v1953_v53 }
 0x895   :  { %v1568_v0 = vrot.slane %v1561_v61, %v14812_v45  ;;  %v1638_v60 = vrot.slane %v15007_v7, %v15078_v59 }
 0x897   :  { %v1570_v3 = vadd.f32 %v1568_v0, %v1414_v63 }
 0x899   :  { %v10874_v4 = vmul.f32 -1.442695, %v1570_v3 }
 0x89b   :  { %14204 = vpow2.f32 %v10874_v4 }
 0x8a1   :  { %v1754_v13 = vpop.f32.mrb[16].mxu0 }
 0x8a2   :  { %v15021_v14 = vadd.f32 %v1754_v13, %v15014_v9  ;;  %v1756_v15 = vpop.f32.mrb[17].mxu0 }
 0x8a3   :  { %v15024_v6 = vadd.f32 %v1756_v15, %v15018_v12 }
 0x8a5   :  { %v14205_v17 = vpop.eup %14204  ;;  %v1846_v18 = vcombine.low %v15021_v14, %v15024_v6  ;;  %v1847_v20 = vcombine.high %v15021_v14, %v15024_v6 }
 0x8a6   :  { %v1574_v21 = vadd.f32 1.0, %v14205_v17 }
 0x8a8   :  { %14206 = vrcp.f32 %v1574_v21  ;;  %v1855_v21 = vrot.slane %v1846_v18, %v14812_v45  ;;  %v1862_v18 = vrot.slane %v1847_v20, %v14812_v45 }
 0x8b2   :  { %v14207_v25 = vpop.eup %14206 }
 0x8b3   :  { %v1578_v26 = vmul.f32 %v14207_v25, %v1577_v22  ;;  %v1585_v11 = vrot.slane %v14207_v25, 2 }
 0x8b5   :  { %v1582_v10 = vadd.f32 %v1580_v23, %v1578_v26  ;;  %v1587_v16 = vsub.f32 1.0, %v1585_v11  ;;  %v1589_v29 = vmul.f32 %v1585_v11, %v14965_v62  ;;  %v1944_v62 = vld [vmem:[#allocation10 + $0x118] sm:$0xff] }
 0x8b6   :  { %v15041_v48 = vpack.c.bf16 %v1944_v62, %v1941_v47  ;;  %v15102_v47 = vld [vmem:[%s16384_s4 + $0x1] ss:$0 sm:$0xff] }
 0x8b7   :  { %14208 = vtanh.f32 %v1582_v10 }
 0x8c1   :  { %v14209_v24 = vpop.eup %14208 }
 0x8c2   :  { %v1588_v19 = vmul.f32 %v14209_v24, %v1587_v16 }
 0x8c4   :  { %v1590_v28 = vadd.f32 %v1589_v29, %v1588_v19 }
 0x8c6   :  { %1592 = vst.msk [vmem:[#allocation2 + $0xe] sm:$0x3] %vm331_vm2, %v1590_v28 }
 0x8cd   :  { %v1600_v36 = vld [vmem:[#allocation2 + $0xe] sm:$0x3] }
 0x8ce   :  { %v1668_v56 = vcombine.low %v1599_v33, %v1600_v36 }
 0x8d0   :  { %v1682_v40 = vrot.slane %v1668_v56, %v14812_v45 }
 0x8d2   :  { %v1683_v44 = vcombine.low %v1675_v39, %v1682_v40 }
 0x8d4   :  { %10876 = vmatmul.mubr.msk.f32.gmra.mrb[18].mxu0 %vm154_vm1, %v1683_v44  ;;  %11700 = vmatmul.mubr.msk.f32.vlgmr.msra.gmra.mrb[16].mxu1 %vm154_vm1, %v1683_v44 }
 0x8d5   :  { %2030 = vmatprep.mubr.f32.mxu0 %v14604_v1  ;;  %12866 = vmatpush3.bf16.msra.mxu1 %v15035_v42 }
 0x8d6   :  { %12867 = vmatprep.subr.bf16.mxu1 %v14605_v2  ;;  %11718 = vmatprep.mubr.msk.f32.mxu1 %vm14606_vm0, %v14604_v1 }
 0x8d8   :  { %2031 = vmatmul.mubr.f32.vlgmr.msra.gmra.mrb[20].mxu0 %v14604_v1 }
 0x8d9   :  { %12869 = vmatpush3.bf16.msra.mxu1 %v15041_v48  ;;  %12879 = vmatpush1.bf16.msra.mxu0 %v14979_v30 }
 0x8da   :  { %12870 = vmatprep.subr.bf16.mxu1 %v14605_v2  ;;  %12881 = vmatprep.subr.bf16.mxu0 %v14982_v38 }
 0x8db   :  { %2209 = vmatprep.mubr.f32.mxu0 %v14604_v1 }
 0x8dd   :  { %12872 = vmatpush3.bf16.msra.mxu1 %v15048_v52  ;;  %12883 = vmatpush1.bf16.msra.mxu0 %v14985_v41 }
 0x8de   :  { %12873 = vmatprep.subr.bf16.mxu1 %v14605_v2  ;;  %12885 = vmatprep.subr.bf16.mxu0 %v14990_v46 }
 0x8e1   :  { %12875 = vmatpush3.bf16.msra.mxu1 %v15055_v58  ;;  %12887 = vmatpush1.bf16.msra.mxu0 %v14992_v50 }
 0x8e2   :  { %12892 = vmatprep.subr.bf16.mxu1 %v14605_v2  ;;  %12889 = vmatprep.subr.bf16.mxu0 %v14995_v54 }
 0x8e4   :  { %11719 = vmatmul.mubr.f32.vlgmr.msra.gmra.mrb[18].mxu1 %v14604_v1 }
 0x8e5   :  { %12894 = vmatpush3.bf16.msra.mxu1 %v15035_v42  ;;  %12891 = vmatpush1.bf16.msra.mxu0 %v14998_v55 }
 0x8e6   :  { %12895 = vmatprep.subr.bf16.mxu1 %v14605_v2  ;;  %11737 = vmatprep.mubr.msk.f32.mxu1 %vm14606_vm0, %v14604_v1 }
 0x8e7   :  { %12905 = vmatprep.subr.bf16.mxu0 %v14977_v31 }
 0x8e9   :  { %12897 = vmatpush3.bf16.msra.mxu1 %v15041_v48 }
 0x8ea   :  { %12898 = vmatprep.subr.bf16.mxu1 %v14605_v2 }
 0x8ed   :  { %12900 = vmatpush3.bf16.msra.mxu1 %v15048_v52 }
 0x8ee   :  { %12901 = vmatprep.subr.bf16.mxu1 %v14605_v2 }
 0x8f1   :  { %12903 = vmatpush3.bf16.msra.mxu1 %v15055_v58 }
 0x8f2   :  { %12920 = vmatprep.subr.bf16.mxu1 %v14605_v2 }
 0x9a7   :  { %v1760_v61 = vpop.f32.mrb[18].mxu0  ;;  %v11701_v63 = vpop.f32.mrb[16].mxu1 }
 0x9a8   :  { %v1761_v0 = vadd.f32 %v1760_v61, %v15014_v9  ;;  %v1837_v3 = vadd.f32 %v11701_v63, %v1638_v60  ;;  %v1762_v4 = vpop.f32.mrb[19].mxu0  ;;  %v1831_v13 = vpop.f32.mrb[17].mxu1 }
 0x9a9   :  { %v1763_v15 = vadd.f32 %v1762_v4, %v15018_v12  ;;  %v1832_v17 = vadd.f32 %v1831_v13, %v1638_v60 }
 0x9aa   :  { %v1883_v43 = vcombine.high %v1837_v3, %v1837_v3  ;;  %v1904_v9 = vrot.slane %v1837_v3, %v14812_v45 }
 0x9ab   :  { %v1881_v22 = vcombine.low %v1761_v0, %v1763_v15  ;;  %v1882_v23 = vcombine.high %v1761_v0, %v1763_v15  ;;  %v1848_v25 = vcombine.high %v1832_v17, %v1832_v17  ;;  %v1869_v7 = vrot.slane %v1832_v17, %v14812_v45  ;;  %v2032_v26 = vpop.f32.mrb[20].mxu0 }
 0x9ac   :  { %v1911_v10 = vrot.slane %v1883_v43, %v14812_v45  ;;  %v2034_v11 = vpop.f32.mrb[21].mxu0 }
 0x9ad   :  { %v1890_v12 = vrot.slane %v1881_v22, %v14812_v45  ;;  %v1897_v16 = vrot.slane %v1882_v23, %v14812_v45  ;;  %v1876_v24 = vrot.slane %v1848_v25, %v14812_v45  ;;  %v1877_v19 = vcombine.low %v1855_v21, %v1869_v7 }
 0x9ae   :  { %v1878_v29 = vcombine.high %v1855_v21, %v1869_v7  ;;  %v2109_v28 = vcombine.low %v2032_v26, %v2034_v11 }
 0x9af   :  { %v1912_v27 = vcombine.low %v1890_v12, %v1904_v9  ;;  %v1913_v35 = vcombine.high %v1890_v12, %v1904_v9  ;;  %v1914_v32 = vcombine.low %v1897_v16, %v1911_v10  ;;  %v1915_v33 = vcombine.high %v1897_v16, %v1911_v10  ;;  %1924 = vst [vmem:[#allocation3] sm:$0x3f] %v1877_v19 }
 0x9b0   :  { %v1879_v36 = vcombine.low %v1862_v18, %v1876_v24  ;;  %v1880_v56 = vcombine.high %v1862_v18, %v1876_v24  ;;  %1925 = vst [vmem:[#allocation3 + $0x6] sm:$0x3f] %v1878_v29  ;;  %v2116_v34 = vrot.slane %v2109_v28, %v14812_v45 }
 0x9b1   :  { %1928 = vst [vmem:[#allocation3 + $0x18] sm:$0x3f] %v1912_v27  ;;  %1929 = vst [vmem:[#allocation3 + $0x1e] sm:$0x3f] %v1913_v35 }
 0x9b2   :  { %1930 = vst [vmem:[#allocation3 + $0x24] sm:$0x3f] %v1914_v32  ;;  %1931 = vst [vmem:[#allocation3 + $0x2a] sm:$0x3f] %v1915_v33 }
 0x9b3   :  { %1926 = vst [vmem:[#allocation3 + $0xc] sm:$0x3f] %v1879_v36  ;;  %1927 = vst [vmem:[#allocation3 + $0x12] sm:$0x3f] %v1880_v56 }
 0x9b6   :  { %v1965_v14 = vld [vmem:[#allocation3] sm:$0x3f] }
 0x9b7   :  { %v2118_v6 = vadd.f32 %v2116_v34, %v1965_v14  ;;  %v2103_v20 = vpop.f32.mrb[18].mxu1  ;;  %v2128_v53 = vrot.slane %v1965_v14, 4  ;;  %v2141_v23 = vld [vmem:[#allocation3 + $0x6] sm:$0x3f] }
 0x9b8   :  { %v11720_v37 = vpop.f32.mrb[19].mxu1  ;;  %v2125_v62 = vadd.f32 %v15102_v47, %v2103_v20  ;;  %v2307_v16 = vrot.slane %v2141_v23, 4 }
 0x9b9   :  { %v10881_v39 = vmul.f32 -1.442695, %v2118_v6 }
 0x9ba   :  { %v2320_v6 = vld [vmem:[#allocation3 + $0xc] sm:$0x3f] }
 0x9bb   :  { %14210 = vpow2.f32 %v10881_v39 }
 0x9c5   :  { %v14211_v40 = vpop.eup %14210 }
 0x9c6   :  { %v2122_v44 = vadd.f32 1.0, %v14211_v40 }
 0x9c8   :  { %14212 = vrcp.f32 %v2122_v44 }
 0x9d2   :  { %v14213_v49 = vpop.eup %14212 }
 0x9d3   :  { %v2126_v51 = vmul.f32 %v14213_v49, %v2125_v62  ;;  %v2133_v60 = vrot.slane %v14213_v49, 2 }
 0x9d5   :  { %v2130_v57 = vadd.f32 %v2128_v53, %v2126_v51  ;;  %v2135_v61 = vsub.f32 1.0, %v2133_v60  ;;  %v2137_v3 = vmul.f32 0.0, %v2133_v60  ;;  %v2486_v51 = vrot.slane %v2320_v6, 4 }
 0x9d7   :  { %14214 = vtanh.f32 %v2130_v57 }
 0x9e1   :  { %v14215_v63 = vpop.eup %14214 }
 0x9e2   :  { %v2136_v0 = vmul.f32 %v14215_v63, %v2135_v61 }
 0x9e4   :  { %v2138_v4 = vadd.f32 %v2137_v3, %v2136_v0 }
 0x9e6   :  { %2139 = vst.msk [vmem:[#allocation2] sm:$0x3] %vm331_vm2, %v2138_v4  ;;  %10882 = vmatmul.mubr.msk.f32.vlgmr.msra.gmra.mrb[22].mxu0 %vm154_vm1, %v2138_v4  ;;  %11738 = vmatmul.mubr.msk.f32.vlgmr.msra.gmra.mrb[20].mxu1 %vm154_vm1, %v2138_v4 }
 0x9e7   :  { %12907 = vmatpush1.bf16.msra.mxu0 %v14979_v30  ;;  %12922 = vmatpush3.bf16.msra.mxu1 %v15035_v42 }
 0x9e8   :  { %12909 = vmatprep.subr.bf16.mxu0 %v14982_v38  ;;  %12923 = vmatprep.subr.bf16.mxu1 %v14605_v2 }
 0x9e9   :  { %2388 = vmatprep.mubr.f32.mxu0 %v14604_v1  ;;  %11756 = vmatprep.mubr.msk.f32.mxu1 %vm14606_vm0, %v14604_v1 }
 0x9eb   :  { %12911 = vmatpush1.bf16.msra.mxu0 %v14985_v41  ;;  %12925 = vmatpush3.bf16.msra.mxu1 %v15041_v48 }
 0x9ec   :  { %12913 = vmatprep.subr.bf16.mxu0 %v14990_v46  ;;  %12926 = vmatprep.subr.bf16.mxu1 %v14605_v2 }
 0x9ef   :  { %12915 = vmatpush1.bf16.msra.mxu0 %v14992_v50  ;;  %12928 = vmatpush3.bf16.msra.mxu1 %v15048_v52 }
 0x9f0   :  { %12917 = vmatprep.subr.bf16.mxu0 %v14995_v54  ;;  %12929 = vmatprep.subr.bf16.mxu1 %v14605_v2 }
 0x9f3   :  { %12919 = vmatpush1.bf16.msra.mxu0 %v14998_v55  ;;  %12931 = vmatpush3.bf16.msra.mxu1 %v15055_v58 }
 0x9f4   :  { %12933 = vmatprep.subr.bf16.mxu0 %v14977_v31  ;;  %12948 = vmatprep.subr.bf16.mxu1 %v14605_v2 }
 0xab9   :  { %v2211_v13 = vpop.f32.mrb[22].mxu0  ;;  %v2282_v15 = vpop.f32.mrb[20].mxu1 }
 0xaba   :  { %v2213_v17 = vpop.f32.mrb[23].mxu0  ;;  %v11739_v21 = vpop.f32.mrb[21].mxu1  ;;  %v2304_v10 = vadd.f32 %v15102_v47, %v2282_v15 }
 0xabb   :  { %v2288_v43 = vcombine.low %v2211_v13, %v2213_v17 }
 0xabd   :  { %v2295_v22 = vrot.slane %v2288_v43, %v14812_v45 }
 0xabf   :  { %v2297_v25 = vadd.f32 %v2295_v22, %v2141_v23  ;;  %v2499_v22 = vld [vmem:[#allocation3 + $0x12] sm:$0x3f] }
 0xac1   :  { %v10884_v7 = vmul.f32 -1.442695, %v2297_v25 }
 0xac3   :  { %14216 = vpow2.f32 %v10884_v7 }
 0xacd   :  { %v14217_v26 = vpop.eup %14216 }
 0xace   :  { %v2301_v9 = vadd.f32 1.0, %v14217_v26 }
 0xad0   :  { %14218 = vrcp.f32 %v2301_v9 }
 0xada   :  { %v14219_v11 = vpop.eup %14218 }
 0xadb   :  { %v2305_v12 = vmul.f32 %v14219_v11, %v2304_v10  ;;  %v2312_v19 = vrot.slane %v14219_v11, 2 }
 0xadd   :  { %v2309_v24 = vadd.f32 %v2307_v16, %v2305_v12  ;;  %v2314_v18 = vsub.f32 1.0, %v2312_v19  ;;  %v2316_v27 = vmul.f32 %v2312_v19, %v2138_v4  ;;  %v2665_v12 = vrot.slane %v2499_v22, 4 }
 0xadf   :  { %14220 = vtanh.f32 %v2309_v24 }
 0xae9   :  { %v14221_v29 = vpop.eup %14220 }
 0xaea   :  { %v2315_v28 = vmul.f32 %v14221_v29, %v2314_v18 }
 0xaec   :  { %v2317_v35 = vadd.f32 %v2316_v27, %v2315_v28 }
 0xaee   :  { %2318 = vst.msk [vmem:[#allocation2 + $0x2] sm:$0x3] %vm331_vm2, %v2317_v35  ;;  %10885 = vmatmul.mubr.msk.f32.vlgmr.msra.gmra.mrb[24].mxu0 %vm154_vm1, %v2317_v35  ;;  %11757 = vmatmul.mubr.msk.f32.vlgmr.msra.gmra.mrb[22].mxu1 %vm154_vm1, %v2317_v35 }
 0xaef   :  { %12935 = vmatpush1.bf16.msra.mxu0 %v14979_v30  ;;  %12950 = vmatpush3.bf16.msra.mxu1 %v15035_v42 }
 0xaf0   :  { %12937 = vmatprep.subr.bf16.mxu0 %v14982_v38  ;;  %12951 = vmatprep.subr.bf16.mxu1 %v14605_v2 }
 0xaf1   :  { %2567 = vmatprep.mubr.f32.mxu0 %v14604_v1  ;;  %11775 = vmatprep.mubr.msk.f32.mxu1 %vm14606_vm0, %v14604_v1 }
 0xaf3   :  { %12939 = vmatpush1.bf16.msra.mxu0 %v14985_v41  ;;  %12953 = vmatpush3.bf16.msra.mxu1 %v15041_v48 }
 0xaf4   :  { %12941 = vmatprep.subr.bf16.mxu0 %v14990_v46  ;;  %12954 = vmatprep.subr.bf16.mxu1 %v14605_v2 }
 0xaf7   :  { %12943 = vmatpush1.bf16.msra.mxu0 %v14992_v50  ;;  %12956 = vmatpush3.bf16.msra.mxu1 %v15048_v52 }
 0xaf8   :  { %12945 = vmatprep.subr.bf16.mxu0 %v14995_v54  ;;  %12957 = vmatprep.subr.bf16.mxu1 %v14605_v2 }
 0xafb   :  { %12947 = vmatpush1.bf16.msra.mxu0 %v14998_v55  ;;  %12959 = vmatpush3.bf16.msra.mxu1 %v15055_v58 }
 0xafc   :  { %12961 = vmatprep.subr.bf16.mxu0 %v14977_v31  ;;  %12976 = vmatprep.subr.bf16.mxu1 %v14605_v2 }
 0xbc1   :  { %v2390_v32 = vpop.f32.mrb[24].mxu0  ;;  %v2461_v33 = vpop.f32.mrb[22].mxu1 }
 0xbc2   :  { %v2392_v36 = vpop.f32.mrb[25].mxu0  ;;  %v11758_v56 = vpop.f32.mrb[23].mxu1  ;;  %v2483_v44 = vadd.f32 %v15102_v47, %v2461_v33 }
 0xbc3   :  { %v2467_v34 = vcombine.low %v2390_v32, %v2392_v36 }
 0xbc5   :  { %v2474_v14 = vrot.slane %v2467_v34, %v14812_v45 }
 0xbc7   :  { %v2476_v20 = vadd.f32 %v2474_v14, %v2320_v6  ;;  %v2678_v14 = vld [vmem:[#allocation3 + $0x18] sm:$0x3f] }
 0xbc9   :  { %v10887_v37 = vmul.f32 -1.442695, %v2476_v20 }
 0xbcb   :  { %14222 = vpow2.f32 %v10887_v37 }
 0xbd5   :  { %v14223_v39 = vpop.eup %14222 }
 0xbd6   :  { %v2480_v40 = vadd.f32 1.0, %v14223_v39 }
 0xbd8   :  { %14224 = vrcp.f32 %v2480_v40 }
 0xbe2   :  { %v14225_v62 = vpop.eup %14224 }
 0xbe3   :  { %v2484_v49 = vmul.f32 %v14225_v62, %v2483_v44  ;;  %v2491_v57 = vrot.slane %v14225_v62, 2 }
 0xbe5   :  { %v2488_v53 = vadd.f32 %v2486_v51, %v2484_v49  ;;  %v2493_v60 = vsub.f32 1.0, %v2491_v57  ;;  %v2495_v0 = vmul.f32 %v2491_v57, %v2317_v35  ;;  %v2844_v49 = vrot.slane %v2678_v14, 4 }
 0xbe7   :  { %14226 = vtanh.f32 %v2488_v53 }
 0xbf1   :  { %v14227_v61 = vpop.eup %14226 }
 0xbf2   :  { %v2494_v63 = vmul.f32 %v14227_v61, %v2493_v60 }
 0xbf4   :  { %v2496_v3 = vadd.f32 %v2495_v0, %v2494_v63 }
 0xbf6   :  { %2497 = vst.msk [vmem:[#allocation2 + $0x4] sm:$0x3] %vm331_vm2, %v2496_v3  ;;  %10888 = vmatmul.mubr.msk.f32.vlgmr.msra.gmra.mrb[26].mxu0 %vm154_vm1, %v2496_v3  ;;  %11776 = vmatmul.mubr.msk.f32.vlgmr.msra.gmra.mrb[24].mxu1 %vm154_vm1, %v2496_v3 }
 0xbf7   :  { %12963 = vmatpush1.bf16.msra.mxu0 %v14979_v30  ;;  %12978 = vmatpush3.bf16.msra.mxu1 %v15035_v42 }
 0xbf8   :  { %12965 = vmatprep.subr.bf16.mxu0 %v14982_v38  ;;  %12979 = vmatprep.subr.bf16.mxu1 %v14605_v2 }
 0xbf9   :  { %2746 = vmatprep.mubr.f32.mxu0 %v14604_v1  ;;  %11794 = vmatprep.mubr.msk.f32.mxu1 %vm14606_vm0, %v14604_v1 }
 0xbfb   :  { %12967 = vmatpush1.bf16.msra.mxu0 %v14985_v41  ;;  %12981 = vmatpush3.bf16.msra.mxu1 %v15041_v48 }
 0xbfc   :  { %12969 = vmatprep.subr.bf16.mxu0 %v14990_v46  ;;  %12982 = vmatprep.subr.bf16.mxu1 %v14605_v2 }
 0xbff   :  { %12971 = vmatpush1.bf16.msra.mxu0 %v14992_v50  ;;  %12984 = vmatpush3.bf16.msra.mxu1 %v15048_v52 }
 0xc00   :  { %12973 = vmatprep.subr.bf16.mxu0 %v14995_v54  ;;  %12985 = vmatprep.subr.bf16.mxu1 %v14605_v2 }
 0xc03   :  { %12975 = vmatpush1.bf16.msra.mxu0 %v14998_v55  ;;  %12987 = vmatpush3.bf16.msra.mxu1 %v15055_v58 }
 0xc04   :  { %12989 = vmatprep.subr.bf16.mxu0 %v14977_v31  ;;  %13004 = vmatprep.subr.bf16.mxu1 %v14605_v2 }
 0xcc9   :  { %v2569_v4 = vpop.f32.mrb[26].mxu0  ;;  %v2640_v13 = vpop.f32.mrb[24].mxu1 }
 0xcca   :  { %v2571_v15 = vpop.f32.mrb[27].mxu0  ;;  %v11777_v17 = vpop.f32.mrb[25].mxu1  ;;  %v2662_v9 = vadd.f32 %v15102_v47, %v2640_v13 }
 0xccb   :  { %v2646_v21 = vcombine.low %v2569_v4, %v2571_v15 }
 0xccd   :  { %v2653_v43 = vrot.slane %v2646_v21, %v14812_v45 }
 0xccf   :  { %v2655_v23 = vadd.f32 %v2653_v43, %v2499_v22  ;;  %v2857_v43 = vld [vmem:[#allocation3 + $0x1e] sm:$0x3f] }
 0xcd1   :  { %v10890_v25 = vmul.f32 -1.442695, %v2655_v23 }
 0xcd3   :  { %14228 = vpow2.f32 %v10890_v25 }
 0xcdd   :  { %v14229_v7 = vpop.eup %14228 }
 0xcde   :  { %v2659_v26 = vadd.f32 1.0, %v14229_v7 }
 0xce0   :  { %14230 = vrcp.f32 %v2659_v26 }
 0xcea   :  { %v14231_v10 = vpop.eup %14230 }
 0xceb   :  { %v2663_v11 = vmul.f32 %v14231_v10, %v2662_v9  ;;  %v2670_v24 = vrot.slane %v14231_v10, 2  ;;  %v3023_v10 = vrot.slane %v2857_v43, 4 }
 0xced   :  { %v2667_v16 = vadd.f32 %v2665_v12, %v2663_v11  ;;  %v2672_v19 = vsub.f32 1.0, %v2670_v24  ;;  %v2674_v28 = vmul.f32 %v2670_v24, %v2496_v3 }
 0xcef   :  { %14232 = vtanh.f32 %v2667_v16 }
 0xcf9   :  { %v14233_v18 = vpop.eup %14232 }
 0xcfa   :  { %v2673_v29 = vmul.f32 %v14233_v18, %v2672_v19 }
 0xcfc   :  { %v2675_v27 = vadd.f32 %v2674_v28, %v2673_v29 }
 0xcfe   :  { %2676 = vst.msk [vmem:[#allocation2 + $0x6] sm:$0x3] %vm331_vm2, %v2675_v27  ;;  %10891 = vmatmul.mubr.msk.f32.vlgmr.msra.gmra.mrb[28].mxu0 %vm154_vm1, %v2675_v27  ;;  %11795 = vmatmul.mubr.msk.f32.vlgmr.msra.gmra.mrb[26].mxu1 %vm154_vm1, %v2675_v27 }
 0xcff   :  { %12991 = vmatpush1.bf16.msra.mxu0 %v14979_v30  ;;  %13006 = vmatpush3.bf16.msra.mxu1 %v15035_v42 }
 0xd00   :  { %12993 = vmatprep.subr.bf16.mxu0 %v14982_v38  ;;  %13007 = vmatprep.subr.bf16.mxu1 %v14605_v2 }
 0xd01   :  { %2925 = vmatprep.mubr.f32.mxu0 %v14604_v1  ;;  %11813 = vmatprep.mubr.msk.f32.mxu1 %vm14606_vm0, %v14604_v1 }
 0xd03   :  { %12995 = vmatpush1.bf16.msra.mxu0 %v14985_v41  ;;  %13009 = vmatpush3.bf16.msra.mxu1 %v15041_v48 }
 0xd04   :  { %12997 = vmatprep.subr.bf16.mxu0 %v14990_v46  ;;  %13010 = vmatprep.subr.bf16.mxu1 %v14605_v2 }
 0xd07   :  { %12999 = vmatpush1.bf16.msra.mxu0 %v14992_v50  ;;  %13012 = vmatpush3.bf16.msra.mxu1 %v15048_v52 }
 0xd08   :  { %13001 = vmatprep.subr.bf16.mxu0 %v14995_v54  ;;  %13013 = vmatprep.subr.bf16.mxu1 %v14605_v2 }
 0xd0b   :  { %13003 = vmatpush1.bf16.msra.mxu0 %v14998_v55  ;;  %13015 = vmatpush3.bf16.msra.mxu1 %v15055_v58 }
 0xd0c   :  { %13017 = vmatprep.subr.bf16.mxu0 %v14977_v31  ;;  %13032 = vmatprep.subr.bf16.mxu1 %v14605_v2 }
 0xdd1   :  { %v2748_v35 = vpop.f32.mrb[28].mxu0  ;;  %v2819_v32 = vpop.f32.mrb[26].mxu1 }
 0xdd2   :  { %v2750_v33 = vpop.f32.mrb[29].mxu0  ;;  %v11796_v36 = vpop.f32.mrb[27].mxu1  ;;  %v2841_v40 = vadd.f32 %v15102_v47, %v2819_v32 }
 0xdd3   :  { %v2825_v56 = vcombine.low %v2748_v35, %v2750_v33 }
 0xdd5   :  { %v2832_v34 = vrot.slane %v2825_v56, %v14812_v45 }
 0xdd7   :  { %v2834_v6 = vadd.f32 %v2832_v34, %v2678_v14  ;;  %v3396_v14 = vld [vmem:[#allocation2 + $0x6] sm:$0x3] }
 0xdd9   :  { %v10893_v20 = vmul.f32 -1.442695, %v2834_v6 }
 0xddb   :  { %14234 = vpow2.f32 %v10893_v20  ;;  %v3394_v20 = vld [vmem:[#allocation2 + $0x2] sm:$0x3] }
 0xde5   :  { %v14235_v37 = vpop.eup %14234 }
 0xde6   :  { %v2838_v39 = vadd.f32 1.0, %v14235_v37  ;;  %v3395_v37 = vld [vmem:[#allocation2 + $0x4] sm:$0x3] }
 0xde8   :  { %14236 = vrcp.f32 %v2838_v39  ;;  %v3453_v39 = vcombine.low %v3395_v37, %v3396_v14  ;;  %v3744_v14 = vld [vmem:[#allocation10 + $0x1c8] sm:$0xff] }
 0xde9   :  { %v3748_v37 = vld [vmem:[#allocation10 + $0x1e8] sm:$0xff] }
 0xdf2   :  { %v14237_v44 = vpop.eup %14236 }
 0xdf3   :  { %v2842_v62 = vmul.f32 %v14237_v44, %v2841_v40  ;;  %v2849_v53 = vrot.slane %v14237_v44, 2  ;;  %v3393_v40 = vld [vmem:[#allocation2] sm:$0x3] }
 0xdf4   :  { %v3452_v44 = vcombine.low %v3393_v40, %v3394_v20  ;;  %v3747_v40 = vld [vmem:[#allocation10 + $0x1e0] sm:$0xff] }
 0xdf5   :  { %v2846_v51 = vadd.f32 %v2844_v49, %v2842_v62  ;;  %v2851_v57 = vsub.f32 1.0, %v2849_v53  ;;  %v2853_v63 = vmul.f32 %v2849_v53, %v2675_v27  ;;  %v3402_v49 = vld [vmem:[#allocation7 + $0xc0] sm:$0xff] }
 0xdf7   :  { %14238 = vtanh.f32 %v2846_v51  ;;  %v3405_v51 = vld [vmem:[#allocation7 + $0xd8] sm:$0xff] }
 0xe01   :  { %v14239_v60 = vpop.eup %14238 }
 0xe02   :  { %v2852_v61 = vmul.f32 %v14239_v60, %v2851_v57  ;;  %v3467_v57 = vrot.slane %v3453_v39, %v14812_v45  ;;  %v3409_v60 = vld [vmem:[#allocation7 + $0xf8] sm:$0xff]  ;;  %v3751_v39 = vld [vmem:[#allocation10 + $0x200] sm:$0xff] }
 0xe04   :  { %v2854_v0 = vadd.f32 %v2853_v63, %v2852_v61  ;;  %v3412_v61 = vld [vmem:[#allocation7 + $0x110] sm:$0xff] }
 0xe06   :  { %2855 = vst.msk [vmem:[#allocation2 + $0x8] sm:$0x3] %vm331_vm2, %v2854_v0  ;;  %10894 = vmatmul.mubr.msk.f32.vlgmr.msra.gmra.mrb[30].mxu0 %vm154_vm1, %v2854_v0  ;;  %11814 = vmatmul.mubr.msk.f32.vlgmr.msra.gmra.mrb[28].mxu1 %vm154_vm1, %v2854_v0 }
 0xe07   :  { %13019 = vmatpush1.bf16.msra.mxu0 %v14979_v30  ;;  %13034 = vmatpush3.bf16.msra.mxu1 %v15035_v42 }
 0xe08   :  { %13021 = vmatprep.subr.bf16.mxu0 %v14982_v38  ;;  %13035 = vmatprep.subr.bf16.mxu1 %v14605_v2 }
 0xe09   :  { %3104 = vmatprep.mubr.f32.mxu0 %v14604_v1  ;;  %11832 = vmatprep.mubr.msk.f32.mxu1 %vm14606_vm0, %v14604_v1 }
 0xe0b   :  { %13023 = vmatpush1.bf16.msra.mxu0 %v14985_v41  ;;  %13037 = vmatpush3.bf16.msra.mxu1 %v15041_v48 }
 0xe0c   :  { %13025 = vmatprep.subr.bf16.mxu0 %v14990_v46  ;;  %13038 = vmatprep.subr.bf16.mxu1 %v14605_v2 }
 0xe0f   :  { %13027 = vmatpush1.bf16.msra.mxu0 %v14992_v50  ;;  %13040 = vmatpush3.bf16.msra.mxu1 %v15048_v52 }
 0xe10   :  { %13029 = vmatprep.subr.bf16.mxu0 %v14995_v54  ;;  %13041 = vmatprep.subr.bf16.mxu1 %v14605_v2 }
 0xe13   :  { %13031 = vmatpush1.bf16.msra.mxu0 %v14998_v55  ;;  %13043 = vmatpush3.bf16.msra.mxu1 %v15055_v58 }
 0xe14   :  { %13045 = vmatprep.subr.bf16.mxu0 %v14977_v31  ;;  %13060 = vmatprep.subr.bf16.mxu1 %v14605_v2 }
 0xed9   :  { %v2927_v3 = vpop.f32.mrb[30].mxu0  ;;  %v2998_v4 = vpop.f32.mrb[28].mxu1 }
 0xeda   :  { %v2929_v13 = vpop.f32.mrb[31].mxu0  ;;  %v11815_v15 = vpop.f32.mrb[29].mxu1  ;;  %v3020_v26 = vadd.f32 %v15102_v47, %v2998_v4  ;;  %v3460_v4 = vrot.slane %v3452_v44, %v14812_v45  ;;  %v15273_v44 = vpack.c.bf16 %v3751_v39, %v3748_v37 }
 0xedb   :  { %v3004_v17 = vcombine.low %v2927_v3, %v2929_v13  ;;  %v13074_v3 = vpack.c.bf16 %v3405_v51, %v3402_v49  ;;  %v13076_v15 = vpack.c.bf16 %v3412_v61, %v3409_v60  ;;  %v3754_v49 = vld [vmem:[#allocation10 + $0x218] sm:$0xff]  ;;  %v3757_v51 = vld [vmem:[#allocation10 + $0x230] sm:$0xff]  ;;  %v3756_v61 = vld [vmem:[#allocation10 + $0x228] sm:$0xff] }
 0xedc   :  { %v3753_v60 = vld [vmem:[#allocation10 + $0x210] sm:$0xff] }
 0xedd   :  { %v3011_v21 = vrot.slane %v3004_v17, %v14812_v45  ;;  %v3408_v17 = vld [vmem:[#allocation7 + $0xf0] sm:$0xff] }
 0xedf   :  { %v3013_v22 = vadd.f32 %v3011_v21, %v2857_v43  ;;  %v3411_v21 = vld [vmem:[#allocation7 + $0x108] sm:$0xff]  ;;  %v3468_v43 = vcombine.low %v3460_v4, %v3467_v57  ;;  %v15278_v57 = vpack.c.bf16 %v3757_v51, %v3754_v49  ;;  %v3749_v49 = vld [vmem:[#allocation10 + $0x1f0] sm:$0xff]  ;;  %v3752_v51 = vld [vmem:[#allocation10 + $0x208] sm:$0xff] }
 0xee1   :  { %v10896_v23 = vmul.f32 -1.442695, %v3013_v22  ;;  %v3415_v22 = vld [vmem:[#allocation7 + $0x128] sm:$0xff] }
 0xee3   :  { %14240 = vpow2.f32 %v10896_v23  ;;  %v3418_v23 = vld [vmem:[#allocation7 + $0x140] sm:$0xff] }
 0xeed   :  { %v14241_v25 = vpop.eup %14240 }
 0xeee   :  { %v3017_v7 = vadd.f32 1.0, %v14241_v25  ;;  %v13078_v25 = vpack.c.bf16 %v3411_v21, %v3408_v17 }
 0xef0   :  { %14242 = vrcp.f32 %v3017_v7  ;;  %v13080_v7 = vpack.c.bf16 %v3418_v23, %v3415_v22 }
 0xefa   :  { %v14243_v9 = vpop.eup %14242 }
 0xefb   :  { %v3021_v31 = vmul.f32 %v14243_v9, %v3020_v26  ;;  %v3028_v12 = vrot.slane %v14243_v9, 2  ;;  %v3414_v26 = vld [vmem:[#allocation7 + $0x120] sm:$0xff]  ;;  %v3417_v9 = vld [vmem:[#allocation7 + $0x138] sm:$0xff] }
 0xefd   :  { %v3025_v11 = vadd.f32 %v3023_v10, %v3021_v31  ;;  %v3030_v16 = vsub.f32 1.0, %v3028_v12  ;;  %v3032_v18 = vmul.f32 %v3028_v12, %v2854_v0  ;;  %v3421_v31 = vld [vmem:[#allocation7 + $0x158] sm:$0xff]  ;;  %v3424_v10 = vld [vmem:[#allocation7 + $0x170] sm:$0xff] }
 0xefe   :  { %v13084_v12 = vpack.c.bf16 %v3424_v10, %v3421_v31 }
 0xeff   :  { %14244 = vtanh.f32 %v3025_v11  ;;  %v13082_v11 = vpack.c.bf16 %v3417_v9, %v3414_v26 }
 0xf09   :  { %v14245_v24 = vpop.eup %14244 }
 0xf0a   :  { %v3031_v19 = vmul.f32 %v14245_v24, %v3030_v16  ;;  %v3420_v16 = vld [vmem:[#allocation7 + $0x150] sm:$0xff]  ;;  %v3423_v24 = vld [vmem:[#allocation7 + $0x168] sm:$0xff] }
 0xf0c   :  { %v3033_v29 = vadd.f32 %v3032_v18, %v3031_v19  ;;  %v13086_v19 = vpack.c.bf16 %v3423_v24, %v3420_v16  ;;  %v3404_v18 = vld [vmem:[#allocation7 + $0xd0] sm:$0xff] }
 0xf0e   :  { %3034 = vst.msk [vmem:[#allocation2 + $0xa] sm:$0x3] %vm331_vm2, %v3033_v29  ;;  %10897 = vmatmul.mubr.msk.f32.vlgmr.msra.gmra.mrb[32].mxu0 %vm154_vm1, %v3033_v29  ;;  %11833 = vmatmul.mubr.msk.f32.vlgmr.msra.gmra.mrb[30].mxu1 %vm154_vm1, %v3033_v29 }
 0xf0f   :  { %13047 = vmatpush1.bf16.msra.mxu0 %v14979_v30  ;;  %13062 = vmatpush3.bf16.msra.mxu1 %v15035_v42  ;;  %v3403_v30 = vld [vmem:[#allocation7 + $0xc8] sm:$0xff] }
 0xf10   :  { %13049 = vmatprep.subr.bf16.mxu0 %v14982_v38  ;;  %13063 = vmatprep.subr.bf16.mxu1 %v14605_v2  ;;  %v3406_v38 = vld [vmem:[#allocation7 + $0xe0] sm:$0xff] }
 0xf11   :  { %3283 = vmatprep.mubr.f32.mxu0 %v14604_v1  ;;  %11851 = vmatprep.mubr.msk.f32.mxu1 %vm14606_vm0, %v14604_v1 }
 0xf13   :  { %13051 = vmatpush1.bf16.msra.mxu0 %v14985_v41  ;;  %13065 = vmatpush3.bf16.msra.mxu1 %v15041_v48  ;;  %v13072_v41 = vpack.c.bf16 %v3406_v38, %v3403_v30  ;;  %v3410_v38 = vld [vmem:[#allocation7 + $0x100] sm:$0xff] }
 0xf14   :  { %13053 = vmatprep.subr.bf16.mxu0 %v14990_v46  ;;  %13066 = vmatprep.subr.bf16.mxu1 %v14605_v2 }
 0xf17   :  { %13055 = vmatpush1.bf16.msra.mxu0 %v14992_v50  ;;  %13068 = vmatpush3.bf16.msra.mxu1 %v15048_v52  ;;  %v3036_v52 = vld [vmem:[#allocation3 + $0x24] sm:$0x3f] }
 0xf18   :  { %13057 = vmatprep.subr.bf16.mxu0 %v14995_v54  ;;  %13069 = vmatprep.subr.bf16.mxu1 %v14605_v2  ;;  %v3202_v56 = vrot.slane %v3036_v52, 4 }
 0xf1b   :  { %13059 = vmatpush1.bf16.msra.mxu0 %v14998_v55  ;;  %13071 = vmatpush3.bf16.msra.mxu1 %v15055_v58 }
 0xf1c   :  { %13073 = vmatprep.subr.bf16.mxu0 %v13072_v41  ;;  %v3413_v41 = vld [vmem:[#allocation7 + $0x118] sm:$0xff] }
 0xfe1   :  { %v3106_v42 = vpop.f32.mrb[32].mxu0  ;;  %v3177_v46 = vpop.f32.mrb[30].mxu1 }
 0xfe2   :  { %v3108_v48 = vpop.f32.mrb[33].mxu0  ;;  %v11834_v28 = vpop.f32.mrb[31].mxu1  ;;  %v3199_v55 = vadd.f32 %v15102_v47, %v3177_v46  ;;  %v13092_v46 = vpack.c.bf16 %v3413_v41, %v3410_v38 }
 0xfe3   :  { %v3183_v27 = vcombine.low %v3106_v42, %v3108_v48  ;;  %v3416_v42 = vld [vmem:[#allocation7 + $0x130] sm:$0xff]  ;;  %v3419_v48 = vld [vmem:[#allocation7 + $0x148] sm:$0xff]  ;;  %v3736_v28 = vld [vmem:[#allocation10 + $0x188] sm:$0xff] }
 0xfe5   :  { %v3190_v50 = vrot.slane %v3183_v27, %v14812_v45  ;;  %v3739_v27 = vld [vmem:[#allocation10 + $0x1a0] sm:$0xff] }
 0xfe7   :  { %v3192_v35 = vadd.f32 %v3190_v50, %v3036_v52  ;;  %v15261_v50 = vpack.c.bf16 %v3739_v27, %v3736_v28  ;;  %v3735_v52 = vld [vmem:[#allocation10 + $0x180] sm:$0xff] }
 0xfe9   :  { %v10899_v54 = vmul.f32 -1.442695, %v3192_v35  ;;  %v3738_v35 = vld [vmem:[#allocation10 + $0x198] sm:$0xff] }
 0xfeb   :  { %14246 = vpow2.f32 %v10899_v54  ;;  %v13096_v54 = vpack.c.bf16 %v3419_v48, %v3416_v42 }
 0xff5   :  { %v14247_v32 = vpop.eup %14246 }
 0xff6   :  { %v3196_v33 = vadd.f32 1.0, %v14247_v32  ;;  %v15263_v32 = vpack.c.bf16 %v3738_v35, %v3735_v52  ;;  %v3398_v35 = vld [vmem:[#allocation2 + $0xa] sm:$0x3] }
 0xff8   :  { %14248 = vrcp.f32 %v3196_v33  ;;  %v3422_v33 = vld [vmem:[#allocation7 + $0x160] sm:$0xff] }
0x1002   :  { %v14249_v58 = vpop.eup %14248 }
0x1003   :  { %v3200_v36 = vmul.f32 %v14249_v58, %v3199_v55  ;;  %v3207_v6 = vrot.slane %v14249_v58, 2  ;;  %v3742_v55 = vld [vmem:[#allocation10 + $0x1b8] sm:$0xff]  ;;  %v3745_v58 = vld [vmem:[#allocation10 + $0x1d0] sm:$0xff] }
0x1005   :  { %v3204_v34 = vadd.f32 %v3202_v56, %v3200_v36  ;;  %v3209_v62 = vsub.f32 1.0, %v3207_v6  ;;  %v3211_v0 = vmul.f32 %v3207_v6, %v3033_v29  ;;  %v3407_v29 = vld [vmem:[#allocation7 + $0xe8] sm:$0xff]  ;;  %v3425_v36 = vld [vmem:[#allocation7 + $0x178] sm:$0xff]  ;;  %v15266_v56 = vpack.c.bf16 %v3745_v58, %v3742_v55 }
0x1006   :  { %v13088_v30 = vpack.c.bf16 %v3407_v29, %v3404_v18  ;;  %v13100_v20 = vpack.c.bf16 %v3425_v36, %v3422_v33  ;;  %v3737_v36 = vld [vmem:[#allocation10 + $0x190] sm:$0xff] }
0x1007   :  { %14250 = vtanh.f32 %v3204_v34  ;;  %v3741_v34 = vld [vmem:[#allocation10 + $0x1b0] sm:$0xff] }
0x1008   :  { %13089 = vmatprep.subr.bf16.mxu1 %v13088_v30  ;;  %v15269_v6 = vpack.c.bf16 %v3744_v14, %v3741_v34  ;;  %v3740_v34 = vld [vmem:[#allocation10 + $0x1a8] sm:$0xff] }
0x1009   :  { %v15313_v37 = vpack.c.bf16 %v3740_v34, %v3737_v36 }
0x1011   :  { %v14251_v53 = vpop.eup %14250 }
0x1012   :  { %v3210_v63 = vmul.f32 %v14251_v53, %v3209_v62  ;;  %v3750_v62 = vld [vmem:[#allocation10 + $0x1f8] sm:$0xff] }
0x1013   :  { %v15276_v53 = vpack.c.bf16 %v3750_v62, %v3747_v40  ;;  %v3743_v40 = vld [vmem:[#allocation10 + $0x1c0] sm:$0xff] }
0x1014   :  { %v15249_v13 = vadd.f32 %v3211_v0, %v3210_v63  ;;  %v15282_v63 = vpack.c.bf16 %v3756_v61, %v3753_v60  ;;  %v15326_v60 = vpack.c.bf16 %v3752_v51, %v3749_v49  ;;  %v3755_v61 = vld [vmem:[#allocation10 + $0x220] sm:$0xff] }
0x1016   :  { %3213 = vst.msk [vmem:[#allocation2 + $0xc] sm:$0x3] %vm331_vm2, %v15249_v13  ;;  %10900 = vmatmul.mubr.msk.f32.vlgmr.msra.gmra.mrb[34].mxu0 %vm154_vm1, %v15249_v13  ;;  %11852 = vmatmul.mubr.msk.f32.vlgmr.msra.gmra.mrb[32].mxu1 %vm154_vm1, %v15249_v13 }
0x1017   :  { %13075 = vmatpush1.bf16.msra.mxu0 %v13074_v3  ;;  %11870 = vmatprep.mubr.msk.f32.mxu1 %vm154_vm1, %v3468_v43 }
0x1018   :  { %13077 = vmatprep.subr.bf16.mxu0 %v13076_v15  ;;  %3554 = vmatprep.mubr.f32.mxu0 %v14604_v1 }
0x1019   :  { %13091 = vmatpush3.bf16.msra.mxu1 %v13088_v30 }
0x101a   :  { %13093 = vmatprep.subr.bf16.mxu1 %v13092_v46 }
0x101b   :  { %13079 = vmatpush1.bf16.msra.mxu0 %v13078_v25  ;;  %v15288_v25 = vld [vmem:[#allocation9 + $0x3] sm:$0x7] }
0x101c   :  { %13081 = vmatprep.subr.bf16.mxu0 %v13080_v7  ;;  %v15292_v7 = vrot.slane %v15288_v25, %v15005_v5  ;;  %v15296_v26 = vrot.slane %v15288_v25, %v15010_v8 }
0x101d   :  { %13095 = vmatpush3.bf16.msra.mxu1 %v13092_v46  ;;  %v3399_v55 = vld [vmem:[#allocation2 + $0xc] sm:$0x3] }
0x101e   :  { %13097 = vmatprep.subr.bf16.mxu1 %v13096_v54 }
0x101f   :  { %13083 = vmatpush1.bf16.msra.mxu0 %v13082_v11 }
0x1020   :  { %13085 = vmatprep.subr.bf16.mxu0 %v13084_v12 }
0x1021   :  { %13099 = vmatpush3.bf16.msra.mxu1 %v13096_v54  ;;  %v3397_v54 = vld [vmem:[#allocation2 + $0x8] sm:$0x3] }
0x1022   :  { %13101 = vmatprep.subr.bf16.mxu1 %v13100_v20  ;;  %v3469_v33 = vcombine.low %v3397_v54, %v3398_v35 }
0x1023   :  { %13087 = vmatpush1.bf16.msra.mxu0 %v13086_v19 }
0x1024   :  { %13105 = vmatprep.subr.bf16.mxu0 %v15261_v50  ;;  %v3477_v14 = vrot.slane %v3469_v33, %v14812_v45 }
0x1025   :  { %13103 = vmatpush3.bf16.msra.mxu1 %v13100_v20 }
0x1026   :  { %10903 = vmatmul.mubr.msk.f32.vlgmr.msra.gmra.mrb[36].mxu0 %vm154_vm1, %v3468_v43  ;;  %13120 = vmatprep.subr.bf16.mxu1 %v14605_v2  ;;  %v3215_v43 = vld [vmem:[#allocation3 + $0x2a] sm:$0x3f] }
0x1027   :  { %3560 = vmatprep.mubr.f32.mxu0 %v14604_v1  ;;  %13107 = vmatpush1.bf16.msra.mxu0 %v15263_v32  ;;  %v3381_v38 = vrot.slane %v3215_v43, 4 }
0x1028   :  { %13109 = vmatprep.subr.bf16.mxu0 %v15266_v56 }
0x102b   :  { %13111 = vmatpush1.bf16.msra.mxu0 %v15269_v6 }
0x102c   :  { %13113 = vmatprep.subr.bf16.mxu0 %v15273_v44 }
0x102f   :  { %13115 = vmatpush1.bf16.msra.mxu0 %v15276_v53 }
0x1030   :  { %13117 = vmatprep.subr.bf16.mxu0 %v15278_v57 }
0x1033   :  { %13119 = vmatpush1.bf16.msra.mxu0 %v15282_v63 }
0x1034   :  { %13133 = vmatprep.subr.bf16.mxu0 %v15261_v50 }
0x10e9   :  { %v3285_v0 = vpop.f32.mrb[34].mxu0  ;;  %v3356_v3 = vpop.f32.mrb[32].mxu1 }
0x10ea   :  { %v3287_v4 = vpop.f32.mrb[35].mxu0  ;;  %v11853_v15 = vpop.f32.mrb[33].mxu1  ;;  %v3378_v18 = vadd.f32 %v15102_v47, %v3356_v3 }
0x10eb   :  { %v3362_v17 = vcombine.low %v3285_v0, %v3287_v4  ;;  %v3758_v0 = vld [vmem:[#allocation10 + $0x238] sm:$0xff]  ;;  %v3440_v4 = vrot.slane %v15288_v25, %v15078_v59 }
0x10ec   :  { %v15333_v3 = vpack.c.bf16 %v3758_v0, %v3755_v61 }
0x10ed   :  { %v3369_v21 = vrot.slane %v3362_v17, %v14812_v45 }
0x10ef   :  { %v3371_v22 = vadd.f32 %v3369_v21, %v3215_v43 }
0x10f1   :  { %v10902_v23 = vmul.f32 -1.442695, %v3371_v22 }
0x10f3   :  { %14252 = vpow2.f32 %v10902_v23 }
0x10f9   :  { %v3556_v9 = vpop.f32.mrb[36].mxu0 }
0x10fa   :  { %v15299_v31 = vadd.f32 %v3556_v9, %v15292_v7  ;;  %v3558_v10 = vpop.f32.mrb[37].mxu0 }
0x10fb   :  { %v15302_v11 = vadd.f32 %v3558_v10, %v15296_v26 }
0x10fd   :  { %v14253_v12 = vpop.eup %14252  ;;  %v3648_v16 = vcombine.low %v15299_v31, %v15302_v11  ;;  %v3649_v24 = vcombine.high %v15299_v31, %v15302_v11 }
0x10fe   :  { %v3375_v19 = vadd.f32 1.0, %v14253_v12 }
0x10ff   :  { %v3657_v12 = vrot.slane %v3648_v16, %v14812_v45  ;;  %v3664_v16 = vrot.slane %v3649_v24, %v14812_v45 }
0x1100   :  { %14254 = vrcp.f32 %v3375_v19 }
0x110a   :  { %v14255_v29 = vpop.eup %14254 }
0x110b   :  { %v3379_v30 = vmul.f32 %v14255_v29, %v3378_v18  ;;  %v3386_v42 = vrot.slane %v14255_v29, 2 }
0x110d   :  { %v3383_v41 = vadd.f32 %v3381_v38, %v3379_v30  ;;  %v3388_v46 = vsub.f32 1.0, %v3386_v42  ;;  %v3390_v27 = vmul.f32 %v3386_v42, %v15249_v13  ;;  %v3746_v13 = vld [vmem:[#allocation10 + $0x1d8] sm:$0xff] }
0x110e   :  { %v15319_v62 = vpack.c.bf16 %v3746_v13, %v3743_v40  ;;  %v15377_v40 = vld [vmem:[%s16384_s4 + $0x2] ss:$0 sm:$0xff] }
0x110f   :  { %14256 = vtanh.f32 %v3383_v41 }
0x1119   :  { %v14257_v48 = vpop.eup %14256 }
0x111a   :  { %v3389_v28 = vmul.f32 %v14257_v48, %v3388_v46 }
0x111c   :  { %v3391_v52 = vadd.f32 %v3390_v27, %v3389_v28 }
0x111e   :  { %3392 = vst.msk [vmem:[#allocation2 + $0xe] sm:$0x3] %vm331_vm2, %v3391_v52 }
0x1125   :  { %v3400_v58 = vld [vmem:[#allocation2 + $0xe] sm:$0x3] }
0x1126   :  { %v3470_v47 = vcombine.low %v3399_v55, %v3400_v58 }
0x1128   :  { %v3484_v20 = vrot.slane %v3470_v47, %v14812_v45 }
0x112a   :  { %v3485_v39 = vcombine.low %v3477_v14, %v3484_v20 }
0x112c   :  { %10904 = vmatmul.mubr.msk.f32.gmra.mrb[38].mxu0 %vm154_vm1, %v3485_v39  ;;  %11871 = vmatmul.mubr.msk.f32.vlgmr.msra.gmra.mrb[34].mxu1 %vm154_vm1, %v3485_v39 }
0x112d   :  { %3832 = vmatprep.mubr.f32.mxu0 %v14604_v1  ;;  %13122 = vmatpush3.bf16.msra.mxu1 %v15313_v37 }
0x112e   :  { %13123 = vmatprep.subr.bf16.mxu1 %v14605_v2  ;;  %11889 = vmatprep.mubr.msk.f32.mxu1 %vm14606_vm0, %v14604_v1 }
0x1130   :  { %3833 = vmatmul.mubr.f32.vlgmr.msra.gmra.mrb[40].mxu0 %v14604_v1 }
0x1131   :  { %13125 = vmatpush3.bf16.msra.mxu1 %v15319_v62  ;;  %13135 = vmatpush1.bf16.msra.mxu0 %v15263_v32 }
0x1132   :  { %13126 = vmatprep.subr.bf16.mxu1 %v14605_v2  ;;  %13137 = vmatprep.subr.bf16.mxu0 %v15266_v56 }
0x1133   :  { %4010 = vmatprep.mubr.f32.mxu0 %v14604_v1 }
0x1135   :  { %13128 = vmatpush3.bf16.msra.mxu1 %v15326_v60  ;;  %13139 = vmatpush1.bf16.msra.mxu0 %v15269_v6 }
0x1136   :  { %13129 = vmatprep.subr.bf16.mxu1 %v14605_v2  ;;  %13141 = vmatprep.subr.bf16.mxu0 %v15273_v44 }
0x1139   :  { %13131 = vmatpush3.bf16.msra.mxu1 %v15333_v3  ;;  %13143 = vmatpush1.bf16.msra.mxu0 %v15276_v53 }
0x113a   :  { %13148 = vmatprep.subr.bf16.mxu1 %v14605_v2  ;;  %13145 = vmatprep.subr.bf16.mxu0 %v15278_v57 }
0x113c   :  { %11890 = vmatmul.mubr.f32.vlgmr.msra.gmra.mrb[36].mxu1 %v14604_v1 }
0x113d   :  { %13150 = vmatpush3.bf16.msra.mxu1 %v15313_v37  ;;  %13147 = vmatpush1.bf16.msra.mxu0 %v15282_v63 }
0x113e   :  { %13151 = vmatprep.subr.bf16.mxu1 %v14605_v2  ;;  %11908 = vmatprep.mubr.msk.f32.mxu1 %vm14606_vm0, %v14604_v1 }
0x113f   :  { %13161 = vmatprep.subr.bf16.mxu0 %v15261_v50 }
0x1141   :  { %13153 = vmatpush3.bf16.msra.mxu1 %v15319_v62 }
0x1142   :  { %13154 = vmatprep.subr.bf16.mxu1 %v14605_v2 }
0x1145   :  { %13156 = vmatpush3.bf16.msra.mxu1 %v15326_v60 }
0x1146   :  { %13157 = vmatprep.subr.bf16.mxu1 %v14605_v2 }
0x1149   :  { %13159 = vmatpush3.bf16.msra.mxu1 %v15333_v3 }
0x114a   :  { %13176 = vmatprep.subr.bf16.mxu1 %v14605_v2 }
0x11ff   :  { %v3562_v15 = vpop.f32.mrb[38].mxu0  ;;  %v11872_v17 = vpop.f32.mrb[34].mxu1 }
0x1200   :  { %v3563_v21 = vadd.f32 %v3562_v15, %v15292_v7  ;;  %v3639_v43 = vadd.f32 %v11872_v17, %v3440_v4  ;;  %v3564_v22 = vpop.f32.mrb[39].mxu0  ;;  %v3633_v23 = vpop.f32.mrb[35].mxu1 }
0x1201   :  { %v3565_v9 = vadd.f32 %v3564_v22, %v15296_v26  ;;  %v3634_v10 = vadd.f32 %v3633_v23, %v3440_v4 }
0x1202   :  { %v3685_v19 = vcombine.high %v3639_v43, %v3639_v43  ;;  %v3706_v7 = vrot.slane %v3639_v43, %v14812_v45 }
0x1203   :  { %v3683_v18 = vcombine.low %v3563_v21, %v3565_v9  ;;  %v3684_v29 = vcombine.high %v3563_v21, %v3565_v9  ;;  %v3650_v30 = vcombine.high %v3634_v10, %v3634_v10  ;;  %v3671_v25 = vrot.slane %v3634_v10, %v14812_v45  ;;  %v3834_v38 = vpop.f32.mrb[40].mxu0 }
0x1204   :  { %v3713_v41 = vrot.slane %v3685_v19, %v14812_v45  ;;  %v3836_v42 = vpop.f32.mrb[41].mxu0 }
0x1205   :  { %v3692_v26 = vrot.slane %v3683_v18, %v14812_v45  ;;  %v3699_v46 = vrot.slane %v3684_v29, %v14812_v45  ;;  %v3678_v48 = vrot.slane %v3650_v30, %v14812_v45  ;;  %v3679_v28 = vcombine.low %v3657_v12, %v3671_v25 }
0x1206   :  { %v3680_v27 = vcombine.high %v3657_v12, %v3671_v25  ;;  %v3911_v52 = vcombine.low %v3834_v38, %v3836_v42 }
0x1207   :  { %v3714_v35 = vcombine.low %v3692_v26, %v3706_v7  ;;  %v3715_v54 = vcombine.high %v3692_v26, %v3706_v7  ;;  %v3716_v33 = vcombine.low %v3699_v46, %v3713_v41  ;;  %v3717_v55 = vcombine.high %v3699_v46, %v3713_v41  ;;  %3726 = vst [vmem:[#allocation3] sm:$0x3f] %v3679_v28 }
0x1208   :  { %v3681_v58 = vcombine.low %v3664_v16, %v3678_v48  ;;  %v3682_v47 = vcombine.high %v3664_v16, %v3678_v48  ;;  %3727 = vst [vmem:[#allocation3 + $0x6] sm:$0x3f] %v3680_v27  ;;  %v3918_v36 = vrot.slane %v3911_v52, %v14812_v45 }
0x1209   :  { %3730 = vst [vmem:[#allocation3 + $0x18] sm:$0x3f] %v3714_v35  ;;  %3731 = vst [vmem:[#allocation3 + $0x1e] sm:$0x3f] %v3715_v54 }
0x120a   :  { %3732 = vst [vmem:[#allocation3 + $0x24] sm:$0x3f] %v3716_v33  ;;  %3733 = vst [vmem:[#allocation3 + $0x2a] sm:$0x3f] %v3717_v55 }
0x120b   :  { %3728 = vst [vmem:[#allocation3 + $0xc] sm:$0x3f] %v3681_v58  ;;  %3729 = vst [vmem:[#allocation3 + $0x12] sm:$0x3f] %v3682_v47 }
0x120e   :  { %v3767_v31 = vld [vmem:[#allocation3] sm:$0x3f] }
0x120f   :  { %v3920_v11 = vadd.f32 %v3918_v36, %v3767_v31  ;;  %v3905_v24 = vpop.f32.mrb[36].mxu1  ;;  %v3930_v61 = vrot.slane %v3767_v31, 4  ;;  %v3942_v29 = vld [vmem:[#allocation3 + $0x6] sm:$0x3f] }
0x1210   :  { %v11891_v34 = vpop.f32.mrb[37].mxu1  ;;  %v3927_v13 = vadd.f32 %v15377_v40, %v3905_v24  ;;  %v4108_v46 = vrot.slane %v3942_v29, 4 }
0x1211   :  { %v10909_v14 = vmul.f32 -1.442695, %v3920_v11 }
0x1212   :  { %v4120_v11 = vld [vmem:[#allocation3 + $0xc] sm:$0x3f] }
0x1213   :  { %14258 = vpow2.f32 %v10909_v14 }
0x121d   :  { %v14259_v20 = vpop.eup %14258 }
0x121e   :  { %v3924_v39 = vadd.f32 1.0, %v14259_v20 }
0x1220   :  { %14260 = vrcp.f32 %v3924_v39 }
0x122a   :  { %v14261_v49 = vpop.eup %14260 }
0x122b   :  { %v3928_v51 = vmul.f32 %v14261_v49, %v3927_v13  ;;  %v3935_v4 = vrot.slane %v14261_v49, 2 }
0x122d   :  { %v3932_v0 = vadd.f32 %v3930_v61, %v3928_v51  ;;  %v3937_v15 = vsub.f32 1.0, %v3935_v4  ;;  %v3939_v43 = vmul.f32 0.0, %v3935_v4  ;;  %v4286_v51 = vrot.slane %v4120_v11, 4 }
0x122f   :  { %14262 = vtanh.f32 %v3932_v0 }
0x1239   :  { %v14263_v17 = vpop.eup %14262 }
0x123a   :  { %v3938_v21 = vmul.f32 %v14263_v17, %v3937_v15 }
0x123c   :  { %v3940_v22 = vadd.f32 %v3939_v43, %v3938_v21 }
0x123e   :  { %3941 = vst.msk [vmem:[#allocation2] sm:$0x3] %vm331_vm2, %v3940_v22  ;;  %10910 = vmatmul.mubr.msk.f32.vlgmr.msra.gmra.mrb[42].mxu0 %vm154_vm1, %v3940_v22  ;;  %11909 = vmatmul.mubr.msk.f32.vlgmr.msra.gmra.mrb[38].mxu1 %vm154_vm1, %v3940_v22 }
0x123f   :  { %13163 = vmatpush1.bf16.msra.mxu0 %v15263_v32  ;;  %13178 = vmatpush3.bf16.msra.mxu1 %v15313_v37 }
0x1240   :  { %13165 = vmatprep.subr.bf16.mxu0 %v15266_v56  ;;  %13179 = vmatprep.subr.bf16.mxu1 %v14605_v2 }
0x1241   :  { %4188 = vmatprep.mubr.f32.mxu0 %v14604_v1  ;;  %11927 = vmatprep.mubr.msk.f32.mxu1 %vm14606_vm0, %v14604_v1 }
0x1243   :  { %13167 = vmatpush1.bf16.msra.mxu0 %v15269_v6  ;;  %13181 = vmatpush3.bf16.msra.mxu1 %v15319_v62 }
0x1244   :  { %13169 = vmatprep.subr.bf16.mxu0 %v15273_v44  ;;  %13182 = vmatprep.subr.bf16.mxu1 %v14605_v2 }
0x1247   :  { %13171 = vmatpush1.bf16.msra.mxu0 %v15276_v53  ;;  %13184 = vmatpush3.bf16.msra.mxu1 %v15326_v60 }
0x1248   :  { %13173 = vmatprep.subr.bf16.mxu0 %v15278_v57  ;;  %13185 = vmatprep.subr.bf16.mxu1 %v14605_v2 }
0x124b   :  { %13175 = vmatpush1.bf16.msra.mxu0 %v15282_v63  ;;  %13187 = vmatpush3.bf16.msra.mxu1 %v15333_v3 }
0x124c   :  { %13189 = vmatprep.subr.bf16.mxu0 %v15261_v50  ;;  %13204 = vmatprep.subr.bf16.mxu1 %v14605_v2 }
0x1311   :  { %v4012_v23 = vpop.f32.mrb[42].mxu0  ;;  %v4083_v9 = vpop.f32.mrb[38].mxu1 }
0x1312   :  { %v4014_v10 = vpop.f32.mrb[43].mxu0  ;;  %v11910_v12 = vpop.f32.mrb[39].mxu1  ;;  %v4105_v41 = vadd.f32 %v15377_v40, %v4083_v9 }
0x1313   :  { %v4089_v19 = vcombine.low %v4012_v23, %v4014_v10 }
0x1315   :  { %v4096_v18 = vrot.slane %v4089_v19, %v14812_v45 }
0x1317   :  { %v4098_v30 = vadd.f32 %v4096_v18, %v3942_v29  ;;  %v4298_v18 = vld [vmem:[#allocation3 + $0x12] sm:$0x3f] }
0x1319   :  { %v10912_v25 = vmul.f32 -1.442695, %v4098_v30 }
0x131b   :  { %14264 = vpow2.f32 %v10912_v25 }
0x1325   :  { %v14265_v38 = vpop.eup %14264 }
0x1326   :  { %v4102_v7 = vadd.f32 1.0, %v14265_v38 }
0x1328   :  { %14266 = vrcp.f32 %v4102_v7 }
0x1332   :  { %v14267_v42 = vpop.eup %14266 }
0x1333   :  { %v4106_v26 = vmul.f32 %v14267_v42, %v4105_v41  ;;  %v4113_v28 = vrot.slane %v14267_v42, 2 }
0x1335   :  { %v4110_v48 = vadd.f32 %v4108_v46, %v4106_v26  ;;  %v4115_v16 = vsub.f32 1.0, %v4113_v28  ;;  %v4117_v35 = vmul.f32 %v4113_v28, %v3940_v22  ;;  %v4464_v26 = vrot.slane %v4298_v18, 4 }
0x1337   :  { %14268 = vtanh.f32 %v4110_v48 }
0x1341   :  { %v14269_v27 = vpop.eup %14268 }
0x1342   :  { %v4116_v52 = vmul.f32 %v14269_v27, %v4115_v16 }
0x1344   :  { %v4118_v54 = vadd.f32 %v4117_v35, %v4116_v52 }
0x1346   :  { %4119 = vst.msk [vmem:[#allocation2 + $0x2] sm:$0x3] %vm331_vm2, %v4118_v54  ;;  %10913 = vmatmul.mubr.msk.f32.vlgmr.msra.gmra.mrb[44].mxu0 %vm154_vm1, %v4118_v54  ;;  %11928 = vmatmul.mubr.msk.f32.vlgmr.msra.gmra.mrb[40].mxu1 %vm154_vm1, %v4118_v54 }
0x1347   :  { %13191 = vmatpush1.bf16.msra.mxu0 %v15263_v32  ;;  %13206 = vmatpush3.bf16.msra.mxu1 %v15313_v37 }
0x1348   :  { %13193 = vmatprep.subr.bf16.mxu0 %v15266_v56  ;;  %13207 = vmatprep.subr.bf16.mxu1 %v14605_v2 }
0x1349   :  { %4366 = vmatprep.mubr.f32.mxu0 %v14604_v1  ;;  %11946 = vmatprep.mubr.msk.f32.mxu1 %vm14606_vm0, %v14604_v1 }
0x134b   :  { %13195 = vmatpush1.bf16.msra.mxu0 %v15269_v6  ;;  %13209 = vmatpush3.bf16.msra.mxu1 %v15319_v62 }
0x134c   :  { %13197 = vmatprep.subr.bf16.mxu0 %v15273_v44  ;;  %13210 = vmatprep.subr.bf16.mxu1 %v14605_v2 }
0x134f   :  { %13199 = vmatpush1.bf16.msra.mxu0 %v15276_v53  ;;  %13212 = vmatpush3.bf16.msra.mxu1 %v15326_v60 }
0x1350   :  { %13201 = vmatprep.subr.bf16.mxu0 %v15278_v57  ;;  %13213 = vmatprep.subr.bf16.mxu1 %v14605_v2 }
0x1353   :  { %13203 = vmatpush1.bf16.msra.mxu0 %v15282_v63  ;;  %13215 = vmatpush3.bf16.msra.mxu1 %v15333_v3 }
0x1354   :  { %13217 = vmatprep.subr.bf16.mxu0 %v15261_v50  ;;  %13232 = vmatprep.subr.bf16.mxu1 %v14605_v2 }
0x1419   :  { %v4190_v33 = vpop.f32.mrb[44].mxu0  ;;  %v4261_v55 = vpop.f32.mrb[40].mxu1 }
0x141a   :  { %v4192_v58 = vpop.f32.mrb[45].mxu0  ;;  %v11929_v47 = vpop.f32.mrb[41].mxu1  ;;  %v4283_v39 = vadd.f32 %v15377_v40, %v4261_v55 }
0x141b   :  { %v4267_v36 = vcombine.low %v4190_v33, %v4192_v58 }
0x141d   :  { %v4274_v31 = vrot.slane %v4267_v36, %v14812_v45 }
0x141f   :  { %v4276_v24 = vadd.f32 %v4274_v31, %v4120_v11  ;;  %v4476_v31 = vld [vmem:[#allocation3 + $0x18] sm:$0x3f] }
0x1421   :  { %v10915_v34 = vmul.f32 -1.442695, %v4276_v24 }
0x1423   :  { %14270 = vpow2.f32 %v10915_v34 }
0x142d   :  { %v14271_v14 = vpop.eup %14270 }
0x142e   :  { %v4280_v20 = vadd.f32 1.0, %v14271_v14 }
0x1430   :  { %14272 = vrcp.f32 %v4280_v20 }
0x143a   :  { %v14273_v13 = vpop.eup %14272 }
0x143b   :  { %v4284_v49 = vmul.f32 %v14273_v13, %v4283_v39  ;;  %v4291_v0 = vrot.slane %v14273_v13, 2 }
0x143d   :  { %v4288_v61 = vadd.f32 %v4286_v51, %v4284_v49  ;;  %v4293_v4 = vsub.f32 1.0, %v4291_v0  ;;  %v4295_v21 = vmul.f32 %v4291_v0, %v4118_v54  ;;  %v4642_v49 = vrot.slane %v4476_v31, 4 }
0x143f   :  { %14274 = vtanh.f32 %v4288_v61 }
0x1449   :  { %v14275_v15 = vpop.eup %14274 }
0x144a   :  { %v4294_v17 = vmul.f32 %v14275_v15, %v4293_v4 }
0x144c   :  { %v4296_v43 = vadd.f32 %v4295_v21, %v4294_v17 }
0x144e   :  { %4297 = vst.msk [vmem:[#allocation2 + $0x4] sm:$0x3] %vm331_vm2, %v4296_v43  ;;  %10916 = vmatmul.mubr.msk.f32.vlgmr.msra.gmra.mrb[46].mxu0 %vm154_vm1, %v4296_v43  ;;  %11947 = vmatmul.mubr.msk.f32.vlgmr.msra.gmra.mrb[42].mxu1 %vm154_vm1, %v4296_v43 }
0x144f   :  { %13219 = vmatpush1.bf16.msra.mxu0 %v15263_v32  ;;  %13234 = vmatpush3.bf16.msra.mxu1 %v15313_v37 }
0x1450   :  { %13221 = vmatprep.subr.bf16.mxu0 %v15266_v56  ;;  %13235 = vmatprep.subr.bf16.mxu1 %v14605_v2 }
0x1451   :  { %4544 = vmatprep.mubr.f32.mxu0 %v14604_v1  ;;  %11965 = vmatprep.mubr.msk.f32.mxu1 %vm14606_vm0, %v14604_v1 }
0x1453   :  { %13223 = vmatpush1.bf16.msra.mxu0 %v15269_v6  ;;  %13237 = vmatpush3.bf16.msra.mxu1 %v15319_v62 }
0x1454   :  { %13225 = vmatprep.subr.bf16.mxu0 %v15273_v44  ;;  %13238 = vmatprep.subr.bf16.mxu1 %v14605_v2 }
0x1457   :  { %13227 = vmatpush1.bf16.msra.mxu0 %v15276_v53  ;;  %13240 = vmatpush3.bf16.msra.mxu1 %v15326_v60 }
0x1458   :  { %13229 = vmatprep.subr.bf16.mxu0 %v15278_v57  ;;  %13241 = vmatprep.subr.bf16.mxu1 %v14605_v2 }
0x145b   :  { %13231 = vmatpush1.bf16.msra.mxu0 %v15282_v63  ;;  %13243 = vmatpush3.bf16.msra.mxu1 %v15333_v3 }
0x145c   :  { %13245 = vmatprep.subr.bf16.mxu0 %v15261_v50  ;;  %13260 = vmatprep.subr.bf16.mxu1 %v14605_v2 }
0x1521   :  { %v4368_v22 = vpop.f32.mrb[46].mxu0  ;;  %v4439_v23 = vpop.f32.mrb[42].mxu1 }
0x1522   :  { %v4370_v9 = vpop.f32.mrb[47].mxu0  ;;  %v11948_v10 = vpop.f32.mrb[43].mxu1  ;;  %v4461_v7 = vadd.f32 %v15377_v40, %v4439_v23 }
0x1523   :  { %v4445_v12 = vcombine.low %v4368_v22, %v4370_v9 }
0x1525   :  { %v4452_v19 = vrot.slane %v4445_v12, %v14812_v45 }
0x1527   :  { %v4454_v29 = vadd.f32 %v4452_v19, %v4298_v18  ;;  %v4654_v19 = vld [vmem:[#allocation3 + $0x1e] sm:$0x3f] }
0x1529   :  { %v10918_v30 = vmul.f32 -1.442695, %v4454_v29 }
0x152b   :  { %14276 = vpow2.f32 %v10918_v30 }
0x1535   :  { %v14277_v25 = vpop.eup %14276 }
0x1536   :  { %v4458_v38 = vadd.f32 1.0, %v14277_v25 }
0x1538   :  { %14278 = vrcp.f32 %v4458_v38 }
0x1542   :  { %v14279_v41 = vpop.eup %14278 }
0x1543   :  { %v4462_v42 = vmul.f32 %v14279_v41, %v4461_v7  ;;  %v4469_v48 = vrot.slane %v14279_v41, 2  ;;  %v4820_v41 = vrot.slane %v4654_v19, 4 }
0x1545   :  { %v4466_v46 = vadd.f32 %v4464_v26, %v4462_v42  ;;  %v4471_v28 = vsub.f32 1.0, %v4469_v48  ;;  %v4473_v52 = vmul.f32 %v4469_v48, %v4296_v43 }
0x1547   :  { %14280 = vtanh.f32 %v4466_v46 }
0x1551   :  { %v14281_v16 = vpop.eup %14280 }
0x1552   :  { %v4472_v27 = vmul.f32 %v14281_v16, %v4471_v28 }
0x1554   :  { %v4474_v35 = vadd.f32 %v4473_v52, %v4472_v27 }
0x1556   :  { %4475 = vst.msk [vmem:[#allocation2 + $0x6] sm:$0x3] %vm331_vm2, %v4474_v35  ;;  %10919 = vmatmul.mubr.msk.f32.vlgmr.msra.gmra.mrb[48].mxu0 %vm154_vm1, %v4474_v35  ;;  %11966 = vmatmul.mubr.msk.f32.vlgmr.msra.gmra.mrb[44].mxu1 %vm154_vm1, %v4474_v35 }
0x1557   :  { %13247 = vmatpush1.bf16.msra.mxu0 %v15263_v32  ;;  %13262 = vmatpush3.bf16.msra.mxu1 %v15313_v37 }
0x1558   :  { %13249 = vmatprep.subr.bf16.mxu0 %v15266_v56  ;;  %13263 = vmatprep.subr.bf16.mxu1 %v14605_v2 }
0x1559   :  { %4722 = vmatprep.mubr.f32.mxu0 %v14604_v1  ;;  %11984 = vmatprep.mubr.msk.f32.mxu1 %vm14606_vm0, %v14604_v1 }
0x155b   :  { %13251 = vmatpush1.bf16.msra.mxu0 %v15269_v6  ;;  %13265 = vmatpush3.bf16.msra.mxu1 %v15319_v62 }
0x155c   :  { %13253 = vmatprep.subr.bf16.mxu0 %v15273_v44  ;;  %13266 = vmatprep.subr.bf16.mxu1 %v14605_v2 }
0x155f   :  { %13255 = vmatpush1.bf16.msra.mxu0 %v15276_v53  ;;  %13268 = vmatpush3.bf16.msra.mxu1 %v15326_v60 }
0x1560   :  { %13257 = vmatprep.subr.bf16.mxu0 %v15278_v57  ;;  %13269 = vmatprep.subr.bf16.mxu1 %v14605_v2 }
0x1563   :  { %13259 = vmatpush1.bf16.msra.mxu0 %v15282_v63  ;;  %13271 = vmatpush3.bf16.msra.mxu1 %v15333_v3 }
0x1564   :  { %13273 = vmatprep.subr.bf16.mxu0 %v15261_v50  ;;  %13288 = vmatprep.subr.bf16.mxu1 %v14605_v2 }
0x1629   :  { %v4546_v54 = vpop.f32.mrb[48].mxu0  ;;  %v4617_v33 = vpop.f32.mrb[44].mxu1 }
0x162a   :  { %v4548_v55 = vpop.f32.mrb[49].mxu0  ;;  %v11967_v58 = vpop.f32.mrb[45].mxu1  ;;  %v4639_v20 = vadd.f32 %v15377_v40, %v4617_v33 }
0x162b   :  { %v4623_v47 = vcombine.low %v4546_v54, %v4548_v55 }
0x162d   :  { %v4630_v36 = vrot.slane %v4623_v47, %v14812_v45 }
0x162f   :  { %v4632_v11 = vadd.f32 %v4630_v36, %v4476_v31  ;;  %v5191_v31 = vld [vmem:[#allocation2 + $0x6] sm:$0x3] }
0x1631   :  { %v10921_v24 = vmul.f32 -1.442695, %v4632_v11 }
0x1633   :  { %14282 = vpow2.f32 %v10921_v24  ;;  %v5189_v24 = vld [vmem:[#allocation2 + $0x2] sm:$0x3] }
0x163d   :  { %v14283_v34 = vpop.eup %14282 }
0x163e   :  { %v4636_v14 = vadd.f32 1.0, %v14283_v34  ;;  %v5190_v34 = vld [vmem:[#allocation2 + $0x4] sm:$0x3] }
0x1640   :  { %14284 = vrcp.f32 %v4636_v14  ;;  %v5248_v14 = vcombine.low %v5190_v34, %v5191_v31  ;;  %v5539_v31 = vld [vmem:[#allocation10 + $0x288] sm:$0xff] }
0x1641   :  { %v5543_v34 = vld [vmem:[#allocation10 + $0x2a8] sm:$0xff] }
0x164a   :  { %v14285_v39 = vpop.eup %14284 }
0x164b   :  { %v4640_v13 = vmul.f32 %v14285_v39, %v4639_v20  ;;  %v4647_v61 = vrot.slane %v14285_v39, 2  ;;  %v5188_v20 = vld [vmem:[#allocation2] sm:$0x3] }
0x164c   :  { %v5247_v39 = vcombine.low %v5188_v20, %v5189_v24  ;;  %v5542_v20 = vld [vmem:[#allocation10 + $0x2a0] sm:$0xff] }
0x164d   :  { %v4644_v51 = vadd.f32 %v4642_v49, %v4640_v13  ;;  %v4649_v0 = vsub.f32 1.0, %v4647_v61  ;;  %v4651_v17 = vmul.f32 %v4647_v61, %v4474_v35  ;;  %v5197_v49 = vld [vmem:[#allocation7 + $0x180] sm:$0xff] }
0x164f   :  { %14286 = vtanh.f32 %v4644_v51  ;;  %v5200_v51 = vld [vmem:[#allocation7 + $0x198] sm:$0xff] }
0x1659   :  { %v14287_v4 = vpop.eup %14286 }
0x165a   :  { %v4650_v15 = vmul.f32 %v14287_v4, %v4649_v0  ;;  %v5262_v0 = vrot.slane %v5248_v14, %v14812_v45  ;;  %v5204_v4 = vld [vmem:[#allocation7 + $0x1b8] sm:$0xff]  ;;  %v5546_v14 = vld [vmem:[#allocation10 + $0x2c0] sm:$0xff] }
0x165c   :  { %v4652_v21 = vadd.f32 %v4651_v17, %v4650_v15  ;;  %v5207_v15 = vld [vmem:[#allocation7 + $0x1d0] sm:$0xff] }
0x165e   :  { %4653 = vst.msk [vmem:[#allocation2 + $0x8] sm:$0x3] %vm331_vm2, %v4652_v21  ;;  %10922 = vmatmul.mubr.msk.f32.vlgmr.msra.gmra.mrb[50].mxu0 %vm154_vm1, %v4652_v21  ;;  %11985 = vmatmul.mubr.msk.f32.vlgmr.msra.gmra.mrb[46].mxu1 %vm154_vm1, %v4652_v21 }
0x165f   :  { %13275 = vmatpush1.bf16.msra.mxu0 %v15263_v32  ;;  %13290 = vmatpush3.bf16.msra.mxu1 %v15313_v37 }
0x1660   :  { %13277 = vmatprep.subr.bf16.mxu0 %v15266_v56  ;;  %13291 = vmatprep.subr.bf16.mxu1 %v14605_v2 }
0x1661   :  { %4900 = vmatprep.mubr.f32.mxu0 %v14604_v1  ;;  %12003 = vmatprep.mubr.msk.f32.mxu1 %vm14606_vm0, %v14604_v1 }
0x1663   :  { %13279 = vmatpush1.bf16.msra.mxu0 %v15269_v6  ;;  %13293 = vmatpush3.bf16.msra.mxu1 %v15319_v62 }
0x1664   :  { %13281 = vmatprep.subr.bf16.mxu0 %v15273_v44  ;;  %13294 = vmatprep.subr.bf16.mxu1 %v14605_v2 }
0x1667   :  { %13283 = vmatpush1.bf16.msra.mxu0 %v15276_v53  ;;  %13296 = vmatpush3.bf16.msra.mxu1 %v15326_v60 }
0x1668   :  { %13285 = vmatprep.subr.bf16.mxu0 %v15278_v57  ;;  %13297 = vmatprep.subr.bf16.mxu1 %v14605_v2 }
0x166b   :  { %13287 = vmatpush1.bf16.msra.mxu0 %v15282_v63  ;;  %13299 = vmatpush3.bf16.msra.mxu1 %v15333_v3 }
0x166c   :  { %13301 = vmatprep.subr.bf16.mxu0 %v15261_v50  ;;  %13316 = vmatprep.subr.bf16.mxu1 %v14605_v2 }
0x1731   :  { %v4724_v43 = vpop.f32.mrb[50].mxu0  ;;  %v4795_v22 = vpop.f32.mrb[46].mxu1 }
0x1732   :  { %v4726_v23 = vpop.f32.mrb[51].mxu0  ;;  %v11986_v9 = vpop.f32.mrb[47].mxu1  ;;  %v4817_v38 = vadd.f32 %v15377_v40, %v4795_v22  ;;  %v5255_v22 = vrot.slane %v5247_v39, %v14812_v45  ;;  %v15548_v39 = vpack.c.bf16 %v5546_v14, %v5543_v34 }
0x1733   :  { %v4801_v10 = vcombine.low %v4724_v43, %v4726_v23  ;;  %v13330_v43 = vpack.c.bf16 %v5200_v51, %v5197_v49  ;;  %v13332_v9 = vpack.c.bf16 %v5207_v15, %v5204_v4  ;;  %v5549_v49 = vld [vmem:[#allocation10 + $0x2d8] sm:$0xff]  ;;  %v5552_v51 = vld [vmem:[#allocation10 + $0x2f0] sm:$0xff]  ;;  %v5551_v15 = vld [vmem:[#allocation10 + $0x2e8] sm:$0xff] }
0x1734   :  { %v5548_v4 = vld [vmem:[#allocation10 + $0x2d0] sm:$0xff] }
0x1735   :  { %v4808_v12 = vrot.slane %v4801_v10, %v14812_v45  ;;  %v5203_v10 = vld [vmem:[#allocation7 + $0x1b0] sm:$0xff] }
0x1737   :  { %v4810_v18 = vadd.f32 %v4808_v12, %v4654_v19  ;;  %v5206_v12 = vld [vmem:[#allocation7 + $0x1c8] sm:$0xff]  ;;  %v5263_v19 = vcombine.low %v5255_v22, %v5262_v0  ;;  %v15553_v0 = vpack.c.bf16 %v5552_v51, %v5549_v49  ;;  %v5544_v49 = vld [vmem:[#allocation10 + $0x2b0] sm:$0xff]  ;;  %v5547_v51 = vld [vmem:[#allocation10 + $0x2c8] sm:$0xff] }
0x1739   :  { %v10924_v29 = vmul.f32 -1.442695, %v4810_v18  ;;  %v5210_v18 = vld [vmem:[#allocation7 + $0x1e8] sm:$0xff] }
0x173b   :  { %14288 = vpow2.f32 %v10924_v29  ;;  %v5213_v29 = vld [vmem:[#allocation7 + $0x200] sm:$0xff] }
0x1745   :  { %v14289_v30 = vpop.eup %14288 }
0x1746   :  { %v4814_v25 = vadd.f32 1.0, %v14289_v30  ;;  %v13334_v30 = vpack.c.bf16 %v5206_v12, %v5203_v10 }
0x1748   :  { %14290 = vrcp.f32 %v4814_v25  ;;  %v13336_v25 = vpack.c.bf16 %v5213_v29, %v5210_v18 }
0x1752   :  { %v14291_v7 = vpop.eup %14290 }
0x1753   :  { %v4818_v50 = vmul.f32 %v14291_v7, %v4817_v38  ;;  %v4825_v26 = vrot.slane %v14291_v7, 2  ;;  %v5209_v38 = vld [vmem:[#allocation7 + $0x1e0] sm:$0xff]  ;;  %v5212_v7 = vld [vmem:[#allocation7 + $0x1f8] sm:$0xff] }
0x1755   :  { %v4822_v42 = vadd.f32 %v4820_v41, %v4818_v50  ;;  %v4827_v46 = vsub.f32 1.0, %v4825_v26  ;;  %v4829_v16 = vmul.f32 %v4825_v26, %v4652_v21  ;;  %v5216_v50 = vld [vmem:[#allocation7 + $0x218] sm:$0xff]  ;;  %v5219_v41 = vld [vmem:[#allocation7 + $0x230] sm:$0xff] }
0x1756   :  { %v13340_v26 = vpack.c.bf16 %v5219_v41, %v5216_v50 }
0x1757   :  { %14292 = vtanh.f32 %v4822_v42  ;;  %v13338_v42 = vpack.c.bf16 %v5212_v7, %v5209_v38 }
0x1761   :  { %v14293_v48 = vpop.eup %14292 }
0x1762   :  { %v4828_v28 = vmul.f32 %v14293_v48, %v4827_v46  ;;  %v5215_v46 = vld [vmem:[#allocation7 + $0x210] sm:$0xff]  ;;  %v5218_v48 = vld [vmem:[#allocation7 + $0x228] sm:$0xff] }
0x1764   :  { %v4830_v27 = vadd.f32 %v4829_v16, %v4828_v28  ;;  %v13342_v28 = vpack.c.bf16 %v5218_v48, %v5215_v46  ;;  %v5199_v16 = vld [vmem:[#allocation7 + $0x190] sm:$0xff] }
0x1766   :  { %4831 = vst.msk [vmem:[#allocation2 + $0xa] sm:$0x3] %vm331_vm2, %v4830_v27  ;;  %10925 = vmatmul.mubr.msk.f32.vlgmr.msra.gmra.mrb[52].mxu0 %vm154_vm1, %v4830_v27  ;;  %12004 = vmatmul.mubr.msk.f32.vlgmr.msra.gmra.mrb[48].mxu1 %vm154_vm1, %v4830_v27 }
0x1767   :  { %13303 = vmatpush1.bf16.msra.mxu0 %v15263_v32  ;;  %13318 = vmatpush3.bf16.msra.mxu1 %v15313_v37  ;;  %v5198_v32 = vld [vmem:[#allocation7 + $0x188] sm:$0xff] }
0x1768   :  { %13305 = vmatprep.subr.bf16.mxu0 %v15266_v56  ;;  %13319 = vmatprep.subr.bf16.mxu1 %v14605_v2  ;;  %v5201_v56 = vld [vmem:[#allocation7 + $0x1a0] sm:$0xff] }
0x1769   :  { %5078 = vmatprep.mubr.f32.mxu0 %v14604_v1  ;;  %12022 = vmatprep.mubr.msk.f32.mxu1 %vm14606_vm0, %v14604_v1 }
0x176b   :  { %13307 = vmatpush1.bf16.msra.mxu0 %v15269_v6  ;;  %13321 = vmatpush3.bf16.msra.mxu1 %v15319_v62  ;;  %v13328_v6 = vpack.c.bf16 %v5201_v56, %v5198_v32  ;;  %v5205_v56 = vld [vmem:[#allocation7 + $0x1c0] sm:$0xff] }
0x176c   :  { %13309 = vmatprep.subr.bf16.mxu0 %v15273_v44  ;;  %13322 = vmatprep.subr.bf16.mxu1 %v14605_v2 }
0x176f   :  { %13311 = vmatpush1.bf16.msra.mxu0 %v15276_v53  ;;  %13324 = vmatpush3.bf16.msra.mxu1 %v15326_v60  ;;  %v4832_v60 = vld [vmem:[#allocation3 + $0x24] sm:$0x3f] }
0x1770   :  { %13313 = vmatprep.subr.bf16.mxu0 %v15278_v57  ;;  %13325 = vmatprep.subr.bf16.mxu1 %v14605_v2  ;;  %v4998_v47 = vrot.slane %v4832_v60, 4 }
0x1773   :  { %13315 = vmatpush1.bf16.msra.mxu0 %v15282_v63  ;;  %13327 = vmatpush3.bf16.msra.mxu1 %v15333_v3 }
0x1774   :  { %13329 = vmatprep.subr.bf16.mxu0 %v13328_v6  ;;  %v5208_v6 = vld [vmem:[#allocation7 + $0x1d8] sm:$0xff] }
0x1839   :  { %v4902_v37 = vpop.f32.mrb[52].mxu0  ;;  %v4973_v44 = vpop.f32.mrb[48].mxu1 }
0x183a   :  { %v4904_v62 = vpop.f32.mrb[53].mxu0  ;;  %v12005_v52 = vpop.f32.mrb[49].mxu1  ;;  %v4995_v63 = vadd.f32 %v15377_v40, %v4973_v44  ;;  %v13348_v44 = vpack.c.bf16 %v5208_v6, %v5205_v56 }
0x183b   :  { %v4979_v35 = vcombine.low %v4902_v37, %v4904_v62  ;;  %v5211_v37 = vld [vmem:[#allocation7 + $0x1f0] sm:$0xff]  ;;  %v5214_v62 = vld [vmem:[#allocation7 + $0x208] sm:$0xff]  ;;  %v5531_v52 = vld [vmem:[#allocation10 + $0x248] sm:$0xff] }
0x183d   :  { %v4986_v53 = vrot.slane %v4979_v35, %v14812_v45  ;;  %v5534_v35 = vld [vmem:[#allocation10 + $0x260] sm:$0xff] }
0x183f   :  { %v4988_v54 = vadd.f32 %v4986_v53, %v4832_v60  ;;  %v15536_v53 = vpack.c.bf16 %v5534_v35, %v5531_v52  ;;  %v5530_v60 = vld [vmem:[#allocation10 + $0x240] sm:$0xff] }
0x1841   :  { %v10927_v57 = vmul.f32 -1.442695, %v4988_v54  ;;  %v5533_v54 = vld [vmem:[#allocation10 + $0x258] sm:$0xff] }
0x1843   :  { %14294 = vpow2.f32 %v10927_v57  ;;  %v13352_v57 = vpack.c.bf16 %v5214_v62, %v5211_v37 }
0x184d   :  { %v14295_v33 = vpop.eup %14294 }
0x184e   :  { %v4992_v55 = vadd.f32 1.0, %v14295_v33  ;;  %v15538_v33 = vpack.c.bf16 %v5533_v54, %v5530_v60  ;;  %v5193_v54 = vld [vmem:[#allocation2 + $0xa] sm:$0x3] }
0x1850   :  { %14296 = vrcp.f32 %v4992_v55  ;;  %v5217_v55 = vld [vmem:[#allocation7 + $0x220] sm:$0xff] }
0x185a   :  { %v14297_v3 = vpop.eup %14296 }
0x185b   :  { %v4996_v58 = vmul.f32 %v14297_v3, %v4995_v63  ;;  %v5003_v11 = vrot.slane %v14297_v3, 2  ;;  %v5537_v63 = vld [vmem:[#allocation10 + $0x278] sm:$0xff]  ;;  %v5540_v3 = vld [vmem:[#allocation10 + $0x290] sm:$0xff] }
0x185d   :  { %v5000_v36 = vadd.f32 %v4998_v47, %v4996_v58  ;;  %v5005_v13 = vsub.f32 1.0, %v5003_v11  ;;  %v5007_v21 = vmul.f32 %v5003_v11, %v4830_v27  ;;  %v5202_v27 = vld [vmem:[#allocation7 + $0x1a8] sm:$0xff]  ;;  %v5220_v58 = vld [vmem:[#allocation7 + $0x238] sm:$0xff]  ;;  %v15541_v47 = vpack.c.bf16 %v5540_v3, %v5537_v63 }
0x185e   :  { %v13344_v32 = vpack.c.bf16 %v5202_v27, %v5199_v16  ;;  %v13356_v24 = vpack.c.bf16 %v5220_v58, %v5217_v55  ;;  %v5532_v58 = vld [vmem:[#allocation10 + $0x250] sm:$0xff] }
0x185f   :  { %14298 = vtanh.f32 %v5000_v36  ;;  %v5536_v36 = vld [vmem:[#allocation10 + $0x270] sm:$0xff] }
0x1860   :  { %13345 = vmatprep.subr.bf16.mxu1 %v13344_v32  ;;  %v15544_v11 = vpack.c.bf16 %v5539_v31, %v5536_v36  ;;  %v5535_v36 = vld [vmem:[#allocation10 + $0x268] sm:$0xff] }
0x1861   :  { %v15588_v34 = vpack.c.bf16 %v5535_v36, %v5532_v58 }
0x1869   :  { %v14299_v61 = vpop.eup %14298 }
0x186a   :  { %v5006_v17 = vmul.f32 %v14299_v61, %v5005_v13  ;;  %v5545_v13 = vld [vmem:[#allocation10 + $0x2b8] sm:$0xff] }
0x186b   :  { %v15551_v61 = vpack.c.bf16 %v5545_v13, %v5542_v20  ;;  %v5538_v20 = vld [vmem:[#allocation10 + $0x280] sm:$0xff] }
0x186c   :  { %v15524_v23 = vadd.f32 %v5007_v21, %v5006_v17  ;;  %v15557_v17 = vpack.c.bf16 %v5551_v15, %v5548_v4  ;;  %v15601_v4 = vpack.c.bf16 %v5547_v51, %v5544_v49  ;;  %v5550_v15 = vld [vmem:[#allocation10 + $0x2e0] sm:$0xff] }
0x186e   :  { %5009 = vst.msk [vmem:[#allocation2 + $0xc] sm:$0x3] %vm331_vm2, %v15524_v23  ;;  %10928 = vmatmul.mubr.msk.f32.vlgmr.msra.gmra.mrb[54].mxu0 %vm154_vm1, %v15524_v23  ;;  %12023 = vmatmul.mubr.msk.f32.vlgmr.msra.gmra.mrb[50].mxu1 %vm154_vm1, %v15524_v23 }
0x186f   :  { %13331 = vmatpush1.bf16.msra.mxu0 %v13330_v43  ;;  %12041 = vmatprep.mubr.msk.f32.mxu1 %vm154_vm1, %v5263_v19 }
0x1870   :  { %13333 = vmatprep.subr.bf16.mxu0 %v13332_v9  ;;  %5349 = vmatprep.mubr.f32.mxu0 %v14604_v1 }
0x1871   :  { %13347 = vmatpush3.bf16.msra.mxu1 %v13344_v32 }
0x1872   :  { %13349 = vmatprep.subr.bf16.mxu1 %v13348_v44 }
0x1873   :  { %13335 = vmatpush1.bf16.msra.mxu0 %v13334_v30  ;;  %v15563_v30 = vld [vmem:[#allocation9 + $0x6] sm:$0x7] }
0x1874   :  { %13337 = vmatprep.subr.bf16.mxu0 %v13336_v25  ;;  %v15567_v25 = vrot.slane %v15563_v30, %v15005_v5  ;;  %v15571_v38 = vrot.slane %v15563_v30, %v15010_v8 }
0x1875   :  { %13351 = vmatpush3.bf16.msra.mxu1 %v13348_v44  ;;  %v5194_v63 = vld [vmem:[#allocation2 + $0xc] sm:$0x3] }
0x1876   :  { %13353 = vmatprep.subr.bf16.mxu1 %v13352_v57 }
0x1877   :  { %13339 = vmatpush1.bf16.msra.mxu0 %v13338_v42 }
0x1878   :  { %13341 = vmatprep.subr.bf16.mxu0 %v13340_v26 }
0x1879   :  { %13355 = vmatpush3.bf16.msra.mxu1 %v13352_v57  ;;  %v5192_v57 = vld [vmem:[#allocation2 + $0x8] sm:$0x3] }
0x187a   :  { %13357 = vmatprep.subr.bf16.mxu1 %v13356_v24  ;;  %v5264_v55 = vcombine.low %v5192_v57, %v5193_v54 }
0x187b   :  { %13343 = vmatpush1.bf16.msra.mxu0 %v13342_v28 }
0x187c   :  { %13361 = vmatprep.subr.bf16.mxu0 %v15536_v53  ;;  %v5272_v31 = vrot.slane %v5264_v55, %v14812_v45 }
0x187d   :  { %13359 = vmatpush3.bf16.msra.mxu1 %v13356_v24 }
0x187e   :  { %10931 = vmatmul.mubr.msk.f32.vlgmr.msra.gmra.mrb[56].mxu0 %vm154_vm1, %v5263_v19  ;;  %13376 = vmatprep.subr.bf16.mxu1 %v14605_v2  ;;  %v5010_v19 = vld [vmem:[#allocation3 + $0x2a] sm:$0x3f] }
0x187f   :  { %5355 = vmatprep.mubr.f32.mxu0 %v14604_v1  ;;  %13363 = vmatpush1.bf16.msra.mxu0 %v15538_v33  ;;  %v5176_v56 = vrot.slane %v5010_v19, 4 }
0x1880   :  { %13365 = vmatprep.subr.bf16.mxu0 %v15541_v47 }
0x1883   :  { %13367 = vmatpush1.bf16.msra.mxu0 %v15544_v11 }
0x1884   :  { %13369 = vmatprep.subr.bf16.mxu0 %v15548_v39 }
0x1887   :  { %13371 = vmatpush1.bf16.msra.mxu0 %v15551_v61 }
0x1888   :  { %13373 = vmatprep.subr.bf16.mxu0 %v15553_v0 }
0x188b   :  { %13375 = vmatpush1.bf16.msra.mxu0 %v15557_v17 }
0x188c   :  { %13389 = vmatprep.subr.bf16.mxu0 %v15536_v53 }
0x1941   :  { %v5080_v21 = vpop.f32.mrb[54].mxu0  ;;  %v5151_v43 = vpop.f32.mrb[50].mxu1 }
0x1942   :  { %v5082_v22 = vpop.f32.mrb[55].mxu0  ;;  %v12024_v9 = vpop.f32.mrb[51].mxu1  ;;  %v5173_v16 = vadd.f32 %v15377_v40, %v5151_v43 }
0x1943   :  { %v5157_v10 = vcombine.low %v5080_v21, %v5082_v22  ;;  %v5553_v21 = vld [vmem:[#allocation10 + $0x2f8] sm:$0xff]  ;;  %v5235_v22 = vrot.slane %v15563_v30, %v15078_v59 }
0x1944   :  { %v15608_v43 = vpack.c.bf16 %v5553_v21, %v5550_v15 }
0x1945   :  { %v5164_v12 = vrot.slane %v5157_v10, %v14812_v45 }
0x1947   :  { %v5166_v18 = vadd.f32 %v5164_v12, %v5010_v19 }
0x1949   :  { %v10930_v29 = vmul.f32 -1.442695, %v5166_v18 }
0x194b   :  { %14300 = vpow2.f32 %v10930_v29 }
0x1951   :  { %v5351_v7 = vpop.f32.mrb[56].mxu0 }
0x1952   :  { %v15574_v50 = vadd.f32 %v5351_v7, %v15567_v25  ;;  %v5353_v41 = vpop.f32.mrb[57].mxu0 }
0x1953   :  { %v15577_v42 = vadd.f32 %v5353_v41, %v15571_v38 }
0x1955   :  { %v14301_v26 = vpop.eup %14300  ;;  %v5443_v46 = vcombine.low %v15574_v50, %v15577_v42  ;;  %v5444_v48 = vcombine.high %v15574_v50, %v15577_v42 }
0x1956   :  { %v5170_v28 = vadd.f32 1.0, %v14301_v26 }
0x1957   :  { %v5452_v26 = vrot.slane %v5443_v46, %v14812_v45  ;;  %v5459_v46 = vrot.slane %v5444_v48, %v14812_v45 }
0x1958   :  { %14302 = vrcp.f32 %v5170_v28 }
0x1962   :  { %v14303_v27 = vpop.eup %14302 }
0x1963   :  { %v5174_v32 = vmul.f32 %v14303_v27, %v5173_v16  ;;  %v5181_v37 = vrot.slane %v14303_v27, 2 }
0x1965   :  { %v5178_v6 = vadd.f32 %v5176_v56, %v5174_v32  ;;  %v5183_v44 = vsub.f32 1.0, %v5181_v37  ;;  %v5185_v35 = vmul.f32 %v5181_v37, %v15524_v23  ;;  %v5541_v23 = vld [vmem:[#allocation10 + $0x298] sm:$0xff] }
0x1966   :  { %v15594_v13 = vpack.c.bf16 %v5541_v23, %v5538_v20  ;;  %v15652_v20 = vld [vmem:[%s16384_s4 + $0x3] ss:$0 sm:$0xff] }
0x1967   :  { %14304 = vtanh.f32 %v5178_v6 }
0x1971   :  { %v14305_v62 = vpop.eup %14304 }
0x1972   :  { %v5184_v52 = vmul.f32 %v14305_v62, %v5183_v44 }
0x1974   :  { %v5186_v60 = vadd.f32 %v5185_v35, %v5184_v52 }
0x1976   :  { %5187 = vst.msk [vmem:[#allocation2 + $0xe] sm:$0x3] %vm331_vm2, %v5186_v60 }
0x197d   :  { %v5195_v3 = vld [vmem:[#allocation2 + $0xe] sm:$0x3] }
0x197e   :  { %v5265_v40 = vcombine.low %v5194_v63, %v5195_v3 }
0x1980   :  { %v5279_v24 = vrot.slane %v5265_v40, %v14812_v45 }
0x1982   :  { %v5280_v14 = vcombine.low %v5272_v31, %v5279_v24 }
0x1984   :  { %10932 = vmatmul.mubr.msk.f32.gmra.mrb[58].mxu0 %vm154_vm1, %v5280_v14  ;;  %12042 = vmatmul.mubr.msk.f32.vlgmr.msra.gmra.mrb[52].mxu1 %vm154_vm1, %v5280_v14 }
0x1985   :  { %5627 = vmatprep.mubr.f32.mxu0 %v14604_v1  ;;  %13378 = vmatpush3.bf16.msra.mxu1 %v15588_v34 }
0x1986   :  { %13379 = vmatprep.subr.bf16.mxu1 %v14605_v2  ;;  %12060 = vmatprep.mubr.msk.f32.mxu1 %vm14606_vm0, %v14604_v1 }
0x1988   :  { %5628 = vmatmul.mubr.f32.vlgmr.msra.gmra.mrb[60].mxu0 %v14604_v1 }
0x1989   :  { %13381 = vmatpush3.bf16.msra.mxu1 %v15594_v13  ;;  %13391 = vmatpush1.bf16.msra.mxu0 %v15538_v33 }
0x198a   :  { %13382 = vmatprep.subr.bf16.mxu1 %v14605_v2  ;;  %13393 = vmatprep.subr.bf16.mxu0 %v15541_v47 }
0x198b   :  { %5805 = vmatprep.mubr.f32.mxu0 %v14604_v1 }
0x198d   :  { %13384 = vmatpush3.bf16.msra.mxu1 %v15601_v4  ;;  %13395 = vmatpush1.bf16.msra.mxu0 %v15544_v11 }
0x198e   :  { %13385 = vmatprep.subr.bf16.mxu1 %v14605_v2  ;;  %13397 = vmatprep.subr.bf16.mxu0 %v15548_v39 }
0x1991   :  { %13387 = vmatpush3.bf16.msra.mxu1 %v15608_v43  ;;  %13399 = vmatpush1.bf16.msra.mxu0 %v15551_v61 }
0x1992   :  { %13404 = vmatprep.subr.bf16.mxu1 %v14605_v2  ;;  %13401 = vmatprep.subr.bf16.mxu0 %v15553_v0 }
0x1994   :  { %12061 = vmatmul.mubr.f32.vlgmr.msra.gmra.mrb[54].mxu1 %v14604_v1 }
0x1995   :  { %13406 = vmatpush3.bf16.msra.mxu1 %v15588_v34  ;;  %13403 = vmatpush1.bf16.msra.mxu0 %v15557_v17 }
0x1996   :  { %13407 = vmatprep.subr.bf16.mxu1 %v14605_v2  ;;  %12079 = vmatprep.mubr.msk.f32.mxu1 %vm14606_vm0, %v14604_v1 }
0x1997   :  { %13417 = vmatprep.subr.bf16.mxu0 %v15536_v53 }
0x1999   :  { %13409 = vmatpush3.bf16.msra.mxu1 %v15594_v13 }
0x199a   :  { %13410 = vmatprep.subr.bf16.mxu1 %v14605_v2 }
0x199d   :  { %13412 = vmatpush3.bf16.msra.mxu1 %v15601_v4 }
0x199e   :  { %13413 = vmatprep.subr.bf16.mxu1 %v14605_v2 }
0x19a1   :  { %13415 = vmatpush3.bf16.msra.mxu1 %v15608_v43 }
0x19a2   :  { %13432 = vmatprep.subr.bf16.mxu1 %v14605_v2 }
0x1a57   :  { %v5357_v9 = vpop.f32.mrb[58].mxu0  ;;  %v12043_v10 = vpop.f32.mrb[52].mxu1 }
0x1a58   :  { %v5358_v12 = vadd.f32 %v5357_v9, %v15567_v25  ;;  %v5434_v19 = vadd.f32 %v12043_v10, %v5235_v22  ;;  %v5359_v18 = vpop.f32.mrb[59].mxu0  ;;  %v5428_v29 = vpop.f32.mrb[53].mxu1 }
0x1a59   :  { %v5360_v7 = vadd.f32 %v5359_v18, %v15571_v38  ;;  %v5429_v41 = vadd.f32 %v5428_v29, %v5235_v22 }
0x1a5a   :  { %v5480_v28 = vcombine.high %v5434_v19, %v5434_v19  ;;  %v5501_v25 = vrot.slane %v5434_v19, %v14812_v45 }
0x1a5b   :  { %v5478_v16 = vcombine.low %v5358_v12, %v5360_v7  ;;  %v5479_v27 = vcombine.high %v5358_v12, %v5360_v7  ;;  %v5445_v32 = vcombine.high %v5429_v41, %v5429_v41  ;;  %v5466_v30 = vrot.slane %v5429_v41, %v14812_v45  ;;  %v5629_v56 = vpop.f32.mrb[60].mxu0 }
0x1a5c   :  { %v5508_v6 = vrot.slane %v5480_v28, %v14812_v45  ;;  %v5631_v37 = vpop.f32.mrb[61].mxu0 }
0x1a5d   :  { %v5487_v38 = vrot.slane %v5478_v16, %v14812_v45  ;;  %v5494_v44 = vrot.slane %v5479_v27, %v14812_v45  ;;  %v5473_v62 = vrot.slane %v5445_v32, %v14812_v45  ;;  %v5474_v52 = vcombine.low %v5452_v26, %v5466_v30 }
0x1a5e   :  { %v5475_v35 = vcombine.high %v5452_v26, %v5466_v30  ;;  %v5706_v60 = vcombine.low %v5629_v56, %v5631_v37 }
0x1a5f   :  { %v5509_v54 = vcombine.low %v5487_v38, %v5501_v25  ;;  %v5510_v57 = vcombine.high %v5487_v38, %v5501_v25  ;;  %v5511_v55 = vcombine.low %v5494_v44, %v5508_v6  ;;  %v5512_v63 = vcombine.high %v5494_v44, %v5508_v6  ;;  %5521 = vst [vmem:[#allocation3] sm:$0x3f] %v5474_v52 }
0x1a60   :  { %v5476_v3 = vcombine.low %v5459_v46, %v5473_v62  ;;  %v5477_v40 = vcombine.high %v5459_v46, %v5473_v62  ;;  %5522 = vst [vmem:[#allocation3 + $0x6] sm:$0x3f] %v5475_v35  ;;  %v5713_v58 = vrot.slane %v5706_v60, %v14812_v45 }
0x1a61   :  { %5525 = vst [vmem:[#allocation3 + $0x18] sm:$0x3f] %v5509_v54  ;;  %5526 = vst [vmem:[#allocation3 + $0x1e] sm:$0x3f] %v5510_v57 }
0x1a62   :  { %5527 = vst [vmem:[#allocation3 + $0x24] sm:$0x3f] %v5511_v55  ;;  %5528 = vst [vmem:[#allocation3 + $0x2a] sm:$0x3f] %v5512_v63 }
0x1a63   :  { %5523 = vst [vmem:[#allocation3 + $0xc] sm:$0x3f] %v5476_v3  ;;  %5524 = vst [vmem:[#allocation3 + $0x12] sm:$0x3f] %v5477_v40 }
0x1a66   :  { %v5562_v50 = vld [vmem:[#allocation3] sm:$0x3f] }
0x1a67   :  { %v5715_v42 = vadd.f32 %v5713_v58, %v5562_v50  ;;  %v5700_v48 = vpop.f32.mrb[54].mxu1  ;;  %v5725_v15 = vrot.slane %v5562_v50, 4  ;;  %v5737_v27 = vld [vmem:[#allocation3 + $0x6] sm:$0x3f] }
0x1a68   :  { %v12062_v36 = vpop.f32.mrb[55].mxu1  ;;  %v5722_v23 = vadd.f32 %v15652_v20, %v5700_v48  ;;  %v5903_v44 = vrot.slane %v5737_v27, 4 }
0x1a69   :  { %v10937_v31 = vmul.f32 -1.442695, %v5715_v42 }
0x1a6a   :  { %v5915_v42 = vld [vmem:[#allocation3 + $0xc] sm:$0x3f] }
0x1a6b   :  { %14306 = vpow2.f32 %v10937_v31 }
0x1a75   :  { %v14307_v24 = vpop.eup %14306 }
0x1a76   :  { %v5719_v14 = vadd.f32 1.0, %v14307_v24 }
0x1a78   :  { %14308 = vrcp.f32 %v5719_v14 }
0x1a82   :  { %v14309_v49 = vpop.eup %14308 }
0x1a83   :  { %v5723_v51 = vmul.f32 %v14309_v49, %v5722_v23  ;;  %v5730_v22 = vrot.slane %v14309_v49, 2 }
0x1a85   :  { %v5727_v21 = vadd.f32 %v5725_v15, %v5723_v51  ;;  %v5732_v9 = vsub.f32 1.0, %v5730_v22  ;;  %v5734_v19 = vmul.f32 0.0, %v5730_v22  ;;  %v6081_v51 = vrot.slane %v5915_v42, 4 }
0x1a87   :  { %14310 = vtanh.f32 %v5727_v21 }
0x1a91   :  { %v14311_v10 = vpop.eup %14310 }
0x1a92   :  { %v5733_v12 = vmul.f32 %v14311_v10, %v5732_v9 }
0x1a94   :  { %v5735_v18 = vadd.f32 %v5734_v19, %v5733_v12 }
0x1a96   :  { %5736 = vst.msk [vmem:[#allocation2] sm:$0x3] %vm331_vm2, %v5735_v18  ;;  %10938 = vmatmul.mubr.msk.f32.vlgmr.msra.gmra.mrb[62].mxu0 %vm154_vm1, %v5735_v18  ;;  %12080 = vmatmul.mubr.msk.f32.vlgmr.msra.gmra.mrb[56].mxu1 %vm154_vm1, %v5735_v18 }
0x1a97   :  { %13419 = vmatpush1.bf16.msra.mxu0 %v15538_v33  ;;  %13434 = vmatpush3.bf16.msra.mxu1 %v15588_v34 }
0x1a98   :  { %13421 = vmatprep.subr.bf16.mxu0 %v15541_v47  ;;  %13435 = vmatprep.subr.bf16.mxu1 %v14605_v2 }
0x1a99   :  { %5983 = vmatprep.mubr.f32.mxu0 %v14604_v1  ;;  %12098 = vmatprep.mubr.msk.f32.mxu1 %vm14606_vm0, %v14604_v1 }
0x1a9b   :  { %13423 = vmatpush1.bf16.msra.mxu0 %v15544_v11  ;;  %13437 = vmatpush3.bf16.msra.mxu1 %v15594_v13 }
0x1a9c   :  { %13425 = vmatprep.subr.bf16.mxu0 %v15548_v39  ;;  %13438 = vmatprep.subr.bf16.mxu1 %v14605_v2 }
0x1a9f   :  { %13427 = vmatpush1.bf16.msra.mxu0 %v15551_v61  ;;  %13440 = vmatpush3.bf16.msra.mxu1 %v15601_v4 }
0x1aa0   :  { %13429 = vmatprep.subr.bf16.mxu0 %v15553_v0  ;;  %13441 = vmatprep.subr.bf16.mxu1 %v14605_v2 }
0x1aa3   :  { %13431 = vmatpush1.bf16.msra.mxu0 %v15557_v17  ;;  %13443 = vmatpush3.bf16.msra.mxu1 %v15608_v43 }
0x1aa4   :  { %13445 = vmatprep.subr.bf16.mxu0 %v15536_v53  ;;  %13460 = vmatprep.subr.bf16.mxu1 %v14605_v2 }
0x1b69   :  { %v5807_v29 = vpop.f32.mrb[62].mxu0  ;;  %v5878_v7 = vpop.f32.mrb[56].mxu1 }
0x1b6a   :  { %v5809_v41 = vpop.f32.mrb[63].mxu0  ;;  %v12081_v26 = vpop.f32.mrb[57].mxu1  ;;  %v5900_v6 = vadd.f32 %v15652_v20, %v5878_v7 }
0x1b6b   :  { %v5884_v28 = vcombine.low %v5807_v29, %v5809_v41 }
0x1b6d   :  { %v5891_v16 = vrot.slane %v5884_v28, %v14812_v45 }
0x1b6f   :  { %v5893_v32 = vadd.f32 %v5891_v16, %v5737_v27  ;;  %v6093_v16 = vld [vmem:[#allocation3 + $0x12] sm:$0x3f] }
0x1b71   :  { %v10940_v30 = vmul.f32 -1.442695, %v5893_v32 }
0x1b73   :  { %14312 = vpow2.f32 %v10940_v30 }
0x1b7d   :  { %v14313_v56 = vpop.eup %14312 }
0x1b7e   :  { %v5897_v25 = vadd.f32 1.0, %v14313_v56 }
0x1b80   :  { %14314 = vrcp.f32 %v5897_v25 }
0x1b8a   :  { %v14315_v37 = vpop.eup %14314 }
0x1b8b   :  { %v5901_v38 = vmul.f32 %v14315_v37, %v5900_v6  ;;  %v5908_v52 = vrot.slane %v14315_v37, 2 }
0x1b8d   :  { %v5905_v62 = vadd.f32 %v5903_v44, %v5901_v38  ;;  %v5910_v46 = vsub.f32 1.0, %v5908_v52  ;;  %v5912_v54 = vmul.f32 %v5908_v52, %v5735_v18  ;;  %v6259_v38 = vrot.slane %v6093_v16, 4 }
0x1b8f   :  { %14316 = vtanh.f32 %v5905_v62 }
0x1b99   :  { %v14317_v35 = vpop.eup %14316 }
0x1b9a   :  { %v5911_v60 = vmul.f32 %v14317_v35, %v5910_v46 }
0x1b9c   :  { %v5913_v57 = vadd.f32 %v5912_v54, %v5911_v60 }
0x1b9e   :  { %5914 = vst.msk [vmem:[#allocation2 + $0x2] sm:$0x3] %vm331_vm2, %v5913_v57  ;;  %10941 = vmatmul.mubr.msk.f32.vlgmr.msra.gmra.mrb[64].mxu0 %vm154_vm1, %v5913_v57  ;;  %12099 = vmatmul.mubr.msk.f32.vlgmr.msra.gmra.mrb[58].mxu1 %vm154_vm1, %v5913_v57 }
0x1b9f   :  { %13447 = vmatpush1.bf16.msra.mxu0 %v15538_v33  ;;  %13462 = vmatpush3.bf16.msra.mxu1 %v15588_v34 }
0x1ba0   :  { %13449 = vmatprep.subr.bf16.mxu0 %v15541_v47  ;;  %13463 = vmatprep.subr.bf16.mxu1 %v14605_v2 }
0x1ba1   :  { %6161 = vmatprep.mubr.f32.mxu0 %v14604_v1  ;;  %12117 = vmatprep.mubr.msk.f32.mxu1 %vm14606_vm0, %v14604_v1 }
0x1ba3   :  { %13451 = vmatpush1.bf16.msra.mxu0 %v15544_v11  ;;  %13465 = vmatpush3.bf16.msra.mxu1 %v15594_v13 }
0x1ba4   :  { %13453 = vmatprep.subr.bf16.mxu0 %v15548_v39  ;;  %13466 = vmatprep.subr.bf16.mxu1 %v14605_v2 }
0x1ba7   :  { %13455 = vmatpush1.bf16.msra.mxu0 %v15551_v61  ;;  %13468 = vmatpush3.bf16.msra.mxu1 %v15601_v4 }
0x1ba8   :  { %13457 = vmatprep.subr.bf16.mxu0 %v15553_v0  ;;  %13469 = vmatprep.subr.bf16.mxu1 %v14605_v2 }
0x1bab   :  { %13459 = vmatpush1.bf16.msra.mxu0 %v15557_v17  ;;  %13471 = vmatpush3.bf16.msra.mxu1 %v15608_v43 }
0x1bac   :  { %13473 = vmatprep.subr.bf16.mxu0 %v15536_v53  ;;  %13488 = vmatprep.subr.bf16.mxu1 %v14605_v2 }
0x1c71   :  { %v5985_v55 = vpop.f32.mrb[64].mxu0  ;;  %v6056_v63 = vpop.f32.mrb[58].mxu1 }
0x1c72   :  { %v5987_v3 = vpop.f32.mrb[65].mxu0  ;;  %v12100_v40 = vpop.f32.mrb[59].mxu1  ;;  %v6078_v14 = vadd.f32 %v15652_v20, %v6056_v63 }
0x1c73   :  { %v6062_v58 = vcombine.low %v5985_v55, %v5987_v3 }
0x1c75   :  { %v6069_v50 = vrot.slane %v6062_v58, %v14812_v45 }
0x1c77   :  { %v6071_v48 = vadd.f32 %v6069_v50, %v5915_v42  ;;  %v6271_v50 = vld [vmem:[#allocation3 + $0x18] sm:$0x3f] }
0x1c79   :  { %v10943_v36 = vmul.f32 -1.442695, %v6071_v48 }
0x1c7b   :  { %14318 = vpow2.f32 %v10943_v36 }
0x1c85   :  { %v14319_v31 = vpop.eup %14318 }
0x1c86   :  { %v6075_v24 = vadd.f32 1.0, %v14319_v31 }
0x1c88   :  { %14320 = vrcp.f32 %v6075_v24 }
0x1c92   :  { %v14321_v23 = vpop.eup %14320 }
0x1c93   :  { %v6079_v49 = vmul.f32 %v14321_v23, %v6078_v14  ;;  %v6086_v21 = vrot.slane %v14321_v23, 2 }
0x1c95   :  { %v6083_v15 = vadd.f32 %v6081_v51, %v6079_v49  ;;  %v6088_v22 = vsub.f32 1.0, %v6086_v21  ;;  %v6090_v12 = vmul.f32 %v6086_v21, %v5913_v57  ;;  %v6437_v49 = vrot.slane %v6271_v50, 4 }
0x1c97   :  { %14322 = vtanh.f32 %v6083_v15 }
0x1ca1   :  { %v14323_v9 = vpop.eup %14322 }
0x1ca2   :  { %v6089_v10 = vmul.f32 %v14323_v9, %v6088_v22 }
0x1ca4   :  { %v6091_v19 = vadd.f32 %v6090_v12, %v6089_v10 }
0x1ca6   :  { %6092 = vst.msk [vmem:[#allocation2 + $0x4] sm:$0x3] %vm331_vm2, %v6091_v19  ;;  %10944 = vmatmul.mubr.msk.f32.vlgmr.msra.gmra.mrb[66].mxu0 %vm154_vm1, %v6091_v19  ;;  %12118 = vmatmul.mubr.msk.f32.vlgmr.msra.gmra.mrb[60].mxu1 %vm154_vm1, %v6091_v19 }
0x1ca7   :  { %13475 = vmatpush1.bf16.msra.mxu0 %v15538_v33  ;;  %13490 = vmatpush3.bf16.msra.mxu1 %v15588_v34 }
0x1ca8   :  { %13477 = vmatprep.subr.bf16.mxu0 %v15541_v47  ;;  %13491 = vmatprep.subr.bf16.mxu1 %v14605_v2 }
0x1ca9   :  { %6339 = vmatprep.mubr.f32.mxu0 %v14604_v1  ;;  %12136 = vmatprep.mubr.msk.f32.mxu1 %vm14606_vm0, %v14604_v1 }
0x1cab   :  { %13479 = vmatpush1.bf16.msra.mxu0 %v15544_v11  ;;  %13493 = vmatpush3.bf16.msra.mxu1 %v15594_v13 }
0x1cac   :  { %13481 = vmatprep.subr.bf16.mxu0 %v15548_v39  ;;  %13494 = vmatprep.subr.bf16.mxu1 %v14605_v2 }
0x1caf   :  { %13483 = vmatpush1.bf16.msra.mxu0 %v15551_v61  ;;  %13496 = vmatpush3.bf16.msra.mxu1 %v15601_v4 }
0x1cb0   :  { %13485 = vmatprep.subr.bf16.mxu0 %v15553_v0  ;;  %13497 = vmatprep.subr.bf16.mxu1 %v14605_v2 }
0x1cb3   :  { %13487 = vmatpush1.bf16.msra.mxu0 %v15557_v17  ;;  %13499 = vmatpush3.bf16.msra.mxu1 %v15608_v43 }
0x1cb4   :  { %13501 = vmatprep.subr.bf16.mxu0 %v15536_v53  ;;  %13516 = vmatprep.subr.bf16.mxu1 %v14605_v2 }
0x1d79   :  { %v6163_v18 = vpop.f32.mrb[66].mxu0  ;;  %v6234_v29 = vpop.f32.mrb[60].mxu1 }
0x1d7a   :  { %v6165_v7 = vpop.f32.mrb[67].mxu0  ;;  %v12119_v41 = vpop.f32.mrb[61].mxu1  ;;  %v6256_v25 = vadd.f32 %v15652_v20, %v6234_v29 }
0x1d7b   :  { %v6240_v26 = vcombine.low %v6163_v18, %v6165_v7 }
0x1d7d   :  { %v6247_v28 = vrot.slane %v6240_v26, %v14812_v45 }
0x1d7f   :  { %v6249_v27 = vadd.f32 %v6247_v28, %v6093_v16  ;;  %v6449_v28 = vld [vmem:[#allocation3 + $0x1e] sm:$0x3f] }
0x1d81   :  { %v10946_v32 = vmul.f32 -1.442695, %v6249_v27 }
0x1d83   :  { %14324 = vpow2.f32 %v10946_v32 }
0x1d8d   :  { %v14325_v30 = vpop.eup %14324 }
0x1d8e   :  { %v6253_v56 = vadd.f32 1.0, %v14325_v30 }
0x1d90   :  { %14326 = vrcp.f32 %v6253_v56 }
0x1d9a   :  { %v14327_v6 = vpop.eup %14326 }
0x1d9b   :  { %v6257_v37 = vmul.f32 %v14327_v6, %v6256_v25  ;;  %v6264_v62 = vrot.slane %v14327_v6, 2  ;;  %v6615_v6 = vrot.slane %v6449_v28, 4 }
0x1d9d   :  { %v6261_v44 = vadd.f32 %v6259_v38, %v6257_v37  ;;  %v6266_v52 = vsub.f32 1.0, %v6264_v62  ;;  %v6268_v60 = vmul.f32 %v6264_v62, %v6091_v19 }
0x1d9f   :  { %14328 = vtanh.f32 %v6261_v44 }
0x1da9   :  { %v14329_v46 = vpop.eup %14328 }
0x1daa   :  { %v6267_v35 = vmul.f32 %v14329_v46, %v6266_v52 }
0x1dac   :  { %v6269_v54 = vadd.f32 %v6268_v60, %v6267_v35 }
0x1dae   :  { %6270 = vst.msk [vmem:[#allocation2 + $0x6] sm:$0x3] %vm331_vm2, %v6269_v54  ;;  %10947 = vmatmul.mubr.msk.f32.vlgmr.msra.gmra.mrb[68].mxu0 %vm154_vm1, %v6269_v54  ;;  %12137 = vmatmul.mubr.msk.f32.vlgmr.msra.gmra.mrb[62].mxu1 %vm154_vm1, %v6269_v54 }
0x1daf   :  { %13503 = vmatpush1.bf16.msra.mxu0 %v15538_v33  ;;  %13518 = vmatpush3.bf16.msra.mxu1 %v15588_v34 }
0x1db0   :  { %13505 = vmatprep.subr.bf16.mxu0 %v15541_v47  ;;  %13519 = vmatprep.subr.bf16.mxu1 %v14605_v2 }
0x1db1   :  { %6517 = vmatprep.mubr.f32.mxu0 %v14604_v1  ;;  %12155 = vmatprep.mubr.msk.f32.mxu1 %vm14606_vm0, %v14604_v1 }
0x1db3   :  { %13507 = vmatpush1.bf16.msra.mxu0 %v15544_v11  ;;  %13521 = vmatpush3.bf16.msra.mxu1 %v15594_v13 }
0x1db4   :  { %13509 = vmatprep.subr.bf16.mxu0 %v15548_v39  ;;  %13522 = vmatprep.subr.bf16.mxu1 %v14605_v2 }
0x1db7   :  { %13511 = vmatpush1.bf16.msra.mxu0 %v15551_v61  ;;  %13524 = vmatpush3.bf16.msra.mxu1 %v15601_v4 }
0x1db8   :  { %13513 = vmatprep.subr.bf16.mxu0 %v15553_v0  ;;  %13525 = vmatprep.subr.bf16.mxu1 %v14605_v2 }
0x1dbb   :  { %13515 = vmatpush1.bf16.msra.mxu0 %v15557_v17  ;;  %13527 = vmatpush3.bf16.msra.mxu1 %v15608_v43 }
0x1dbc   :  { %13529 = vmatprep.subr.bf16.mxu0 %v15536_v53  ;;  %13544 = vmatprep.subr.bf16.mxu1 %v14605_v2 }
0x1e81   :  { %v6341_v57 = vpop.f32.mrb[68].mxu0  ;;  %v6412_v55 = vpop.f32.mrb[62].mxu1 }
0x1e82   :  { %v6343_v63 = vpop.f32.mrb[69].mxu0  ;;  %v12138_v3 = vpop.f32.mrb[63].mxu1  ;;  %v6434_v24 = vadd.f32 %v15652_v20, %v6412_v55 }
0x1e83   :  { %v6418_v40 = vcombine.low %v6341_v57, %v6343_v63 }
0x1e85   :  { %v6425_v58 = vrot.slane %v6418_v40, %v14812_v45 }
0x1e87   :  { %v6427_v42 = vadd.f32 %v6425_v58, %v6271_v50  ;;  %v6986_v50 = vld [vmem:[#allocation2 + $0x6] sm:$0x3] }
0x1e89   :  { %v10949_v48 = vmul.f32 -1.442695, %v6427_v42 }
0x1e8b   :  { %14330 = vpow2.f32 %v10949_v48  ;;  %v6984_v48 = vld [vmem:[#allocation2 + $0x2] sm:$0x3] }
0x1e95   :  { %v14331_v36 = vpop.eup %14330 }
0x1e96   :  { %v6431_v31 = vadd.f32 1.0, %v14331_v36  ;;  %v6985_v36 = vld [vmem:[#allocation2 + $0x4] sm:$0x3] }
0x1e98   :  { %14332 = vrcp.f32 %v6431_v31  ;;  %v7043_v31 = vcombine.low %v6985_v36, %v6986_v50  ;;  %v7334_v50 = vld [vmem:[#allocation10 + $0x348] sm:$0xff] }
0x1e99   :  { %v7338_v36 = vld [vmem:[#allocation10 + $0x368] sm:$0xff] }
0x1ea2   :  { %v14333_v14 = vpop.eup %14332 }
0x1ea3   :  { %v6435_v23 = vmul.f32 %v14333_v14, %v6434_v24  ;;  %v6442_v15 = vrot.slane %v14333_v14, 2  ;;  %v6983_v24 = vld [vmem:[#allocation2] sm:$0x3] }
0x1ea4   :  { %v7042_v14 = vcombine.low %v6983_v24, %v6984_v48  ;;  %v7337_v24 = vld [vmem:[#allocation10 + $0x360] sm:$0xff] }
0x1ea5   :  { %v6439_v51 = vadd.f32 %v6437_v49, %v6435_v23  ;;  %v6444_v21 = vsub.f32 1.0, %v6442_v15  ;;  %v6446_v10 = vmul.f32 %v6442_v15, %v6269_v54  ;;  %v6992_v49 = vld [vmem:[#allocation7 + $0x240] sm:$0xff] }
0x1ea7   :  { %14334 = vtanh.f32 %v6439_v51  ;;  %v6995_v51 = vld [vmem:[#allocation7 + $0x258] sm:$0xff] }
0x1eb1   :  { %v14335_v22 = vpop.eup %14334 }
0x1eb2   :  { %v6445_v9 = vmul.f32 %v14335_v22, %v6444_v21  ;;  %v7057_v21 = vrot.slane %v7043_v31, %v14812_v45  ;;  %v6999_v22 = vld [vmem:[#allocation7 + $0x278] sm:$0xff]  ;;  %v7341_v31 = vld [vmem:[#allocation10 + $0x380] sm:$0xff] }
0x1eb4   :  { %v6447_v12 = vadd.f32 %v6446_v10, %v6445_v9  ;;  %v7002_v9 = vld [vmem:[#allocation7 + $0x290] sm:$0xff] }
0x1eb6   :  { %6448 = vst.msk [vmem:[#allocation2 + $0x8] sm:$0x3] %vm331_vm2, %v6447_v12  ;;  %10950 = vmatmul.mubr.msk.f32.vlgmr.msra.gmra.mrb[70].mxu0 %vm154_vm1, %v6447_v12  ;;  %12156 = vmatmul.mubr.msk.f32.vlgmr.msra.gmra.mrb[64].mxu1 %vm154_vm1, %v6447_v12 }
0x1eb7   :  { %13531 = vmatpush1.bf16.msra.mxu0 %v15538_v33  ;;  %13546 = vmatpush3.bf16.msra.mxu1 %v15588_v34 }
0x1eb8   :  { %13533 = vmatprep.subr.bf16.mxu0 %v15541_v47  ;;  %13547 = vmatprep.subr.bf16.mxu1 %v14605_v2 }
0x1eb9   :  { %6695 = vmatprep.mubr.f32.mxu0 %v14604_v1  ;;  %12174 = vmatprep.mubr.msk.f32.mxu1 %vm14606_vm0, %v14604_v1 }
0x1ebb   :  { %13535 = vmatpush1.bf16.msra.mxu0 %v15544_v11  ;;  %13549 = vmatpush3.bf16.msra.mxu1 %v15594_v13 }
0x1ebc   :  { %13537 = vmatprep.subr.bf16.mxu0 %v15548_v39  ;;  %13550 = vmatprep.subr.bf16.mxu1 %v14605_v2 }
0x1ebf   :  { %13539 = vmatpush1.bf16.msra.mxu0 %v15551_v61  ;;  %13552 = vmatpush3.bf16.msra.mxu1 %v15601_v4 }
0x1ec0   :  { %13541 = vmatprep.subr.bf16.mxu0 %v15553_v0  ;;  %13553 = vmatprep.subr.bf16.mxu1 %v14605_v2 }
0x1ec3   :  { %13543 = vmatpush1.bf16.msra.mxu0 %v15557_v17  ;;  %13555 = vmatpush3.bf16.msra.mxu1 %v15608_v43 }
0x1ec4   :  { %13557 = vmatprep.subr.bf16.mxu0 %v15536_v53  ;;  %13572 = vmatprep.subr.bf16.mxu1 %v14605_v2 }
0x1f89   :  { %v6519_v19 = vpop.f32.mrb[70].mxu0  ;;  %v6590_v18 = vpop.f32.mrb[64].mxu1 }
0x1f8a   :  { %v6521_v29 = vpop.f32.mrb[71].mxu0  ;;  %v12157_v7 = vpop.f32.mrb[65].mxu1  ;;  %v6612_v56 = vadd.f32 %v15652_v20, %v6590_v18  ;;  %v7050_v18 = vrot.slane %v7042_v14, %v14812_v45  ;;  %v15823_v14 = vpack.c.bf16 %v7341_v31, %v7338_v36 }
0x1f8b   :  { %v6596_v41 = vcombine.low %v6519_v19, %v6521_v29  ;;  %v13586_v19 = vpack.c.bf16 %v6995_v51, %v6992_v49  ;;  %v13588_v7 = vpack.c.bf16 %v7002_v9, %v6999_v22  ;;  %v7344_v49 = vld [vmem:[#allocation10 + $0x398] sm:$0xff]  ;;  %v7347_v51 = vld [vmem:[#allocation10 + $0x3b0] sm:$0xff]  ;;  %v7346_v9 = vld [vmem:[#allocation10 + $0x3a8] sm:$0xff] }
0x1f8c   :  { %v7343_v22 = vld [vmem:[#allocation10 + $0x390] sm:$0xff] }
0x1f8d   :  { %v6603_v26 = vrot.slane %v6596_v41, %v14812_v45  ;;  %v6998_v41 = vld [vmem:[#allocation7 + $0x270] sm:$0xff] }
0x1f8f   :  { %v6605_v16 = vadd.f32 %v6603_v26, %v6449_v28  ;;  %v7001_v26 = vld [vmem:[#allocation7 + $0x288] sm:$0xff]  ;;  %v7058_v28 = vcombine.low %v7050_v18, %v7057_v21  ;;  %v15828_v21 = vpack.c.bf16 %v7347_v51, %v7344_v49  ;;  %v7339_v49 = vld [vmem:[#allocation10 + $0x370] sm:$0xff]  ;;  %v7342_v51 = vld [vmem:[#allocation10 + $0x388] sm:$0xff] }
0x1f91   :  { %v10952_v27 = vmul.f32 -1.442695, %v6605_v16  ;;  %v7005_v16 = vld [vmem:[#allocation7 + $0x2a8] sm:$0xff] }
0x1f93   :  { %14336 = vpow2.f32 %v10952_v27  ;;  %v7008_v27 = vld [vmem:[#allocation7 + $0x2c0] sm:$0xff] }
0x1f9d   :  { %v14337_v32 = vpop.eup %14336 }
0x1f9e   :  { %v6609_v30 = vadd.f32 1.0, %v14337_v32  ;;  %v13590_v32 = vpack.c.bf16 %v7001_v26, %v6998_v41 }
0x1fa0   :  { %14338 = vrcp.f32 %v6609_v30  ;;  %v13592_v30 = vpack.c.bf16 %v7008_v27, %v7005_v16 }
0x1faa   :  { %v14339_v25 = vpop.eup %14338 }
0x1fab   :  { %v6613_v53 = vmul.f32 %v14339_v25, %v6612_v56  ;;  %v6620_v38 = vrot.slane %v14339_v25, 2  ;;  %v7004_v56 = vld [vmem:[#allocation7 + $0x2a0] sm:$0xff]  ;;  %v7007_v25 = vld [vmem:[#allocation7 + $0x2b8] sm:$0xff] }
0x1fad   :  { %v6617_v37 = vadd.f32 %v6615_v6, %v6613_v53  ;;  %v6622_v44 = vsub.f32 1.0, %v6620_v38  ;;  %v6624_v46 = vmul.f32 %v6620_v38, %v6447_v12  ;;  %v7011_v53 = vld [vmem:[#allocation7 + $0x2d8] sm:$0xff]  ;;  %v7014_v6 = vld [vmem:[#allocation7 + $0x2f0] sm:$0xff] }
0x1fae   :  { %v13596_v38 = vpack.c.bf16 %v7014_v6, %v7011_v53 }
0x1faf   :  { %14340 = vtanh.f32 %v6617_v37  ;;  %v13594_v37 = vpack.c.bf16 %v7007_v25, %v7004_v56 }
0x1fb9   :  { %v14341_v62 = vpop.eup %14340 }
0x1fba   :  { %v6623_v52 = vmul.f32 %v14341_v62, %v6622_v44  ;;  %v7010_v44 = vld [vmem:[#allocation7 + $0x2d0] sm:$0xff]  ;;  %v7013_v62 = vld [vmem:[#allocation7 + $0x2e8] sm:$0xff] }
0x1fbc   :  { %v6625_v35 = vadd.f32 %v6624_v46, %v6623_v52  ;;  %v13598_v52 = vpack.c.bf16 %v7013_v62, %v7010_v44  ;;  %v6994_v46 = vld [vmem:[#allocation7 + $0x250] sm:$0xff] }
0x1fbe   :  { %6626 = vst.msk [vmem:[#allocation2 + $0xa] sm:$0x3] %vm331_vm2, %v6625_v35  ;;  %10953 = vmatmul.mubr.msk.f32.vlgmr.msra.gmra.mrb[72].mxu0 %vm154_vm1, %v6625_v35  ;;  %12175 = vmatmul.mubr.msk.f32.vlgmr.msra.gmra.mrb[66].mxu1 %vm154_vm1, %v6625_v35 }
0x1fbf   :  { %13559 = vmatpush1.bf16.msra.mxu0 %v15538_v33  ;;  %13574 = vmatpush3.bf16.msra.mxu1 %v15588_v34  ;;  %v6993_v33 = vld [vmem:[#allocation7 + $0x248] sm:$0xff] }
0x1fc0   :  { %13561 = vmatprep.subr.bf16.mxu0 %v15541_v47  ;;  %13575 = vmatprep.subr.bf16.mxu1 %v14605_v2  ;;  %v6996_v47 = vld [vmem:[#allocation7 + $0x260] sm:$0xff] }
0x1fc1   :  { %6873 = vmatprep.mubr.f32.mxu0 %v14604_v1  ;;  %12193 = vmatprep.mubr.msk.f32.mxu1 %vm14606_vm0, %v14604_v1 }
0x1fc3   :  { %13563 = vmatpush1.bf16.msra.mxu0 %v15544_v11  ;;  %13577 = vmatpush3.bf16.msra.mxu1 %v15594_v13  ;;  %v13584_v11 = vpack.c.bf16 %v6996_v47, %v6993_v33  ;;  %v7000_v47 = vld [vmem:[#allocation7 + $0x280] sm:$0xff] }
0x1fc4   :  { %13565 = vmatprep.subr.bf16.mxu0 %v15548_v39  ;;  %13578 = vmatprep.subr.bf16.mxu1 %v14605_v2 }
0x1fc7   :  { %13567 = vmatpush1.bf16.msra.mxu0 %v15551_v61  ;;  %13580 = vmatpush3.bf16.msra.mxu1 %v15601_v4  ;;  %v6627_v4 = vld [vmem:[#allocation3 + $0x24] sm:$0x3f] }
0x1fc8   :  { %13569 = vmatprep.subr.bf16.mxu0 %v15553_v0  ;;  %13581 = vmatprep.subr.bf16.mxu1 %v14605_v2  ;;  %v6793_v40 = vrot.slane %v6627_v4, 4 }
0x1fcb   :  { %13571 = vmatpush1.bf16.msra.mxu0 %v15557_v17  ;;  %13583 = vmatpush3.bf16.msra.mxu1 %v15608_v43 }
0x1fcc   :  { %13585 = vmatprep.subr.bf16.mxu0 %v13584_v11  ;;  %v7003_v11 = vld [vmem:[#allocation7 + $0x298] sm:$0xff] }
0x2091   :  { %v6697_v34 = vpop.f32.mrb[72].mxu0  ;;  %v6768_v39 = vpop.f32.mrb[66].mxu1 }
0x2092   :  { %v6699_v13 = vpop.f32.mrb[73].mxu0  ;;  %v12176_v60 = vpop.f32.mrb[67].mxu1  ;;  %v6790_v17 = vadd.f32 %v15652_v20, %v6768_v39  ;;  %v13604_v39 = vpack.c.bf16 %v7003_v11, %v7000_v47 }
0x2093   :  { %v6774_v54 = vcombine.low %v6697_v34, %v6699_v13  ;;  %v7006_v34 = vld [vmem:[#allocation7 + $0x2b0] sm:$0xff]  ;;  %v7009_v13 = vld [vmem:[#allocation7 + $0x2c8] sm:$0xff]  ;;  %v7326_v60 = vld [vmem:[#allocation10 + $0x308] sm:$0xff] }
0x2095   :  { %v6781_v61 = vrot.slane %v6774_v54, %v14812_v45  ;;  %v7329_v54 = vld [vmem:[#allocation10 + $0x320] sm:$0xff] }
0x2097   :  { %v6783_v57 = vadd.f32 %v6781_v61, %v6627_v4  ;;  %v15811_v61 = vpack.c.bf16 %v7329_v54, %v7326_v60  ;;  %v7325_v4 = vld [vmem:[#allocation10 + $0x300] sm:$0xff] }
0x2099   :  { %v10955_v0 = vmul.f32 -1.442695, %v6783_v57  ;;  %v7328_v57 = vld [vmem:[#allocation10 + $0x318] sm:$0xff] }
0x209b   :  { %14342 = vpow2.f32 %v10955_v0  ;;  %v13608_v0 = vpack.c.bf16 %v7009_v13, %v7006_v34 }
0x20a5   :  { %v14343_v55 = vpop.eup %14342 }
0x20a6   :  { %v6787_v63 = vadd.f32 1.0, %v14343_v55  ;;  %v15813_v55 = vpack.c.bf16 %v7328_v57, %v7325_v4  ;;  %v6988_v57 = vld [vmem:[#allocation2 + $0xa] sm:$0x3] }
0x20a8   :  { %14344 = vrcp.f32 %v6787_v63  ;;  %v7012_v63 = vld [vmem:[#allocation7 + $0x2e0] sm:$0xff] }
0x20b2   :  { %v14345_v43 = vpop.eup %14344 }
0x20b3   :  { %v6791_v3 = vmul.f32 %v14345_v43, %v6790_v17  ;;  %v6798_v42 = vrot.slane %v14345_v43, 2  ;;  %v7332_v17 = vld [vmem:[#allocation10 + $0x338] sm:$0xff]  ;;  %v7335_v43 = vld [vmem:[#allocation10 + $0x350] sm:$0xff] }
0x20b5   :  { %v6795_v58 = vadd.f32 %v6793_v40, %v6791_v3  ;;  %v6800_v23 = vsub.f32 1.0, %v6798_v42  ;;  %v6802_v12 = vmul.f32 %v6798_v42, %v6625_v35  ;;  %v6997_v35 = vld [vmem:[#allocation7 + $0x268] sm:$0xff]  ;;  %v7015_v3 = vld [vmem:[#allocation7 + $0x2f8] sm:$0xff]  ;;  %v15816_v40 = vpack.c.bf16 %v7335_v43, %v7332_v17 }
0x20b6   :  { %v13600_v33 = vpack.c.bf16 %v6997_v35, %v6994_v46  ;;  %v13612_v48 = vpack.c.bf16 %v7015_v3, %v7012_v63  ;;  %v7327_v3 = vld [vmem:[#allocation10 + $0x310] sm:$0xff] }
0x20b7   :  { %14346 = vtanh.f32 %v6795_v58  ;;  %v7331_v58 = vld [vmem:[#allocation10 + $0x330] sm:$0xff] }
0x20b8   :  { %13601 = vmatprep.subr.bf16.mxu1 %v13600_v33  ;;  %v15819_v42 = vpack.c.bf16 %v7334_v50, %v7331_v58  ;;  %v7330_v58 = vld [vmem:[#allocation10 + $0x328] sm:$0xff] }
0x20b9   :  { %v15863_v36 = vpack.c.bf16 %v7330_v58, %v7327_v3 }
0x20c1   :  { %v14347_v15 = vpop.eup %14346 }
0x20c2   :  { %v6801_v10 = vmul.f32 %v14347_v15, %v6800_v23  ;;  %v7340_v23 = vld [vmem:[#allocation10 + $0x378] sm:$0xff] }
0x20c3   :  { %v15826_v15 = vpack.c.bf16 %v7340_v23, %v7337_v24  ;;  %v7333_v24 = vld [vmem:[#allocation10 + $0x340] sm:$0xff] }
0x20c4   :  { %v15799_v29 = vadd.f32 %v6802_v12, %v6801_v10  ;;  %v15832_v10 = vpack.c.bf16 %v7346_v9, %v7343_v22  ;;  %v15876_v22 = vpack.c.bf16 %v7342_v51, %v7339_v49  ;;  %v7345_v9 = vld [vmem:[#allocation10 + $0x3a0] sm:$0xff] }
0x20c6   :  { %6804 = vst.msk [vmem:[#allocation2 + $0xc] sm:$0x3] %vm331_vm2, %v15799_v29  ;;  %10956 = vmatmul.mubr.msk.f32.vlgmr.msra.gmra.mrb[74].mxu0 %vm154_vm1, %v15799_v29  ;;  %12194 = vmatmul.mubr.msk.f32.vlgmr.msra.gmra.mrb[68].mxu1 %vm154_vm1, %v15799_v29 }
0x20c7   :  { %13587 = vmatpush1.bf16.msra.mxu0 %v13586_v19  ;;  %12212 = vmatprep.mubr.msk.f32.mxu1 %vm154_vm1, %v7058_v28 }
0x20c8   :  { %13589 = vmatprep.subr.bf16.mxu0 %v13588_v7  ;;  %7144 = vmatprep.mubr.f32.mxu0 %v14604_v1 }
0x20c9   :  { %13603 = vmatpush3.bf16.msra.mxu1 %v13600_v33 }
0x20ca   :  { %13605 = vmatprep.subr.bf16.mxu1 %v13604_v39 }
0x20cb   :  { %13591 = vmatpush1.bf16.msra.mxu0 %v13590_v32  ;;  %v15838_v32 = vld [vmem:[#allocation9 + $0x9] sm:$0x7] }
0x20cc   :  { %13593 = vmatprep.subr.bf16.mxu0 %v13592_v30  ;;  %v15842_v30 = vrot.slane %v15838_v32, %v15005_v5  ;;  %v15846_v56 = vrot.slane %v15838_v32, %v15010_v8 }
0x20cd   :  { %13607 = vmatpush3.bf16.msra.mxu1 %v13604_v39  ;;  %v6989_v17 = vld [vmem:[#allocation2 + $0xc] sm:$0x3] }
0x20ce   :  { %13609 = vmatprep.subr.bf16.mxu1 %v13608_v0 }
0x20cf   :  { %13595 = vmatpush1.bf16.msra.mxu0 %v13594_v37 }
0x20d0   :  { %13597 = vmatprep.subr.bf16.mxu0 %v13596_v38 }
0x20d1   :  { %13611 = vmatpush3.bf16.msra.mxu1 %v13608_v0  ;;  %v6987_v0 = vld [vmem:[#allocation2 + $0x8] sm:$0x3] }
0x20d2   :  { %13613 = vmatprep.subr.bf16.mxu1 %v13612_v48  ;;  %v7059_v63 = vcombine.low %v6987_v0, %v6988_v57 }
0x20d3   :  { %13599 = vmatpush1.bf16.msra.mxu0 %v13598_v52 }
0x20d4   :  { %13617 = vmatprep.subr.bf16.mxu0 %v15811_v61  ;;  %v7067_v50 = vrot.slane %v7059_v63, %v14812_v45 }
0x20d5   :  { %13615 = vmatpush3.bf16.msra.mxu1 %v13612_v48 }
0x20d6   :  { %10959 = vmatmul.mubr.msk.f32.vlgmr.msra.gmra.mrb[76].mxu0 %vm154_vm1, %v7058_v28  ;;  %13632 = vmatprep.subr.bf16.mxu1 %v14605_v2  ;;  %v6805_v28 = vld [vmem:[#allocation3 + $0x2a] sm:$0x3f] }
0x20d7   :  { %7150 = vmatprep.mubr.f32.mxu0 %v14604_v1  ;;  %13619 = vmatpush1.bf16.msra.mxu0 %v15813_v55  ;;  %v6971_v47 = vrot.slane %v6805_v28, 4 }
0x20d8   :  { %13621 = vmatprep.subr.bf16.mxu0 %v15816_v40 }
0x20db   :  { %13623 = vmatpush1.bf16.msra.mxu0 %v15819_v42 }
0x20dc   :  { %13625 = vmatprep.subr.bf16.mxu0 %v15823_v14 }
0x20df   :  { %13627 = vmatpush1.bf16.msra.mxu0 %v15826_v15 }
0x20e0   :  { %13629 = vmatprep.subr.bf16.mxu0 %v15828_v21 }
0x20e3   :  { %13631 = vmatpush1.bf16.msra.mxu0 %v15832_v10 }
0x20e4   :  { %13645 = vmatprep.subr.bf16.mxu0 %v15811_v61 }
0x2199   :  { %v6875_v12 = vpop.f32.mrb[74].mxu0  ;;  %v6946_v19 = vpop.f32.mrb[68].mxu1 }
0x219a   :  { %v6877_v18 = vpop.f32.mrb[75].mxu0  ;;  %v12195_v7 = vpop.f32.mrb[69].mxu1  ;;  %v6968_v46 = vadd.f32 %v15652_v20, %v6946_v19 }
0x219b   :  { %v6952_v41 = vcombine.low %v6875_v12, %v6877_v18  ;;  %v7348_v12 = vld [vmem:[#allocation10 + $0x3b8] sm:$0xff]  ;;  %v7030_v18 = vrot.slane %v15838_v32, %v15078_v59 }
0x219c   :  { %v15883_v19 = vpack.c.bf16 %v7348_v12, %v7345_v9 }
0x219d   :  { %v6959_v26 = vrot.slane %v6952_v41, %v14812_v45 }
0x219f   :  { %v6961_v16 = vadd.f32 %v6959_v26, %v6805_v28 }
0x21a1   :  { %v10958_v27 = vmul.f32 -1.442695, %v6961_v16 }
0x21a3   :  { %14348 = vpow2.f32 %v10958_v27 }
0x21a9   :  { %v7146_v25 = vpop.f32.mrb[76].mxu0 }
0x21aa   :  { %v15849_v53 = vadd.f32 %v7146_v25, %v15842_v30  ;;  %v7148_v6 = vpop.f32.mrb[77].mxu0 }
0x21ab   :  { %v15852_v37 = vadd.f32 %v7148_v6, %v15846_v56 }
0x21ad   :  { %v14349_v38 = vpop.eup %14348  ;;  %v7238_v44 = vcombine.low %v15849_v53, %v15852_v37  ;;  %v7239_v62 = vcombine.high %v15849_v53, %v15852_v37 }
0x21ae   :  { %v6965_v52 = vadd.f32 1.0, %v14349_v38 }
0x21af   :  { %v7247_v38 = vrot.slane %v7238_v44, %v14812_v45  ;;  %v7254_v44 = vrot.slane %v7239_v62, %v14812_v45 }
0x21b0   :  { %14350 = vrcp.f32 %v6965_v52 }
0x21ba   :  { %v14351_v35 = vpop.eup %14350 }
0x21bb   :  { %v6969_v33 = vmul.f32 %v14351_v35, %v6968_v46  ;;  %v6976_v34 = vrot.slane %v14351_v35, 2 }
0x21bd   :  { %v6973_v11 = vadd.f32 %v6971_v47, %v6969_v33  ;;  %v6978_v39 = vsub.f32 1.0, %v6976_v34  ;;  %v6980_v54 = vmul.f32 %v6976_v34, %v15799_v29  ;;  %v7336_v29 = vld [vmem:[#allocation10 + $0x358] sm:$0xff] }
0x21be   :  { %v15869_v23 = vpack.c.bf16 %v7336_v29, %v7333_v24  ;;  %v15927_v24 = vld [vmem:[%s16384_s4 + $0x4] ss:$0 sm:$0xff] }
0x21bf   :  { %14352 = vtanh.f32 %v6973_v11 }
0x21c9   :  { %v14353_v13 = vpop.eup %14352 }
0x21ca   :  { %v6979_v60 = vmul.f32 %v14353_v13, %v6978_v39 }
0x21cc   :  { %v6981_v4 = vadd.f32 %v6980_v54, %v6979_v60 }
0x21ce   :  { %6982 = vst.msk [vmem:[#allocation2 + $0xe] sm:$0x3] %vm331_vm2, %v6981_v4 }
0x21d5   :  { %v6990_v43 = vld [vmem:[#allocation2 + $0xe] sm:$0x3] }
0x21d6   :  { %v7060_v20 = vcombine.low %v6989_v17, %v6990_v43 }
0x21d8   :  { %v7074_v48 = vrot.slane %v7060_v20, %v14812_v45 }
0x21da   :  { %v7075_v31 = vcombine.low %v7067_v50, %v7074_v48 }
0x21dc   :  { %10960 = vmatmul.mubr.msk.f32.gmra.mrb[78].mxu0 %vm154_vm1, %v7075_v31  ;;  %12213 = vmatmul.mubr.msk.f32.vlgmr.msra.gmra.mrb[70].mxu1 %vm154_vm1, %v7075_v31 }
0x21dd   :  { %7422 = vmatprep.mubr.f32.mxu0 %v14604_v1  ;;  %13634 = vmatpush3.bf16.msra.mxu1 %v15863_v36 }
0x21de   :  { %13635 = vmatprep.subr.bf16.mxu1 %v14605_v2  ;;  %12231 = vmatprep.mubr.msk.f32.mxu1 %vm14606_vm0, %v14604_v1 }
0x21e0   :  { %7423 = vmatmul.mubr.f32.vlgmr.msra.gmra.mrb[80].mxu0 %v14604_v1 }
0x21e1   :  { %13637 = vmatpush3.bf16.msra.mxu1 %v15869_v23  ;;  %13647 = vmatpush1.bf16.msra.mxu0 %v15813_v55 }
0x21e2   :  { %13638 = vmatprep.subr.bf16.mxu1 %v14605_v2  ;;  %13649 = vmatprep.subr.bf16.mxu0 %v15816_v40 }
0x21e3   :  { %7600 = vmatprep.mubr.f32.mxu0 %v14604_v1 }
0x21e5   :  { %13640 = vmatpush3.bf16.msra.mxu1 %v15876_v22  ;;  %13651 = vmatpush1.bf16.msra.mxu0 %v15819_v42 }
0x21e6   :  { %13641 = vmatprep.subr.bf16.mxu1 %v14605_v2  ;;  %13653 = vmatprep.subr.bf16.mxu0 %v15823_v14 }
0x21e9   :  { %13643 = vmatpush3.bf16.msra.mxu1 %v15883_v19  ;;  %13655 = vmatpush1.bf16.msra.mxu0 %v15826_v15 }
0x21ea   :  { %13660 = vmatprep.subr.bf16.mxu1 %v14605_v2  ;;  %13657 = vmatprep.subr.bf16.mxu0 %v15828_v21 }
0x21ec   :  { %12232 = vmatmul.mubr.f32.vlgmr.msra.gmra.mrb[72].mxu1 %v14604_v1 }
0x21ed   :  { %13662 = vmatpush3.bf16.msra.mxu1 %v15863_v36  ;;  %13659 = vmatpush1.bf16.msra.mxu0 %v15832_v10 }
0x21ee   :  { %13663 = vmatprep.subr.bf16.mxu1 %v14605_v2  ;;  %12250 = vmatprep.mubr.msk.f32.mxu1 %vm14606_vm0, %v14604_v1 }
0x21ef   :  { %13673 = vmatprep.subr.bf16.mxu0 %v15811_v61 }
0x21f1   :  { %13665 = vmatpush3.bf16.msra.mxu1 %v15869_v23 }
0x21f2   :  { %13666 = vmatprep.subr.bf16.mxu1 %v14605_v2 }
0x21f5   :  { %13668 = vmatpush3.bf16.msra.mxu1 %v15876_v22 }
0x21f6   :  { %13669 = vmatprep.subr.bf16.mxu1 %v14605_v2 }
0x21f9   :  { %13671 = vmatpush3.bf16.msra.mxu1 %v15883_v19 }
0x21fa   :  { %13688 = vmatprep.subr.bf16.mxu1 %v14605_v2 }
0x22af   :  { %v7152_v7 = vpop.f32.mrb[78].mxu0  ;;  %v12214_v41 = vpop.f32.mrb[70].mxu1 }
0x22b0   :  { %v7153_v26 = vadd.f32 %v7152_v7, %v15842_v30  ;;  %v7229_v28 = vadd.f32 %v12214_v41, %v7030_v18  ;;  %v7154_v16 = vpop.f32.mrb[79].mxu0  ;;  %v7223_v27 = vpop.f32.mrb[71].mxu1 }
0x22b1   :  { %v7155_v25 = vadd.f32 %v7154_v16, %v15846_v56  ;;  %v7224_v6 = vadd.f32 %v7223_v27, %v7030_v18 }
0x22b2   :  { %v7275_v52 = vcombine.high %v7229_v28, %v7229_v28  ;;  %v7296_v30 = vrot.slane %v7229_v28, %v14812_v45 }
0x22b3   :  { %v7273_v46 = vcombine.low %v7153_v26, %v7155_v25  ;;  %v7274_v35 = vcombine.high %v7153_v26, %v7155_v25  ;;  %v7240_v33 = vcombine.high %v7224_v6, %v7224_v6  ;;  %v7261_v32 = vrot.slane %v7224_v6, %v14812_v45  ;;  %v7424_v47 = vpop.f32.mrb[80].mxu0 }
0x22b4   :  { %v7303_v11 = vrot.slane %v7275_v52, %v14812_v45  ;;  %v7426_v34 = vpop.f32.mrb[81].mxu0 }
0x22b5   :  { %v7282_v56 = vrot.slane %v7273_v46, %v14812_v45  ;;  %v7289_v39 = vrot.slane %v7274_v35, %v14812_v45  ;;  %v7268_v13 = vrot.slane %v7240_v33, %v14812_v45  ;;  %v7269_v60 = vcombine.low %v7247_v38, %v7261_v32 }
0x22b6   :  { %v7270_v54 = vcombine.high %v7247_v38, %v7261_v32  ;;  %v7501_v4 = vcombine.low %v7424_v47, %v7426_v34 }
0x22b7   :  { %v7304_v57 = vcombine.low %v7282_v56, %v7296_v30  ;;  %v7305_v0 = vcombine.high %v7282_v56, %v7296_v30  ;;  %v7306_v63 = vcombine.low %v7289_v39, %v7303_v11  ;;  %v7307_v17 = vcombine.high %v7289_v39, %v7303_v11  ;;  %7316 = vst [vmem:[#allocation3] sm:$0x3f] %v7269_v60 }
0x22b8   :  { %v7271_v43 = vcombine.low %v7254_v44, %v7268_v13  ;;  %v7272_v20 = vcombine.high %v7254_v44, %v7268_v13  ;;  %7317 = vst [vmem:[#allocation3 + $0x6] sm:$0x3f] %v7270_v54  ;;  %v7508_v3 = vrot.slane %v7501_v4, %v14812_v45 }
0x22b9   :  { %7320 = vst [vmem:[#allocation3 + $0x18] sm:$0x3f] %v7304_v57  ;;  %7321 = vst [vmem:[#allocation3 + $0x1e] sm:$0x3f] %v7305_v0 }
0x22ba   :  { %7322 = vst [vmem:[#allocation3 + $0x24] sm:$0x3f] %v7306_v63  ;;  %7323 = vst [vmem:[#allocation3 + $0x2a] sm:$0x3f] %v7307_v17 }
0x22bb   :  { %7318 = vst [vmem:[#allocation3 + $0xc] sm:$0x3f] %v7271_v43  ;;  %7319 = vst [vmem:[#allocation3 + $0x12] sm:$0x3f] %v7272_v20 }
0x22be   :  { %v7357_v53 = vld [vmem:[#allocation3] sm:$0x3f] }
0x22bf   :  { %v7510_v37 = vadd.f32 %v7508_v3, %v7357_v53  ;;  %v7495_v62 = vpop.f32.mrb[72].mxu1  ;;  %v7520_v9 = vrot.slane %v7357_v53, 4  ;;  %v7532_v35 = vld [vmem:[#allocation3 + $0x6] sm:$0x3f] }
0x22c0   :  { %v12233_v58 = vpop.f32.mrb[73].mxu1  ;;  %v7517_v29 = vadd.f32 %v15927_v24, %v7495_v62  ;;  %v7698_v39 = vrot.slane %v7532_v35, 4 }
0x22c1   :  { %v10965_v50 = vmul.f32 -1.442695, %v7510_v37 }
0x22c2   :  { %v7710_v37 = vld [vmem:[#allocation3 + $0xc] sm:$0x3f] }
0x22c3   :  { %14354 = vpow2.f32 %v10965_v50 }
0x22cd   :  { %v14355_v48 = vpop.eup %14354 }
0x22ce   :  { %v7514_v31 = vadd.f32 1.0, %v14355_v48 }
0x22d0   :  { %14356 = vrcp.f32 %v7514_v31 }
0x22da   :  { %v14357_v49 = vpop.eup %14356 }
0x22db   :  { %v7518_v51 = vmul.f32 %v14357_v49, %v7517_v29  ;;  %v7525_v18 = vrot.slane %v14357_v49, 2 }
0x22dd   :  { %v7522_v12 = vadd.f32 %v7520_v9, %v7518_v51  ;;  %v7527_v7 = vsub.f32 1.0, %v7525_v18  ;;  %v7529_v28 = vmul.f32 0.0, %v7525_v18  ;;  %v7876_v51 = vrot.slane %v7710_v37, 4 }
0x22df   :  { %14358 = vtanh.f32 %v7522_v12 }
0x22e9   :  { %v14359_v41 = vpop.eup %14358 }
0x22ea   :  { %v7528_v26 = vmul.f32 %v14359_v41, %v7527_v7 }
0x22ec   :  { %v7530_v16 = vadd.f32 %v7529_v28, %v7528_v26 }
0x22ee   :  { %7531 = vst.msk [vmem:[#allocation2] sm:$0x3] %vm331_vm2, %v7530_v16  ;;  %10966 = vmatmul.mubr.msk.f32.vlgmr.msra.gmra.mrb[82].mxu0 %vm154_vm1, %v7530_v16  ;;  %12251 = vmatmul.mubr.msk.f32.vlgmr.msra.gmra.mrb[74].mxu1 %vm154_vm1, %v7530_v16 }
0x22ef   :  { %13675 = vmatpush1.bf16.msra.mxu0 %v15813_v55  ;;  %13690 = vmatpush3.bf16.msra.mxu1 %v15863_v36 }
0x22f0   :  { %13677 = vmatprep.subr.bf16.mxu0 %v15816_v40  ;;  %13691 = vmatprep.subr.bf16.mxu1 %v14605_v2 }
0x22f1   :  { %7778 = vmatprep.mubr.f32.mxu0 %v14604_v1  ;;  %12269 = vmatprep.mubr.msk.f32.mxu1 %vm14606_vm0, %v14604_v1 }
0x22f3   :  { %13679 = vmatpush1.bf16.msra.mxu0 %v15819_v42  ;;  %13693 = vmatpush3.bf16.msra.mxu1 %v15869_v23 }
0x22f4   :  { %13681 = vmatprep.subr.bf16.mxu0 %v15823_v14  ;;  %13694 = vmatprep.subr.bf16.mxu1 %v14605_v2 }
0x22f7   :  { %13683 = vmatpush1.bf16.msra.mxu0 %v15826_v15  ;;  %13696 = vmatpush3.bf16.msra.mxu1 %v15876_v22 }
0x22f8   :  { %13685 = vmatprep.subr.bf16.mxu0 %v15828_v21  ;;  %13697 = vmatprep.subr.bf16.mxu1 %v14605_v2 }
0x22fb   :  { %13687 = vmatpush1.bf16.msra.mxu0 %v15832_v10  ;;  %13699 = vmatpush3.bf16.msra.mxu1 %v15883_v19 }
0x22fc   :  { %13701 = vmatprep.subr.bf16.mxu0 %v15811_v61  ;;  %13716 = vmatprep.subr.bf16.mxu1 %v14605_v2 }
0x23c1   :  { %v7602_v27 = vpop.f32.mrb[82].mxu0  ;;  %v7673_v25 = vpop.f32.mrb[74].mxu1 }
0x23c2   :  { %v7604_v6 = vpop.f32.mrb[83].mxu0  ;;  %v12252_v38 = vpop.f32.mrb[75].mxu1  ;;  %v7695_v11 = vadd.f32 %v15927_v24, %v7673_v25 }
0x23c3   :  { %v7679_v52 = vcombine.low %v7602_v27, %v7604_v6 }
0x23c5   :  { %v7686_v46 = vrot.slane %v7679_v52, %v14812_v45 }
0x23c7   :  { %v7688_v33 = vadd.f32 %v7686_v46, %v7532_v35  ;;  %v7888_v46 = vld [vmem:[#allocation3 + $0x12] sm:$0x3f] }
0x23c9   :  { %v10968_v32 = vmul.f32 -1.442695, %v7688_v33 }
0x23cb   :  { %14360 = vpow2.f32 %v10968_v32 }
0x23d5   :  { %v14361_v47 = vpop.eup %14360 }
0x23d6   :  { %v7692_v30 = vadd.f32 1.0, %v14361_v47 }
0x23d8   :  { %14362 = vrcp.f32 %v7692_v30 }
0x23e2   :  { %v14363_v34 = vpop.eup %14362 }
0x23e3   :  { %v7696_v56 = vmul.f32 %v14363_v34, %v7695_v11  ;;  %v7703_v60 = vrot.slane %v14363_v34, 2 }
0x23e5   :  { %v7700_v13 = vadd.f32 %v7698_v39, %v7696_v56  ;;  %v7705_v44 = vsub.f32 1.0, %v7703_v60  ;;  %v7707_v57 = vmul.f32 %v7703_v60, %v7530_v16  ;;  %v8054_v56 = vrot.slane %v7888_v46, 4 }
0x23e7   :  { %14364 = vtanh.f32 %v7700_v13 }
0x23f1   :  { %v14365_v54 = vpop.eup %14364 }
0x23f2   :  { %v7706_v4 = vmul.f32 %v14365_v54, %v7705_v44 }
0x23f4   :  { %v7708_v0 = vadd.f32 %v7707_v57, %v7706_v4 }
0x23f6   :  { %7709 = vst.msk [vmem:[#allocation2 + $0x2] sm:$0x3] %vm331_vm2, %v7708_v0  ;;  %10969 = vmatmul.mubr.msk.f32.vlgmr.msra.gmra.mrb[84].mxu0 %vm154_vm1, %v7708_v0  ;;  %12270 = vmatmul.mubr.msk.f32.vlgmr.msra.gmra.mrb[76].mxu1 %vm154_vm1, %v7708_v0 }
0x23f7   :  { %13703 = vmatpush1.bf16.msra.mxu0 %v15813_v55  ;;  %13718 = vmatpush3.bf16.msra.mxu1 %v15863_v36 }
0x23f8   :  { %13705 = vmatprep.subr.bf16.mxu0 %v15816_v40  ;;  %13719 = vmatprep.subr.bf16.mxu1 %v14605_v2 }
0x23f9   :  { %7956 = vmatprep.mubr.f32.mxu0 %v14604_v1  ;;  %12288 = vmatprep.mubr.msk.f32.mxu1 %vm14606_vm0, %v14604_v1 }
0x23fb   :  { %13707 = vmatpush1.bf16.msra.mxu0 %v15819_v42  ;;  %13721 = vmatpush3.bf16.msra.mxu1 %v15869_v23 }
0x23fc   :  { %13709 = vmatprep.subr.bf16.mxu0 %v15823_v14  ;;  %13722 = vmatprep.subr.bf16.mxu1 %v14605_v2 }
0x23ff   :  { %13711 = vmatpush1.bf16.msra.mxu0 %v15826_v15  ;;  %13724 = vmatpush3.bf16.msra.mxu1 %v15876_v22 }
0x2400   :  { %13713 = vmatprep.subr.bf16.mxu0 %v15828_v21  ;;  %13725 = vmatprep.subr.bf16.mxu1 %v14605_v2 }
0x2403   :  { %13715 = vmatpush1.bf16.msra.mxu0 %v15832_v10  ;;  %13727 = vmatpush3.bf16.msra.mxu1 %v15883_v19 }
0x2404   :  { %13729 = vmatprep.subr.bf16.mxu0 %v15811_v61  ;;  %13744 = vmatprep.subr.bf16.mxu1 %v14605_v2 }
0x24c9   :  { %v7780_v63 = vpop.f32.mrb[84].mxu0  ;;  %v7851_v17 = vpop.f32.mrb[76].mxu1 }
0x24ca   :  { %v7782_v43 = vpop.f32.mrb[85].mxu0  ;;  %v12271_v20 = vpop.f32.mrb[77].mxu1  ;;  %v7873_v31 = vadd.f32 %v15927_v24, %v7851_v17 }
0x24cb   :  { %v7857_v3 = vcombine.low %v7780_v63, %v7782_v43 }
0x24cd   :  { %v7864_v53 = vrot.slane %v7857_v3, %v14812_v45 }
0x24cf   :  { %v7866_v62 = vadd.f32 %v7864_v53, %v7710_v37  ;;  %v8066_v53 = vld [vmem:[#allocation3 + $0x18] sm:$0x3f] }
0x24d1   :  { %v10971_v58 = vmul.f32 -1.442695, %v7866_v62 }
0x24d3   :  { %14366 = vpow2.f32 %v10971_v58 }
0x24dd   :  { %v14367_v50 = vpop.eup %14366 }
0x24de   :  { %v7870_v48 = vadd.f32 1.0, %v14367_v50 }
0x24e0   :  { %14368 = vrcp.f32 %v7870_v48 }
0x24ea   :  { %v14369_v29 = vpop.eup %14368 }
0x24eb   :  { %v7874_v49 = vmul.f32 %v14369_v29, %v7873_v31  ;;  %v7881_v12 = vrot.slane %v14369_v29, 2 }
0x24ed   :  { %v7878_v9 = vadd.f32 %v7876_v51, %v7874_v49  ;;  %v7883_v18 = vsub.f32 1.0, %v7881_v12  ;;  %v7885_v26 = vmul.f32 %v7881_v12, %v7708_v0  ;;  %v8232_v49 = vrot.slane %v8066_v53, 4 }
0x24ef   :  { %14370 = vtanh.f32 %v7878_v9 }
0x24f9   :  { %v14371_v7 = vpop.eup %14370 }
0x24fa   :  { %v7884_v41 = vmul.f32 %v14371_v7, %v7883_v18 }
0x24fc   :  { %v7886_v28 = vadd.f32 %v7885_v26, %v7884_v41 }
0x24fe   :  { %7887 = vst.msk [vmem:[#allocation2 + $0x4] sm:$0x3] %vm331_vm2, %v7886_v28  ;;  %10972 = vmatmul.mubr.msk.f32.vlgmr.msra.gmra.mrb[86].mxu0 %vm154_vm1, %v7886_v28  ;;  %12289 = vmatmul.mubr.msk.f32.vlgmr.msra.gmra.mrb[78].mxu1 %vm154_vm1, %v7886_v28 }
0x24ff   :  { %13731 = vmatpush1.bf16.msra.mxu0 %v15813_v55  ;;  %13746 = vmatpush3.bf16.msra.mxu1 %v15863_v36 }
0x2500   :  { %13733 = vmatprep.subr.bf16.mxu0 %v15816_v40  ;;  %13747 = vmatprep.subr.bf16.mxu1 %v14605_v2 }
0x2501   :  { %8134 = vmatprep.mubr.f32.mxu0 %v14604_v1  ;;  %12307 = vmatprep.mubr.msk.f32.mxu1 %vm14606_vm0, %v14604_v1 }
0x2503   :  { %13735 = vmatpush1.bf16.msra.mxu0 %v15819_v42  ;;  %13749 = vmatpush3.bf16.msra.mxu1 %v15869_v23 }
0x2504   :  { %13737 = vmatprep.subr.bf16.mxu0 %v15823_v14  ;;  %13750 = vmatprep.subr.bf16.mxu1 %v14605_v2 }
0x2507   :  { %13739 = vmatpush1.bf16.msra.mxu0 %v15826_v15  ;;  %13752 = vmatpush3.bf16.msra.mxu1 %v15876_v22 }
0x2508   :  { %13741 = vmatprep.subr.bf16.mxu0 %v15828_v21  ;;  %13753 = vmatprep.subr.bf16.mxu1 %v14605_v2 }
0x250b   :  { %13743 = vmatpush1.bf16.msra.mxu0 %v15832_v10  ;;  %13755 = vmatpush3.bf16.msra.mxu1 %v15883_v19 }
0x250c   :  { %13757 = vmatprep.subr.bf16.mxu0 %v15811_v61  ;;  %13772 = vmatprep.subr.bf16.mxu1 %v14605_v2 }
0x25d1   :  { %v7958_v16 = vpop.f32.mrb[86].mxu0  ;;  %v8029_v27 = vpop.f32.mrb[78].mxu1 }
0x25d2   :  { %v7960_v25 = vpop.f32.mrb[87].mxu0  ;;  %v12290_v6 = vpop.f32.mrb[79].mxu1  ;;  %v8051_v30 = vadd.f32 %v15927_v24, %v8029_v27 }
0x25d3   :  { %v8035_v38 = vcombine.low %v7958_v16, %v7960_v25 }
0x25d5   :  { %v8042_v52 = vrot.slane %v8035_v38, %v14812_v45 }
0x25d7   :  { %v8044_v35 = vadd.f32 %v8042_v52, %v7888_v46  ;;  %v8244_v52 = vld [vmem:[#allocation3 + $0x1e] sm:$0x3f] }
0x25d9   :  { %v10974_v33 = vmul.f32 -1.442695, %v8044_v35 }
0x25db   :  { %14372 = vpow2.f32 %v10974_v33 }
0x25e5   :  { %v14373_v32 = vpop.eup %14372 }
0x25e6   :  { %v8048_v47 = vadd.f32 1.0, %v14373_v32 }
0x25e8   :  { %14374 = vrcp.f32 %v8048_v47 }
0x25f2   :  { %v14375_v11 = vpop.eup %14374 }
0x25f3   :  { %v8052_v34 = vmul.f32 %v14375_v11, %v8051_v30  ;;  %v8059_v13 = vrot.slane %v14375_v11, 2  ;;  %v8410_v11 = vrot.slane %v8244_v52, 4 }
0x25f5   :  { %v8056_v39 = vadd.f32 %v8054_v56, %v8052_v34  ;;  %v8061_v60 = vsub.f32 1.0, %v8059_v13  ;;  %v8063_v4 = vmul.f32 %v8059_v13, %v7886_v28 }
0x25f7   :  { %14376 = vtanh.f32 %v8056_v39 }
0x2601   :  { %v14377_v44 = vpop.eup %14376 }
0x2602   :  { %v8062_v54 = vmul.f32 %v14377_v44, %v8061_v60 }
0x2604   :  { %v8064_v57 = vadd.f32 %v8063_v4, %v8062_v54 }
0x2606   :  { %8065 = vst.msk [vmem:[#allocation2 + $0x6] sm:$0x3] %vm331_vm2, %v8064_v57  ;;  %10975 = vmatmul.mubr.msk.f32.vlgmr.msra.gmra.mrb[88].mxu0 %vm154_vm1, %v8064_v57  ;;  %12308 = vmatmul.mubr.msk.f32.vlgmr.msra.gmra.mrb[80].mxu1 %vm154_vm1, %v8064_v57 }
0x2607   :  { %13759 = vmatpush1.bf16.msra.mxu0 %v15813_v55  ;;  %13774 = vmatpush3.bf16.msra.mxu1 %v15863_v36 }
0x2608   :  { %13761 = vmatprep.subr.bf16.mxu0 %v15816_v40  ;;  %13775 = vmatprep.subr.bf16.mxu1 %v14605_v2 }
0x2609   :  { %8312 = vmatprep.mubr.f32.mxu0 %v14604_v1  ;;  %12326 = vmatprep.mubr.msk.f32.mxu1 %vm14606_vm0, %v14604_v1 }
0x260b   :  { %13763 = vmatpush1.bf16.msra.mxu0 %v15819_v42  ;;  %13777 = vmatpush3.bf16.msra.mxu1 %v15869_v23 }
0x260c   :  { %13765 = vmatprep.subr.bf16.mxu0 %v15823_v14  ;;  %13778 = vmatprep.subr.bf16.mxu1 %v14605_v2 }
0x260f   :  { %13767 = vmatpush1.bf16.msra.mxu0 %v15826_v15  ;;  %13780 = vmatpush3.bf16.msra.mxu1 %v15876_v22 }
0x2610   :  { %13769 = vmatprep.subr.bf16.mxu0 %v15828_v21  ;;  %13781 = vmatprep.subr.bf16.mxu1 %v14605_v2 }
0x2613   :  { %13771 = vmatpush1.bf16.msra.mxu0 %v15832_v10  ;;  %13783 = vmatpush3.bf16.msra.mxu1 %v15883_v19 }
0x2614   :  { %13785 = vmatprep.subr.bf16.mxu0 %v15811_v61  ;;  %13800 = vmatprep.subr.bf16.mxu1 %v14605_v2 }
0x26d9   :  { %v8136_v0 = vpop.f32.mrb[88].mxu0  ;;  %v8207_v63 = vpop.f32.mrb[80].mxu1 }
0x26da   :  { %v8138_v17 = vpop.f32.mrb[89].mxu0  ;;  %v12309_v43 = vpop.f32.mrb[81].mxu1  ;;  %v8229_v48 = vadd.f32 %v15927_v24, %v8207_v63 }
0x26db   :  { %v8213_v20 = vcombine.low %v8136_v0, %v8138_v17 }
0x26dd   :  { %v8220_v3 = vrot.slane %v8213_v20, %v14812_v45 }
0x26df   :  { %v8222_v37 = vadd.f32 %v8220_v3, %v8066_v53  ;;  %v8781_v53 = vld [vmem:[#allocation2 + $0x6] sm:$0x3] }
0x26e1   :  { %v10977_v62 = vmul.f32 -1.442695, %v8222_v37 }
0x26e3   :  { %14378 = vpow2.f32 %v10977_v62  ;;  %v8779_v62 = vld [vmem:[#allocation2 + $0x2] sm:$0x3] }
0x26ed   :  { %v14379_v58 = vpop.eup %14378 }
0x26ee   :  { %v8226_v50 = vadd.f32 1.0, %v14379_v58  ;;  %v8780_v58 = vld [vmem:[#allocation2 + $0x4] sm:$0x3] }
0x26f0   :  { %14380 = vrcp.f32 %v8226_v50  ;;  %v8838_v50 = vcombine.low %v8780_v58, %v8781_v53  ;;  %v9129_v53 = vld [vmem:[#allocation10 + $0x408] sm:$0xff] }
0x26f1   :  { %v9133_v58 = vld [vmem:[#allocation10 + $0x428] sm:$0xff] }
0x26fa   :  { %v14381_v31 = vpop.eup %14380 }
0x26fb   :  { %v8230_v29 = vmul.f32 %v14381_v31, %v8229_v48  ;;  %v8237_v9 = vrot.slane %v14381_v31, 2  ;;  %v8778_v48 = vld [vmem:[#allocation2] sm:$0x3] }
0x26fc   :  { %v8837_v31 = vcombine.low %v8778_v48, %v8779_v62  ;;  %v9132_v48 = vld [vmem:[#allocation10 + $0x420] sm:$0xff] }
0x26fd   :  { %v8234_v51 = vadd.f32 %v8232_v49, %v8230_v29  ;;  %v8239_v12 = vsub.f32 1.0, %v8237_v9  ;;  %v8241_v41 = vmul.f32 %v8237_v9, %v8064_v57  ;;  %v8787_v49 = vld [vmem:[#allocation7 + $0x300] sm:$0xff] }
0x26ff   :  { %14382 = vtanh.f32 %v8234_v51  ;;  %v8790_v51 = vld [vmem:[#allocation7 + $0x318] sm:$0xff] }
0x2709   :  { %v14383_v18 = vpop.eup %14382 }
0x270a   :  { %v8240_v7 = vmul.f32 %v14383_v18, %v8239_v12  ;;  %v8852_v12 = vrot.slane %v8838_v50, %v14812_v45  ;;  %v8794_v18 = vld [vmem:[#allocation7 + $0x338] sm:$0xff]  ;;  %v9136_v50 = vld [vmem:[#allocation10 + $0x440] sm:$0xff] }
0x270c   :  { %v8242_v26 = vadd.f32 %v8241_v41, %v8240_v7  ;;  %v8797_v7 = vld [vmem:[#allocation7 + $0x350] sm:$0xff] }
0x270e   :  { %8243 = vst.msk [vmem:[#allocation2 + $0x8] sm:$0x3] %vm331_vm2, %v8242_v26  ;;  %10978 = vmatmul.mubr.msk.f32.vlgmr.msra.gmra.mrb[90].mxu0 %vm154_vm1, %v8242_v26  ;;  %12327 = vmatmul.mubr.msk.f32.vlgmr.msra.gmra.mrb[82].mxu1 %vm154_vm1, %v8242_v26 }
0x270f   :  { %13787 = vmatpush1.bf16.msra.mxu0 %v15813_v55  ;;  %13802 = vmatpush3.bf16.msra.mxu1 %v15863_v36 }
0x2710   :  { %13789 = vmatprep.subr.bf16.mxu0 %v15816_v40  ;;  %13803 = vmatprep.subr.bf16.mxu1 %v14605_v2 }
0x2711   :  { %8490 = vmatprep.mubr.f32.mxu0 %v14604_v1  ;;  %12345 = vmatprep.mubr.msk.f32.mxu1 %vm14606_vm0, %v14604_v1 }
0x2713   :  { %13791 = vmatpush1.bf16.msra.mxu0 %v15819_v42  ;;  %13805 = vmatpush3.bf16.msra.mxu1 %v15869_v23 }
0x2714   :  { %13793 = vmatprep.subr.bf16.mxu0 %v15823_v14  ;;  %13806 = vmatprep.subr.bf16.mxu1 %v14605_v2 }
0x2717   :  { %13795 = vmatpush1.bf16.msra.mxu0 %v15826_v15  ;;  %13808 = vmatpush3.bf16.msra.mxu1 %v15876_v22 }
0x2718   :  { %13797 = vmatprep.subr.bf16.mxu0 %v15828_v21  ;;  %13809 = vmatprep.subr.bf16.mxu1 %v14605_v2 }
0x271b   :  { %13799 = vmatpush1.bf16.msra.mxu0 %v15832_v10  ;;  %13811 = vmatpush3.bf16.msra.mxu1 %v15883_v19 }
0x271c   :  { %13813 = vmatprep.subr.bf16.mxu0 %v15811_v61  ;;  %13828 = vmatprep.subr.bf16.mxu1 %v14605_v2 }
0x27e1   :  { %v8314_v28 = vpop.f32.mrb[90].mxu0  ;;  %v8385_v16 = vpop.f32.mrb[82].mxu1 }
0x27e2   :  { %v8316_v27 = vpop.f32.mrb[91].mxu0  ;;  %v12328_v25 = vpop.f32.mrb[83].mxu1  ;;  %v8407_v47 = vadd.f32 %v15927_v24, %v8385_v16  ;;  %v8845_v16 = vrot.slane %v8837_v31, %v14812_v45  ;;  %v16098_v31 = vpack.c.bf16 %v9136_v50, %v9133_v58  ;;  %v9128_v58 = vld [vmem:[#allocation10 + $0x400] sm:$0xff] }
0x27e3   :  { %v8391_v6 = vcombine.low %v8314_v28, %v8316_v27  ;;  %v13842_v28 = vpack.c.bf16 %v8790_v51, %v8787_v49  ;;  %v13844_v25 = vpack.c.bf16 %v8797_v7, %v8794_v18  ;;  %v9139_v49 = vld [vmem:[#allocation10 + $0x458] sm:$0xff]  ;;  %v9142_v51 = vld [vmem:[#allocation10 + $0x470] sm:$0xff]  ;;  %v9141_v7 = vld [vmem:[#allocation10 + $0x468] sm:$0xff] }
0x27e4   :  { %v9138_v18 = vld [vmem:[#allocation10 + $0x450] sm:$0xff] }
0x27e5   :  { %v8398_v38 = vrot.slane %v8391_v6, %v14812_v45  ;;  %v8793_v6 = vld [vmem:[#allocation7 + $0x330] sm:$0xff] }
0x27e7   :  { %v8400_v46 = vadd.f32 %v8398_v38, %v8244_v52  ;;  %v8796_v38 = vld [vmem:[#allocation7 + $0x348] sm:$0xff]  ;;  %v8853_v52 = vcombine.low %v8845_v16, %v8852_v12  ;;  %v16103_v12 = vpack.c.bf16 %v9142_v51, %v9139_v49  ;;  %v9140_v51 = vld [vmem:[#allocation10 + $0x460] sm:$0xff] }
0x27e9   :  { %v10980_v35 = vmul.f32 -1.442695, %v8400_v46  ;;  %v8800_v46 = vld [vmem:[#allocation7 + $0x368] sm:$0xff] }
0x27eb   :  { %14384 = vpow2.f32 %v10980_v35  ;;  %v8803_v35 = vld [vmem:[#allocation7 + $0x380] sm:$0xff] }
0x27f5   :  { %v14385_v33 = vpop.eup %14384 }
0x27f6   :  { %v8404_v32 = vadd.f32 1.0, %v14385_v33  ;;  %v13846_v33 = vpack.c.bf16 %v8796_v38, %v8793_v6 }
0x27f8   :  { %14386 = vrcp.f32 %v8404_v32  ;;  %v13848_v32 = vpack.c.bf16 %v8803_v35, %v8800_v46 }
0x2802   :  { %v14387_v30 = vpop.eup %14386 }
0x2803   :  { %v8408_v61 = vmul.f32 %v14387_v30, %v8407_v47  ;;  %v8415_v56 = vrot.slane %v14387_v30, 2  ;;  %v8799_v47 = vld [vmem:[#allocation7 + $0x360] sm:$0xff]  ;;  %v8802_v30 = vld [vmem:[#allocation7 + $0x378] sm:$0xff] }
0x2805   :  { %v8412_v34 = vadd.f32 %v8410_v11, %v8408_v61  ;;  %v8417_v39 = vsub.f32 1.0, %v8415_v56  ;;  %v8419_v44 = vmul.f32 %v8415_v56, %v8242_v26  ;;  %v8806_v61 = vld [vmem:[#allocation7 + $0x398] sm:$0xff]  ;;  %v8809_v11 = vld [vmem:[#allocation7 + $0x3b0] sm:$0xff] }
0x2806   :  { %v13852_v56 = vpack.c.bf16 %v8809_v11, %v8806_v61 }
0x2807   :  { %14388 = vtanh.f32 %v8412_v34  ;;  %v13850_v34 = vpack.c.bf16 %v8802_v30, %v8799_v47 }
0x2811   :  { %v14389_v13 = vpop.eup %14388 }
0x2812   :  { %v8418_v60 = vmul.f32 %v14389_v13, %v8417_v39  ;;  %v8805_v39 = vld [vmem:[#allocation7 + $0x390] sm:$0xff]  ;;  %v8808_v13 = vld [vmem:[#allocation7 + $0x3a8] sm:$0xff] }
0x2814   :  { %v8420_v54 = vadd.f32 %v8419_v44, %v8418_v60  ;;  %v13854_v60 = vpack.c.bf16 %v8808_v13, %v8805_v39  ;;  %v8789_v44 = vld [vmem:[#allocation7 + $0x310] sm:$0xff] }
0x2816   :  { %8421 = vst.msk [vmem:[#allocation2 + $0xa] sm:$0x3] %vm331_vm2, %v8420_v54  ;;  %10981 = vmatmul.mubr.msk.f32.vlgmr.msra.gmra.mrb[92].mxu0 %vm154_vm1, %v8420_v54  ;;  %12346 = vmatmul.mubr.msk.f32.vlgmr.msra.gmra.mrb[84].mxu1 %vm154_vm1, %v8420_v54 }
0x2817   :  { %13815 = vmatpush1.bf16.msra.mxu0 %v15813_v55  ;;  %13830 = vmatpush3.bf16.msra.mxu1 %v15863_v36  ;;  %v8788_v55 = vld [vmem:[#allocation7 + $0x308] sm:$0xff] }
0x2818   :  { %13817 = vmatprep.subr.bf16.mxu0 %v15816_v40  ;;  %13831 = vmatprep.subr.bf16.mxu1 %v14605_v2  ;;  %v8791_v40 = vld [vmem:[#allocation7 + $0x320] sm:$0xff] }
0x2819   :  { %8668 = vmatprep.mubr.f32.mxu0 %v14604_v1  ;;  %12364 = vmatprep.mubr.msk.f32.mxu1 %vm14606_vm0, %v14604_v1 }
0x281b   :  { %13819 = vmatpush1.bf16.msra.mxu0 %v15819_v42  ;;  %13833 = vmatpush3.bf16.msra.mxu1 %v15869_v23  ;;  %v13840_v42 = vpack.c.bf16 %v8791_v40, %v8788_v55  ;;  %v8795_v40 = vld [vmem:[#allocation7 + $0x340] sm:$0xff] }
0x281c   :  { %13821 = vmatprep.subr.bf16.mxu0 %v15823_v14  ;;  %13834 = vmatprep.subr.bf16.mxu1 %v14605_v2 }
0x281f   :  { %13823 = vmatpush1.bf16.msra.mxu0 %v15826_v15  ;;  %13836 = vmatpush3.bf16.msra.mxu1 %v15876_v22  ;;  %v8422_v22 = vld [vmem:[#allocation3 + $0x24] sm:$0x3f] }
0x2820   :  { %13825 = vmatprep.subr.bf16.mxu0 %v15828_v21  ;;  %13837 = vmatprep.subr.bf16.mxu1 %v14605_v2  ;;  %v8588_v20 = vrot.slane %v8422_v22, 4 }
0x2823   :  { %13827 = vmatpush1.bf16.msra.mxu0 %v15832_v10  ;;  %13839 = vmatpush3.bf16.msra.mxu1 %v15883_v19 }
0x2824   :  { %13841 = vmatprep.subr.bf16.mxu0 %v13840_v42  ;;  %v8798_v42 = vld [vmem:[#allocation7 + $0x358] sm:$0xff] }
0x28e9   :  { %v8492_v36 = vpop.f32.mrb[92].mxu0  ;;  %v8563_v14 = vpop.f32.mrb[84].mxu1 }
0x28ea   :  { %v8494_v23 = vpop.f32.mrb[93].mxu0  ;;  %v12347_v4 = vpop.f32.mrb[85].mxu1  ;;  %v8585_v10 = vadd.f32 %v15927_v24, %v8563_v14  ;;  %v13860_v14 = vpack.c.bf16 %v8798_v42, %v8795_v40 }
0x28eb   :  { %v8569_v57 = vcombine.low %v8492_v36, %v8494_v23  ;;  %v8801_v36 = vld [vmem:[#allocation7 + $0x370] sm:$0xff]  ;;  %v8804_v23 = vld [vmem:[#allocation7 + $0x388] sm:$0xff]  ;;  %v9121_v4 = vld [vmem:[#allocation10 + $0x3c8] sm:$0xff] }
0x28ed   :  { %v8576_v15 = vrot.slane %v8569_v57, %v14812_v45  ;;  %v9124_v57 = vld [vmem:[#allocation10 + $0x3e0] sm:$0xff] }
0x28ef   :  { %v8578_v0 = vadd.f32 %v8576_v15, %v8422_v22  ;;  %v16086_v15 = vpack.c.bf16 %v9124_v57, %v9121_v4  ;;  %v9120_v22 = vld [vmem:[#allocation10 + $0x3c0] sm:$0xff]  ;;  %v8783_v57 = vld [vmem:[#allocation2 + $0xa] sm:$0x3] }
0x28f1   :  { %v10983_v21 = vmul.f32 -1.442695, %v8578_v0  ;;  %v9123_v0 = vld [vmem:[#allocation10 + $0x3d8] sm:$0xff] }
0x28f3   :  { %14390 = vpow2.f32 %v10983_v21  ;;  %v13864_v21 = vpack.c.bf16 %v8804_v23, %v8801_v36 }
0x28fd   :  { %v14391_v63 = vpop.eup %14390 }
0x28fe   :  { %v8582_v17 = vadd.f32 1.0, %v14391_v63  ;;  %v16088_v63 = vpack.c.bf16 %v9123_v0, %v9120_v22  ;;  %v8782_v22 = vld [vmem:[#allocation2 + $0x8] sm:$0x3] }
0x28ff   :  { %v8854_v0 = vcombine.low %v8782_v22, %v8783_v57 }
0x2900   :  { %14392 = vrcp.f32 %v8582_v17  ;;  %v8807_v17 = vld [vmem:[#allocation7 + $0x3a0] sm:$0xff] }
0x290a   :  { %v14393_v19 = vpop.eup %14392 }
0x290b   :  { %v8586_v43 = vmul.f32 %v14393_v19, %v8585_v10  ;;  %v8593_v37 = vrot.slane %v14393_v19, 2  ;;  %v9127_v10 = vld [vmem:[#allocation10 + $0x3f8] sm:$0xff]  ;;  %v9130_v19 = vld [vmem:[#allocation10 + $0x410] sm:$0xff] }
0x290d   :  { %v8590_v3 = vadd.f32 %v8588_v20, %v8586_v43  ;;  %v8595_v29 = vsub.f32 1.0, %v8593_v37  ;;  %v8597_v26 = vmul.f32 %v8593_v37, %v8420_v54  ;;  %v8792_v54 = vld [vmem:[#allocation7 + $0x328] sm:$0xff]  ;;  %v8810_v43 = vld [vmem:[#allocation7 + $0x3b8] sm:$0xff]  ;;  %v16091_v20 = vpack.c.bf16 %v9130_v19, %v9127_v10  ;;  %v9122_v10 = vld [vmem:[#allocation10 + $0x3d0] sm:$0xff] }
0x290e   :  { %v13856_v55 = vpack.c.bf16 %v8792_v54, %v8789_v44  ;;  %v13868_v62 = vpack.c.bf16 %v8810_v43, %v8807_v17  ;;  %v9125_v19 = vld [vmem:[#allocation10 + $0x3e8] sm:$0xff]  ;;  %v8862_v43 = vrot.slane %v8854_v0, %v14812_v45 }
0x290f   :  { %14394 = vtanh.f32 %v8590_v3  ;;  %v9126_v3 = vld [vmem:[#allocation10 + $0x3f0] sm:$0xff] }
0x2910   :  { %13857 = vmatprep.subr.bf16.mxu1 %v13856_v55  ;;  %v16094_v37 = vpack.c.bf16 %v9129_v53, %v9126_v3  ;;  %v16138_v53 = vpack.c.bf16 %v9125_v19, %v9122_v10 }
0x2919   :  { %v14395_v9 = vpop.eup %14394 }
0x291a   :  { %v8596_v41 = vmul.f32 %v14395_v9, %v8595_v29  ;;  %v9135_v29 = vld [vmem:[#allocation10 + $0x438] sm:$0xff] }
0x291b   :  { %v16101_v9 = vpack.c.bf16 %v9135_v29, %v9132_v48  ;;  %v9134_v48 = vld [vmem:[#allocation10 + $0x430] sm:$0xff]  ;;  %v9137_v29 = vld [vmem:[#allocation10 + $0x448] sm:$0xff] }
0x291c   :  { %v16074_v27 = vadd.f32 %v8597_v26, %v8596_v41  ;;  %v16107_v41 = vpack.c.bf16 %v9141_v7, %v9138_v18  ;;  %v16151_v49 = vpack.c.bf16 %v9137_v29, %v9134_v48  ;;  %v9143_v18 = vld [vmem:[#allocation10 + $0x478] sm:$0xff] }
0x291d   :  { %v16158_v7 = vpack.c.bf16 %v9143_v18, %v9140_v51 }
0x291e   :  { %8599 = vst.msk [vmem:[#allocation2 + $0xc] sm:$0x3] %vm331_vm2, %v16074_v27  ;;  %10984 = vmatmul.mubr.msk.f32.vlgmr.msra.gmra.mrb[94].mxu0 %vm154_vm1, %v16074_v27  ;;  %12365 = vmatmul.mubr.msk.f32.vlgmr.msra.gmra.mrb[86].mxu1 %vm154_vm1, %v16074_v27 }
0x291f   :  { %13843 = vmatpush1.bf16.msra.mxu0 %v13842_v28  ;;  %12383 = vmatprep.mubr.msk.f32.mxu1 %vm154_vm1, %v8853_v52 }
0x2920   :  { %13845 = vmatprep.subr.bf16.mxu0 %v13844_v25  ;;  %8939 = vmatprep.mubr.f32.mxu0 %v14604_v1 }
0x2921   :  { %13859 = vmatpush3.bf16.msra.mxu1 %v13856_v55 }
0x2922   :  { %13861 = vmatprep.subr.bf16.mxu1 %v13860_v14 }
0x2923   :  { %13847 = vmatpush1.bf16.msra.mxu0 %v13846_v33  ;;  %v16113_v33 = vld [vmem:[#allocation9 + $0xc] sm:$0x7] }
0x2924   :  { %13849 = vmatprep.subr.bf16.mxu0 %v13848_v32  ;;  %v16117_v32 = vrot.slane %v16113_v33, %v15005_v5  ;;  %v16121_v47 = vrot.slane %v16113_v33, %v15010_v8 }
0x2925   :  { %13863 = vmatpush3.bf16.msra.mxu1 %v13860_v14 }
0x2926   :  { %13865 = vmatprep.subr.bf16.mxu1 %v13864_v21 }
0x2927   :  { %13851 = vmatpush1.bf16.msra.mxu0 %v13850_v34 }
0x2928   :  { %13853 = vmatprep.subr.bf16.mxu0 %v13852_v56 }
0x2929   :  { %13867 = vmatpush3.bf16.msra.mxu1 %v13864_v21  ;;  %v8784_v21 = vld [vmem:[#allocation2 + $0xc] sm:$0x3] }
0x292a   :  { %13869 = vmatprep.subr.bf16.mxu1 %v13868_v62 }
0x292b   :  { %13855 = vmatpush1.bf16.msra.mxu0 %v13854_v60 }
0x292c   :  { %13873 = vmatprep.subr.bf16.mxu0 %v16086_v15 }
0x292d   :  { %13871 = vmatpush3.bf16.msra.mxu1 %v13868_v62 }
0x292e   :  { %10987 = vmatmul.mubr.msk.f32.vlgmr.msra.gmra.mrb[96].mxu0 %vm154_vm1, %v8853_v52  ;;  %13888 = vmatprep.subr.bf16.mxu1 %v14605_v2  ;;  %v8600_v52 = vld [vmem:[#allocation3 + $0x2a] sm:$0x3f] }
0x292f   :  { %8945 = vmatprep.mubr.f32.mxu0 %v14604_v1  ;;  %13875 = vmatpush1.bf16.msra.mxu0 %v16088_v63  ;;  %v8766_v54 = vrot.slane %v8600_v52, 4 }
0x2930   :  { %13877 = vmatprep.subr.bf16.mxu0 %v16091_v20 }
0x2933   :  { %13879 = vmatpush1.bf16.msra.mxu0 %v16094_v37 }
0x2934   :  { %13881 = vmatprep.subr.bf16.mxu0 %v16098_v31 }
0x2937   :  { %13883 = vmatpush1.bf16.msra.mxu0 %v16101_v9 }
0x2938   :  { %13885 = vmatprep.subr.bf16.mxu0 %v16103_v12 }
0x293b   :  { %13887 = vmatpush1.bf16.msra.mxu0 %v16107_v41 }
0x293c   :  { %13901 = vmatprep.subr.bf16.mxu0 %v16086_v15 }
0x29f1   :  { %v8670_v26 = vpop.f32.mrb[94].mxu0  ;;  %v8741_v28 = vpop.f32.mrb[86].mxu1 }
0x29f2   :  { %v8672_v16 = vpop.f32.mrb[95].mxu0  ;;  %v12366_v25 = vpop.f32.mrb[87].mxu1  ;;  %v8763_v8 = vadd.f32 %v15927_v24, %v8741_v28 }
0x29f3   :  { %v8747_v6 = vcombine.low %v8670_v26, %v8672_v16  ;;  %v8825_v26 = vrot.slane %v16113_v33, %v15078_v59 }
0x29f5   :  { %v8754_v38 = vrot.slane %v8747_v6, %v14812_v45 }
0x29f7   :  { %v8756_v46 = vadd.f32 %v8754_v38, %v8600_v52 }
0x29f9   :  { %v10986_v35 = vmul.f32 -1.442695, %v8756_v46 }
0x29fb   :  { %14396 = vpow2.f32 %v10986_v35 }
0x2a01   :  { %v8941_v30 = vpop.f32.mrb[96].mxu0 }
0x2a02   :  { %v16124_v61 = vadd.f32 %v8941_v30, %v16117_v32  ;;  %v8943_v11 = vpop.f32.mrb[97].mxu0 }
0x2a03   :  { %v16127_v34 = vadd.f32 %v8943_v11, %v16121_v47 }
0x2a05   :  { %v14397_v56 = vpop.eup %14396  ;;  %v9033_v39 = vcombine.low %v16124_v61, %v16127_v34  ;;  %v9034_v5 = vcombine.high %v16124_v61, %v16127_v34 }
0x2a06   :  { %v8760_v13 = vadd.f32 1.0, %v14397_v56 }
0x2a07   :  { %v9042_v30 = vrot.slane %v9033_v39, %v14812_v45  ;;  %v9049_v39 = vrot.slane %v9034_v5, %v14812_v45 }
0x2a08   :  { %14398 = vrcp.f32 %v8760_v13 }
0x2a12   :  { %v14399_v60 = vpop.eup %14398 }
0x2a13   :  { %v8764_v44 = vmul.f32 %v14399_v60, %v8763_v8  ;;  %v8771_v40 = vrot.slane %v14399_v60, 2 }
0x2a15   :  { %v8768_v55 = vadd.f32 %v8766_v54, %v8764_v44  ;;  %v8773_v42 = vsub.f32 1.0, %v8771_v40  ;;  %v8775_v23 = vmul.f32 %v8771_v40, %v16074_v27  ;;  %v9131_v27 = vld [vmem:[#allocation10 + $0x418] sm:$0xff] }
0x2a16   :  { %v16144_v50 = vpack.c.bf16 %v9131_v27, %v9128_v58 }
0x2a17   :  { %14400 = vtanh.f32 %v8768_v55 }
0x2a21   :  { %v14401_v36 = vpop.eup %14400 }
0x2a22   :  { %v8774_v14 = vmul.f32 %v14401_v36, %v8773_v42 }
0x2a24   :  { %v8776_v4 = vadd.f32 %v8775_v23, %v8774_v14 }
0x2a26   :  { %8777 = vst.msk [vmem:[#allocation2 + $0xe] sm:$0x3] %vm331_vm2, %v8776_v4 }
0x2a2d   :  { %v8785_v17 = vld [vmem:[#allocation2 + $0xe] sm:$0x3] }
0x2a2e   :  { %v8855_v24 = vcombine.low %v8784_v21, %v8785_v17 }
0x2a30   :  { %v8869_v3 = vrot.slane %v8855_v24, %v14812_v45 }
0x2a32   :  { %v8870_v62 = vcombine.low %v8862_v43, %v8869_v3  ;;  %v16202_v43 = vld [vmem:[%s16384_s4 + $0x5] ss:$0 sm:$0xff] }
0x2a34   :  { %10988 = vmatmul.mubr.msk.f32.gmra.mrb[98].mxu0 %vm154_vm1, %v8870_v62  ;;  %12384 = vmatmul.mubr.msk.f32.vlgmr.msra.gmra.mrb[88].mxu1 %vm154_vm1, %v8870_v62 }
0x2a35   :  { %9217 = vmatprep.mubr.f32.mxu0 %v14604_v1  ;;  %13890 = vmatpush3.bf16.msra.mxu1 %v16138_v53 }
0x2a36   :  { %13891 = vmatprep.subr.bf16.mxu1 %v14605_v2  ;;  %12402 = vmatprep.mubr.msk.f32.mxu1 %vm14606_vm0, %v14604_v1 }
0x2a38   :  { %9218 = vmatmul.mubr.f32.vlgmr.msra.gmra.mrb[100].mxu0 %v14604_v1 }
0x2a39   :  { %13893 = vmatpush3.bf16.msra.mxu1 %v16144_v50  ;;  %13903 = vmatpush1.bf16.msra.mxu0 %v16088_v63 }
0x2a3a   :  { %13894 = vmatprep.subr.bf16.mxu1 %v14605_v2  ;;  %13905 = vmatprep.subr.bf16.mxu0 %v16091_v20 }
0x2a3b   :  { %9395 = vmatprep.mubr.f32.mxu0 %v14604_v1 }
0x2a3d   :  { %13896 = vmatpush3.bf16.msra.mxu1 %v16151_v49  ;;  %13907 = vmatpush1.bf16.msra.mxu0 %v16094_v37 }
0x2a3e   :  { %13897 = vmatprep.subr.bf16.mxu1 %v14605_v2  ;;  %13909 = vmatprep.subr.bf16.mxu0 %v16098_v31 }
0x2a41   :  { %13899 = vmatpush3.bf16.msra.mxu1 %v16158_v7  ;;  %13911 = vmatpush1.bf16.msra.mxu0 %v16101_v9 }
0x2a42   :  { %13916 = vmatprep.subr.bf16.mxu1 %v14605_v2  ;;  %13913 = vmatprep.subr.bf16.mxu0 %v16103_v12 }
0x2a44   :  { %12403 = vmatmul.mubr.f32.vlgmr.msra.gmra.mrb[90].mxu1 %v14604_v1 }
0x2a45   :  { %13918 = vmatpush3.bf16.msra.mxu1 %v16138_v53  ;;  %13915 = vmatpush1.bf16.msra.mxu0 %v16107_v41 }
0x2a46   :  { %13919 = vmatprep.subr.bf16.mxu1 %v14605_v2  ;;  %12421 = vmatprep.mubr.msk.f32.mxu1 %vm14606_vm0, %v14604_v1 }
0x2a47   :  { %13929 = vmatprep.subr.bf16.mxu0 %v16086_v15 }
0x2a49   :  { %13921 = vmatpush3.bf16.msra.mxu1 %v16144_v50 }
0x2a4a   :  { %13922 = vmatprep.subr.bf16.mxu1 %v14605_v2 }
0x2a4d   :  { %13924 = vmatpush3.bf16.msra.mxu1 %v16151_v49 }
0x2a4e   :  { %13925 = vmatprep.subr.bf16.mxu1 %v14605_v2 }
0x2a51   :  { %13927 = vmatpush3.bf16.msra.mxu1 %v16158_v7 }
0x2a52   :  { %13944 = vmatprep.subr.bf16.mxu1 %v14605_v2 }
0x2b07   :  { %v8947_v28 = vpop.f32.mrb[98].mxu0  ;;  %v12385_v16 = vpop.f32.mrb[88].mxu1 }
0x2b08   :  { %v8948_v25 = vadd.f32 %v8947_v28, %v16117_v32  ;;  %v9024_v6 = vadd.f32 %v12385_v16, %v8825_v26  ;;  %v8949_v38 = vpop.f32.mrb[99].mxu0  ;;  %v9018_v52 = vpop.f32.mrb[89].mxu1 }
0x2b09   :  { %v8950_v46 = vadd.f32 %v8949_v38, %v16121_v47  ;;  %v9019_v35 = vadd.f32 %v9018_v52, %v8825_v26 }
0x2b0a   :  { %v9070_v11 = vcombine.high %v9024_v6, %v9024_v6  ;;  %v9091_v32 = vrot.slane %v9024_v6, %v14812_v45 }
0x2b0b   :  { %v9068_v56 = vcombine.low %v8948_v25, %v8950_v46  ;;  %v9069_v13 = vcombine.high %v8948_v25, %v8950_v46  ;;  %v9035_v8 = vcombine.high %v9019_v35, %v9019_v35  ;;  %v9056_v59 = vrot.slane %v9019_v35, %v14812_v45  ;;  %v9219_v33 = vpop.f32.mrb[100].mxu0 }
0x2b0c   :  { %v9098_v60 = vrot.slane %v9070_v11, %v14812_v45  ;;  %v9221_v44 = vpop.f32.mrb[101].mxu0 }
0x2b0d   :  { %v9077_v47 = vrot.slane %v9068_v56, %v14812_v45  ;;  %v9084_v54 = vrot.slane %v9069_v13, %v14812_v45  ;;  %v9063_v55 = vrot.slane %v9035_v8, %v14812_v45  ;;  %v9064_v40 = vcombine.low %v9042_v30, %v9056_v59 }
0x2b0e   :  { %v9065_v42 = vcombine.high %v9042_v30, %v9056_v59  ;;  %v9296_v36 = vcombine.low %v9219_v33, %v9221_v44 }
0x2b0f   :  { %v9099_v14 = vcombine.low %v9077_v47, %v9091_v32  ;;  %v9100_v23 = vcombine.high %v9077_v47, %v9091_v32  ;;  %v9101_v4 = vcombine.low %v9084_v54, %v9098_v60  ;;  %v9102_v57 = vcombine.high %v9084_v54, %v9098_v60  ;;  %9111 = vst [vmem:[#allocation3] sm:$0x3f] %v9064_v40 }
0x2b10   :  { %v9066_v22 = vcombine.low %v9049_v39, %v9063_v55  ;;  %v9067_v0 = vcombine.high %v9049_v39, %v9063_v55  ;;  %9112 = vst [vmem:[#allocation3 + $0x6] sm:$0x3f] %v9065_v42  ;;  %v9303_v21 = vrot.slane %v9296_v36, %v14812_v45 }
0x2b11   :  { %9115 = vst [vmem:[#allocation3 + $0x18] sm:$0x3f] %v9099_v14  ;;  %9116 = vst [vmem:[#allocation3 + $0x1e] sm:$0x3f] %v9100_v23 }
0x2b12   :  { %9117 = vst [vmem:[#allocation3 + $0x24] sm:$0x3f] %v9101_v4  ;;  %9118 = vst [vmem:[#allocation3 + $0x2a] sm:$0x3f] %v9102_v57 }
0x2b13   :  { %9113 = vst [vmem:[#allocation3 + $0xc] sm:$0x3f] %v9066_v22  ;;  %9114 = vst [vmem:[#allocation3 + $0x12] sm:$0x3f] %v9067_v0 }
0x2b16   :  { %v9152_v61 = vld [vmem:[#allocation3] sm:$0x3f] }
0x2b17   :  { %v9305_v34 = vadd.f32 %v9303_v21, %v9152_v61  ;;  %v9290_v5 = vpop.f32.mrb[90].mxu1  ;;  %v9315_v27 = vrot.slane %v9152_v61, 4  ;;  %v9327_v30 = vld [vmem:[#allocation3 + $0x6] sm:$0x3f] }
0x2b18   :  { %v12404_v17 = vpop.f32.mrb[91].mxu1  ;;  %v9312_v3 = vadd.f32 %v16202_v43, %v9290_v5  ;;  %v9493_v60 = vrot.slane %v9327_v30, 4 }
0x2b19   :  { %v10993_v24 = vmul.f32 -1.442695, %v9305_v34 }
0x2b1a   :  { %v9505_v0 = vld [vmem:[#allocation3 + $0xc] sm:$0x3f] }
0x2b1b   :  { %14402 = vpow2.f32 %v10993_v24 }
0x2b25   :  { %v14403_v10 = vpop.eup %14402 }
0x2b26   :  { %v9309_v19 = vadd.f32 1.0, %v14403_v10 }
0x2b28   :  { %14404 = vrcp.f32 %v9309_v19  ;;  %v9671_v19 = vrot.slane %v9505_v0, 4 }
0x2b32   :  { %v14405_v62 = vpop.eup %14404 }
0x2b33   :  { %v9313_v58 = vmul.f32 %v14405_v62, %v9312_v3  ;;  %v9320_v29 = vrot.slane %v14405_v62, 2 }
0x2b35   :  { %v9317_v48 = vadd.f32 %v9315_v27, %v9313_v58  ;;  %v9322_v51 = vsub.f32 1.0, %v9320_v29  ;;  %v9324_v28 = vmul.f32 0.0, %v9320_v29 }
0x2b37   :  { %14406 = vtanh.f32 %v9317_v48 }
0x2b41   :  { %v14407_v18 = vpop.eup %14406 }
0x2b42   :  { %v9323_v26 = vmul.f32 %v14407_v18, %v9322_v51 }
0x2b44   :  { %v9325_v16 = vadd.f32 %v9324_v28, %v9323_v26 }
0x2b46   :  { %10994 = vmatmul.mubr.msk.f32.vlgmr.msra.gmra.mrb[102].mxu0 %vm154_vm1, %v9325_v16  ;;  %9326 = vst.msk [vmem:[#allocation2] sm:$0x3] %vm331_vm2, %v9325_v16  ;;  %12422 = vmatmul.mubr.msk.f32.vlgmr.msra.gmra.mrb[92].mxu1 %vm154_vm1, %v9325_v16 }
0x2b47   :  { %13931 = vmatpush1.bf16.msra.mxu0 %v16088_v63  ;;  %13946 = vmatpush3.bf16.msra.mxu1 %v16138_v53 }
0x2b48   :  { %13933 = vmatprep.subr.bf16.mxu0 %v16091_v20  ;;  %13947 = vmatprep.subr.bf16.mxu1 %v14605_v2 }
0x2b49   :  { %9573 = vmatprep.mubr.f32.mxu0 %v14604_v1  ;;  %12440 = vmatprep.mubr.msk.f32.mxu1 %vm14606_vm0, %v14604_v1 }
0x2b4b   :  { %13935 = vmatpush1.bf16.msra.mxu0 %v16094_v37  ;;  %13949 = vmatpush3.bf16.msra.mxu1 %v16144_v50 }
0x2b4c   :  { %13937 = vmatprep.subr.bf16.mxu0 %v16098_v31  ;;  %13950 = vmatprep.subr.bf16.mxu1 %v14605_v2 }
0x2b4f   :  { %13939 = vmatpush1.bf16.msra.mxu0 %v16101_v9  ;;  %13952 = vmatpush3.bf16.msra.mxu1 %v16151_v49 }
0x2b50   :  { %13941 = vmatprep.subr.bf16.mxu0 %v16103_v12  ;;  %13953 = vmatprep.subr.bf16.mxu1 %v14605_v2 }
0x2b53   :  { %13943 = vmatpush1.bf16.msra.mxu0 %v16107_v41  ;;  %13955 = vmatpush3.bf16.msra.mxu1 %v16158_v7 }
0x2b54   :  { %13957 = vmatprep.subr.bf16.mxu0 %v16086_v15  ;;  %13972 = vmatprep.subr.bf16.mxu1 %v14605_v2 }
0x2c19   :  { %v9397_v25 = vpop.f32.mrb[102].mxu0  ;;  %v9468_v6 = vpop.f32.mrb[92].mxu1 }
0x2c1a   :  { %v9399_v38 = vpop.f32.mrb[103].mxu0  ;;  %v12423_v52 = vpop.f32.mrb[93].mxu1  ;;  %v9490_v59 = vadd.f32 %v16202_v43, %v9468_v6 }
0x2c1b   :  { %v9474_v46 = vcombine.low %v9397_v25, %v9399_v38  ;;  %v9683_v38 = vld [vmem:[#allocation3 + $0x12] sm:$0x3f] }
0x2c1d   :  { %v9481_v35 = vrot.slane %v9474_v46, %v14812_v45 }
0x2c1f   :  { %v9483_v11 = vadd.f32 %v9481_v35, %v9327_v30 }
0x2c21   :  { %v10996_v56 = vmul.f32 -1.442695, %v9483_v11 }
0x2c23   :  { %14408 = vpow2.f32 %v10996_v56 }
0x2c2d   :  { %v14409_v13 = vpop.eup %14408 }
0x2c2e   :  { %v9487_v8 = vadd.f32 1.0, %v14409_v13 }
0x2c30   :  { %14410 = vrcp.f32 %v9487_v8  ;;  %v9849_v8 = vrot.slane %v9683_v38, 4 }
0x2c3a   :  { %v14411_v33 = vpop.eup %14410 }
0x2c3b   :  { %v9491_v32 = vmul.f32 %v14411_v33, %v9490_v59  ;;  %v9498_v47 = vrot.slane %v14411_v33, 2 }
0x2c3d   :  { %v9495_v44 = vadd.f32 %v9493_v60, %v9491_v32  ;;  %v9500_v54 = vsub.f32 1.0, %v9498_v47  ;;  %v9502_v39 = vmul.f32 %v9498_v47, %v9325_v16 }
0x2c3f   :  { %14412 = vtanh.f32 %v9495_v44 }
0x2c49   :  { %v14413_v55 = vpop.eup %14412 }
0x2c4a   :  { %v9501_v40 = vmul.f32 %v14413_v55, %v9500_v54 }
0x2c4c   :  { %v9503_v42 = vadd.f32 %v9502_v39, %v9501_v40 }
0x2c4e   :  { %10997 = vmatmul.mubr.msk.f32.vlgmr.msra.gmra.mrb[104].mxu0 %vm154_vm1, %v9503_v42  ;;  %9504 = vst.msk [vmem:[#allocation2 + $0x2] sm:$0x3] %vm331_vm2, %v9503_v42  ;;  %12441 = vmatmul.mubr.msk.f32.vlgmr.msra.gmra.mrb[94].mxu1 %vm154_vm1, %v9503_v42 }
0x2c4f   :  { %13959 = vmatpush1.bf16.msra.mxu0 %v16088_v63  ;;  %13974 = vmatpush3.bf16.msra.mxu1 %v16138_v53 }
0x2c50   :  { %13961 = vmatprep.subr.bf16.mxu0 %v16091_v20  ;;  %13975 = vmatprep.subr.bf16.mxu1 %v14605_v2 }
0x2c51   :  { %9751 = vmatprep.mubr.f32.mxu0 %v14604_v1  ;;  %12459 = vmatprep.mubr.msk.f32.mxu1 %vm14606_vm0, %v14604_v1 }
0x2c53   :  { %13963 = vmatpush1.bf16.msra.mxu0 %v16094_v37  ;;  %13977 = vmatpush3.bf16.msra.mxu1 %v16144_v50 }
0x2c54   :  { %13965 = vmatprep.subr.bf16.mxu0 %v16098_v31  ;;  %13978 = vmatprep.subr.bf16.mxu1 %v14605_v2 }
0x2c57   :  { %13967 = vmatpush1.bf16.msra.mxu0 %v16101_v9  ;;  %13980 = vmatpush3.bf16.msra.mxu1 %v16151_v49 }
0x2c58   :  { %13969 = vmatprep.subr.bf16.mxu0 %v16103_v12  ;;  %13981 = vmatprep.subr.bf16.mxu1 %v14605_v2 }
0x2c5b   :  { %13971 = vmatpush1.bf16.msra.mxu0 %v16107_v41  ;;  %13983 = vmatpush3.bf16.msra.mxu1 %v16158_v7 }
0x2c5c   :  { %13985 = vmatprep.subr.bf16.mxu0 %v16086_v15  ;;  %14000 = vmatprep.subr.bf16.mxu1 %v14605_v2 }
0x2d21   :  { %v9575_v36 = vpop.f32.mrb[104].mxu0  ;;  %v9646_v14 = vpop.f32.mrb[94].mxu1 }
0x2d22   :  { %v9577_v23 = vpop.f32.mrb[105].mxu0  ;;  %v12442_v4 = vpop.f32.mrb[95].mxu1  ;;  %v9668_v17 = vadd.f32 %v16202_v43, %v9646_v14 }
0x2d23   :  { %v9652_v57 = vcombine.low %v9575_v36, %v9577_v23  ;;  %v9861_v23 = vld [vmem:[#allocation3 + $0x18] sm:$0x3f] }
0x2d25   :  { %v9659_v22 = vrot.slane %v9652_v57, %v14812_v45 }
0x2d27   :  { %v9661_v21 = vadd.f32 %v9659_v22, %v9505_v0 }
0x2d29   :  { %v10999_v61 = vmul.f32 -1.442695, %v9661_v21 }
0x2d2b   :  { %14414 = vpow2.f32 %v10999_v61 }
0x2d35   :  { %v14415_v34 = vpop.eup %14414 }
0x2d36   :  { %v9665_v5 = vadd.f32 1.0, %v14415_v34 }
0x2d38   :  { %14416 = vrcp.f32 %v9665_v5  ;;  %v10027_v5 = vrot.slane %v9861_v23, 4 }
0x2d42   :  { %v14417_v24 = vpop.eup %14416 }
0x2d43   :  { %v9669_v10 = vmul.f32 %v14417_v24, %v9668_v17  ;;  %v9676_v62 = vrot.slane %v14417_v24, 2 }
0x2d45   :  { %v9673_v3 = vadd.f32 %v9671_v19, %v9669_v10  ;;  %v9678_v58 = vsub.f32 1.0, %v9676_v62  ;;  %v9680_v29 = vmul.f32 %v9676_v62, %v9503_v42 }
0x2d47   :  { %14418 = vtanh.f32 %v9673_v3 }
0x2d51   :  { %v14419_v27 = vpop.eup %14418 }
0x2d52   :  { %v9679_v48 = vmul.f32 %v14419_v27, %v9678_v58 }
0x2d54   :  { %v9681_v51 = vadd.f32 %v9680_v29, %v9679_v48 }
0x2d56   :  { %11000 = vmatmul.mubr.msk.f32.vlgmr.msra.gmra.mrb[106].mxu0 %vm154_vm1, %v9681_v51  ;;  %9682 = vst.msk [vmem:[#allocation2 + $0x4] sm:$0x3] %vm331_vm2, %v9681_v51  ;;  %12460 = vmatmul.mubr.msk.f32.vlgmr.msra.gmra.mrb[96].mxu1 %vm154_vm1, %v9681_v51 }
0x2d57   :  { %13987 = vmatpush1.bf16.msra.mxu0 %v16088_v63  ;;  %14002 = vmatpush3.bf16.msra.mxu1 %v16138_v53 }
0x2d58   :  { %13989 = vmatprep.subr.bf16.mxu0 %v16091_v20  ;;  %14003 = vmatprep.subr.bf16.mxu1 %v14605_v2 }
0x2d59   :  { %9929 = vmatprep.mubr.f32.mxu0 %v14604_v1  ;;  %12478 = vmatprep.mubr.msk.f32.mxu1 %vm14606_vm0, %v14604_v1 }
0x2d5b   :  { %13991 = vmatpush1.bf16.msra.mxu0 %v16094_v37  ;;  %14005 = vmatpush3.bf16.msra.mxu1 %v16144_v50 }
0x2d5c   :  { %13993 = vmatprep.subr.bf16.mxu0 %v16098_v31  ;;  %14006 = vmatprep.subr.bf16.mxu1 %v14605_v2 }
0x2d5f   :  { %13995 = vmatpush1.bf16.msra.mxu0 %v16101_v9  ;;  %14008 = vmatpush3.bf16.msra.mxu1 %v16151_v49 }
0x2d60   :  { %13997 = vmatprep.subr.bf16.mxu0 %v16103_v12  ;;  %14009 = vmatprep.subr.bf16.mxu1 %v14605_v2 }
0x2d63   :  { %13999 = vmatpush1.bf16.msra.mxu0 %v16107_v41  ;;  %14011 = vmatpush3.bf16.msra.mxu1 %v16158_v7 }
0x2d64   :  { %14013 = vmatprep.subr.bf16.mxu0 %v16086_v15  ;;  %14028 = vmatprep.subr.bf16.mxu1 %v14605_v2 }
0x2e29   :  { %v9753_v18 = vpop.f32.mrb[106].mxu0  ;;  %v9824_v26 = vpop.f32.mrb[96].mxu1 }
0x2e2a   :  { %v9755_v28 = vpop.f32.mrb[107].mxu0  ;;  %v12461_v16 = vpop.f32.mrb[97].mxu1  ;;  %v9846_v11 = vadd.f32 %v16202_v43, %v9824_v26 }
0x2e2b   :  { %v9830_v25 = vcombine.low %v9753_v18, %v9755_v28  ;;  %v10039_v28 = vld [vmem:[#allocation3 + $0x1e] sm:$0x3f] }
0x2e2d   :  { %v9837_v6 = vrot.slane %v9830_v25, %v14812_v45 }
0x2e2f   :  { %v9839_v52 = vadd.f32 %v9837_v6, %v9683_v38 }
0x2e31   :  { %v11002_v46 = vmul.f32 -1.442695, %v9839_v52 }
0x2e33   :  { %14420 = vpow2.f32 %v11002_v46 }
0x2e3d   :  { %v14421_v35 = vpop.eup %14420 }
0x2e3e   :  { %v9843_v30 = vadd.f32 1.0, %v14421_v35  ;;  %v10205_v35 = vrot.slane %v10039_v28, 4 }
0x2e40   :  { %14422 = vrcp.f32 %v9843_v30 }
0x2e4a   :  { %v14423_v56 = vpop.eup %14422 }
0x2e4b   :  { %v9847_v13 = vmul.f32 %v14423_v56, %v9846_v11  ;;  %v9854_v33 = vrot.slane %v14423_v56, 2 }
0x2e4d   :  { %v9851_v59 = vadd.f32 %v9849_v8, %v9847_v13  ;;  %v9856_v32 = vsub.f32 1.0, %v9854_v33  ;;  %v9858_v47 = vmul.f32 %v9854_v33, %v9681_v51 }
0x2e4f   :  { %14424 = vtanh.f32 %v9851_v59 }
0x2e59   :  { %v14425_v60 = vpop.eup %14424 }
0x2e5a   :  { %v9857_v44 = vmul.f32 %v14425_v60, %v9856_v32 }
0x2e5c   :  { %v9859_v54 = vadd.f32 %v9858_v47, %v9857_v44 }
0x2e5e   :  { %11003 = vmatmul.mubr.msk.f32.vlgmr.msra.gmra.mrb[108].mxu0 %vm154_vm1, %v9859_v54  ;;  %9860 = vst.msk [vmem:[#allocation2 + $0x6] sm:$0x3] %vm331_vm2, %v9859_v54  ;;  %12479 = vmatmul.mubr.msk.f32.vlgmr.msra.gmra.mrb[98].mxu1 %vm154_vm1, %v9859_v54 }
0x2e5f   :  { %14015 = vmatpush1.bf16.msra.mxu0 %v16088_v63  ;;  %14030 = vmatpush3.bf16.msra.mxu1 %v16138_v53 }
0x2e60   :  { %14017 = vmatprep.subr.bf16.mxu0 %v16091_v20  ;;  %14031 = vmatprep.subr.bf16.mxu1 %v14605_v2 }
0x2e61   :  { %10107 = vmatprep.mubr.f32.mxu0 %v14604_v1  ;;  %12497 = vmatprep.mubr.msk.f32.mxu1 %vm14606_vm0, %v14604_v1 }
0x2e63   :  { %14019 = vmatpush1.bf16.msra.mxu0 %v16094_v37  ;;  %14033 = vmatpush3.bf16.msra.mxu1 %v16144_v50 }
0x2e64   :  { %14021 = vmatprep.subr.bf16.mxu0 %v16098_v31  ;;  %14034 = vmatprep.subr.bf16.mxu1 %v14605_v2 }
0x2e65   :  { %v10576_v47 = vld [vmem:[#allocation2 + $0x6] sm:$0x3] }
0x2e67   :  { %14023 = vmatpush1.bf16.msra.mxu0 %v16101_v9  ;;  %14036 = vmatpush3.bf16.msra.mxu1 %v16151_v49 }
0x2e68   :  { %14025 = vmatprep.subr.bf16.mxu0 %v16103_v12  ;;  %14037 = vmatprep.subr.bf16.mxu1 %v14605_v2 }
0x2e6b   :  { %14027 = vmatpush1.bf16.msra.mxu0 %v16107_v41  ;;  %14039 = vmatpush3.bf16.msra.mxu1 %v16158_v7 }
0x2e6c   :  { %14041 = vmatprep.subr.bf16.mxu0 %v16086_v15  ;;  %14056 = vmatprep.subr.bf16.mxu1 %v14605_v2 }
0x2f31   :  { %v9931_v55 = vpop.f32.mrb[108].mxu0  ;;  %v10002_v40 = vpop.f32.mrb[98].mxu1 }
0x2f32   :  { %v9933_v39 = vpop.f32.mrb[109].mxu0  ;;  %v12480_v42 = vpop.f32.mrb[99].mxu1  ;;  %v10024_v21 = vadd.f32 %v16202_v43, %v10002_v40  ;;  %v10575_v40 = vld [vmem:[#allocation2 + $0x4] sm:$0x3] }
0x2f33   :  { %v10008_v36 = vcombine.low %v9931_v55, %v9933_v39  ;;  %v10574_v55 = vld [vmem:[#allocation2 + $0x2] sm:$0x3]  ;;  %v10605_v39 = vcombine.low %v10575_v40, %v10576_v47  ;;  %v10573_v42 = vld [vmem:[#allocation2] sm:$0x3] }
0x2f35   :  { %v10015_v14 = vrot.slane %v10008_v36, %v14812_v45  ;;  %v10604_v36 = vcombine.low %v10573_v42, %v10574_v55 }
0x2f37   :  { %v10017_v4 = vadd.f32 %v10015_v14, %v9861_v23 }
0x2f39   :  { %v11005_v57 = vmul.f32 -1.442695, %v10017_v4  ;;  %v10619_v4 = vrot.slane %v10605_v39, %v14812_v45 }
0x2f3b   :  { %14426 = vpow2.f32 %v11005_v57 }
0x2f45   :  { %v14427_v22 = vpop.eup %14426 }
0x2f46   :  { %v10021_v0 = vadd.f32 1.0, %v14427_v22 }
0x2f48   :  { %14428 = vrcp.f32 %v10021_v0  ;;  %v10612_v0 = vrot.slane %v10604_v36, %v14812_v45 }
0x2f52   :  { %v14429_v61 = vpop.eup %14428 }
0x2f53   :  { %v10025_v34 = vmul.f32 %v14429_v61, %v10024_v21  ;;  %v10032_v24 = vrot.slane %v14429_v61, 2  ;;  %v10620_v61 = vcombine.low %v10612_v0, %v10619_v4 }
0x2f55   :  { %v10029_v17 = vadd.f32 %v10027_v5, %v10025_v34  ;;  %v10034_v10 = vsub.f32 1.0, %v10032_v24  ;;  %v10036_v62 = vmul.f32 %v10032_v24, %v9859_v54  ;;  %v10581_v34 = vld [vmem:[#allocation12] sm:$0xff]  ;;  %v10582_v5 = vld [vmem:[#allocation12 + $0x8] sm:$0xff]  ;;  %v10583_v24 = vld [vmem:[#allocation12 + $0x10] sm:$0xff] }
0x2f57   :  { %14430 = vtanh.f32 %v10029_v17  ;;  %v14096_v17 = vpack.c.bf16 %v10582_v5, %v10581_v34 }
0x2f61   :  { %v14431_v19 = vpop.eup %14430 }
0x2f62   :  { %v10035_v3 = vmul.f32 %v14431_v19, %v10034_v10  ;;  %v10584_v10 = vld [vmem:[#allocation12 + $0x18] sm:$0xff]  ;;  %v10585_v19 = vld [vmem:[#allocation12 + $0x20] sm:$0xff] }
0x2f64   :  { %v10037_v58 = vadd.f32 %v10036_v62, %v10035_v3  ;;  %v14100_v3 = vpack.c.bf16 %v10584_v10, %v10583_v24  ;;  %v10586_v62 = vld [vmem:[#allocation12 + $0x28] sm:$0xff]  ;;  %v10734_v24 = vld [vmem:[#allocation13 + $0x78] sm:$0xff] }
0x2f66   :  { %11006 = vmatmul.mubr.msk.f32.vlgmr.msra.gmra.mrb[110].mxu0 %vm154_vm1, %v10037_v58  ;;  %10038 = vst.msk [vmem:[#allocation2 + $0x8] sm:$0x3] %vm331_vm2, %v10037_v58  ;;  %12498 = vmatmul.mubr.msk.f32.vlgmr.msra.gmra.mrb[100].mxu1 %vm154_vm1, %v10037_v58 }
0x2f67   :  { %14043 = vmatpush1.bf16.msra.mxu0 %v16088_v63  ;;  %14058 = vmatpush3.bf16.msra.mxu1 %v16138_v53 }
0x2f68   :  { %14045 = vmatprep.subr.bf16.mxu0 %v16091_v20  ;;  %14059 = vmatprep.subr.bf16.mxu1 %v14605_v2 }
0x2f69   :  { %10285 = vmatprep.mubr.f32.mxu0 %v14604_v1  ;;  %12516 = vmatprep.mubr.msk.f32.mxu1 %vm14606_vm0, %v14604_v1 }
0x2f6b   :  { %14047 = vmatpush1.bf16.msra.mxu0 %v16094_v37  ;;  %14061 = vmatpush3.bf16.msra.mxu1 %v16144_v50 }
0x2f6c   :  { %14049 = vmatprep.subr.bf16.mxu0 %v16098_v31  ;;  %14062 = vmatprep.subr.bf16.mxu1 %v14605_v2 }
0x2f6d   :  { %v10577_v4 = vld [vmem:[#allocation2 + $0x8] sm:$0x3] }
0x2f6f   :  { %14051 = vmatpush1.bf16.msra.mxu0 %v16101_v9  ;;  %14064 = vmatpush3.bf16.msra.mxu1 %v16151_v49 }
0x2f70   :  { %14053 = vmatprep.subr.bf16.mxu0 %v16103_v12  ;;  %14065 = vmatprep.subr.bf16.mxu1 %v14605_v2 }
0x2f73   :  { %14055 = vmatpush1.bf16.msra.mxu0 %v16107_v41  ;;  %14067 = vmatpush3.bf16.msra.mxu1 %v16158_v7 }
0x2f74   :  { %14069 = vmatprep.subr.bf16.mxu0 %v16086_v15  ;;  %14084 = vmatprep.subr.bf16.mxu1 %v14605_v2 }
0x3039   :  { %v10109_v27 = vpop.f32.mrb[110].mxu0  ;;  %v10180_v48 = vpop.f32.mrb[100].mxu1 }
0x303a   :  { %v10111_v29 = vpop.f32.mrb[111].mxu0  ;;  %v12499_v51 = vpop.f32.mrb[101].mxu1  ;;  %v10202_v52 = vadd.f32 %v16202_v43, %v10180_v48  ;;  %v10588_v48 = vld [vmem:[#allocation12 + $0x38] sm:$0xff] }
0x303b   :  { %v10186_v18 = vcombine.low %v10109_v27, %v10111_v29  ;;  %v10587_v27 = vld [vmem:[#allocation12 + $0x30] sm:$0xff]  ;;  %v10719_v51 = vld [vmem:[#allocation13] sm:$0xff] }
0x303c   :  { %v14108_v29 = vpack.c.bf16 %v10588_v48, %v10587_v27 }
0x303d   :  { %v10193_v26 = vrot.slane %v10186_v18, %v14812_v45  ;;  %v10720_v18 = vld [vmem:[#allocation13 + $0x8] sm:$0xff] }
0x303f   :  { %v10195_v16 = vadd.f32 %v10193_v26, %v10039_v28  ;;  %v10721_v26 = vld [vmem:[#allocation13 + $0x10] sm:$0xff]  ;;  %v14112_v28 = vpack.c.bf16 %v10720_v18, %v10719_v51 }
0x3041   :  { %v11008_v25 = vmul.f32 -1.442695, %v10195_v16  ;;  %v10722_v16 = vld [vmem:[#allocation13 + $0x18] sm:$0xff] }
0x3043   :  { %14432 = vpow2.f32 %v11008_v25  ;;  %v14116_v25 = vpack.c.bf16 %v10722_v16, %v10721_v26 }
0x304d   :  { %v14433_v6 = vpop.eup %14432 }
0x304e   :  { %v10199_v38 = vadd.f32 1.0, %v14433_v6  ;;  %v10723_v6 = vld [vmem:[#allocation13 + $0x20] sm:$0xff] }
0x3050   :  { %14434 = vrcp.f32 %v10199_v38  ;;  %v10724_v38 = vld [vmem:[#allocation13 + $0x28] sm:$0xff] }
0x305a   :  { %v14435_v46 = vpop.eup %14434 }
0x305b   :  { %v10203_v15 = vmul.f32 %v14435_v46, %v10202_v52  ;;  %v10210_v11 = vrot.slane %v14435_v46, 2  ;;  %v14120_v52 = vpack.c.bf16 %v10724_v38, %v10723_v6  ;;  %v10725_v46 = vld [vmem:[#allocation13 + $0x30] sm:$0xff] }
0x305d   :  { %v10207_v30 = vadd.f32 %v10205_v35, %v10203_v15  ;;  %v10212_v56 = vsub.f32 1.0, %v10210_v11  ;;  %v10214_v59 = vmul.f32 %v10210_v11, %v10037_v58  ;;  %v14104_v58 = vpack.c.bf16 %v10586_v62, %v10585_v19  ;;  %v10726_v15 = vld [vmem:[#allocation13 + $0x38] sm:$0xff]  ;;  %v10728_v11 = vld [vmem:[#allocation13 + $0x48] sm:$0xff] }
0x305e   :  { %v14124_v35 = vpack.c.bf16 %v10726_v15, %v10725_v46 }
0x305f   :  { %14436 = vtanh.f32 %v10207_v30  ;;  %v10727_v30 = vld [vmem:[#allocation13 + $0x40] sm:$0xff] }
0x3069   :  { %v14437_v13 = vpop.eup %14436 }
0x306a   :  { %v10213_v8 = vmul.f32 %v14437_v13, %v10212_v56  ;;  %v14128_v56 = vpack.c.bf16 %v10728_v11, %v10727_v30  ;;  %v10729_v13 = vld [vmem:[#allocation13 + $0x50] sm:$0xff] }
0x306c   :  { %v10215_v33 = vadd.f32 %v10214_v59, %v10213_v8  ;;  %v10730_v8 = vld [vmem:[#allocation13 + $0x58] sm:$0xff] }
0x306d   :  { %v14132_v59 = vpack.c.bf16 %v10730_v8, %v10729_v13 }
0x306e   :  { %11009 = vmatmul.mubr.msk.f32.vlgmr.msra.gmra.mrb[112].mxu0 %vm154_vm1, %v10215_v33  ;;  %10216 = vst.msk [vmem:[#allocation2 + $0xa] sm:$0x3] %vm331_vm2, %v10215_v33  ;;  %12517 = vmatmul.mubr.msk.f32.vlgmr.msra.gmra.mrb[102].mxu1 %vm154_vm1, %v10215_v33 }
0x306f   :  { %14071 = vmatpush1.bf16.msra.mxu0 %v16088_v63  ;;  %14086 = vmatpush3.bf16.msra.mxu1 %v16138_v53 }
0x3070   :  { %14073 = vmatprep.subr.bf16.mxu0 %v16091_v20  ;;  %14087 = vmatprep.subr.bf16.mxu1 %v14605_v2 }
0x3071   :  { %10463 = vmatprep.mubr.f32.mxu0 %v14604_v1  ;;  %12535 = vmatprep.mubr.msk.f32.mxu1 %vm14606_vm0, %v14604_v1 }
0x3073   :  { %14075 = vmatpush1.bf16.msra.mxu0 %v16094_v37  ;;  %14089 = vmatpush3.bf16.msra.mxu1 %v16144_v50  ;;  %v10217_v50 = vld [vmem:[#allocation3 + $0x24] sm:$0x3f] }
0x3074   :  { %14077 = vmatprep.subr.bf16.mxu0 %v16098_v31  ;;  %14090 = vmatprep.subr.bf16.mxu1 %v14605_v2  ;;  %v10383_v44 = vrot.slane %v10217_v50, 4 }
0x3077   :  { %14079 = vmatpush1.bf16.msra.mxu0 %v16101_v9  ;;  %14092 = vmatpush3.bf16.msra.mxu1 %v16151_v49 }
0x3078   :  { %14081 = vmatprep.subr.bf16.mxu0 %v16103_v12  ;;  %14093 = vmatprep.subr.bf16.mxu1 %v14605_v2 }
0x307b   :  { %14083 = vmatpush1.bf16.msra.mxu0 %v16107_v41  ;;  %14095 = vmatpush3.bf16.msra.mxu1 %v16158_v7 }
0x307c   :  { %14097 = vmatprep.subr.bf16.mxu0 %v14096_v17  ;;  %14113 = vmatprep.subr.bf16.mxu1 %v14112_v28 }
0x3141   :  { %v10287_v1 = vpop.f32.mrb[112].mxu0  ;;  %v10358_v63 = vpop.f32.mrb[102].mxu1 }
0x3142   :  { %v10289_v20 = vpop.f32.mrb[113].mxu0  ;;  %v12518_v37 = vpop.f32.mrb[103].mxu1  ;;  %v10380_v2 = vadd.f32 %v16202_v43, %v10358_v63 }
0x3143   :  { %v10364_v53 = vcombine.low %v10287_v1, %v10289_v20  ;;  %v10732_v1 = vld [vmem:[#allocation13 + $0x68] sm:$0xff] }
0x3145   :  { %v10371_v31 = vrot.slane %v10364_v53, %v14812_v45 }
0x3147   :  { %v10373_v32 = vadd.f32 %v10371_v31, %v10217_v50 }
0x3149   :  { %v11011_v9 = vmul.f32 -1.442695, %v10373_v32 }
0x314b   :  { %14438 = vpow2.f32 %v11011_v9  ;;  %v10395_v9 = vld [vmem:[#allocation3 + $0x2a] sm:$0x3f] }
0x314c   :  { %v10561_v47 = vrot.slane %v10395_v9, 4 }
0x3155   :  { %v14439_v49 = vpop.eup %14438 }
0x3156   :  { %v10377_v60 = vadd.f32 1.0, %v14439_v49 }
0x3158   :  { %14440 = vrcp.f32 %v10377_v60 }
0x3162   :  { %v14441_v12 = vpop.eup %14440 }
0x3163   :  { %v10381_v41 = vmul.f32 %v14441_v12, %v10380_v2  ;;  %v10388_v54 = vrot.slane %v14441_v12, 2 }
0x3165   :  { %v10385_v7 = vadd.f32 %v10383_v44, %v10381_v41  ;;  %v10390_v14 = vsub.f32 1.0, %v10388_v54  ;;  %v10392_v22 = vmul.f32 %v10388_v54, %v10215_v33  ;;  %v10731_v33 = vld [vmem:[#allocation13 + $0x60] sm:$0xff] }
0x3166   :  { %v14136_v63 = vpack.c.bf16 %v10732_v1, %v10731_v33 }
0x3167   :  { %14442 = vtanh.f32 %v10385_v7 }
0x3171   :  { %v14443_v23 = vpop.eup %14442 }
0x3172   :  { %v10391_v57 = vmul.f32 %v14443_v23, %v10390_v14  ;;  %v10578_v23 = vld [vmem:[#allocation2 + $0xa] sm:$0x3] }
0x3174   :  { %v16349_v21 = vadd.f32 %v10392_v22, %v10391_v57  ;;  %v10621_v57 = vcombine.low %v10577_v4, %v10578_v23 }
0x3176   :  { %11012 = vmatmul.mubr.msk.f32.vlgmr.msra.gmra.mrb[114].mxu0 %vm154_vm1, %v16349_v21  ;;  %10394 = vst.msk [vmem:[#allocation2 + $0xc] sm:$0x3] %vm331_vm2, %v16349_v21  ;;  %12536 = vmatmul.mubr.msk.f32.vlgmr.msra.gmra.mrb[104].mxu1 %vm154_vm1, %v16349_v21 }
0x3177   :  { %12554 = vmatprep.mubr.msk.f32.mxu0 %vm154_vm1, %v10620_v61  ;;  %14099 = vmatpush3.bf16.msra.mxu0 %v14096_v17  ;;  %v10629_v61 = vrot.slane %v10621_v57, %v14812_v45  ;;  %v10733_v17 = vld [vmem:[#allocation13 + $0x70] sm:$0xff] }
0x3178   :  { %14101 = vmatprep.subr.bf16.mxu0 %v14100_v3  ;;  %14115 = vmatpush3.bf16.msra.mxu1 %v14112_v28  ;;  %v14140_v10 = vpack.c.bf16 %v10734_v24, %v10733_v17  ;;  %v11019_v28 = vld [vmem:[%s16389_s9] ss:$0 sm:$0xff] }
0x3179   :  { %14117 = vmatprep.subr.bf16.mxu1 %v14116_v25 }
0x317b   :  { %14103 = vmatpush3.bf16.msra.mxu0 %v14100_v3 }
0x317c   :  { %14105 = vmatprep.subr.bf16.mxu0 %v14104_v58  ;;  %14119 = vmatpush3.bf16.msra.mxu1 %v14116_v25 }
0x317d   :  { %14121 = vmatprep.subr.bf16.mxu1 %v14120_v52  ;;  %v10579_v22 = vld [vmem:[#allocation2 + $0xc] sm:$0x3] }
0x317f   :  { %14107 = vmatpush3.bf16.msra.mxu0 %v14104_v58 }
0x3180   :  { %14109 = vmatprep.subr.bf16.mxu0 %v14108_v29  ;;  %14123 = vmatpush3.bf16.msra.mxu1 %v14120_v52  ;;  %v11020_v52 = vld [vmem:[#allocation4] ss:$0 sm:$0xff] }
0x3181   :  { %14125 = vmatprep.subr.bf16.mxu1 %v14124_v35 }
0x3183   :  { %14111 = vmatpush3.bf16.msra.mxu0 %v14108_v29 }
0x3184   :  { %14127 = vmatpush3.bf16.msra.mxu1 %v14124_v35 }
0x3185   :  { %14129 = vmatprep.subr.bf16.mxu1 %v14128_v56 }
0x3188   :  { %14131 = vmatpush3.bf16.msra.mxu1 %v14128_v56 }
0x3189   :  { %14133 = vmatprep.subr.bf16.mxu1 %v14132_v59 }
0x318c   :  { %14135 = vmatpush3.bf16.msra.mxu1 %v14132_v59 }
0x318d   :  { %14137 = vmatprep.subr.bf16.mxu1 %v14136_v63 }
0x3190   :  { %14139 = vmatpush3.bf16.msra.mxu1 %v14136_v63 }
0x3191   :  { %14141 = vmatprep.subr.bf16.mxu1 %v14140_v10 }
0x3194   :  { %14143 = vmatpush3.bf16.msra.mxu1 %v14140_v10 }
0x3249   :  { %v10465_v20 = vpop.f32.mrb[114].mxu0  ;;  %v10536_v37 = vpop.f32.mrb[104].mxu1 }
0x324a   :  { %v10467_v53 = vpop.f32.mrb[115].mxu0  ;;  %v12537_v31 = vpop.f32.mrb[105].mxu1  ;;  %v10558_v41 = vadd.f32 %v16202_v43, %v10536_v37 }
0x324b   :  { %v10542_v50 = vcombine.low %v10465_v20, %v10467_v53 }
0x324d   :  { %v10549_v32 = vrot.slane %v10542_v50, %v14812_v45 }
0x324f   :  { %v10551_v49 = vadd.f32 %v10549_v32, %v10395_v9 }
0x3251   :  { %v11014_v60 = vmul.f32 -1.442695, %v10551_v49 }
0x3253   :  { %14444 = vpow2.f32 %v11014_v60 }
0x325d   :  { %v14445_v2 = vpop.eup %14444 }
0x325e   :  { %v10555_v12 = vadd.f32 1.0, %v14445_v2 }
0x3260   :  { %14446 = vrcp.f32 %v10555_v12 }
0x326a   :  { %v14447_v44 = vpop.eup %14446 }
0x326b   :  { %v10559_v7 = vmul.f32 %v14447_v44, %v10558_v41  ;;  %v10566_v55 = vrot.slane %v14447_v44, 2 }
0x326d   :  { %v10563_v54 = vadd.f32 %v10561_v47, %v10559_v7  ;;  %v10568_v40 = vsub.f32 1.0, %v10566_v55  ;;  %v10570_v36 = vmul.f32 %v10566_v55, %v16349_v21  ;;  %v11015_v21 = vld [vmem:[%s16386_s6] ss:$0 sm:$0xff] }
0x326f   :  { %14448 = vtanh.f32 %v10563_v54 }
0x3279   :  { %v14449_v39 = vpop.eup %14448 }
0x327a   :  { %v10569_v42 = vmul.f32 %v14449_v39, %v10568_v40 }
0x327c   :  { %v10571_v14 = vadd.f32 %v10570_v36, %v10569_v42 }
0x327e   :  { %10572 = vst.msk [vmem:[#allocation2 + $0xe] sm:$0x3] %vm331_vm2, %v10571_v14 }
0x3285   :  { %v10580_v0 = vld [vmem:[#allocation2 + $0xe] sm:$0x3] }
0x3286   :  { %v10622_v43 = vcombine.low %v10579_v22, %v10580_v0 }
0x3288   :  { %v10636_v34 = vrot.slane %v10622_v43, %v14812_v45  ;;  %v11018_v45 = vld [vmem:[%s16388_s8] ss:$0 sm:$0xff] }
0x328a   :  { %v10637_v5 = vcombine.low %v10629_v61, %v10636_v34 }
0x328c   :  { %12555 = vmatmul.mubr.msk.f32.vlgmr.msra.gmra.mrb[116].mxu0 %vm154_vm1, %v10637_v5 }
0x335f   :  { %v12556_v19 = vpop.f32.mrb[116].mxu0 }
0x3360   :  { %v10714_v3 = vadd.f32 %v12556_v19, %v11015_v21  ;;  %v10708_v62 = vpop.f32.mrb[117].mxu0 }
0x3361   :  { %v10709_v58 = vadd.f32 %v11015_v21, %v10708_v62 }
0x3362   :  { %v10718_v48 = vmax.f32 %v10714_v3, 0.0 }
0x3363   :  { %v10717_v27 = vmax.f32 %v10709_v58, 0.0 }
0x3365   :  { %12589 = vmatprep.mubr.f32.mxu1 %v10717_v27 }
0x3366   :  { %12590 = vmatmul.mubr.f32.vlgmr.msra.gmra.mrb[106].mxu1 %v10718_v48 }
0x3439   :  { %v12591_v29 = vpop.f32.mrb[106].mxu1 }
0x343a   :  { %v10808_v51 = vpop.f32.mrb[107].mxu1  ;;  %v10814_v18 = vadd.f32 %v12591_v29, %v11018_v45 }
0x343b   :  { %v10809_v26 = vadd.f32 %v11018_v45, %v10808_v51 }
0x343c   :  { %v10818_v25 = vmax.f32 %v10814_v18, 0.0 }
0x343d   :  { %v10817_v16 = vmax.f32 %v10809_v26, 0.0 }
0x343e   :  { %v10827_v38 = vmul.f32 %v11019_v28, %v10818_v25 }
0x343f   :  { %v10826_v6 = vmul.f32 %v11019_v28, %v10817_v16 }
0x3441   :  { %10828 = vadd.xlane.f32.xlu0 %v10826_v6 }
0x3445   :  { %10830 = vadd.xlane.f32.xlu0 %v10827_v38 }
0x34ce   :  { %v10829_v46 = vpop.xlane.xlu0 %10828 }
0x34cf   :  { %v10839_v15 = vadd.f32 %v11020_v52, %v10829_v46 }
0x34d1   :  { %10842 = vst.msk [vmem:[%s16391_s11] sm:$0xff] %vm10841_vm3, %v10839_v15 }
0x34d2   :  { %v10831_v35 = vpop.xlane.xlu0 %10830 }
0x34d3   :  { %v10840_v30 = vadd.f32 %v11020_v52, %v10831_v35 }
0x34d5   :  { %10843 = vst.msk [vmem:[%s16391_s11 + $0x8] sm:$0xff] %vm10841_vm3, %v10840_v30 }
0x34d6   :  { %10848 = vsyncpa [#allocation6], 1 }
0x34d7   :  { %10849 = vsyncpa [#allocation8], 1 }
0x34d8   :  { %10850 = vsyncpa [#allocation11], 1 }
0x34d9   :  { %10851 = vsyncpa [#allocation14], 1 }

</bundles_post_ra>
